<compile_context>
chip_gen: v7x
topology: tpu7x:2x2x1
jax: 0.10.0
libtpu: 0.0.40
codegen_flags: <defaults>
</compile_context>

<pallas_src>
import math
import jax
import jax.numpy as jnp
from jax.experimental import pallas as pl
from jax.experimental.pallas import tpu as pltpu

# ---------------- Config (MultiHeadDecoder.__init__ arguments) ----------------
LATENT_DIM = 8
OUTPUT_CHANNELS = 4
NUM_HEADS = 2
OUTPUT_SIZE = 16
HIDDEN_DIM = 32
START_SIZE = 4
UPSCALE_FACTOR = int(math.log2(OUTPUT_SIZE / START_SIZE))
assert 2 ** UPSCALE_FACTOR == OUTPUT_SIZE // START_SIZE
assert UPSCALE_FACTOR >= 2
BN_EPS = 1e-5


# ------------------------------ in-kernel helpers ------------------------------
def _convt_stride2_phase(x, w_phases):
    """ConvTranspose2d(kernel=4, stride=2, padding=1, bias=False), phase-decomposed.

    x:         (B, H, W, Cin)  NHWC activation value (stays in VMEM/vregs).
    w_phases:  (4, 4*Cin, Cout) packed weight. Phase p = 2*ph + pw (output parities);
               K-block d = 2*dh + dw holds W_pt[:, :, 3 - ph - 2*dh, 3 - pw - 2*dw].
    returns:   (B, 2H, 2W, Cout) float32.
    """
    B, H, W, Cin = x.shape
    Cout = w_phases.shape[-1]

    # Pad by 1 on each spatial side (covers the boundary taps of every phase).
    zrow = jnp.zeros((B, 1, W, Cin), x.dtype)
    xp = jnp.concatenate([zrow, x, zrow], axis=1)              # (B, H+2, W,   Cin)
    zcol = jnp.zeros((B, H + 2, 1, Cin), x.dtype)
    xp = jnp.concatenate([zcol, xp, zcol], axis=2)             # (B, H+2, W+2, Cin)

    rows = []
    for ph in range(2):                                        # output row parity
        cols = []
        for pw in range(2):                                    # output col parity
            wp = w_phases[2 * ph + pw]                         # (4*Cin, Cout)
            acc = jnp.zeros((B * H * W, Cout), jnp.float32)
            for dh in range(2):                                # 2x2 taps per phase
                for dw in range(2):
                    tap = xp[:, ph + dh:ph + dh + H, pw + dw:pw + dw + W, :]
                    d = 2 * dh + dw
                    wd = wp[d * Cin:(d + 1) * Cin, :]
                    acc = acc + jnp.dot(tap.reshape(B * H * W, Cin), wd,
                                        preferred_element_type=jnp.float32)
            cols.append(acc.reshape(B * H * W, 1, Cout))
        # interleave the two column-parity results along W
        row = jnp.concatenate(cols, axis=1).reshape(B * H, 2 * W, Cout)
        rows.append(row.reshape(B * H, 1, 2 * W, Cout))
    # interleave the two row-parity results along H
    return jnp.concatenate(rows, axis=1).reshape(B, 2 * H, 2 * W, Cout)


# --------------------------------- fused kernel --------------------------------
def _decoder_kernel(z_ref, wsh_ref, bsh_ref, w0_ref, gamma_ref, beta_ref,
                    wmid_ref, wto_ref, wout_ref, o_ref):
    B = z_ref.shape[0]

    # ---- shared_layers: Linear(latent_dim, this head's hidden slice) + ReLU ----
    h = jnp.dot(z_ref[...], wsh_ref[0], preferred_element_type=jnp.float32)
    h = jnp.maximum(h + bsh_ref[0], 0.0)                       # (B, HIDDEN_DIM)

    # ---- first ConvTranspose2d on the 1x1 map: only taps (kh,kw) in {1,2}^2 hit data ----
    w0 = w0_ref[0]                                             # (4, HID, HID), p = 2*oh + ow
    ys = [jnp.dot(h, w0[p], preferred_element_type=jnp.float32) for p in range(4)]

    # ---- BatchNorm2d (training-mode batch stats over N,H,W) fused with ReLU ----
    ycat = jnp.concatenate(ys, axis=0)                         # (4*B, HID)
    mean = jnp.mean(ycat, axis=0, keepdims=True)
    var = jnp.mean(jnp.square(ycat - mean), axis=0, keepdims=True)
    ycat = (ycat - mean) * jax.lax.rsqrt(var + BN_EPS) * gamma_ref[0] + beta_ref[0]
    ycat = jnp.maximum(ycat, 0.0)
    # TODO(synk): running_mean / running_var buffer updates (training side effect) are not
    # part of the forward output and are not materialized here.

    # assemble NHWC (B, 2, 2, HID); pixel p = 2*oh + ow
    y = [ycat[p * B:(p + 1) * B].reshape(B, 1, 1, HIDDEN_DIM) for p in range(4)]
    top = jnp.concatenate([y[0], y[1]], axis=2)                # (B, 1, 2, HID)
    bot = jnp.concatenate([y[2], y[3]], axis=2)
    x = jnp.concatenate([top, bot], axis=1)                    # (B, 2, 2, HID)

    # ---- middle ConvTranspose2d stages (hidden -> hidden), no BN/ReLU per reference ----
    wmid = wmid_ref[0]                                         # ((UF-1)*4, 4*HID, HID)
    for j in range(UPSCALE_FACTOR - 1):
        x = _convt_stride2_phase(x, wmid[j * 4:(j + 1) * 4])

    # ---- hidden -> output_channels, then output_channels -> output_channels ----
    x = _convt_stride2_phase(x, wto_ref[0])
    x = _convt_stride2_phase(x, wout_ref[0])                   # (B, S, S, OUT_C)

    # ---- lane-dense NCHW store: per head (B, 1, OUT_C, S*S), lane width = 256 ----
    S = x.shape[1]
    assert S == OUTPUT_SIZE
    xf = x.reshape(B, S * S, OUTPUT_CHANNELS)
    planes = [xf[b].T.reshape(1, 1, OUTPUT_CHANNELS, S * S) for b in range(B)]
    o_ref[...] = jnp.concatenate(planes, axis=0)               # (B, 1, OUT_C, S*S)


# ------------------- one-time weight packing (hoisted out of forward) ----------
def _pack_first_convt(w_pt):
    # (Cin, Cout, 4, 4) -> (4, Cin, Cout); output pixel p = 2*oh + ow uses tap (oh+1, ow+1).
    return jnp.stack([w_pt[:, :, oh + 1, ow + 1]
                      for oh in range(2) for ow in range(2)], axis=0)


def _pack_convt_phases(w_pt):
    # (Cin, Cout, 4, 4) -> (4, 4*Cin, Cout) for the phase-decomposed stride-2 transpose conv.
    phases = []
    for ph in range(2):
        for pw in range(2):
            blocks = [w_pt[:, :, 3 - ph - 2 * dh, 3 - pw - 2 * dw]
                      for dh in range(2) for dw in range(2)]   # each (Cin, Cout)
            phases.append(jnp.concatenate(blocks, axis=0))     # (4*Cin, Cout)
    return jnp.stack(phases, axis=0)


def pack_params(params):
    """Repack PyTorch-layout parameters into kernel-friendly per-head tensors (done once)."""
    heads = params["heads"]
    return {
        "w_shared": params["w_shared"].reshape(
            LATENT_DIM, NUM_HEADS, HIDDEN_DIM).transpose(1, 0, 2),        # (NH, LD, HID)
        "b_shared": params["b_shared"].reshape(NUM_HEADS, 1, HIDDEN_DIM),  # (NH, 1, HID)
        "w0": jnp.stack([_pack_first_convt(hd["w_convs"][0]) for hd in heads]),
        "gamma": jnp.stack([hd["gamma"] for hd in heads]),                 # (NH, 1, HID)
        "beta": jnp.stack([hd["beta"] for hd in heads]),
        "w_mid": jnp.stack([jnp.concatenate(
            [_pack_convt_phases(hd["w_convs"][j]) for j in range(1, UPSCALE_FACTOR)],
            axis=0) for hd in heads]),                                     # (NH, (UF-1)*4, 4*HID, HID)
        "w_to_out": jnp.stack([_pack_convt_phases(hd["w_to_out"]) for hd in heads]),
        "w_out": jnp.stack([_pack_convt_phases(hd["w_out"]) for hd in heads]),
    }


# ------------------------- Parameters (deterministic, PyTorch layout) ----------
def init_params(key):
    keys = jax.random.split(key, 2 + NUM_HEADS)
    params = {
        "w_shared": 0.1 * jax.random.normal(
            keys[0], (LATENT_DIM, NUM_HEADS * HIDDEN_DIM), jnp.float32),
        "b_shared": 0.1 * jax.random.normal(
            keys[1], (1, NUM_HEADS * HIDDEN_DIM), jnp.float32),
        "heads": [],
    }
    for h in range(NUM_HEADS):
        hk = jax.random.split(keys[2 + h], UPSCALE_FACTOR + 2)
        head = {
            "w_convs": [0.1 * jax.random.normal(hk[j], (HIDDEN_DIM, HIDDEN_DIM, 4, 4),
                                                jnp.float32)
                        for j in range(UPSCALE_FACTOR)],
            "gamma": jnp.ones((1, HIDDEN_DIM), jnp.float32),   # BatchNorm2d weight
            "beta": jnp.zeros((1, HIDDEN_DIM), jnp.float32),   # BatchNorm2d bias
            "w_to_out": 0.1 * jax.random.normal(
                hk[UPSCALE_FACTOR], (HIDDEN_DIM, OUTPUT_CHANNELS, 4, 4), jnp.float32),
            "w_out": 0.1 * jax.random.normal(
                hk[UPSCALE_FACTOR + 1], (OUTPUT_CHANNELS, OUTPUT_CHANNELS, 4, 4),
                jnp.float32),
        }
        params["heads"].append(head)
    return params


# --------------------------------- Forward -------------------------------------
@jax.jit
def multi_head_decoder_forward(z, packed):
    # z: (B, latent_dim) -> (B, num_heads*output_channels, output_size, output_size)
    B = z.shape[0]
    SS = OUTPUT_SIZE * OUTPUT_SIZE
    out = pl.pallas_call(
        _decoder_kernel,
        out_shape=jax.ShapeDtypeStruct((B, NUM_HEADS, OUTPUT_CHANNELS, SS), jnp.float32),
        grid=(NUM_HEADS,),
        in_specs=[
            pl.BlockSpec((B, LATENT_DIM), lambda h: (0, 0)),                       # z
            pl.BlockSpec((1, LATENT_DIM, HIDDEN_DIM), lambda h: (h, 0, 0)),        # w_shared
            pl.BlockSpec((1, 1, HIDDEN_DIM), lambda h: (h, 0, 0)),                 # b_shared
            pl.BlockSpec((1, 4, HIDDEN_DIM, HIDDEN_DIM), lambda h: (h, 0, 0, 0)),  # w0
            pl.BlockSpec((1, 1, HIDDEN_DIM), lambda h: (h, 0, 0)),                 # gamma
            pl.BlockSpec((1, 1, HIDDEN_DIM), lambda h: (h, 0, 0)),                 # beta
            pl.BlockSpec((1, (UPSCALE_FACTOR - 1) * 4, 4 * HIDDEN_DIM, HIDDEN_DIM),
                         lambda h: (h, 0, 0, 0)),                                  # w_mid
            pl.BlockSpec((1, 4, 4 * HIDDEN_DIM, OUTPUT_CHANNELS),
                         lambda h: (h, 0, 0, 0)),                                  # w_to_out
            pl.BlockSpec((1, 4, 4 * OUTPUT_CHANNELS, OUTPUT_CHANNELS),
                         lambda h: (h, 0, 0, 0)),                                  # w_out
        ],
        out_specs=pl.BlockSpec((B, 1, OUTPUT_CHANNELS, SS), lambda h: (0, h, 0, 0)),
        compiler_params=pltpu.CompilerParams(dimension_semantics=("parallel",)),
    )(z, packed["w_shared"], packed["b_shared"], packed["w0"], packed["gamma"],
      packed["beta"], packed["w_mid"], packed["w_to_out"], packed["w_out"])
    # Pure (free) reshape: (B, NH, C, S*S) -> NCHW (B, NH*C, S, S); no transpose/concat.
    return out.reshape(B, NUM_HEADS * OUTPUT_CHANNELS, OUTPUT_SIZE, OUTPUT_SIZE)


if __name__ == "__main__":
    key = jax.random.PRNGKey(0)
    pkey, zkey = jax.random.split(key)
    params = init_params(pkey)
    packed = pack_params(params)                 # one-time weight repack (hoisted)
    z = jax.random.normal(zkey, (2, LATENT_DIM), jnp.float32)   # batch=2
    out = multi_head_decoder_forward(z, packed)
    out = jax.block_until_ready(out)
    expected = (2, NUM_HEADS * OUTPUT_CHANNELS, OUTPUT_SIZE, OUTPUT_SIZE)
    assert out.shape == expected, (out.shape, expected)
    assert bool(jnp.all(jnp.isfinite(out)))
    print("KERNEL_OK")
</pallas_src>

<mosaic_0001>
module attributes {stable_mosaic.version = 11 : i64} {
  func.func @_decoder_kernel(%arg0: i32, %arg1: memref<2x8xf32, #tpu.memory_space<vmem>>, %arg2: memref<1x8x32xf32, #tpu.memory_space<vmem>>, %arg3: memref<1x1x32xf32, #tpu.memory_space<vmem>>, %arg4: memref<1x4x32x32xf32, #tpu.memory_space<vmem>>, %arg5: memref<1x1x32xf32, #tpu.memory_space<vmem>>, %arg6: memref<1x1x32xf32, #tpu.memory_space<vmem>>, %arg7: memref<1x4x128x32xf32, #tpu.memory_space<vmem>>, %arg8: memref<1x4x128x4xf32, #tpu.memory_space<vmem>>, %arg9: memref<1x4x16x4xf32, #tpu.memory_space<vmem>>, %arg10: memref<2x1x4x256xf32, #tpu.memory_space<vmem>>) attributes {dimension_semantics = [#tpu.dimension_semantics<parallel>], iteration_bounds = array<i64: 2>, scalar_prefetch = 0 : i64, scratch_operands = 0 : i64, tpu.core_type = #tpu.core_type<tc>, window_params = [{pipeline_mode = #tpu.pipeline_mode<synchronous>, transform_indices = @transform_0, window_bounds = array<i64: 2, 8>}, {transform_indices = @transform_1, window_bounds = array<i64: 1, 8, 32>}, {transform_indices = @transform_2, window_bounds = array<i64: 1, 1, 32>}, {transform_indices = @transform_3, window_bounds = array<i64: 1, 4, 32, 32>}, {transform_indices = @transform_4, window_bounds = array<i64: 1, 1, 32>}, {transform_indices = @transform_5, window_bounds = array<i64: 1, 1, 32>}, {transform_indices = @transform_6, window_bounds = array<i64: 1, 4, 128, 32>}, {transform_indices = @transform_7, window_bounds = array<i64: 1, 4, 128, 4>}, {transform_indices = @transform_8, window_bounds = array<i64: 1, 4, 16, 4>}, {transform_indices = @transform_9, window_bounds = array<i64: 2, 1, 4, 256>}]} {
    %c0 = arith.constant 0 : index
    %c0_0 = arith.constant 0 : index
    %0 = vector.load %arg1[%c0, %c0_0] : memref<2x8xf32, #tpu.memory_space<vmem>>, vector<2x8xf32>
    %c0_1 = arith.constant 0 : index
    %c0_2 = arith.constant 0 : index
    %c0_3 = arith.constant 0 : index
    %1 = vector.load %arg2[%c0_1, %c0_2, %c0_3] : memref<1x8x32xf32, #tpu.memory_space<vmem>>, vector<1x8x32xf32>
    %2 = vector.shape_cast %1 : vector<1x8x32xf32> to vector<8x32xf32>
    %cst = arith.constant dense<0.000000e+00> : vector<2x32xf32>
    %3 = tpu.matmul %0, %2, %cst {dimension_numbers = #tpu.dot_dimension_numbers<[1], [0], [0], [1], [0, 0, 1, 1], [], []>} : vector<2x8xf32>, vector<8x32xf32>, vector<2x32xf32> -> vector<2x32xf32>
    %c0_4 = arith.constant 0 : index
    %c0_5 = arith.constant 0 : index
    %c0_6 = arith.constant 0 : index
    %4 = vector.load %arg3[%c0_4, %c0_5, %c0_6] : memref<1x1x32xf32, #tpu.memory_space<vmem>>, vector<1x1x32xf32>
    %5 = vector.shape_cast %4 : vector<1x1x32xf32> to vector<1x32xf32>
    %6 = vector.broadcast %5 : vector<1x32xf32> to vector<2x32xf32>
    %7 = arith.addf %3, %6 : vector<2x32xf32>
    %cst_7 = arith.constant 0.000000e+00 : f32
    %8 = vector.broadcast %cst_7 : f32 to vector<2x32xf32>
    %9 = arith.maximumf %7, %8 : vector<2x32xf32>
    %c0_8 = arith.constant 0 : index
    %c0_9 = arith.constant 0 : index
    %c0_10 = arith.constant 0 : index
    %c0_11 = arith.constant 0 : index
    %10 = vector.load %arg4[%c0_8, %c0_9, %c0_10, %c0_11] : memref<1x4x32x32xf32, #tpu.memory_space<vmem>>, vector<1x4x32x32xf32>
    %11 = vector.shape_cast %10 : vector<1x4x32x32xf32> to vector<4x32x32xf32>
    %12 = vector.extract_strided_slice %11 {offsets = [0, 0, 0], sizes = [1, 32, 32], strides = [1, 1, 1]} : vector<4x32x32xf32> to vector<1x32x32xf32>
    %13 = vector.shape_cast %12 : vector<1x32x32xf32> to vector<32x32xf32>
    %cst_12 = arith.constant dense<0.000000e+00> : vector<2x32xf32>
    %14 = tpu.matmul %9, %13, %cst_12 {dimension_numbers = #tpu.dot_dimension_numbers<[1], [0], [0], [1], [0, 0, 1, 1], [], []>} : vector<2x32xf32>, vector<32x32xf32>, vector<2x32xf32> -> vector<2x32xf32>
    %15 = vector.extract_strided_slice %11 {offsets = [1, 0, 0], sizes = [1, 32, 32], strides = [1, 1, 1]} : vector<4x32x32xf32> to vector<1x32x32xf32>
    %16 = vector.shape_cast %15 : vector<1x32x32xf32> to vector<32x32xf32>
    %cst_13 = arith.constant dense<0.000000e+00> : vector<2x32xf32>
    %17 = tpu.matmul %9, %16, %cst_13 {dimension_numbers = #tpu.dot_dimension_numbers<[1], [0], [0], [1], [0, 0, 1, 1], [], []>} : vector<2x32xf32>, vector<32x32xf32>, vector<2x32xf32> -> vector<2x32xf32>
    %18 = vector.extract_strided_slice %11 {offsets = [2, 0, 0], sizes = [1, 32, 32], strides = [1, 1, 1]} : vector<4x32x32xf32> to vector<1x32x32xf32>
    %19 = vector.shape_cast %18 : vector<1x32x32xf32> to vector<32x32xf32>
    %cst_14 = arith.constant dense<0.000000e+00> : vector<2x32xf32>
    %20 = tpu.matmul %9, %19, %cst_14 {dimension_numbers = #tpu.dot_dimension_numbers<[1], [0], [0], [1], [0, 0, 1, 1], [], []>} : vector<2x32xf32>, vector<32x32xf32>, vector<2x32xf32> -> vector<2x32xf32>
    %21 = vector.extract_strided_slice %11 {offsets = [3, 0, 0], sizes = [1, 32, 32], strides = [1, 1, 1]} : vector<4x32x32xf32> to vector<1x32x32xf32>
    %22 = vector.shape_cast %21 : vector<1x32x32xf32> to vector<32x32xf32>
    %cst_15 = arith.constant dense<0.000000e+00> : vector<2x32xf32>
    %23 = tpu.matmul %9, %22, %cst_15 {dimension_numbers = #tpu.dot_dimension_numbers<[1], [0], [0], [1], [0, 0, 1, 1], [], []>} : vector<2x32xf32>, vector<32x32xf32>, vector<2x32xf32> -> vector<2x32xf32>
    %24 = tpu.concatenate %14, %17, %20, %23 in 0 : vector<2x32xf32>, vector<2x32xf32>, vector<2x32xf32>, vector<2x32xf32> -> vector<8x32xf32>
    %cst_16 = arith.constant dense<0.000000e+00> : vector<32xf32>
    %25 = vector.multi_reduction <add>, %24, %cst_16 [0] : vector<8x32xf32> to vector<32xf32>
    %26 = vector.shape_cast %25 : vector<32xf32> to vector<1x32xf32>
    %cst_17 = arith.constant 8.000000e+00 : f32
    %27 = vector.broadcast %cst_17 : f32 to vector<1x32xf32>
    %28 = arith.divf %26, %27 : vector<1x32xf32>
    %29 = vector.broadcast %28 : vector<1x32xf32> to vector<8x32xf32>
    %30 = arith.subf %24, %29 : vector<8x32xf32>
    %31 = arith.mulf %30, %30 : vector<8x32xf32>
    %cst_18 = arith.constant dense<0.000000e+00> : vector<32xf32>
    %32 = vector.multi_reduction <add>, %31, %cst_18 [0] : vector<8x32xf32> to vector<32xf32>
    %33 = vector.shape_cast %32 : vector<32xf32> to vector<1x32xf32>
    %cst_19 = arith.constant 8.000000e+00 : f32
    %34 = vector.broadcast %cst_19 : f32 to vector<1x32xf32>
    %35 = arith.divf %33, %34 : vector<1x32xf32>
    %36 = vector.broadcast %28 : vector<1x32xf32> to vector<8x32xf32>
    %37 = arith.subf %24, %36 : vector<8x32xf32>
    %cst_20 = arith.constant 9.99999974E-6 : f32
    %38 = vector.broadcast %cst_20 : f32 to vector<1x32xf32>
    %39 = arith.addf %35, %38 : vector<1x32xf32>
    %40 = math.rsqrt %39 : vector<1x32xf32>
    %41 = vector.broadcast %40 : vector<1x32xf32> to vector<8x32xf32>
    %42 = arith.mulf %37, %41 : vector<8x32xf32>
    %c0_21 = arith.constant 0 : index
    %c0_22 = arith.constant 0 : index
    %c0_23 = arith.constant 0 : index
    %43 = vector.load %arg5[%c0_21, %c0_22, %c0_23] : memref<1x1x32xf32, #tpu.memory_space<vmem>>, vector<1x1x32xf32>
    %44 = vector.shape_cast %43 : vector<1x1x32xf32> to vector<1x32xf32>
    %45 = vector.broadcast %44 : vector<1x32xf32> to vector<8x32xf32>
    %46 = arith.mulf %42, %45 : vector<8x32xf32>
    %c0_24 = arith.constant 0 : index
    %c0_25 = arith.constant 0 : index
    %c0_26 = arith.constant 0 : index
    %47 = vector.load %arg6[%c0_24, %c0_25, %c0_26] : memref<1x1x32xf32, #tpu.memory_space<vmem>>, vector<1x1x32xf32>
    %48 = vector.shape_cast %47 : vector<1x1x32xf32> to vector<1x32xf32>
    %49 = vector.broadcast %48 : vector<1x32xf32> to vector<8x32xf32>
    %50 = arith.addf %46, %49 : vector<8x32xf32>
    %cst_27 = arith.constant 0.000000e+00 : f32
    %51 = vector.broadcast %cst_27 : f32 to vector<8x32xf32>
    %52 = arith.maximumf %50, %51 : vector<8x32xf32>
    %53 = vector.extract_strided_slice %52 {offsets = [0, 0], sizes = [2, 32], strides = [1, 1]} : vector<8x32xf32> to vector<2x32xf32>
    %54 = vector.shape_cast %53 : vector<2x32xf32> to vector<2x1x1x32xf32>
    %55 = vector.extract_strided_slice %52 {offsets = [2, 0], sizes = [2, 32], strides = [1, 1]} : vector<8x32xf32> to vector<2x32xf32>
    %56 = vector.shape_cast %55 : vector<2x32xf32> to vector<2x1x1x32xf32>
    %57 = vector.extract_strided_slice %52 {offsets = [4, 0], sizes = [2, 32], strides = [1, 1]} : vector<8x32xf32> to vector<2x32xf32>
    %58 = vector.shape_cast %57 : vector<2x32xf32> to vector<2x1x1x32xf32>
    %59 = vector.extract_strided_slice %52 {offsets = [6, 0], sizes = [2, 32], strides = [1, 1]} : vector<8x32xf32> to vector<2x32xf32>
    %60 = vector.shape_cast %59 : vector<2x32xf32> to vector<2x1x1x32xf32>
    %61 = tpu.concatenate %54, %56 in 2 : vector<2x1x1x32xf32>, vector<2x1x1x32xf32> -> vector<2x1x2x32xf32>
    %62 = tpu.concatenate %58, %60 in 2 : vector<2x1x1x32xf32>, vector<2x1x1x32xf32> -> vector<2x1x2x32xf32>
    %63 = tpu.concatenate %61, %62 in 1 : vector<2x1x2x32xf32>, vector<2x1x2x32xf32> -> vector<2x2x2x32xf32>
    %c0_28 = arith.constant 0 : index
    %c0_29 = arith.constant 0 : index
    %c0_30 = arith.constant 0 : index
    %c0_31 = arith.constant 0 : index
    %64 = vector.load %arg7[%c0_28, %c0_29, %c0_30, %c0_31] : memref<1x4x128x32xf32, #tpu.memory_space<vmem>>, vector<1x4x128x32xf32>
    %65 = vector.shape_cast %64 : vector<1x4x128x32xf32> to vector<4x128x32xf32>
    %cst_32 = arith.constant 0.000000e+00 : f32
    %66 = vector.broadcast %cst_32 : f32 to vector<2x1x2x32xf32>
    %67 = tpu.concatenate %66, %63, %66 in 1 : vector<2x1x2x32xf32>, vector<2x2x2x32xf32>, vector<2x1x2x32xf32> -> vector<2x4x2x32xf32>
    %cst_33 = arith.constant 0.000000e+00 : f32
    %68 = vector.broadcast %cst_33 : f32 to vector<2x4x1x32xf32>
    %69 = tpu.concatenate %68, %67, %68 in 2 : vector<2x4x1x32xf32>, vector<2x4x2x32xf32>, vector<2x4x1x32xf32> -> vector<2x4x4x32xf32>
    %70 = vector.extract_strided_slice %65 {offsets = [0, 0, 0], sizes = [1, 128, 32], strides = [1, 1, 1]} : vector<4x128x32xf32> to vector<1x128x32xf32>
    %71 = vector.shape_cast %70 : vector<1x128x32xf32> to vector<128x32xf32>
    %cst_34 = arith.constant 0.000000e+00 : f32
    %72 = vector.broadcast %cst_34 : f32 to vector<8x32xf32>
    %73 = vector.extract_strided_slice %69 {offsets = [0, 0, 0, 0], sizes = [2, 2, 2, 32], strides = [1, 1, 1, 1]} : vector<2x4x4x32xf32> to vector<2x2x2x32xf32>
    %74 = vector.extract_strided_slice %71 {offsets = [0, 0], sizes = [32, 32], strides = [1, 1]} : vector<128x32xf32> to vector<32x32xf32>
    %75 = vector.shape_cast %73 : vector<2x2x2x32xf32> to vector<8x32xf32>
    %cst_35 = arith.constant dense<0.000000e+00> : vector<8x32xf32>
    %76 = tpu.matmul %75, %74, %cst_35 {dimension_numbers = #tpu.dot_dimension_numbers<[1], [0], [0], [1], [0, 0, 1, 1], [], []>} : vector<8x32xf32>, vector<32x32xf32>, vector<8x32xf32> -> vector<8x32xf32>
    %77 = arith.addf %72, %76 : vector<8x32xf32>
    %78 = vector.extract_strided_slice %69 {offsets = [0, 0, 1, 0], sizes = [2, 2, 2, 32], strides = [1, 1, 1, 1]} : vector<2x4x4x32xf32> to vector<2x2x2x32xf32>
    %79 = vector.extract_strided_slice %71 {offsets = [32, 0], sizes = [32, 32], strides = [1, 1]} : vector<128x32xf32> to vector<32x32xf32>
    %80 = vector.shape_cast %78 : vector<2x2x2x32xf32> to vector<8x32xf32>
    %cst_36 = arith.constant dense<0.000000e+00> : vector<8x32xf32>
    %81 = tpu.matmul %80, %79, %cst_36 {dimension_numbers = #tpu.dot_dimension_numbers<[1], [0], [0], [1], [0, 0, 1, 1], [], []>} : vector<8x32xf32>, vector<32x32xf32>, vector<8x32xf32> -> vector<8x32xf32>
    %82 = arith.addf %77, %81 : vector<8x32xf32>
    %83 = vector.extract_strided_slice %69 {offsets = [0, 1, 0, 0], sizes = [2, 2, 2, 32], strides = [1, 1, 1, 1]} : vector<2x4x4x32xf32> to vector<2x2x2x32xf32>
    %84 = vector.extract_strided_slice %71 {offsets = [64, 0], sizes = [32, 32], strides = [1, 1]} : vector<128x32xf32> to vector<32x32xf32>
    %85 = vector.shape_cast %83 : vector<2x2x2x32xf32> to vector<8x32xf32>
    %cst_37 = arith.constant dense<0.000000e+00> : vector<8x32xf32>
    %86 = tpu.matmul %85, %84, %cst_37 {dimension_numbers = #tpu.dot_dimension_numbers<[1], [0], [0], [1], [0, 0, 1, 1], [], []>} : vector<8x32xf32>, vector<32x32xf32>, vector<8x32xf32> -> vector<8x32xf32>
    %87 = arith.addf %82, %86 : vector<8x32xf32>
    %88 = vector.extract_strided_slice %69 {offsets = [0, 1, 1, 0], sizes = [2, 2, 2, 32], strides = [1, 1, 1, 1]} : vector<2x4x4x32xf32> to vector<2x2x2x32xf32>
    %89 = vector.extract_strided_slice %71 {offsets = [96, 0], sizes = [32, 32], strides = [1, 1]} : vector<128x32xf32> to vector<32x32xf32>
    %90 = vector.shape_cast %88 : vector<2x2x2x32xf32> to vector<8x32xf32>
    %cst_38 = arith.constant dense<0.000000e+00> : vector<8x32xf32>
    %91 = tpu.matmul %90, %89, %cst_38 {dimension_numbers = #tpu.dot_dimension_numbers<[1], [0], [0], [1], [0, 0, 1, 1], [], []>} : vector<8x32xf32>, vector<32x32xf32>, vector<8x32xf32> -> vector<8x32xf32>
    %92 = arith.addf %87, %91 : vector<8x32xf32>
    %93 = vector.shape_cast %92 : vector<8x32xf32> to vector<8x1x32xf32>
    %94 = vector.extract_strided_slice %65 {offsets = [1, 0, 0], sizes = [1, 128, 32], strides = [1, 1, 1]} : vector<4x128x32xf32> to vector<1x128x32xf32>
    %95 = vector.shape_cast %94 : vector<1x128x32xf32> to vector<128x32xf32>
    %cst_39 = arith.constant 0.000000e+00 : f32
    %96 = vector.broadcast %cst_39 : f32 to vector<8x32xf32>
    %97 = vector.extract_strided_slice %69 {offsets = [0, 0, 1, 0], sizes = [2, 2, 2, 32], strides = [1, 1, 1, 1]} : vector<2x4x4x32xf32> to vector<2x2x2x32xf32>
    %98 = vector.extract_strided_slice %95 {offsets = [0, 0], sizes = [32, 32], strides = [1, 1]} : vector<128x32xf32> to vector<32x32xf32>
    %99 = vector.shape_cast %97 : vector<2x2x2x32xf32> to vector<8x32xf32>
    %cst_40 = arith.constant dense<0.000000e+00> : vector<8x32xf32>
    %100 = tpu.matmul %99, %98, %cst_40 {dimension_numbers = #tpu.dot_dimension_numbers<[1], [0], [0], [1], [0, 0, 1, 1], [], []>} : vector<8x32xf32>, vector<32x32xf32>, vector<8x32xf32> -> vector<8x32xf32>
    %101 = arith.addf %96, %100 : vector<8x32xf32>
    %102 = vector.extract_strided_slice %69 {offsets = [0, 0, 2, 0], sizes = [2, 2, 2, 32], strides = [1, 1, 1, 1]} : vector<2x4x4x32xf32> to vector<2x2x2x32xf32>
    %103 = vector.extract_strided_slice %95 {offsets = [32, 0], sizes = [32, 32], strides = [1, 1]} : vector<128x32xf32> to vector<32x32xf32>
    %104 = vector.shape_cast %102 : vector<2x2x2x32xf32> to vector<8x32xf32>
    %cst_41 = arith.constant dense<0.000000e+00> : vector<8x32xf32>
    %105 = tpu.matmul %104, %103, %cst_41 {dimension_numbers = #tpu.dot_dimension_numbers<[1], [0], [0], [1], [0, 0, 1, 1], [], []>} : vector<8x32xf32>, vector<32x32xf32>, vector<8x32xf32> -> vector<8x32xf32>
    %106 = arith.addf %101, %105 : vector<8x32xf32>
    %107 = vector.extract_strided_slice %69 {offsets = [0, 1, 1, 0], sizes = [2, 2, 2, 32], strides = [1, 1, 1, 1]} : vector<2x4x4x32xf32> to vector<2x2x2x32xf32>
    %108 = vector.extract_strided_slice %95 {offsets = [64, 0], sizes = [32, 32], strides = [1, 1]} : vector<128x32xf32> to vector<32x32xf32>
    %109 = vector.shape_cast %107 : vector<2x2x2x32xf32> to vector<8x32xf32>
    %cst_42 = arith.constant dense<0.000000e+00> : vector<8x32xf32>
    %110 = tpu.matmul %109, %108, %cst_42 {dimension_numbers = #tpu.dot_dimension_numbers<[1], [0], [0], [1], [0, 0, 1, 1], [], []>} : vector<8x32xf32>, vector<32x32xf32>, vector<8x32xf32> -> vector<8x32xf32>
    %111 = arith.addf %106, %110 : vector<8x32xf32>
    %112 = vector.extract_strided_slice %69 {offsets = [0, 1, 2, 0], sizes = [2, 2, 2, 32], strides = [1, 1, 1, 1]} : vector<2x4x4x32xf32> to vector<2x2x2x32xf32>
    %113 = vector.extract_strided_slice %95 {offsets = [96, 0], sizes = [32, 32], strides = [1, 1]} : vector<128x32xf32> to vector<32x32xf32>
    %114 = vector.shape_cast %112 : vector<2x2x2x32xf32> to vector<8x32xf32>
    %cst_43 = arith.constant dense<0.000000e+00> : vector<8x32xf32>
    %115 = tpu.matmul %114, %113, %cst_43 {dimension_numbers = #tpu.dot_dimension_numbers<[1], [0], [0], [1], [0, 0, 1, 1], [], []>} : vector<8x32xf32>, vector<32x32xf32>, vector<8x32xf32> -> vector<8x32xf32>
    %116 = arith.addf %111, %115 : vector<8x32xf32>
    %117 = vector.shape_cast %116 : vector<8x32xf32> to vector<8x1x32xf32>
    %118 = tpu.concatenate %93, %117 in 1 : vector<8x1x32xf32>, vector<8x1x32xf32> -> vector<8x2x32xf32>
    %119 = vector.shape_cast %118 : vector<8x2x32xf32> to vector<4x4x32xf32>
    %120 = vector.shape_cast %119 : vector<4x4x32xf32> to vector<4x1x4x32xf32>
    %121 = vector.extract_strided_slice %65 {offsets = [2, 0, 0], sizes = [1, 128, 32], strides = [1, 1, 1]} : vector<4x128x32xf32> to vector<1x128x32xf32>
    %122 = vector.shape_cast %121 : vector<1x128x32xf32> to vector<128x32xf32>
    %cst_44 = arith.constant 0.000000e+00 : f32
    %123 = vector.broadcast %cst_44 : f32 to vector<8x32xf32>
    %124 = vector.extract_strided_slice %69 {offsets = [0, 1, 0, 0], sizes = [2, 2, 2, 32], strides = [1, 1, 1, 1]} : vector<2x4x4x32xf32> to vector<2x2x2x32xf32>
    %125 = vector.extract_strided_slice %122 {offsets = [0, 0], sizes = [32, 32], strides = [1, 1]} : vector<128x32xf32> to vector<32x32xf32>
    %126 = vector.shape_cast %124 : vector<2x2x2x32xf32> to vector<8x32xf32>
    %cst_45 = arith.constant dense<0.000000e+00> : vector<8x32xf32>
    %127 = tpu.matmul %126, %125, %cst_45 {dimension_numbers = #tpu.dot_dimension_numbers<[1], [0], [0], [1], [0, 0, 1, 1], [], []>} : vector<8x32xf32>, vector<32x32xf32>, vector<8x32xf32> -> vector<8x32xf32>
    %128 = arith.addf %123, %127 : vector<8x32xf32>
    %129 = vector.extract_strided_slice %69 {offsets = [0, 1, 1, 0], sizes = [2, 2, 2, 32], strides = [1, 1, 1, 1]} : vector<2x4x4x32xf32> to vector<2x2x2x32xf32>
    %130 = vector.extract_strided_slice %122 {offsets = [32, 0], sizes = [32, 32], strides = [1, 1]} : vector<128x32xf32> to vector<32x32xf32>
    %131 = vector.shape_cast %129 : vector<2x2x2x32xf32> to vector<8x32xf32>
    %cst_46 = arith.constant dense<0.000000e+00> : vector<8x32xf32>
    %132 = tpu.matmul %131, %130, %cst_46 {dimension_numbers = #tpu.dot_dimension_numbers<[1], [0], [0], [1], [0, 0, 1, 1], [], []>} : vector<8x32xf32>, vector<32x32xf32>, vector<8x32xf32> -> vector<8x32xf32>
    %133 = arith.addf %128, %132 : vector<8x32xf32>
    %134 = vector.extract_strided_slice %69 {offsets = [0, 2, 0, 0], sizes = [2, 2, 2, 32], strides = [1, 1, 1, 1]} : vector<2x4x4x32xf32> to vector<2x2x2x32xf32>
    %135 = vector.extract_strided_slice %122 {offsets = [64, 0], sizes = [32, 32], strides = [1, 1]} : vector<128x32xf32> to vector<32x32xf32>
    %136 = vector.shape_cast %134 : vector<2x2x2x32xf32> to vector<8x32xf32>
    %cst_47 = arith.constant dense<0.000000e+00> : vector<8x32xf32>
    %137 = tpu.matmul %136, %135, %cst_47 {dimension_numbers = #tpu.dot_dimension_numbers<[1], [0], [0], [1], [0, 0, 1, 1], [], []>} : vector<8x32xf32>, vector<32x32xf32>, vector<8x32xf32> -> vector<8x32xf32>
    %138 = arith.addf %133, %137 : vector<8x32xf32>
    %139 = vector.extract_strided_slice %69 {offsets = [0, 2, 1, 0], sizes = [2, 2, 2, 32], strides = [1, 1, 1, 1]} : vector<2x4x4x32xf32> to vector<2x2x2x32xf32>
    %140 = vector.extract_strided_slice %122 {offsets = [96, 0], sizes = [32, 32], strides = [1, 1]} : vector<128x32xf32> to vector<32x32xf32>
    %141 = vector.shape_cast %139 : vector<2x2x2x32xf32> to vector<8x32xf32>
    %cst_48 = arith.constant dense<0.000000e+00> : vector<8x32xf32>
    %142 = tpu.matmul %141, %140, %cst_48 {dimension_numbers = #tpu.dot_dimension_numbers<[1], [0], [0], [1], [0, 0, 1, 1], [], []>} : vector<8x32xf32>, vector<32x32xf32>, vector<8x32xf32> -> vector<8x32xf32>
    %143 = arith.addf %138, %142 : vector<8x32xf32>
    %144 = vector.shape_cast %143 : vector<8x32xf32> to vector<8x1x32xf32>
    %145 = vector.extract_strided_slice %65 {offsets = [3, 0, 0], sizes = [1, 128, 32], strides = [1, 1, 1]} : vector<4x128x32xf32> to vector<1x128x32xf32>
    %146 = vector.shape_cast %145 : vector<1x128x32xf32> to vector<128x32xf32>
    %cst_49 = arith.constant 0.000000e+00 : f32
    %147 = vector.broadcast %cst_49 : f32 to vector<8x32xf32>
    %148 = vector.extract_strided_slice %69 {offsets = [0, 1, 1, 0], sizes = [2, 2, 2, 32], strides = [1, 1, 1, 1]} : vector<2x4x4x32xf32> to vector<2x2x2x32xf32>
    %149 = vector.extract_strided_slice %146 {offsets = [0, 0], sizes = [32, 32], strides = [1, 1]} : vector<128x32xf32> to vector<32x32xf32>
    %150 = vector.shape_cast %148 : vector<2x2x2x32xf32> to vector<8x32xf32>
    %cst_50 = arith.constant dense<0.000000e+00> : vector<8x32xf32>
    %151 = tpu.matmul %150, %149, %cst_50 {dimension_numbers = #tpu.dot_dimension_numbers<[1], [0], [0], [1], [0, 0, 1, 1], [], []>} : vector<8x32xf32>, vector<32x32xf32>, vector<8x32xf32> -> vector<8x32xf32>
    %152 = arith.addf %147, %151 : vector<8x32xf32>
    %153 = vector.extract_strided_slice %69 {offsets = [0, 1, 2, 0], sizes = [2, 2, 2, 32], strides = [1, 1, 1, 1]} : vector<2x4x4x32xf32> to vector<2x2x2x32xf32>
    %154 = vector.extract_strided_slice %146 {offsets = [32, 0], sizes = [32, 32], strides = [1, 1]} : vector<128x32xf32> to vector<32x32xf32>
    %155 = vector.shape_cast %153 : vector<2x2x2x32xf32> to vector<8x32xf32>
    %cst_51 = arith.constant dense<0.000000e+00> : vector<8x32xf32>
    %156 = tpu.matmul %155, %154, %cst_51 {dimension_numbers = #tpu.dot_dimension_numbers<[1], [0], [0], [1], [0, 0, 1, 1], [], []>} : vector<8x32xf32>, vector<32x32xf32>, vector<8x32xf32> -> vector<8x32xf32>
    %157 = arith.addf %152, %156 : vector<8x32xf32>
    %158 = vector.extract_strided_slice %69 {offsets = [0, 2, 1, 0], sizes = [2, 2, 2, 32], strides = [1, 1, 1, 1]} : vector<2x4x4x32xf32> to vector<2x2x2x32xf32>
    %159 = vector.extract_strided_slice %146 {offsets = [64, 0], sizes = [32, 32], strides = [1, 1]} : vector<128x32xf32> to vector<32x32xf32>
    %160 = vector.shape_cast %158 : vector<2x2x2x32xf32> to vector<8x32xf32>
    %cst_52 = arith.constant dense<0.000000e+00> : vector<8x32xf32>
    %161 = tpu.matmul %160, %159, %cst_52 {dimension_numbers = #tpu.dot_dimension_numbers<[1], [0], [0], [1], [0, 0, 1, 1], [], []>} : vector<8x32xf32>, vector<32x32xf32>, vector<8x32xf32> -> vector<8x32xf32>
    %162 = arith.addf %157, %161 : vector<8x32xf32>
    %163 = vector.extract_strided_slice %69 {offsets = [0, 2, 2, 0], sizes = [2, 2, 2, 32], strides = [1, 1, 1, 1]} : vector<2x4x4x32xf32> to vector<2x2x2x32xf32>
    %164 = vector.extract_strided_slice %146 {offsets = [96, 0], sizes = [32, 32], strides = [1, 1]} : vector<128x32xf32> to vector<32x32xf32>
    %165 = vector.shape_cast %163 : vector<2x2x2x32xf32> to vector<8x32xf32>
    %cst_53 = arith.constant dense<0.000000e+00> : vector<8x32xf32>
    %166 = tpu.matmul %165, %164, %cst_53 {dimension_numbers = #tpu.dot_dimension_numbers<[1], [0], [0], [1], [0, 0, 1, 1], [], []>} : vector<8x32xf32>, vector<32x32xf32>, vector<8x32xf32> -> vector<8x32xf32>
    %167 = arith.addf %162, %166 : vector<8x32xf32>
    %168 = vector.shape_cast %167 : vector<8x32xf32> to vector<8x1x32xf32>
    %169 = tpu.concatenate %144, %168 in 1 : vector<8x1x32xf32>, vector<8x1x32xf32> -> vector<8x2x32xf32>
    %170 = vector.shape_cast %169 : vector<8x2x32xf32> to vector<4x4x32xf32>
    %171 = vector.shape_cast %170 : vector<4x4x32xf32> to vector<4x1x4x32xf32>
    %172 = tpu.concatenate %120, %171 in 1 : vector<4x1x4x32xf32>, vector<4x1x4x32xf32> -> vector<4x2x4x32xf32>
    %173 = vector.shape_cast %172 : vector<4x2x4x32xf32> to vector<2x4x4x32xf32>
    %c0_54 = arith.constant 0 : index
    %c0_55 = arith.constant 0 : index
    %c0_56 = arith.constant 0 : index
    %c0_57 = arith.constant 0 : index
    %174 = vector.load %arg8[%c0_54, %c0_55, %c0_56, %c0_57] : memref<1x4x128x4xf32, #tpu.memory_space<vmem>>, vector<1x4x128x4xf32>
    %175 = vector.shape_cast %174 : vector<1x4x128x4xf32> to vector<4x128x4xf32>
    %cst_58 = arith.constant 0.000000e+00 : f32
    %176 = vector.broadcast %cst_58 : f32 to vector<2x1x4x32xf32>
    %177 = tpu.concatenate %176, %173, %176 in 1 : vector<2x1x4x32xf32>, vector<2x4x4x32xf32>, vector<2x1x4x32xf32> -> vector<2x6x4x32xf32>
    %cst_59 = arith.constant 0.000000e+00 : f32
    %178 = vector.broadcast %cst_59 : f32 to vector<2x6x1x32xf32>
    %179 = tpu.concatenate %178, %177, %178 in 2 : vector<2x6x1x32xf32>, vector<2x6x4x32xf32>, vector<2x6x1x32xf32> -> vector<2x6x6x32xf32>
    %180 = vector.extract_strided_slice %175 {offsets = [0, 0, 0], sizes = [1, 128, 4], strides = [1, 1, 1]} : vector<4x128x4xf32> to vector<1x128x4xf32>
    %181 = vector.shape_cast %180 : vector<1x128x4xf32> to vector<128x4xf32>
    %cst_60 = arith.constant 0.000000e+00 : f32
    %182 = vector.broadcast %cst_60 : f32 to vector<32x4xf32>
    %183 = vector.extract_strided_slice %179 {offsets = [0, 0, 0, 0], sizes = [2, 4, 4, 32], strides = [1, 1, 1, 1]} : vector<2x6x6x32xf32> to vector<2x4x4x32xf32>
    %184 = vector.extract_strided_slice %181 {offsets = [0, 0], sizes = [32, 4], strides = [1, 1]} : vector<128x4xf32> to vector<32x4xf32>
    %185 = vector.shape_cast %183 : vector<2x4x4x32xf32> to vector<32x32xf32>
    %cst_61 = arith.constant dense<0.000000e+00> : vector<32x4xf32>
    %186 = tpu.matmul %185, %184, %cst_61 {dimension_numbers = #tpu.dot_dimension_numbers<[1], [0], [0], [1], [0, 0, 1, 1], [], []>} : vector<32x32xf32>, vector<32x4xf32>, vector<32x4xf32> -> vector<32x4xf32>
    %187 = arith.addf %182, %186 : vector<32x4xf32>
    %188 = vector.extract_strided_slice %179 {offsets = [0, 0, 1, 0], sizes = [2, 4, 4, 32], strides = [1, 1, 1, 1]} : vector<2x6x6x32xf32> to vector<2x4x4x32xf32>
    %189 = vector.extract_strided_slice %181 {offsets = [32, 0], sizes = [32, 4], strides = [1, 1]} : vector<128x4xf32> to vector<32x4xf32>
    %190 = vector.shape_cast %188 : vector<2x4x4x32xf32> to vector<32x32xf32>
    %cst_62 = arith.constant dense<0.000000e+00> : vector<32x4xf32>
    %191 = tpu.matmul %190, %189, %cst_62 {dimension_numbers = #tpu.dot_dimension_numbers<[1], [0], [0], [1], [0, 0, 1, 1], [], []>} : vector<32x32xf32>, vector<32x4xf32>, vector<32x4xf32> -> vector<32x4xf32>
    %192 = arith.addf %187, %191 : vector<32x4xf32>
    %193 = vector.extract_strided_slice %179 {offsets = [0, 1, 0, 0], sizes = [2, 4, 4, 32], strides = [1, 1, 1, 1]} : vector<2x6x6x32xf32> to vector<2x4x4x32xf32>
    %194 = vector.extract_strided_slice %181 {offsets = [64, 0], sizes = [32, 4], strides = [1, 1]} : vector<128x4xf32> to vector<32x4xf32>
    %195 = vector.shape_cast %193 : vector<2x4x4x32xf32> to vector<32x32xf32>
    %cst_63 = arith.constant dense<0.000000e+00> : vector<32x4xf32>
    %196 = tpu.matmul %195, %194, %cst_63 {dimension_numbers = #tpu.dot_dimension_numbers<[1], [0], [0], [1], [0, 0, 1, 1], [], []>} : vector<32x32xf32>, vector<32x4xf32>, vector<32x4xf32> -> vector<32x4xf32>
    %197 = arith.addf %192, %196 : vector<32x4xf32>
    %198 = vector.extract_strided_slice %179 {offsets = [0, 1, 1, 0], sizes = [2, 4, 4, 32], strides = [1, 1, 1, 1]} : vector<2x6x6x32xf32> to vector<2x4x4x32xf32>
    %199 = vector.extract_strided_slice %181 {offsets = [96, 0], sizes = [32, 4], strides = [1, 1]} : vector<128x4xf32> to vector<32x4xf32>
    %200 = vector.shape_cast %198 : vector<2x4x4x32xf32> to vector<32x32xf32>
    %cst_64 = arith.constant dense<0.000000e+00> : vector<32x4xf32>
    %201 = tpu.matmul %200, %199, %cst_64 {dimension_numbers = #tpu.dot_dimension_numbers<[1], [0], [0], [1], [0, 0, 1, 1], [], []>} : vector<32x32xf32>, vector<32x4xf32>, vector<32x4xf32> -> vector<32x4xf32>
    %202 = arith.addf %197, %201 : vector<32x4xf32>
    %203 = vector.shape_cast %202 : vector<32x4xf32> to vector<32x1x4xf32>
    %204 = vector.extract_strided_slice %175 {offsets = [1, 0, 0], sizes = [1, 128, 4], strides = [1, 1, 1]} : vector<4x128x4xf32> to vector<1x128x4xf32>
    %205 = vector.shape_cast %204 : vector<1x128x4xf32> to vector<128x4xf32>
    %cst_65 = arith.constant 0.000000e+00 : f32
    %206 = vector.broadcast %cst_65 : f32 to vector<32x4xf32>
    %207 = vector.extract_strided_slice %179 {offsets = [0, 0, 1, 0], sizes = [2, 4, 4, 32], strides = [1, 1, 1, 1]} : vector<2x6x6x32xf32> to vector<2x4x4x32xf32>
    %208 = vector.extract_strided_slice %205 {offsets = [0, 0], sizes = [32, 4], strides = [1, 1]} : vector<128x4xf32> to vector<32x4xf32>
    %209 = vector.shape_cast %207 : vector<2x4x4x32xf32> to vector<32x32xf32>
    %cst_66 = arith.constant dense<0.000000e+00> : vector<32x4xf32>
    %210 = tpu.matmul %209, %208, %cst_66 {dimension_numbers = #tpu.dot_dimension_numbers<[1], [0], [0], [1], [0, 0, 1, 1], [], []>} : vector<32x32xf32>, vector<32x4xf32>, vector<32x4xf32> -> vector<32x4xf32>
    %211 = arith.addf %206, %210 : vector<32x4xf32>
    %212 = vector.extract_strided_slice %179 {offsets = [0, 0, 2, 0], sizes = [2, 4, 4, 32], strides = [1, 1, 1, 1]} : vector<2x6x6x32xf32> to vector<2x4x4x32xf32>
    %213 = vector.extract_strided_slice %205 {offsets = [32, 0], sizes = [32, 4], strides = [1, 1]} : vector<128x4xf32> to vector<32x4xf32>
    %214 = vector.shape_cast %212 : vector<2x4x4x32xf32> to vector<32x32xf32>
    %cst_67 = arith.constant dense<0.000000e+00> : vector<32x4xf32>
    %215 = tpu.matmul %214, %213, %cst_67 {dimension_numbers = #tpu.dot_dimension_numbers<[1], [0], [0], [1], [0, 0, 1, 1], [], []>} : vector<32x32xf32>, vector<32x4xf32>, vector<32x4xf32> -> vector<32x4xf32>
    %216 = arith.addf %211, %215 : vector<32x4xf32>
    %217 = vector.extract_strided_slice %179 {offsets = [0, 1, 1, 0], sizes = [2, 4, 4, 32], strides = [1, 1, 1, 1]} : vector<2x6x6x32xf32> to vector<2x4x4x32xf32>
    %218 = vector.extract_strided_slice %205 {offsets = [64, 0], sizes = [32, 4], strides = [1, 1]} : vector<128x4xf32> to vector<32x4xf32>
    %219 = vector.shape_cast %217 : vector<2x4x4x32xf32> to vector<32x32xf32>
    %cst_68 = arith.constant dense<0.000000e+00> : vector<32x4xf32>
    %220 = tpu.matmul %219, %218, %cst_68 {dimension_numbers = #tpu.dot_dimension_numbers<[1], [0], [0], [1], [0, 0, 1, 1], [], []>} : vector<32x32xf32>, vector<32x4xf32>, vector<32x4xf32> -> vector<32x4xf32>
    %221 = arith.addf %216, %220 : vector<32x4xf32>
    %222 = vector.extract_strided_slice %179 {offsets = [0, 1, 2, 0], sizes = [2, 4, 4, 32], strides = [1, 1, 1, 1]} : vector<2x6x6x32xf32> to vector<2x4x4x32xf32>
    %223 = vector.extract_strided_slice %205 {offsets = [96, 0], sizes = [32, 4], strides = [1, 1]} : vector<128x4xf32> to vector<32x4xf32>
    %224 = vector.shape_cast %222 : vector<2x4x4x32xf32> to vector<32x32xf32>
    %cst_69 = arith.constant dense<0.000000e+00> : vector<32x4xf32>
    %225 = tpu.matmul %224, %223, %cst_69 {dimension_numbers = #tpu.dot_dimension_numbers<[1], [0], [0], [1], [0, 0, 1, 1], [], []>} : vector<32x32xf32>, vector<32x4xf32>, vector<32x4xf32> -> vector<32x4xf32>
    %226 = arith.addf %221, %225 : vector<32x4xf32>
    %227 = vector.shape_cast %226 : vector<32x4xf32> to vector<32x1x4xf32>
    %228 = tpu.concatenate %203, %227 in 1 : vector<32x1x4xf32>, vector<32x1x4xf32> -> vector<32x2x4xf32>
    %229 = vector.shape_cast %228 : vector<32x2x4xf32> to vector<8x8x4xf32>
    %230 = vector.shape_cast %229 : vector<8x8x4xf32> to vector<8x1x8x4xf32>
    %231 = vector.extract_strided_slice %175 {offsets = [2, 0, 0], sizes = [1, 128, 4], strides = [1, 1, 1]} : vector<4x128x4xf32> to vector<1x128x4xf32>
    %232 = vector.shape_cast %231 : vector<1x128x4xf32> to vector<128x4xf32>
    %cst_70 = arith.constant 0.000000e+00 : f32
    %233 = vector.broadcast %cst_70 : f32 to vector<32x4xf32>
    %234 = vector.extract_strided_slice %179 {offsets = [0, 1, 0, 0], sizes = [2, 4, 4, 32], strides = [1, 1, 1, 1]} : vector<2x6x6x32xf32> to vector<2x4x4x32xf32>
    %235 = vector.extract_strided_slice %232 {offsets = [0, 0], sizes = [32, 4], strides = [1, 1]} : vector<128x4xf32> to vector<32x4xf32>
    %236 = vector.shape_cast %234 : vector<2x4x4x32xf32> to vector<32x32xf32>
    %cst_71 = arith.constant dense<0.000000e+00> : vector<32x4xf32>
    %237 = tpu.matmul %236, %235, %cst_71 {dimension_numbers = #tpu.dot_dimension_numbers<[1], [0], [0], [1], [0, 0, 1, 1], [], []>} : vector<32x32xf32>, vector<32x4xf32>, vector<32x4xf32> -> vector<32x4xf32>
    %238 = arith.addf %233, %237 : vector<32x4xf32>
    %239 = vector.extract_strided_slice %179 {offsets = [0, 1, 1, 0], sizes = [2, 4, 4, 32], strides = [1, 1, 1, 1]} : vector<2x6x6x32xf32> to vector<2x4x4x32xf32>
    %240 = vector.extract_strided_slice %232 {offsets = [32, 0], sizes = [32, 4], strides = [1, 1]} : vector<128x4xf32> to vector<32x4xf32>
    %241 = vector.shape_cast %239 : vector<2x4x4x32xf32> to vector<32x32xf32>
    %cst_72 = arith.constant dense<0.000000e+00> : vector<32x4xf32>
    %242 = tpu.matmul %241, %240, %cst_72 {dimension_numbers = #tpu.dot_dimension_numbers<[1], [0], [0], [1], [0, 0, 1, 1], [], []>} : vector<32x32xf32>, vector<32x4xf32>, vector<32x4xf32> -> vector<32x4xf32>
    %243 = arith.addf %238, %242 : vector<32x4xf32>
    %244 = vector.extract_strided_slice %179 {offsets = [0, 2, 0, 0], sizes = [2, 4, 4, 32], strides = [1, 1, 1, 1]} : vector<2x6x6x32xf32> to vector<2x4x4x32xf32>
    %245 = vector.extract_strided_slice %232 {offsets = [64, 0], sizes = [32, 4], strides = [1, 1]} : vector<128x4xf32> to vector<32x4xf32>
    %246 = vector.shape_cast %244 : vector<2x4x4x32xf32> to vector<32x32xf32>
    %cst_73 = arith.constant dense<0.000000e+00> : vector<32x4xf32>
    %247 = tpu.matmul %246, %245, %cst_73 {dimension_numbers = #tpu.dot_dimension_numbers<[1], [0], [0], [1], [0, 0, 1, 1], [], []>} : vector<32x32xf32>, vector<32x4xf32>, vector<32x4xf32> -> vector<32x4xf32>
    %248 = arith.addf %243, %247 : vector<32x4xf32>
    %249 = vector.extract_strided_slice %179 {offsets = [0, 2, 1, 0], sizes = [2, 4, 4, 32], strides = [1, 1, 1, 1]} : vector<2x6x6x32xf32> to vector<2x4x4x32xf32>
    %250 = vector.extract_strided_slice %232 {offsets = [96, 0], sizes = [32, 4], strides = [1, 1]} : vector<128x4xf32> to vector<32x4xf32>
    %251 = vector.shape_cast %249 : vector<2x4x4x32xf32> to vector<32x32xf32>
    %cst_74 = arith.constant dense<0.000000e+00> : vector<32x4xf32>
    %252 = tpu.matmul %251, %250, %cst_74 {dimension_numbers = #tpu.dot_dimension_numbers<[1], [0], [0], [1], [0, 0, 1, 1], [], []>} : vector<32x32xf32>, vector<32x4xf32>, vector<32x4xf32> -> vector<32x4xf32>
    %253 = arith.addf %248, %252 : vector<32x4xf32>
    %254 = vector.shape_cast %253 : vector<32x4xf32> to vector<32x1x4xf32>
    %255 = vector.extract_strided_slice %175 {offsets = [3, 0, 0], sizes = [1, 128, 4], strides = [1, 1, 1]} : vector<4x128x4xf32> to vector<1x128x4xf32>
    %256 = vector.shape_cast %255 : vector<1x128x4xf32> to vector<128x4xf32>
    %cst_75 = arith.constant 0.000000e+00 : f32
    %257 = vector.broadcast %cst_75 : f32 to vector<32x4xf32>
    %258 = vector.extract_strided_slice %179 {offsets = [0, 1, 1, 0], sizes = [2, 4, 4, 32], strides = [1, 1, 1, 1]} : vector<2x6x6x32xf32> to vector<2x4x4x32xf32>
    %259 = vector.extract_strided_slice %256 {offsets = [0, 0], sizes = [32, 4], strides = [1, 1]} : vector<128x4xf32> to vector<32x4xf32>
    %260 = vector.shape_cast %258 : vector<2x4x4x32xf32> to vector<32x32xf32>
    %cst_76 = arith.constant dense<0.000000e+00> : vector<32x4xf32>
    %261 = tpu.matmul %260, %259, %cst_76 {dimension_numbers = #tpu.dot_dimension_numbers<[1], [0], [0], [1], [0, 0, 1, 1], [], []>} : vector<32x32xf32>, vector<32x4xf32>, vector<32x4xf32> -> vector<32x4xf32>
    %262 = arith.addf %257, %261 : vector<32x4xf32>
    %263 = vector.extract_strided_slice %179 {offsets = [0, 1, 2, 0], sizes = [2, 4, 4, 32], strides = [1, 1, 1, 1]} : vector<2x6x6x32xf32> to vector<2x4x4x32xf32>
    %264 = vector.extract_strided_slice %256 {offsets = [32, 0], sizes = [32, 4], strides = [1, 1]} : vector<128x4xf32> to vector<32x4xf32>
    %265 = vector.shape_cast %263 : vector<2x4x4x32xf32> to vector<32x32xf32>
    %cst_77 = arith.constant dense<0.000000e+00> : vector<32x4xf32>
    %266 = tpu.matmul %265, %264, %cst_77 {dimension_numbers = #tpu.dot_dimension_numbers<[1], [0], [0], [1], [0, 0, 1, 1], [], []>} : vector<32x32xf32>, vector<32x4xf32>, vector<32x4xf32> -> vector<32x4xf32>
    %267 = arith.addf %262, %266 : vector<32x4xf32>
    %268 = vector.extract_strided_slice %179 {offsets = [0, 2, 1, 0], sizes = [2, 4, 4, 32], strides = [1, 1, 1, 1]} : vector<2x6x6x32xf32> to vector<2x4x4x32xf32>
    %269 = vector.extract_strided_slice %256 {offsets = [64, 0], sizes = [32, 4], strides = [1, 1]} : vector<128x4xf32> to vector<32x4xf32>
    %270 = vector.shape_cast %268 : vector<2x4x4x32xf32> to vector<32x32xf32>
    %cst_78 = arith.constant dense<0.000000e+00> : vector<32x4xf32>
    %271 = tpu.matmul %270, %269, %cst_78 {dimension_numbers = #tpu.dot_dimension_numbers<[1], [0], [0], [1], [0, 0, 1, 1], [], []>} : vector<32x32xf32>, vector<32x4xf32>, vector<32x4xf32> -> vector<32x4xf32>
    %272 = arith.addf %267, %271 : vector<32x4xf32>
    %273 = vector.extract_strided_slice %179 {offsets = [0, 2, 2, 0], sizes = [2, 4, 4, 32], strides = [1, 1, 1, 1]} : vector<2x6x6x32xf32> to vector<2x4x4x32xf32>
    %274 = vector.extract_strided_slice %256 {offsets = [96, 0], sizes = [32, 4], strides = [1, 1]} : vector<128x4xf32> to vector<32x4xf32>
    %275 = vector.shape_cast %273 : vector<2x4x4x32xf32> to vector<32x32xf32>
    %cst_79 = arith.constant dense<0.000000e+00> : vector<32x4xf32>
    %276 = tpu.matmul %275, %274, %cst_79 {dimension_numbers = #tpu.dot_dimension_numbers<[1], [0], [0], [1], [0, 0, 1, 1], [], []>} : vector<32x32xf32>, vector<32x4xf32>, vector<32x4xf32> -> vector<32x4xf32>
    %277 = arith.addf %272, %276 : vector<32x4xf32>
    %278 = vector.shape_cast %277 : vector<32x4xf32> to vector<32x1x4xf32>
    %279 = tpu.concatenate %254, %278 in 1 : vector<32x1x4xf32>, vector<32x1x4xf32> -> vector<32x2x4xf32>
    %280 = vector.shape_cast %279 : vector<32x2x4xf32> to vector<8x8x4xf32>
    %281 = vector.shape_cast %280 : vector<8x8x4xf32> to vector<8x1x8x4xf32>
    %282 = tpu.concatenate %230, %281 in 1 : vector<8x1x8x4xf32>, vector<8x1x8x4xf32> -> vector<8x2x8x4xf32>
    %283 = vector.shape_cast %282 : vector<8x2x8x4xf32> to vector<2x8x8x4xf32>
    %c0_80 = arith.constant 0 : index
    %c0_81 = arith.constant 0 : index
    %c0_82 = arith.constant 0 : index
    %c0_83 = arith.constant 0 : index
    %284 = vector.load %arg9[%c0_80, %c0_81, %c0_82, %c0_83] : memref<1x4x16x4xf32, #tpu.memory_space<vmem>>, vector<1x4x16x4xf32>
    %285 = vector.shape_cast %284 : vector<1x4x16x4xf32> to vector<4x16x4xf32>
    %cst_84 = arith.constant 0.000000e+00 : f32
    %286 = vector.broadcast %cst_84 : f32 to vector<2x1x8x4xf32>
    %287 = tpu.concatenate %286, %283, %286 in 1 : vector<2x1x8x4xf32>, vector<2x8x8x4xf32>, vector<2x1x8x4xf32> -> vector<2x10x8x4xf32>
    %cst_85 = arith.constant 0.000000e+00 : f32
    %288 = vector.broadcast %cst_85 : f32 to vector<2x10x1x4xf32>
    %289 = tpu.concatenate %288, %287, %288 in 2 : vector<2x10x1x4xf32>, vector<2x10x8x4xf32>, vector<2x10x1x4xf32> -> vector<2x10x10x4xf32>
    %290 = vector.extract_strided_slice %285 {offsets = [0, 0, 0], sizes = [1, 16, 4], strides = [1, 1, 1]} : vector<4x16x4xf32> to vector<1x16x4xf32>
    %291 = vector.shape_cast %290 : vector<1x16x4xf32> to vector<16x4xf32>
    %cst_86 = arith.constant 0.000000e+00 : f32
    %292 = vector.broadcast %cst_86 : f32 to vector<128x4xf32>
    %293 = vector.extract_strided_slice %289 {offsets = [0, 0, 0, 0], sizes = [2, 8, 8, 4], strides = [1, 1, 1, 1]} : vector<2x10x10x4xf32> to vector<2x8x8x4xf32>
    %294 = vector.extract_strided_slice %291 {offsets = [0, 0], sizes = [4, 4], strides = [1, 1]} : vector<16x4xf32> to vector<4x4xf32>
    %295 = vector.shape_cast %293 : vector<2x8x8x4xf32> to vector<128x4xf32>
    %cst_87 = arith.constant dense<0.000000e+00> : vector<128x4xf32>
    %296 = tpu.matmul %295, %294, %cst_87 {dimension_numbers = #tpu.dot_dimension_numbers<[1], [0], [0], [1], [0, 0, 1, 1], [], []>} : vector<128x4xf32>, vector<4x4xf32>, vector<128x4xf32> -> vector<128x4xf32>
    %297 = arith.addf %292, %296 : vector<128x4xf32>
    %298 = vector.extract_strided_slice %289 {offsets = [0, 0, 1, 0], sizes = [2, 8, 8, 4], strides = [1, 1, 1, 1]} : vector<2x10x10x4xf32> to vector<2x8x8x4xf32>
    %299 = vector.extract_strided_slice %291 {offsets = [4, 0], sizes = [4, 4], strides = [1, 1]} : vector<16x4xf32> to vector<4x4xf32>
    %300 = vector.shape_cast %298 : vector<2x8x8x4xf32> to vector<128x4xf32>
    %cst_88 = arith.constant dense<0.000000e+00> : vector<128x4xf32>
    %301 = tpu.matmul %300, %299, %cst_88 {dimension_numbers = #tpu.dot_dimension_numbers<[1], [0], [0], [1], [0, 0, 1, 1], [], []>} : vector<128x4xf32>, vector<4x4xf32>, vector<128x4xf32> -> vector<128x4xf32>
    %302 = arith.addf %297, %301 : vector<128x4xf32>
    %303 = vector.extract_strided_slice %289 {offsets = [0, 1, 0, 0], sizes = [2, 8, 8, 4], strides = [1, 1, 1, 1]} : vector<2x10x10x4xf32> to vector<2x8x8x4xf32>
    %304 = vector.extract_strided_slice %291 {offsets = [8, 0], sizes = [4, 4], strides = [1, 1]} : vector<16x4xf32> to vector<4x4xf32>
    %305 = vector.shape_cast %303 : vector<2x8x8x4xf32> to vector<128x4xf32>
    %cst_89 = arith.constant dense<0.000000e+00> : vector<128x4xf32>
    %306 = tpu.matmul %305, %304, %cst_89 {dimension_numbers = #tpu.dot_dimension_numbers<[1], [0], [0], [1], [0, 0, 1, 1], [], []>} : vector<128x4xf32>, vector<4x4xf32>, vector<128x4xf32> -> vector<128x4xf32>
    %307 = arith.addf %302, %306 : vector<128x4xf32>
    %308 = vector.extract_strided_slice %289 {offsets = [0, 1, 1, 0], sizes = [2, 8, 8, 4], strides = [1, 1, 1, 1]} : vector<2x10x10x4xf32> to vector<2x8x8x4xf32>
    %309 = vector.extract_strided_slice %291 {offsets = [12, 0], sizes = [4, 4], strides = [1, 1]} : vector<16x4xf32> to vector<4x4xf32>
    %310 = vector.shape_cast %308 : vector<2x8x8x4xf32> to vector<128x4xf32>
    %cst_90 = arith.constant dense<0.000000e+00> : vector<128x4xf32>
    %311 = tpu.matmul %310, %309, %cst_90 {dimension_numbers = #tpu.dot_dimension_numbers<[1], [0], [0], [1], [0, 0, 1, 1], [], []>} : vector<128x4xf32>, vector<4x4xf32>, vector<128x4xf32> -> vector<128x4xf32>
    %312 = arith.addf %307, %311 : vector<128x4xf32>
    %313 = vector.shape_cast %312 : vector<128x4xf32> to vector<128x1x4xf32>
    %314 = vector.extract_strided_slice %285 {offsets = [1, 0, 0], sizes = [1, 16, 4], strides = [1, 1, 1]} : vector<4x16x4xf32> to vector<1x16x4xf32>
    %315 = vector.shape_cast %314 : vector<1x16x4xf32> to vector<16x4xf32>
    %cst_91 = arith.constant 0.000000e+00 : f32
    %316 = vector.broadcast %cst_91 : f32 to vector<128x4xf32>
    %317 = vector.extract_strided_slice %289 {offsets = [0, 0, 1, 0], sizes = [2, 8, 8, 4], strides = [1, 1, 1, 1]} : vector<2x10x10x4xf32> to vector<2x8x8x4xf32>
    %318 = vector.extract_strided_slice %315 {offsets = [0, 0], sizes = [4, 4], strides = [1, 1]} : vector<16x4xf32> to vector<4x4xf32>
    %319 = vector.shape_cast %317 : vector<2x8x8x4xf32> to vector<128x4xf32>
    %cst_92 = arith.constant dense<0.000000e+00> : vector<128x4xf32>
    %320 = tpu.matmul %319, %318, %cst_92 {dimension_numbers = #tpu.dot_dimension_numbers<[1], [0], [0], [1], [0, 0, 1, 1], [], []>} : vector<128x4xf32>, vector<4x4xf32>, vector<128x4xf32> -> vector<128x4xf32>
    %321 = arith.addf %316, %320 : vector<128x4xf32>
    %322 = vector.extract_strided_slice %289 {offsets = [0, 0, 2, 0], sizes = [2, 8, 8, 4], strides = [1, 1, 1, 1]} : vector<2x10x10x4xf32> to vector<2x8x8x4xf32>
    %323 = vector.extract_strided_slice %315 {offsets = [4, 0], sizes = [4, 4], strides = [1, 1]} : vector<16x4xf32> to vector<4x4xf32>
    %324 = vector.shape_cast %322 : vector<2x8x8x4xf32> to vector<128x4xf32>
    %cst_93 = arith.constant dense<0.000000e+00> : vector<128x4xf32>
    %325 = tpu.matmul %324, %323, %cst_93 {dimension_numbers = #tpu.dot_dimension_numbers<[1], [0], [0], [1], [0, 0, 1, 1], [], []>} : vector<128x4xf32>, vector<4x4xf32>, vector<128x4xf32> -> vector<128x4xf32>
    %326 = arith.addf %321, %325 : vector<128x4xf32>
    %327 = vector.extract_strided_slice %289 {offsets = [0, 1, 1, 0], sizes = [2, 8, 8, 4], strides = [1, 1, 1, 1]} : vector<2x10x10x4xf32> to vector<2x8x8x4xf32>
    %328 = vector.extract_strided_slice %315 {offsets = [8, 0], sizes = [4, 4], strides = [1, 1]} : vector<16x4xf32> to vector<4x4xf32>
    %329 = vector.shape_cast %327 : vector<2x8x8x4xf32> to vector<128x4xf32>
    %cst_94 = arith.constant dense<0.000000e+00> : vector<128x4xf32>
    %330 = tpu.matmul %329, %328, %cst_94 {dimension_numbers = #tpu.dot_dimension_numbers<[1], [0], [0], [1], [0, 0, 1, 1], [], []>} : vector<128x4xf32>, vector<4x4xf32>, vector<128x4xf32> -> vector<128x4xf32>
    %331 = arith.addf %326, %330 : vector<128x4xf32>
    %332 = vector.extract_strided_slice %289 {offsets = [0, 1, 2, 0], sizes = [2, 8, 8, 4], strides = [1, 1, 1, 1]} : vector<2x10x10x4xf32> to vector<2x8x8x4xf32>
    %333 = vector.extract_strided_slice %315 {offsets = [12, 0], sizes = [4, 4], strides = [1, 1]} : vector<16x4xf32> to vector<4x4xf32>
    %334 = vector.shape_cast %332 : vector<2x8x8x4xf32> to vector<128x4xf32>
    %cst_95 = arith.constant dense<0.000000e+00> : vector<128x4xf32>
    %335 = tpu.matmul %334, %333, %cst_95 {dimension_numbers = #tpu.dot_dimension_numbers<[1], [0], [0], [1], [0, 0, 1, 1], [], []>} : vector<128x4xf32>, vector<4x4xf32>, vector<128x4xf32> -> vector<128x4xf32>
    %336 = arith.addf %331, %335 : vector<128x4xf32>
    %337 = vector.shape_cast %336 : vector<128x4xf32> to vector<128x1x4xf32>
    %338 = tpu.concatenate %313, %337 in 1 : vector<128x1x4xf32>, vector<128x1x4xf32> -> vector<128x2x4xf32>
    %339 = vector.shape_cast %338 : vector<128x2x4xf32> to vector<16x16x4xf32>
    %340 = vector.shape_cast %339 : vector<16x16x4xf32> to vector<16x1x16x4xf32>
    %341 = vector.extract_strided_slice %285 {offsets = [2, 0, 0], sizes = [1, 16, 4], strides = [1, 1, 1]} : vector<4x16x4xf32> to vector<1x16x4xf32>
    %342 = vector.shape_cast %341 : vector<1x16x4xf32> to vector<16x4xf32>
    %cst_96 = arith.constant 0.000000e+00 : f32
    %343 = vector.broadcast %cst_96 : f32 to vector<128x4xf32>
    %344 = vector.extract_strided_slice %289 {offsets = [0, 1, 0, 0], sizes = [2, 8, 8, 4], strides = [1, 1, 1, 1]} : vector<2x10x10x4xf32> to vector<2x8x8x4xf32>
    %345 = vector.extract_strided_slice %342 {offsets = [0, 0], sizes = [4, 4], strides = [1, 1]} : vector<16x4xf32> to vector<4x4xf32>
    %346 = vector.shape_cast %344 : vector<2x8x8x4xf32> to vector<128x4xf32>
    %cst_97 = arith.constant dense<0.000000e+00> : vector<128x4xf32>
    %347 = tpu.matmul %346, %345, %cst_97 {dimension_numbers = #tpu.dot_dimension_numbers<[1], [0], [0], [1], [0, 0, 1, 1], [], []>} : vector<128x4xf32>, vector<4x4xf32>, vector<128x4xf32> -> vector<128x4xf32>
    %348 = arith.addf %343, %347 : vector<128x4xf32>
    %349 = vector.extract_strided_slice %289 {offsets = [0, 1, 1, 0], sizes = [2, 8, 8, 4], strides = [1, 1, 1, 1]} : vector<2x10x10x4xf32> to vector<2x8x8x4xf32>
    %350 = vector.extract_strided_slice %342 {offsets = [4, 0], sizes = [4, 4], strides = [1, 1]} : vector<16x4xf32> to vector<4x4xf32>
    %351 = vector.shape_cast %349 : vector<2x8x8x4xf32> to vector<128x4xf32>
    %cst_98 = arith.constant dense<0.000000e+00> : vector<128x4xf32>
    %352 = tpu.matmul %351, %350, %cst_98 {dimension_numbers = #tpu.dot_dimension_numbers<[1], [0], [0], [1], [0, 0, 1, 1], [], []>} : vector<128x4xf32>, vector<4x4xf32>, vector<128x4xf32> -> vector<128x4xf32>
    %353 = arith.addf %348, %352 : vector<128x4xf32>
    %354 = vector.extract_strided_slice %289 {offsets = [0, 2, 0, 0], sizes = [2, 8, 8, 4], strides = [1, 1, 1, 1]} : vector<2x10x10x4xf32> to vector<2x8x8x4xf32>
    %355 = vector.extract_strided_slice %342 {offsets = [8, 0], sizes = [4, 4], strides = [1, 1]} : vector<16x4xf32> to vector<4x4xf32>
    %356 = vector.shape_cast %354 : vector<2x8x8x4xf32> to vector<128x4xf32>
    %cst_99 = arith.constant dense<0.000000e+00> : vector<128x4xf32>
    %357 = tpu.matmul %356, %355, %cst_99 {dimension_numbers = #tpu.dot_dimension_numbers<[1], [0], [0], [1], [0, 0, 1, 1], [], []>} : vector<128x4xf32>, vector<4x4xf32>, vector<128x4xf32> -> vector<128x4xf32>
    %358 = arith.addf %353, %357 : vector<128x4xf32>
    %359 = vector.extract_strided_slice %289 {offsets = [0, 2, 1, 0], sizes = [2, 8, 8, 4], strides = [1, 1, 1, 1]} : vector<2x10x10x4xf32> to vector<2x8x8x4xf32>
    %360 = vector.extract_strided_slice %342 {offsets = [12, 0], sizes = [4, 4], strides = [1, 1]} : vector<16x4xf32> to vector<4x4xf32>
    %361 = vector.shape_cast %359 : vector<2x8x8x4xf32> to vector<128x4xf32>
    %cst_100 = arith.constant dense<0.000000e+00> : vector<128x4xf32>
    %362 = tpu.matmul %361, %360, %cst_100 {dimension_numbers = #tpu.dot_dimension_numbers<[1], [0], [0], [1], [0, 0, 1, 1], [], []>} : vector<128x4xf32>, vector<4x4xf32>, vector<128x4xf32> -> vector<128x4xf32>
    %363 = arith.addf %358, %362 : vector<128x4xf32>
    %364 = vector.shape_cast %363 : vector<128x4xf32> to vector<128x1x4xf32>
    %365 = vector.extract_strided_slice %285 {offsets = [3, 0, 0], sizes = [1, 16, 4], strides = [1, 1, 1]} : vector<4x16x4xf32> to vector<1x16x4xf32>
    %366 = vector.shape_cast %365 : vector<1x16x4xf32> to vector<16x4xf32>
    %cst_101 = arith.constant 0.000000e+00 : f32
    %367 = vector.broadcast %cst_101 : f32 to vector<128x4xf32>
    %368 = vector.extract_strided_slice %289 {offsets = [0, 1, 1, 0], sizes = [2, 8, 8, 4], strides = [1, 1, 1, 1]} : vector<2x10x10x4xf32> to vector<2x8x8x4xf32>
    %369 = vector.extract_strided_slice %366 {offsets = [0, 0], sizes = [4, 4], strides = [1, 1]} : vector<16x4xf32> to vector<4x4xf32>
    %370 = vector.shape_cast %368 : vector<2x8x8x4xf32> to vector<128x4xf32>
    %cst_102 = arith.constant dense<0.000000e+00> : vector<128x4xf32>
    %371 = tpu.matmul %370, %369, %cst_102 {dimension_numbers = #tpu.dot_dimension_numbers<[1], [0], [0], [1], [0, 0, 1, 1], [], []>} : vector<128x4xf32>, vector<4x4xf32>, vector<128x4xf32> -> vector<128x4xf32>
    %372 = arith.addf %367, %371 : vector<128x4xf32>
    %373 = vector.extract_strided_slice %289 {offsets = [0, 1, 2, 0], sizes = [2, 8, 8, 4], strides = [1, 1, 1, 1]} : vector<2x10x10x4xf32> to vector<2x8x8x4xf32>
    %374 = vector.extract_strided_slice %366 {offsets = [4, 0], sizes = [4, 4], strides = [1, 1]} : vector<16x4xf32> to vector<4x4xf32>
    %375 = vector.shape_cast %373 : vector<2x8x8x4xf32> to vector<128x4xf32>
    %cst_103 = arith.constant dense<0.000000e+00> : vector<128x4xf32>
    %376 = tpu.matmul %375, %374, %cst_103 {dimension_numbers = #tpu.dot_dimension_numbers<[1], [0], [0], [1], [0, 0, 1, 1], [], []>} : vector<128x4xf32>, vector<4x4xf32>, vector<128x4xf32> -> vector<128x4xf32>
    %377 = arith.addf %372, %376 : vector<128x4xf32>
    %378 = vector.extract_strided_slice %289 {offsets = [0, 2, 1, 0], sizes = [2, 8, 8, 4], strides = [1, 1, 1, 1]} : vector<2x10x10x4xf32> to vector<2x8x8x4xf32>
    %379 = vector.extract_strided_slice %366 {offsets = [8, 0], sizes = [4, 4], strides = [1, 1]} : vector<16x4xf32> to vector<4x4xf32>
    %380 = vector.shape_cast %378 : vector<2x8x8x4xf32> to vector<128x4xf32>
    %cst_104 = arith.constant dense<0.000000e+00> : vector<128x4xf32>
    %381 = tpu.matmul %380, %379, %cst_104 {dimension_numbers = #tpu.dot_dimension_numbers<[1], [0], [0], [1], [0, 0, 1, 1], [], []>} : vector<128x4xf32>, vector<4x4xf32>, vector<128x4xf32> -> vector<128x4xf32>
    %382 = arith.addf %377, %381 : vector<128x4xf32>
    %383 = vector.extract_strided_slice %289 {offsets = [0, 2, 2, 0], sizes = [2, 8, 8, 4], strides = [1, 1, 1, 1]} : vector<2x10x10x4xf32> to vector<2x8x8x4xf32>
    %384 = vector.extract_strided_slice %366 {offsets = [12, 0], sizes = [4, 4], strides = [1, 1]} : vector<16x4xf32> to vector<4x4xf32>
    %385 = vector.shape_cast %383 : vector<2x8x8x4xf32> to vector<128x4xf32>
    %cst_105 = arith.constant dense<0.000000e+00> : vector<128x4xf32>
    %386 = tpu.matmul %385, %384, %cst_105 {dimension_numbers = #tpu.dot_dimension_numbers<[1], [0], [0], [1], [0, 0, 1, 1], [], []>} : vector<128x4xf32>, vector<4x4xf32>, vector<128x4xf32> -> vector<128x4xf32>
    %387 = arith.addf %382, %386 : vector<128x4xf32>
    %388 = vector.shape_cast %387 : vector<128x4xf32> to vector<128x1x4xf32>
    %389 = tpu.concatenate %364, %388 in 1 : vector<128x1x4xf32>, vector<128x1x4xf32> -> vector<128x2x4xf32>
    %390 = vector.shape_cast %389 : vector<128x2x4xf32> to vector<16x16x4xf32>
    %391 = vector.shape_cast %390 : vector<16x16x4xf32> to vector<16x1x16x4xf32>
    %392 = tpu.concatenate %340, %391 in 1 : vector<16x1x16x4xf32>, vector<16x1x16x4xf32> -> vector<16x2x16x4xf32>
    %393 = vector.shape_cast %392 : vector<16x2x16x4xf32> to vector<2x16x16x4xf32>
    %394 = vector.shape_cast %393 : vector<2x16x16x4xf32> to vector<2x256x4xf32>
    %395 = vector.extract_strided_slice %394 {offsets = [0, 0, 0], sizes = [1, 256, 4], strides = [1, 1, 1]} : vector<2x256x4xf32> to vector<1x256x4xf32>
    %396 = vector.shape_cast %395 : vector<1x256x4xf32> to vector<256x4xf32>
    %397 = tpu.transpose %396, [1, 0] : vector<256x4xf32> -> vector<4x256xf32>
    %398 = vector.shape_cast %397 : vector<4x256xf32> to vector<1x1x4x256xf32>
    %399 = vector.extract_strided_slice %394 {offsets = [1, 0, 0], sizes = [1, 256, 4], strides = [1, 1, 1]} : vector<2x256x4xf32> to vector<1x256x4xf32>
    %400 = vector.shape_cast %399 : vector<1x256x4xf32> to vector<256x4xf32>
    %401 = tpu.transpose %400, [1, 0] : vector<256x4xf32> -> vector<4x256xf32>
    %402 = vector.shape_cast %401 : vector<4x256xf32> to vector<1x1x4x256xf32>
    %403 = tpu.concatenate %398, %402 in 0 : vector<1x1x4x256xf32>, vector<1x1x4x256xf32> -> vector<2x1x4x256xf32>
    %c0_106 = arith.constant 0 : index
    %c0_107 = arith.constant 0 : index
    %c0_108 = arith.constant 0 : index
    %c0_109 = arith.constant 0 : index
    %404 = vector.load %arg10[%c0_106, %c0_107, %c0_108, %c0_109] : memref<2x1x4x256xf32, #tpu.memory_space<vmem>>, vector<2x1x4x256xf32>
    tpu.vector_store %arg10[%c0_106, %c0_107, %c0_108, %c0_109], %403 {strides = array<i32>} : memref<2x1x4x256xf32, #tpu.memory_space<vmem>>, vector<2x1x4x256xf32>,
    return
  }
  func.func @transform_0(%arg0: i32) -> (i32, i32) {
    %c0_i32 = arith.constant 0 : i32
    %c0_i32_0 = arith.constant 0 : i32
    %c0_i32_1 = arith.constant 0 : i32
    return %c0_i32, %c0_i32_0 : i32, i32
  }
  func.func @transform_1(%arg0: i32) -> (i32, i32, i32) {
    %c0_i32 = arith.constant 0 : i32
    %c0_i32_0 = arith.constant 0 : i32
    %c0_i32_1 = arith.constant 0 : i32
    return %arg0, %c0_i32, %c0_i32_0 : i32, i32, i32
  }
  func.func @transform_2(%arg0: i32) -> (i32, i32, i32) {
    %c0_i32 = arith.constant 0 : i32
    %c0_i32_0 = arith.constant 0 : i32
    %c0_i32_1 = arith.constant 0 : i32
    return %arg0, %c0_i32, %c0_i32_0 : i32, i32, i32
  }
  func.func @transform_3(%arg0: i32) -> (i32, i32, i32, i32) {
    %c0_i32 = arith.constant 0 : i32
    %c0_i32_0 = arith.constant 0 : i32
    %c0_i32_1 = arith.constant 0 : i32
    %c0_i32_2 = arith.constant 0 : i32
    return %arg0, %c0_i32, %c0_i32_0, %c0_i32_1 : i32, i32, i32, i32
  }
  func.func @transform_4(%arg0: i32) -> (i32, i32, i32) {
    %c0_i32 = arith.constant 0 : i32
    %c0_i32_0 = arith.constant 0 : i32
    %c0_i32_1 = arith.constant 0 : i32
    return %arg0, %c0_i32, %c0_i32_0 : i32, i32, i32
  }
  func.func @transform_5(%arg0: i32) -> (i32, i32, i32) {
    %c0_i32 = arith.constant 0 : i32
    %c0_i32_0 = arith.constant 0 : i32
    %c0_i32_1 = arith.constant 0 : i32
    return %arg0, %c0_i32, %c0_i32_0 : i32, i32, i32
  }
  func.func @transform_6(%arg0: i32) -> (i32, i32, i32, i32) {
    %c0_i32 = arith.constant 0 : i32
    %c0_i32_0 = arith.constant 0 : i32
    %c0_i32_1 = arith.constant 0 : i32
    %c0_i32_2 = arith.constant 0 : i32
    return %arg0, %c0_i32, %c0_i32_0, %c0_i32_1 : i32, i32, i32, i32
  }
  func.func @transform_7(%arg0: i32) -> (i32, i32, i32, i32) {
    %c0_i32 = arith.constant 0 : i32
    %c0_i32_0 = arith.constant 0 : i32
    %c0_i32_1 = arith.constant 0 : i32
    %c0_i32_2 = arith.constant 0 : i32
    return %arg0, %c0_i32, %c0_i32_0, %c0_i32_1 : i32, i32, i32, i32
  }
  func.func @transform_8(%arg0: i32) -> (i32, i32, i32, i32) {
    %c0_i32 = arith.constant 0 : i32
    %c0_i32_0 = arith.constant 0 : i32
    %c0_i32_1 = arith.constant 0 : i32
    %c0_i32_2 = arith.constant 0 : i32
    return %arg0, %c0_i32, %c0_i32_0, %c0_i32_1 : i32, i32, i32, i32
  }
  func.func @transform_9(%arg0: i32) -> (i32, i32, i32, i32) {
    %c0_i32 = arith.constant 0 : i32
    %c0_i32_0 = arith.constant 0 : i32
    %c0_i32_1 = arith.constant 0 : i32
    %c0_i32_2 = arith.constant 0 : i32
    return %c0_i32, %arg0, %c0_i32_0, %c0_i32_1 : i32, i32, i32, i32
  }
}

</mosaic_0001>

<bundles_post_ra>
// kernel: multi_head_decoder_forward.1
= control target key start
LH: loop header
LB: loop body
LE: loop exit
PB: predicated region body
PF: predicated region fallthrough
CT: control target
= control target key end

     0   :  { %s17994_s30 = smov 0   ;;  %s17996_s10 = smov 0   ;;  %s23956_s0 = inlined_call_operand.vmem [shape: f32[2,8], index: 0, kind: input, shape index: {}]   ;;  %s23957_s1 = inlined_call_operand.vmem [shape: f32[2,8,32], index: 1, kind: input, shape index: {}]   ;;  %s23958_s2 = inlined_call_operand.vmem [shape: f32[2,1,32], index: 2, kind: input, shape index: {}]   ;;  %s23959_s3 = inlined_call_operand.vmem [shape: f32[2,4,32,32], index: 3, kind: input, shape index: {}]   ;;  %s23960_s4 = inlined_call_operand.vmem [shape: f32[2,1,32], index: 4, kind: input, shape index: {}]   ;;  %s23961_s5 = inlined_call_operand.vmem [shape: f32[2,1,32], index: 5, kind: input, shape index: {}]   ;;  %s23962_s6 = inlined_call_operand.vmem [shape: f32[2,4,128,32], index: 6, kind: input, shape index: {}]   ;;  %s23963_s7 = inlined_call_operand.vmem [shape: f32[2,4,128,4], index: 7, kind: input, shape index: {}]   ;;  %s23964_s8 = inlined_call_operand.vmem [shape: f32[2,4,16,4], index: 8, kind: input, shape index: {}]   ;;  %s23965_s9 = inlined_call_operand.vmem [shape: f32[2,2,4,256], index: 9, kind: output, shape index: {}]  }
   0x1   :  { %s17998_s11 = smov 0  }
   0x2 LB: > { %s18007_s12 = sadd.s32 4294967295, %s17937_s11   ;;  %s18009_s13 = sadd.s32 1, %s17937_s11   ;;  %s17937_s11 = sphi %s17998_s11, %s25165_s11   ;;  %s17933_s10 = sphi %s17996_s10, %s25164_s10   ;;  %s17929_s30 = sphi %s17994_s30, %s25163_s30  }
   0x3   : > { %s252_s14 = ssub.s32 %s17937_s11, %s18009_s13  ;;  %s255_s15 = sadd.s32 1, %s17933_s10 }
   0x4   : > { %p253_p0 = scmp.eq.s32.totalorder %s252_s14, 0  ;;  %p265_p1 = scmp.ne.s32.totalorder %s17933_s10, %s17929_s30 }
   0x5   : > { %p266_p2 = scmp.eq.s32.totalorder %s18007_s12, 1  ;;  %p15595_p3 = scmp.ge.s32.totalorder %s17937_s11, 1 }
   0x6   : > { %s18017_s16 = scalar_select %p253_p0, %s17933_s10, %s255_s15  }
   0x7   : > { %p18019_p4 = por %p266_p2, %p265_p1  ;;  %p350_p5 = scmp.lt.s32.totalorder %s17937_s11, 3 }
   0x9   : > { %p351_p6 = pnand %p15595_p3, %p350_p5 }
   0xb   : > { %354 = sbr.rel (%p351_p6) target bundleno = 2024 (0x7e8), region = 56 }
  0x12   : > { %p413_p7 = scmp.lt.s32.totalorder %s18007_s12, 1  ;;  %v17939_v0 = vmov 0.0   ;;  %vm17940_vm0 = vmmov 0   ;;  %v17941_v1 = vmov 0.0|0.0   ;;  %v446_v2 = vld [vmem:[%s23956_s0] sm:$0x3] }
  0x13   : > { %16507 = vmatprep.subr.mxu0 %v17939_v0  ;;  %16509 = vmatprep.mubr.msk.f32.mxu0 %vm17940_vm0, %v17939_v0  ;;  %vm455_vm1 = vcmask 64512   ;;  %vm546_vm2 = vcmask 261120   ;;  %vm839_vm3 = vcmask 1041408   ;;  %vm841_vm4 = vcmask 1043456  }
  0x14   : > { %s18028_s18 = scalar_select %p413_p7, %s18007_s12, 1  ;;  %17372 = vmatprep.subr.bf16.mxu1 %v17941_v1  ;;  %16520 = vmatprep.mubr.msk.f32.mxu1 %vm17940_vm0, %v17939_v0  ;;  %vm843_vm5 = vcmask 1045504   ;;  %vm948_vm6 = vcmask 1040384   ;;  %vm1047_vm7 = vcmask 1042432   ;;  %vm1080_vm8 = vcmask 1042434  }
  0x15   : > { %vm1081_vm9 = vmor %vm948_vm6, %vm1080_vm8  ;;  %vm1082_vm10 = vcmask 1044484   ;;  %vm1084_vm12 = vcmask 1046534   ;;  %vm2903_vm14 = vcmask 1044480   ;;  %vm3597_vm15 = vcmask 1045508  }
  0x16   : > { %s15597_s19 = sshll.u32 %s18028_s18, 3  ;;  %s16000_s20 = sshll.u32 %s18028_s18, 7  ;;  %vm1083_vm11 = vmor %vm1081_vm9, %vm1082_vm10 }
  0x17   : > { %s416_s23 = scalar_lea.vmem %s23957_s1, %s15597_s19  ;;  %s18041_s26 = scalar_lea.vmem %s23959_s3, %s16000_s20  ;;  %vm18184_vm13 = vmor %vm1083_vm11, %vm1084_vm12 }
  0x18   : > { %v447_v3 = vld [vmem:[%s416_s23] sm:$0xff]  ;;  %v531_v5 = vld [vmem:[%s18041_s26 + $0x8] sm:$0xff]  ;;  %v532_v10 = vld [vmem:[%s18041_s26 + $0x10] sm:$0xff]  ;;  %s419_s14 = scalar_lea.vmem %s23958_s2, %s18028_s18  ;;  %s16001_s15 = sshll.u32 %s18028_s18, 9 }
  0x19   : > { %v530_v4 = vld [vmem:[%s18041_s26] sm:$0xff]  ;;  %16508 = vmatpush3.msra.mxu0 %v447_v3  ;;  %v535_v8 = vld [vmem:[%s18041_s26 + $0x28] sm:$0xff]  ;;  %v533_v11 = vld [vmem:[%s18041_s26 + $0x18] sm:$0xff]  ;;  %s18095_s21 = scalar_lea.vmem %s23962_s6, %s16001_s15  ;;  %s427_s24 = scalar_lea.vmem %s23960_s4, %s18028_s18 }
  0x1a   : > { %v17373_v6 = vpack.c.bf16 %v531_v5, %v530_v4  ;;  %v534_v7 = vld [vmem:[%s18041_s26 + $0x20] sm:$0xff]  ;;  %16510 = vmatmul.mubr.msk.f32.vlgmr.msra.gmra.mrb[0].mxu0 %vm455_vm1, %v446_v2  ;;  %17378 = vmatprep.subr.bf16.mxu0 %v17941_v1  ;;  %v536_v12 = vld [vmem:[%s18041_s26 + $0x30] sm:$0xff]  ;;  %v17376_v13 = vpack.c.bf16 %v533_v11, %v532_v10  ;;  %v537_v14 = vld [vmem:[%s18041_s26 + $0x38] sm:$0xff]  ;;  %s430_s27 = scalar_lea.vmem %s23961_s5, %s18028_s18  ;;  %s18416_s11 = scalar_lea.vmem %s23963_s7, %s16001_s15 }
  0x1b   : > { %v17379_v9 = vpack.c.bf16 %v535_v8, %v534_v7  ;;  %16531 = vmatprep.mubr.msk.f32.mxu0 %vm17940_vm0, %v17939_v0  ;;  %v17382_v15 = vpack.c.bf16 %v537_v14, %v536_v12  ;;  %v15606_v16 = vld [vmem:[%s419_s14] ss:$0 sm:$0xff]  ;;  %v539_v18 = vld [vmem:[%s18041_s26 + $0x48] sm:$0xff]  ;;  %v540_v26 = vld [vmem:[%s18041_s26 + $0x50] sm:$0xff]  ;;  %s16003_s14 = sshll.u32 %s18028_s18, 6  ;;  %s410_s18 = sand.u32 1, %s17929_s30  }
  0x1c   : > { %17374 = vmatpush3.bf16.msra.mxu1 %v17373_v6  ;;  %v538_v17 = vld [vmem:[%s18041_s26 + $0x40] sm:$0xff]  ;;  %v543_v20 = vld [vmem:[%s18041_s26 + $0x68] sm:$0xff]  ;;  %v541_v28 = vld [vmem:[%s18041_s26 + $0x58] sm:$0xff]  ;;  %s18921_s20 = scalar_lea.vmem %s23964_s8, %s16003_s14  ;;  %s16004_s30 = sshll.u32 (%p18019_p4), %s18007_s12, 3 }
  0x1d   : > { %17380 = vmatpush3.bf16.msra.mxu0 %v17379_v9  ;;  %17375 = vmatprep.subr.bf16.mxu1 %v17941_v1  ;;  %v542_v19 = vld [vmem:[%s18041_s26 + $0x60] sm:$0xff]  ;;  %v17385_v24 = vpack.c.bf16 %v539_v18, %v538_v17  ;;  %v544_v29 = vld [vmem:[%s18041_s26 + $0x70] sm:$0xff]  ;;  %v545_v30 = vld [vmem:[%s18041_s26 + $0x78] sm:$0xff]  ;;  %v17388_v31 = vpack.c.bf16 %v541_v28, %v540_v26  ;;  %v888_v18 = vlaneseq  ;;  %v18123_v28 = vrot.slane %v17939_v0, 7  ;;  %s15429_s25 = scalar_lea.vmem (%p18019_p4), %s23965_s9, %s16004_s30 }
  0x1e   : > { %17381 = vmatprep.subr.bf16.mxu0 %v17941_v1  ;;  %v17391_v25 = vpack.c.bf16 %v543_v20, %v542_v19  ;;  %v17394_v32 = vpack.c.bf16 %v545_v30, %v544_v29  ;;  %v983_v33 = vld [vmem:[%s18095_s21 + $0xa0] sm:$0xff]  ;;  %v984_v34 = vld [vmem:[%s18095_s21 + $0xa8] sm:$0xff]  ;;  %v985_v36 = vld [vmem:[%s18095_s21 + $0xb0] sm:$0xff] }
  0x1f   : > { %v17421_v35 = vpack.c.bf16 %v984_v34, %v983_v33  ;;  %v986_v37 = vld [vmem:[%s18095_s21 + $0xb8] sm:$0xff]  ;;  %v967_v38 = vld [vmem:[%s18095_s21 + $0x20] sm:$0xff]  ;;  %v968_v40 = vld [vmem:[%s18095_s21 + $0x28] sm:$0xff]  ;;  %v18129_v33 = vsel %vm948_vm6, 0.0, %v18123_v28 }
  0x20   : > { %17377 = vmatpush3.bf16.msra.mxu1 %v17376_v13  ;;  %v17424_v39 = vpack.c.bf16 %v986_v37, %v985_v36  ;;  %v17397_v41 = vpack.c.bf16 %v968_v40, %v967_v38  ;;  %v969_v42 = vld [vmem:[%s18095_s21 + $0x30] sm:$0xff]  ;;  %v970_v43 = vld [vmem:[%s18095_s21 + $0x38] sm:$0xff]  ;;  %v15612_v20 = vld [vmem:[%s427_s24] ss:$0 sm:$0xff]  ;;  %24289 = vst [vmem:[#allocation4_spill] sm:$0xff] %v18129_v33 }
  0x21   : > { %17383 = vmatpush3.bf16.msra.mxu0 %v17382_v15  ;;  %17384 = vmatprep.subr.bf16.mxu1 %v17941_v1  ;;  %v17400_v44 = vpack.c.bf16 %v970_v43, %v969_v42  ;;  %vm18474_vm1 = vmor %vm839_vm3, %vm3597_vm15 }
  0x22   : > { %17390 = vmatprep.subr.bf16.mxu0 %v17941_v1 }
  0xed   : > { %v525_v21 = vpop.f32.mrb[0].mxu0 }
  0xee   : > { %v526_v22 = vadd.f32 %v15606_v16, %v525_v21  ;;  %v16511_v23 = vpop.f32.mrb[1].mxu0  ;;  %v17942_v16 = vmov 1966171168  }
  0xef   : > { %v886_v17 = vunpack.c.l.s4 %v17942_v16  ;;  %v889_v23 = vshrl.u32 %v888_v18, 7 }
  0xf0   : > { %v529_v27 = vmax.f32 %v526_v22, 0.0 }
  0xf1   : > { %v887_v22 = vunpack.c.0.s8 %v886_v17  ;;  %v18132_v36 = vsub.s32 0, %v889_v23 }
  0xf2   : > { %16521 = vmatmul.mubr.msk.f32.vlgmr.msra.gmra.mrb[0].mxu1 %vm546_vm2, %v529_v27  ;;  %16532 = vmatmul.mubr.msk.f32.vlgmr.msra.gmra.mrb[2].mxu0 %vm546_vm2, %v529_v27 }
  0xf3   : > { %17386 = vmatpush3.bf16.msra.mxu1 %v17385_v24  ;;  %17392 = vmatpush3.bf16.msra.mxu0 %v17391_v25  ;;  %v15613_v24 = vld [vmem:[%s430_s27] ss:$0 sm:$0xff]  ;;  %v17943_v25 = vmov 1983009808   ;;  %v18125_v30 = vsub.s32 %v887_v22, %v889_v23  ;;  %24290 = vst [vmem:[#allocation5_spill] sm:$0xff] %v18132_v36 }
  0xf4   : > { %17387 = vmatprep.subr.bf16.mxu1 %v17941_v1  ;;  %17393 = vmatprep.subr.bf16.mxu0 %v17941_v1  ;;  %v1057_v26 = vunpack.c.l.s4 %v17943_v25 }
  0xf5   : > { %16542 = vmatprep.mubr.msk.f32.mxu1 %vm17940_vm0, %v17939_v0  ;;  %16553 = vmatprep.mubr.msk.f32.mxu0 %vm17940_vm0, %v17939_v0  ;;  %24288 = vst [vmem:[#allocation3_spill] sm:$0xff] %v18125_v30 }
  0xf7   : > { %17389 = vmatpush3.bf16.msra.mxu1 %v17388_v31  ;;  %17395 = vmatpush3.bf16.msra.mxu0 %v17394_v32  ;;  %v1058_v31 = vunpack.c.0.s8 %v1057_v26 }
  0xf8   : > { %17420 = vmatprep.subr.bf16.mxu0 %v17941_v1  ;;  %17396 = vmatprep.subr.bf16.mxu1 %v17941_v1 }
  0xf9   : > { %v18134_v37 = vsub.s32 %v1058_v31, %v889_v23 }
  0xfa   : > { %16543 = vmatmul.mubr.msk.f32.vlgmr.msra.gmra.mrb[2].mxu1 %vm546_vm2, %v529_v27  ;;  %16554 = vmatmul.mubr.msk.f32.vlgmr.msra.gmra.mrb[4].mxu0 %vm546_vm2, %v529_v27 }
  0xfb   : > { %16608 = vmatprep.mubr.msk.f32.mxu0 %vm17940_vm0, %v17939_v0  ;;  %16564 = vmatprep.mubr.msk.f32.mxu1 %vm17940_vm0, %v17939_v0 }
  0xfc   : > { %17422 = vmatpush3.bf16.msra.mxu0 %v17421_v35  ;;  %17398 = vmatpush3.bf16.msra.mxu1 %v17397_v41  ;;  %v18140_v41 = vsel %vm1047_vm7, %v18129_v33, 0.0 }
  0xfd   : > { %17423 = vmatprep.subr.bf16.mxu0 %v17941_v1  ;;  %17399 = vmatprep.subr.bf16.mxu1 %v17941_v1 }
 0x100   : > { %17425 = vmatpush3.bf16.msra.mxu0 %v17424_v39  ;;  %17401 = vmatpush3.bf16.msra.mxu1 %v17400_v44 }
 0x101   : > { %17426 = vmatprep.subr.bf16.mxu0 %v17941_v1  ;;  %17402 = vmatprep.subr.bf16.mxu1 %v17941_v1 }
 0x1c5   : > { %v616_v45 = vpop.f32.mrb[0].mxu1  ;;  %v686_v46 = vpop.f32.mrb[2].mxu0 }
 0x1c6   : > { %v831_v47 = vrot.slane %v686_v46, 6  ;;  %v16522_v48 = vpop.f32.mrb[1].mxu1  ;;  %v16533_v49 = vpop.f32.mrb[3].mxu0  ;;  %v18146_v46 = vrot.slane %v18140_v41, %v18134_v37 }
 0x1c8   : > { %v840_v50 = vsel %vm839_vm3, %v616_v45, %v831_v47  ;;  %vm6224_vm3 = vcmask 31744  }
 0x1cd   : > { %v756_v51 = vpop.f32.mrb[2].mxu1  ;;  %v826_v52 = vpop.f32.mrb[4].mxu0 }
 0x1ce   : > { %v834_v53 = vrot.slane %v756_v51, 4  ;;  %v837_v54 = vrot.slane %v826_v52, 2  ;;  %v16544_v55 = vpop.f32.mrb[3].mxu1  ;;  %v16555_v56 = vpop.f32.mrb[5].mxu0 }
 0x1d0   : > { %v842_v57 = vsel %vm841_vm4, %v840_v50, %v834_v53 }
 0x1d1   : > { %v844_v58 = vsel %vm843_vm5, %v842_v57, %v837_v54 }
 0x1d2   : > { %v845_v59 = vsel %vm546_vm2, %v844_v58, 0.0 }
 0x1d3   : > { %v846_v60 = vrot.slane %v845_v59, 4 }
 0x1d5   : > { %v847_v61 = vadd.f32 %v846_v60, %v845_v59  ;;  %v1063_v59 = vcombine.high %v18146_v46, %v18146_v46 }
 0x1d7   : > { %v848_v62 = vrot.slane %v847_v61, 2 }
 0x1d9   : > { %v849_v63 = vadd.f32 %v848_v62, %v847_v61 }
 0x1db   : > { %v850_v2 = vrot.slane %v849_v63, 1 }
 0x1dd   : > { %v851_v3 = vadd.f32 %v850_v2, %v849_v63 }
 0x1df   : > { %v853_v4 = vmul.f32 0.125, %v851_v3 }
 0x1e1   : > { %v854_v5 = vsub.f32 %v844_v58, %v853_v4 }
 0x1e3   : > { %v855_v6 = vmul.f32 %v854_v5, %v854_v5 }
 0x1e5   : > { %v856_v7 = vsel %vm546_vm2, %v855_v6, 0.0 }
 0x1e6   : > { %v857_v8 = vrot.slane %v856_v7, 4 }
 0x1e8   : > { %v858_v9 = vadd.f32 %v857_v8, %v856_v7 }
 0x1ea   : > { %v859_v10 = vrot.slane %v858_v9, 2 }
 0x1ec   : > { %v860_v11 = vadd.f32 %v859_v10, %v858_v9  ;;  %v15614_v9 = vrot.slane %v18146_v46, 9  ;;  %v1088_v10 = vrot.slane %v1063_v59, 7  ;;  %v965_v59 = vld [vmem:[%s18095_s21 + $0x10] sm:$0xff] }
 0x1ee   : > { %v861_v12 = vrot.slane %v860_v11, 1  ;;  %v18206_v23 = vsel %vm18184_vm13, %v15614_v9, %v1088_v10  ;;  %v989_v10 = vld [vmem:[%s18095_s21 + $0xd0] sm:$0xff] }
 0x1f0   : > { %v862_v13 = vadd.f32 %v861_v12, %v860_v11 }
 0x1f2   : > { %v863_v14 = vmul.f32 0.125, %v862_v13 }
 0x1f4   : > { %v864_v15 = vadd.f32 1e-05, %v863_v14  ;;  %v971_v14 = vld [vmem:[%s18095_s21 + $0x40] sm:$0xff] }
 0x1f6   : > { %17913 = vrsqrt.f32 %v864_v15 }
 0x200   : > { %v17914_v19 = vpop.eup %17913 }
 0x201   : > { %v866_v21 = vmul.f32 %v17914_v19, %v854_v5  ;;  %v979_v19 = vld [vmem:[%s18095_s21 + $0x80] sm:$0xff] }
 0x203   : > { %v874_v27 = vmul.f32 %v15612_v20, %v866_v21  ;;  %v980_v20 = vld [vmem:[%s18095_s21 + $0x88] sm:$0xff] }
 0x205   : > { %v882_v29 = vadd.f32 %v15613_v24, %v874_v27 }
 0x207   : > { %v883_v32 = vmax.f32 %v882_v29, 0.0 }
 0x209   : > { %v891_v34 = vrot.slane %v883_v32, %v18125_v30  ;;  %v911_v35 = vcombine.high %v883_v32, %v883_v32  ;;  %v17427_v32 = vpack.c.bf16 %v980_v20, %v979_v19 }
 0x20b   : > { %v892_v38 = vcombine.high %v891_v34, %v891_v34  ;;  %v899_v39 = vrot.slane %v891_v34, %v18125_v30  ;;  %v918_v40 = vrot.slane %v911_v35, %v18125_v30  ;;  %v981_v34 = vld [vmem:[%s18095_s21 + $0x90] sm:$0xff]  ;;  %v982_v35 = vld [vmem:[%s18095_s21 + $0x98] sm:$0xff] }
 0x20d   : > { %v906_v42 = vrot.slane %v892_v38, %v18125_v30  ;;  %v909_v43 = vcombine.high %v899_v39, %v899_v39  ;;  %v919_v44 = vcombine.high %v918_v40, %v918_v40  ;;  %v926_v45 = vrot.slane %v918_v40, %v18125_v30 }
 0x20f   : > { %v910_v47 = vcombine.high %v906_v42, %v906_v42  ;;  %v933_v48 = vrot.slane %v919_v44, %v18125_v30  ;;  %v936_v49 = vcombine.high %v926_v45, %v926_v45  ;;  %v941_v50 = vrot.slane %v909_v43, %v18132_v36 }
 0x211   : > { %v937_v51 = vcombine.high %v933_v48, %v933_v48  ;;  %v945_v52 = vrot.slane %v910_v47, %v18132_v36  ;;  %v949_v53 = vsel %vm948_vm6, %v899_v39, %v941_v50  ;;  %v954_v54 = vrot.slane %v936_v49, %v18132_v36  ;;  %v963_v47 = vld [vmem:[%s18095_s21] sm:$0xff] }
 0x212   : > { %v1033_v55 = vrot.slane %v949_v53, 7  ;;  %v17430_v49 = vpack.c.bf16 %v982_v35, %v981_v34 }
 0x213   : > { %v950_v56 = vsel %vm948_vm6, %v906_v42, %v945_v52  ;;  %v958_v57 = vrot.slane %v937_v51, %v18132_v36  ;;  %v961_v58 = vsel %vm948_vm6, %v926_v45, %v954_v54 }
 0x214   : > { %v1034_v60 = vrot.slane %v961_v58, 7  ;;  %v1035_v61 = vrot.slane %v950_v56, 7  ;;  %v1043_v62 = vsel %vm948_vm6, 0.0, %v1033_v55  ;;  %v987_v56 = vld [vmem:[%s18095_s21 + $0xc0] sm:$0xff] }
 0x215   : > { %v962_v63 = vsel %vm948_vm6, %v933_v48, %v958_v57  ;;  %v18162_v2 = vsel %vm1047_vm7, %v1043_v62, 0.0  ;;  %v964_v48 = vld [vmem:[%s18095_s21 + $0x8] sm:$0xff] }
 0x216   : > { %v1036_v3 = vrot.slane %v962_v63, 7  ;;  %v1044_v4 = vsel %vm948_vm6, 0.0, %v1034_v60  ;;  %v1045_v5 = vsel %vm948_vm6, 0.0, %v1035_v61  ;;  %v18168_v6 = vrot.slane %v18162_v2, %v18134_v37  ;;  %v988_v57 = vld [vmem:[%s18095_s21 + $0xc8] sm:$0xff]  ;;  %v966_v60 = vld [vmem:[%s18095_s21 + $0x18] sm:$0xff] }
 0x217   : > { %v18171_v7 = vsel %vm1047_vm7, %v1044_v4, 0.0  ;;  %v18174_v8 = vsel %vm1047_vm7, %v1045_v5, 0.0  ;;  %v17403_v55 = vpack.c.bf16 %v964_v48, %v963_v47  ;;  %v1187_v4 = vcombine.low %v18140_v41, %v18162_v2  ;;  %v976_v47 = vld [vmem:[%s18095_s21 + $0x68] sm:$0xff] }
 0x218   : > { %v1046_v11 = vsel %vm948_vm6, 0.0, %v1036_v3  ;;  %v18180_v12 = vrot.slane %v18174_v8, %v18134_v37  ;;  %v15623_v13 = vcombine.high %v18146_v46, %v18168_v6  ;;  %v18193_v16 = vrot.slane %v18171_v7, %v18134_v37 }
 0x219   : > { %v18189_v15 = vsel %vm1047_vm7, %v1046_v11, 0.0  ;;  %v1071_v17 = vcombine.high %v18168_v6, %v18168_v6  ;;  %v15615_v24 = vrot.slane %v18168_v6, 9  ;;  %v1188_v61 = vcombine.low %v18140_v41, %v18174_v8  ;;  %v990_v11 = vld [vmem:[%s18095_s21 + $0xd8] sm:$0xff] }
 0x21a   : > { %v15624_v18 = vcombine.high %v18146_v46, %v18180_v12  ;;  %v1079_v21 = vcombine.high %v18180_v12, %v18180_v12  ;;  %v1548_v22 = vrot.slane %v15623_v13, %v18134_v37  ;;  %v15616_v27 = vrot.slane %v18180_v12, 9 }
 0x21b   : > { %v1092_v25 = vrot.slane %v1071_v17, 7  ;;  %v18213_v31 = vrot.slane %v18189_v15, %v18134_v37  ;;  %v1375_v39 = vcombine.high %v18193_v16, %v18193_v16  ;;  %v15620_v62 = vrot.slane %v18193_v16, 9 }
 0x21c   : > { %v1555_v26 = vrot.slane %v15624_v18, %v18134_v37  ;;  %v1096_v29 = vrot.slane %v1079_v21, 7  ;;  %v17433_v3 = vpack.c.bf16 %v988_v57, %v987_v56  ;;  %v17406_v9 = vpack.c.bf16 %v966_v60, %v965_v59  ;;  %v972_v18 = vld [vmem:[%s18095_s21 + $0x48] sm:$0xff]  ;;  %v1017_v60 = vld [vmem:[%s18095_s21 + $0x1b0] sm:$0xff] }
 0x21d   : > { %v1093_v38 = vsel %vm18184_vm13, %v15615_v24, %v1092_v25  ;;  %v1383_v44 = vcombine.high %v18213_v31, %v18213_v31  ;;  %v1386_v53 = vrot.slane %v1375_v39, 7  ;;  %v15621_v54 = vrot.slane %v18213_v31, 9  ;;  %v991_v25 = vld [vmem:[%s18095_s21 + $0xe0] sm:$0xff] }
 0x21e   : > { %v1556_v40 = vcombine.low %v1548_v22, %v1555_v26  ;;  %v1097_v42 = vsel %vm18184_vm13, %v15616_v27, %v1096_v29  ;;  %v1098_v43 = vcombine.low %v18206_v23, %v1093_v38  ;;  %v1202_v17 = vrot.slane %v1188_v61, %v18134_v37  ;;  %v992_v26 = vld [vmem:[%s18095_s21 + $0xe8] sm:$0xff]  ;;  %v973_v29 = vld [vmem:[%s18095_s21 + $0x50] sm:$0xff]  ;;  %v1018_v61 = vld [vmem:[%s18095_s21 + $0x1b8] sm:$0xff] }
 0x21f   : > { %v1099_v45 = vcombine.low %v18206_v23, %v1097_v42  ;;  %v1390_v50 = vrot.slane %v1383_v44, 7  ;;  %v18252_v5 = vsel %vm18184_vm13, %v15620_v62, %v1386_v53  ;;  %v17436_v20 = vpack.c.bf16 %v990_v11, %v989_v10  ;;  %v994_v44 = vld [vmem:[%s18095_s21 + $0xf8] sm:$0xff]  ;;  %v1016_v53 = vld [vmem:[%s18095_s21 + $0x1a8] sm:$0xff]  ;;  %v999_v62 = vld [vmem:[%s18095_s21 + $0x120] sm:$0xff] }
 0x220   : > { %16609 = vmatmul.mubr.msk.f32.vlgmr.msra.gmra.mrb[6].mxu0 %vm546_vm2, %v1556_v40  ;;  %v1106_v51 = vrot.slane %v1098_v43, %v18134_v37  ;;  %v1392_v19 = vcombine.low %v1093_v38, %v18252_v5  ;;  %v1195_v21 = vrot.slane %v1187_v4, %v18134_v37  ;;  %v17409_v22 = vpack.c.bf16 %v972_v18, %v971_v14  ;;  %v993_v43 = vld [vmem:[%s18095_s21 + $0xf0] sm:$0xff]  ;;  %v1011_v10 = vld [vmem:[%s18095_s21 + $0x180] sm:$0xff]  ;;  %v1012_v11 = vld [vmem:[%s18095_s21 + $0x188] sm:$0xff] }
 0x221   : > { %17428 = vmatpush3.bf16.msra.mxu0 %v17427_v32  ;;  %v1113_v52 = vrot.slane %v1099_v45, %v18134_v37  ;;  %16619 = vmatprep.mubr.msk.f32.mxu0 %vm17940_vm0, %v17939_v0  ;;  %v18245_v63 = vsel %vm18184_vm13, %v15621_v54, %v1390_v50  ;;  %v974_v32 = vld [vmem:[%s18095_s21 + $0x58] sm:$0xff]  ;;  %v1279_v34 = vcombine.low %v18174_v8, %v18189_v15  ;;  %v975_v45 = vld [vmem:[%s18095_s21 + $0x60] sm:$0xff]  ;;  %v977_v54 = vld [vmem:[%s18095_s21 + $0x70] sm:$0xff] }
 0x222   : > { %17429 = vmatprep.subr.bf16.mxu0 %v17941_v1  ;;  %v1393_v13 = vcombine.low %v1097_v42, %v18245_v63  ;;  %v1203_v27 = vcombine.low %v1195_v21, %v1202_v17  ;;  %v1400_v35 = vrot.slane %v1392_v19, %v18134_v37  ;;  %v17439_v38 = vpack.c.bf16 %v992_v26, %v991_v25  ;;  %v1002_v17 = vld [vmem:[%s18095_s21 + $0x138] sm:$0xff]  ;;  %v1013_v19 = vld [vmem:[%s18095_s21 + $0x190] sm:$0xff]  ;;  %v995_v21 = vld [vmem:[%s18095_s21 + $0x100] sm:$0xff] }
 0x223   : > { %v1114_v58 = vcombine.low %v1106_v51, %v1113_v52  ;;  %v1278_v39 = vcombine.low %v18162_v2, %v18171_v7  ;;  %v17412_v42 = vpack.c.bf16 %v974_v32, %v973_v29  ;;  %v15629_v8 = vcombine.high %v18180_v12, %v18213_v31  ;;  %v1015_v52 = vld [vmem:[%s18095_s21 + $0x1a0] sm:$0xff]  ;;  %v997_v29 = vld [vmem:[%s18095_s21 + $0x110] sm:$0xff]  ;;  %v998_v32 = vld [vmem:[%s18095_s21 + $0x118] sm:$0xff] }
 0x224   : > { %v1407_v24 = vrot.slane %v1393_v13, %v18134_v37  ;;  %v1293_v2 = vrot.slane %v1279_v34, %v18134_v37  ;;  %v15628_v48 = vcombine.high %v18168_v6, %v18193_v16  ;;  %v17442_v12 = vpack.c.bf16 %v994_v44, %v993_v43  ;;  %v1001_v13 = vld [vmem:[%s18095_s21 + $0x130] sm:$0xff]  ;;  %v1019_v26 = vld [vmem:[%s18095_s21 + $0x1c0] sm:$0xff]  ;;  %v1004_v44 = vld [vmem:[%s18095_s21 + $0x148] sm:$0xff] }
 0x225   : > { %17431 = vmatpush3.bf16.msra.mxu0 %v17430_v49  ;;  %16565 = vmatmul.mubr.msk.f32.vlgmr.msra.gmra.mrb[4].mxu1 %vm546_vm2, %v1114_v58  ;;  %v1286_v49 = vrot.slane %v1278_v39, %v18134_v37  ;;  %v17415_v50 = vpack.c.bf16 %v976_v47, %v975_v45  ;;  %v1785_v51 = vrot.slane %v15629_v8, %v18134_v37  ;;  %v1022_v39 = vld [vmem:[%s18095_s21 + $0x1d8] sm:$0xff]  ;;  %v1003_v43 = vld [vmem:[%s18095_s21 + $0x140] sm:$0xff] }
 0x226   : > { %17404 = vmatpush3.bf16.msra.mxu1 %v17403_v55  ;;  %17432 = vmatprep.subr.bf16.mxu0 %v17941_v1  ;;  %v18283_v40 = vcombine.low %v1400_v35, %v1407_v24  ;;  %v978_v55 = vld [vmem:[%s18095_s21 + $0x78] sm:$0xff]  ;;  %v1778_v56 = vrot.slane %v15628_v48, %v18134_v37  ;;  %v17469_v57 = vpack.c.bf16 %v1016_v53, %v1015_v52  ;;  %v1023_v47 = vld [vmem:[%s18095_s21 + $0x1e0] sm:$0xff]  ;;  %v1024_v48 = vld [vmem:[%s18095_s21 + $0x1e8] sm:$0xff] }
 0x227   : > { %17405 = vmatprep.subr.bf16.mxu1 %v17941_v1  ;;  %16575 = vmatprep.mubr.msk.f32.mxu1 %vm17940_vm0, %v17939_v0  ;;  %v18307_v6 = vcombine.low %v1286_v49, %v1293_v2  ;;  %v17418_v59 = vpack.c.bf16 %v978_v55, %v977_v54  ;;  %v17472_v4 = vpack.c.bf16 %v1018_v61, %v1017_v60  ;;  %v1025_v53 = vld [vmem:[%s18095_s21 + $0x1f0] sm:$0xff]  ;;  %v1026_v54 = vld [vmem:[%s18095_s21 + $0x1f8] sm:$0xff] }
 0x228   : > { %16620 = vmatmul.mubr.msk.f32.vlgmr.msra.gmra.mrb[6].mxu0 %vm546_vm2, %v1114_v58  ;;  %v1786_v58 = vcombine.low %v1778_v56, %v1785_v51  ;;  %v17475_v14 = vpack.c.bf16 %v1012_v11, %v1011_v10  ;;  %v17448_v18 = vpack.c.bf16 %v1002_v17, %v1001_v13  ;;  %v17454_v35 = vpack.c.bf16 %v998_v32, %v997_v29  ;;  %v1009_v60 = vld [vmem:[%s18095_s21 + $0x170] sm:$0xff]  ;;  %v1010_v61 = vld [vmem:[%s18095_s21 + $0x178] sm:$0xff] }
 0x229   : > { %17434 = vmatpush3.bf16.msra.mxu0 %v17433_v3  ;;  %16630 = vmatprep.mubr.msk.f32.mxu0 %vm17940_vm0, %v17939_v0  ;;  %v1000_v3 = vld [vmem:[%s18095_s21 + $0x128] sm:$0xff]  ;;  %v2188_v8 = vcombine.low %v18252_v5, %v18206_v23  ;;  %v17487_v49 = vpack.c.bf16 %v1024_v48, %v1023_v47  ;;  %v15638_v55 = vcombine.high %v18193_v16, %v18146_v46  ;;  %v2741_v10 = vld [vmem:[%s18416_s11 + $0x30] sm:$0xff]  ;;  %v2742_v11 = vld [vmem:[%s18416_s11 + $0x38] sm:$0xff] }
 0x22a   : > { %17407 = vmatpush3.bf16.msra.mxu1 %v17406_v9  ;;  %17435 = vmatprep.subr.bf16.mxu0 %v17941_v1  ;;  %v17445_v9 = vpack.c.bf16 %v1000_v3, %v999_v62  ;;  %v17466_v62 = vpack.c.bf16 %v1010_v61, %v1009_v60  ;;  %v2755_v3 = vld [vmem:[%s18416_s11 + $0xa0] sm:$0xff]  ;;  %v17496_v17 = vpack.c.bf16 %v2742_v11, %v2741_v10 }
 0x22b   : > { %17408 = vmatprep.subr.bf16.mxu1 %v17941_v1  ;;  %v2196_v5 = vrot.slane %v2188_v8, %v18134_v37 }
 0x22d   : > { %17437 = vmatpush3.bf16.msra.mxu0 %v17436_v20  ;;  %16576 = vmatmul.mubr.msk.f32.vlgmr.msra.gmra.mrb[4].mxu1 %vm546_vm2, %v1203_v27  ;;  %v1014_v20 = vld [vmem:[%s18095_s21 + $0x198] sm:$0xff]  ;;  %v1020_v27 = vld [vmem:[%s18095_s21 + $0x1c8] sm:$0xff] }
 0x22e   : > { %17410 = vmatpush3.bf16.msra.mxu1 %v17409_v22  ;;  %17438 = vmatprep.subr.bf16.mxu0 %v17941_v1  ;;  %v996_v22 = vld [vmem:[%s18095_s21 + $0x108] sm:$0xff]  ;;  %v17478_v24 = vpack.c.bf16 %v1014_v20, %v1013_v19  ;;  %v17481_v34 = vpack.c.bf16 %v1020_v27, %v1019_v26  ;;  %v2735_v20 = vld [vmem:[%s18416_s11] sm:$0xff] }
 0x22f   : > { %17411 = vmatprep.subr.bf16.mxu1 %v17941_v1  ;;  %16586 = vmatprep.mubr.msk.f32.mxu1 %vm17940_vm0, %v17939_v0  ;;  %v17451_v25 = vpack.c.bf16 %v996_v22, %v995_v21  ;;  %v2736_v21 = vld [vmem:[%s18416_s11 + $0x8] sm:$0xff]  ;;  %v2751_v22 = vld [vmem:[%s18416_s11 + $0x80] sm:$0xff] }
 0x230   : > { %16631 = vmatmul.mubr.msk.f32.vlgmr.msra.gmra.mrb[6].mxu0 %vm546_vm2, %v18283_v40 }
 0x231   : > { %17440 = vmatpush3.bf16.msra.mxu0 %v17439_v38  ;;  %16641 = vmatprep.mubr.msk.f32.mxu0 %vm17940_vm0, %v17939_v0  ;;  %v1021_v38 = vld [vmem:[%s18095_s21 + $0x1d0] sm:$0xff] }
 0x232   : > { %17413 = vmatpush3.bf16.msra.mxu1 %v17412_v42  ;;  %17441 = vmatprep.subr.bf16.mxu0 %v17941_v1  ;;  %v2189_v42 = vcombine.low %v18245_v63, %v18206_v23  ;;  %v17484_v2 = vpack.c.bf16 %v1022_v39, %v1021_v38  ;;  %v17457_v63 = vpack.c.bf16 %v1004_v44, %v1003_v43 }
 0x233   : > { %17414 = vmatprep.subr.bf16.mxu1 %v17941_v1  ;;  %v2099_v23 = vcombine.low %v18189_v15, %v18140_v41  ;;  %v15639_v15 = vcombine.high %v18213_v31, %v18146_v46  ;;  %v17490_v31 = vpack.c.bf16 %v1026_v54, %v1025_v53  ;;  %v2555_v46 = vrot.slane %v15638_v55, %v18134_v37 }
 0x234   : > { %v2203_v45 = vrot.slane %v2189_v42, %v18134_v37 }
 0x235   : > { %17443 = vmatpush3.bf16.msra.mxu0 %v17442_v12  ;;  %16587 = vmatmul.mubr.msk.f32.vlgmr.msra.gmra.mrb[4].mxu1 %vm546_vm2, %v18307_v6  ;;  %v1006_v12 = vld [vmem:[%s18095_s21 + $0x158] sm:$0xff] }
 0x236   : > { %17416 = vmatpush3.bf16.msra.mxu1 %v17415_v50  ;;  %17468 = vmatprep.subr.bf16.mxu0 %v17941_v1  ;;  %v2098_v50 = vcombine.low %v18171_v7, %v18140_v41  ;;  %v2204_v51 = vcombine.low %v2196_v5, %v2203_v45  ;;  %v1007_v41 = vld [vmem:[%s18095_s21 + $0x160] sm:$0xff]  ;;  %v1008_v7 = vld [vmem:[%s18095_s21 + $0x168] sm:$0xff] }
 0x237   : > { %17417 = vmatprep.subr.bf16.mxu1 %v17941_v1  ;;  %16597 = vmatprep.mubr.msk.f32.mxu1 %vm17940_vm0, %v17939_v0 }
 0x238   : > { %16642 = vmatmul.mubr.msk.f32.vlgmr.msra.gmra.mrb[6].mxu0 %vm546_vm2, %v1786_v58  ;;  %v2106_v56 = vrot.slane %v2098_v50, %v18134_v37 }
 0x239   : > { %17470 = vmatpush3.bf16.msra.mxu0 %v17469_v57  ;;  %16696 = vmatprep.mubr.msk.f32.mxu0 %vm17940_vm0, %v17939_v0  ;;  %v17463_v57 = vpack.c.bf16 %v1008_v7, %v1007_v41 }
 0x23a   : > { %17419 = vmatpush3.bf16.msra.mxu1 %v17418_v59  ;;  %17471 = vmatprep.subr.bf16.mxu0 %v17941_v1 }
 0x23b   : > { %17444 = vmatprep.subr.bf16.mxu1 %v17941_v1 }
 0x23d   : > { %17473 = vmatpush3.bf16.msra.mxu0 %v17472_v4  ;;  %16598 = vmatmul.mubr.msk.f32.vlgmr.msra.gmra.mrb[4].mxu1 %vm546_vm2, %v18283_v40 }
 0x23e   : > { %17446 = vmatpush3.bf16.msra.mxu1 %v17445_v9  ;;  %17474 = vmatprep.subr.bf16.mxu0 %v17941_v1  ;;  %v2756_v9 = vld [vmem:[%s18416_s11 + $0xa8] sm:$0xff] }
 0x23f   : > { %17447 = vmatprep.subr.bf16.mxu1 %v17941_v1  ;;  %16652 = vmatprep.mubr.msk.f32.mxu1 %vm17940_vm0, %v17939_v0  ;;  %v17524_v13 = vpack.c.bf16 %v2756_v9, %v2755_v3 }
 0x240   : > { %16697 = vmatmul.mubr.msk.f32.vlgmr.msra.gmra.mrb[8].mxu0 %vm546_vm2, %v1786_v58  ;;  %v2562_v58 = vrot.slane %v15639_v15, %v18134_v37 }
 0x241   : > { %17476 = vmatpush3.bf16.msra.mxu0 %v17475_v14  ;;  %16707 = vmatprep.mubr.msk.f32.mxu0 %vm17940_vm0, %v17939_v0  ;;  %v2757_v14 = vld [vmem:[%s18416_s11 + $0xb0] sm:$0xff] }
 0x242   : > { %17449 = vmatpush3.bf16.msra.mxu1 %v17448_v18  ;;  %17477 = vmatprep.subr.bf16.mxu0 %v17941_v1  ;;  %v2563_v16 = vcombine.low %v2555_v46, %v2562_v58  ;;  %v2758_v18 = vld [vmem:[%s18416_s11 + $0xb8] sm:$0xff] }
 0x243   : > { %17450 = vmatprep.subr.bf16.mxu1 %v17941_v1  ;;  %v17528_v19 = vpack.c.bf16 %v2758_v18, %v2757_v14 }
 0x245   : > { %16653 = vmatmul.mubr.msk.f32.vlgmr.msra.gmra.mrb[6].mxu1 %vm546_vm2, %v18283_v40  ;;  %17479 = vmatpush3.bf16.msra.mxu0 %v17478_v24  ;;  %v18429_v24 = vpack.c.bf16 %v2736_v21, %v2735_v20 }
 0x246   : > { %17452 = vmatpush3.bf16.msra.mxu1 %v17451_v25  ;;  %17480 = vmatprep.subr.bf16.mxu0 %v17941_v1  ;;  %v2752_v25 = vld [vmem:[%s18416_s11 + $0x88] sm:$0xff] }
 0x247   : > { %17453 = vmatprep.subr.bf16.mxu1 %v17941_v1  ;;  %16663 = vmatprep.mubr.msk.f32.mxu1 %vm17940_vm0, %v17939_v0  ;;  %v18432_v26 = vpack.c.bf16 %v2752_v25, %v2751_v22 }
 0x248   : > { %16708 = vmatmul.mubr.msk.f32.vlgmr.msra.gmra.mrb[8].mxu0 %vm546_vm2, %v18283_v40  ;;  %v1005_v40 = vld [vmem:[%s18095_s21 + $0x150] sm:$0xff]  ;;  %s15596_s21 = sshll.u32 %s410_s18, 4 }
 0x249   : > { %17482 = vmatpush3.bf16.msra.mxu0 %v17481_v34  ;;  %16718 = vmatprep.mubr.msk.f32.mxu0 %vm17940_vm0, %v17939_v0  ;;  %v17460_v52 = vpack.c.bf16 %v1006_v12, %v1005_v40  ;;  %s412_s22 = scalar_lea.vmem [#allocation2], %s15596_s21 }
 0x24a   : > { %17455 = vmatpush3.bf16.msra.mxu1 %v17454_v35  ;;  %17483 = vmatprep.subr.bf16.mxu0 %v17941_v1 }
 0x24b   : > { %17456 = vmatprep.subr.bf16.mxu1 %v17941_v1 }
 0x24d   : > { %16664 = vmatmul.mubr.msk.f32.vlgmr.msra.gmra.mrb[6].mxu1 %vm546_vm2, %v18307_v6  ;;  %17485 = vmatpush3.bf16.msra.mxu0 %v17484_v2  ;;  %v2113_v6 = vrot.slane %v2099_v23, %v18134_v37 }
 0x24e   : > { %17458 = vmatpush3.bf16.msra.mxu1 %v17457_v63  ;;  %17486 = vmatprep.subr.bf16.mxu0 %v17941_v1 }
 0x24f   : > { %17459 = vmatprep.subr.bf16.mxu1 %v17941_v1  ;;  %16674 = vmatprep.mubr.msk.f32.mxu1 %vm17940_vm0, %v17939_v0  ;;  %v2114_v59 = vcombine.low %v2106_v56, %v2113_v6 }
 0x250   : > { %16719 = vmatmul.mubr.msk.f32.vlgmr.msra.gmra.mrb[8].mxu0 %vm546_vm2, %v2204_v51 }
 0x251   : > { %17488 = vmatpush3.bf16.msra.mxu0 %v17487_v49  ;;  %16729 = vmatprep.mubr.msk.f32.mxu0 %vm17940_vm0, %v17939_v0  ;;  %v18446_v49 = vsel %vm2903_vm14, %v18129_v33, 0.0 }
 0x252   : > { %17461 = vmatpush3.bf16.msra.mxu1 %v17460_v52  ;;  %17489 = vmatprep.subr.bf16.mxu0 %v17941_v1  ;;  %v2920_v14 = vcombine.high %v18446_v49, %v18446_v49 }
 0x253   : > { %17462 = vmatprep.subr.bf16.mxu1 %v17941_v1 }
 0x255   : > { %16675 = vmatmul.mubr.msk.f32.vlgmr.msra.gmra.mrb[6].mxu1 %vm546_vm2, %v2114_v59  ;;  %17491 = vmatpush3.bf16.msra.mxu0 %v17490_v31 }
 0x256   : > { %17464 = vmatpush3.bf16.msra.mxu1 %v17463_v57  ;;  %16685 = vmatprep.mubr.msk.f32.mxu1 %vm17940_vm0, %v17939_v0  ;;  %v2739_v0 = vld [vmem:[%s18416_s11 + $0x20] sm:$0xff]  ;;  %vm2927_vm0 = vcmask 1046532  }
 0x257   : > { %17465 = vmatprep.subr.bf16.mxu1 %v17941_v1  ;;  %v2740_v1 = vld [vmem:[%s18416_s11 + $0x28] sm:$0xff]  ;;  %17525 = vmatprep.subr.bf16.mxu0 %v17524_v13  ;;  %vm18482_vm8 = vmor %vm1047_vm7, %vm2927_vm0 }
 0x258   : > { %16730 = vmatmul.mubr.msk.f32.vlgmr.msra.gmra.mrb[8].mxu0 %vm546_vm2, %v2563_v16  ;;  %v17492_v4 = vpack.c.bf16 %v2740_v1, %v2739_v0 }
 0x259   : > { %17527 = vmatpush3.bf16.msra.mxu0 %v17524_v13 }
 0x25a   : > { %17467 = vmatpush3.bf16.msra.mxu1 %v17466_v62  ;;  %17529 = vmatprep.subr.bf16.mxu0 %v17528_v19 }
 0x25b   : > { %17493 = vmatprep.subr.bf16.mxu1 %v17492_v4 }
 0x25d   : > { %16686 = vmatmul.mubr.msk.f32.vlgmr.msra.gmra.mrb[6].mxu1 %vm546_vm2, %v2204_v51  ;;  %17531 = vmatpush3.bf16.msra.mxu0 %v17528_v19 }
 0x25e   : > { %17495 = vmatpush3.bf16.msra.mxu1 %v17492_v4  ;;  %17533 = vmatprep.subr.bf16.mxu0 %v18432_v26 }
 0x25f   : > { %17497 = vmatprep.subr.bf16.mxu1 %v17496_v17 }
 0x262   : > { %17499 = vmatpush3.bf16.msra.mxu1 %v17496_v17 }
 0x263   : > { %17501 = vmatprep.subr.bf16.mxu1 %v18429_v24 }
 0x30b   : > { %v1855_v27 = vpop.f32.mrb[6].mxu0 }
 0x30c   : > { %v1861_v29 = vcombine.high %v1855_v27, %v1855_v27  ;;  %v1868_v32 = vrot.slane %v1855_v27, %v18125_v30  ;;  %v16643_v34 = vpop.f32.mrb[7].mxu0  ;;  %v15641_v27 = vrot.slane %v18446_v49, 9 }
 0x30d   : > { %v3601_v34 = vrot.slane %v2920_v14, 6 }
 0x30e   : > { %v1875_v35 = vrot.slane %v1861_v29, %v18125_v30  ;;  %v1876_v38 = vcombine.high %v1868_v32, %v1868_v32  ;;  %v1884_v39 = vrot.slane %v1868_v32, %v18125_v30  ;;  %v2931_v29 = vrot.slane %v2920_v14, 5 }
 0x30f   : > { %v15666_v32 = vrot.slane %v18446_v49, 10 }
 0x310   : > { %v1877_v42 = vcombine.high %v1875_v35, %v1875_v35  ;;  %v1891_v43 = vrot.slane %v1875_v35, %v18125_v30  ;;  %v1898_v44 = vrot.slane %v1876_v38, %v18125_v30  ;;  %v1906_v8 = vcombine.high %v1884_v39, %v1884_v39  ;;  %v1477_v2 = vpop.f32.mrb[4].mxu1  ;;  %v2763_v38 = vld [vmem:[%s18416_s11 + $0xe0] sm:$0xff] }
 0x311   : > { %v1483_v63 = vcombine.high %v1477_v2, %v1477_v2  ;;  %v1490_v45 = vrot.slane %v1477_v2, %v18125_v30  ;;  %v16599_v47 = vpop.f32.mrb[5].mxu1  ;;  %v1913_v51 = vrot.slane %v1884_v39, %v18132_v36  ;;  %v18494_v2 = vsel %vm18482_vm8, %v15641_v27, %v2931_v29 }
 0x312   : > { %v1905_v48 = vrot.slane %v1877_v42, %v18125_v30  ;;  %v1907_v40 = vcombine.high %v1891_v43, %v1891_v43  ;;  %v1908_v12 = vcombine.high %v1898_v44, %v1898_v44  ;;  %v1917_v52 = vrot.slane %v1898_v44, %v18132_v36 }
 0x313   : > { %v1497_v23 = vrot.slane %v1483_v63, %v18125_v30  ;;  %v1498_v5 = vcombine.high %v1490_v45, %v1490_v45  ;;  %v1921_v53 = vrot.slane %v1906_v8, %v18132_v36  ;;  %v1506_v15 = vrot.slane %v1490_v45, %v18125_v30 }
 0x314   : > { %v1909_v50 = vcombine.high %v1905_v48, %v1905_v48  ;;  %v1925_v7 = vrot.slane %v1908_v12, %v18132_v36  ;;  %v1929_v55 = vrot.slane %v1891_v43, %v18132_v36  ;;  %v1933_v56 = vrot.slane %v1905_v48, %v18132_v36 }
 0x315   : > { %v1499_v54 = vcombine.high %v1497_v23, %v1497_v23  ;;  %v1513_v6 = vrot.slane %v1497_v23, %v18125_v30  ;;  %v1520_v41 = vrot.slane %v1498_v5, %v18125_v30  ;;  %v1937_v31 = vrot.slane %v1907_v40, %v18132_v36 }
 0x316   : > { %v1528_v58 = vcombine.high %v1506_v15, %v1506_v15  ;;  %v1941_v61 = vrot.slane %v1909_v50, %v18132_v36  ;;  %v1950_v46 = vsel %vm948_vm6, %v1506_v15, %v1913_v51  ;;  %v18498_v63 = vsel %vm18474_vm1, %v15666_v32, %v3601_v34 }
 0x317   : > { %v1527_v57 = vrot.slane %v1499_v54, %v18125_v30  ;;  %v1529_v59 = vcombine.high %v1513_v6, %v1513_v6  ;;  %v1530_v60 = vcombine.high %v1520_v41, %v1520_v41  ;;  %v1951_v16 = vsel %vm948_vm6, %v1520_v41, %v1917_v52  ;;  %v2738_v41 = vld [vmem:[%s18416_s11 + $0x18] sm:$0xff] }
 0x318   : > { %v1954_v62 = vsel %vm948_vm6, %v1513_v6, %v1929_v55  ;;  %v1952_v1 = vsel %vm948_vm6, %v1528_v58, %v1921_v53  ;;  %v2815_v10 = vcombine.low %v1950_v46, %v1951_v16  ;;  %v2737_v6 = vld [vmem:[%s18416_s11 + $0x10] sm:$0xff]  ;;  %v2754_v55 = vld [vmem:[%s18416_s11 + $0x98] sm:$0xff]  ;;  %v2759_v58 = vld [vmem:[%s18416_s11 + $0xc0] sm:$0xff] }
 0x319   : > { %v1531_v0 = vcombine.high %v1527_v57, %v1527_v57  ;;  %v1953_v3 = vsel %vm948_vm6, %v1530_v60, %v1925_v7  ;;  %v1955_v4 = vsel %vm948_vm6, %v1527_v57, %v1933_v56  ;;  %v1956_v9 = vsel %vm948_vm6, %v1529_v59, %v1937_v31  ;;  %v2753_v7 = vld [vmem:[%s18416_s11 + $0x90] sm:$0xff]  ;;  %v2743_v56 = vld [vmem:[%s18416_s11 + $0x40] sm:$0xff]  ;;  %v2744_v57 = vld [vmem:[%s18416_s11 + $0x48] sm:$0xff] }
 0x31a   : > { %v2831_v11 = vcombine.low %v1952_v1, %v1953_v3  ;;  %v2847_v13 = vcombine.low %v1954_v62, %v1955_v4  ;;  %v2822_v18 = vrot.slane %v2815_v10, %v18134_v37  ;;  %v2760_v59 = vld [vmem:[%s18416_s11 + $0xc8] sm:$0xff]  ;;  %v18545_v1 = vpack.c.bf16 %v2738_v41, %v2737_v6 }
 0x31b   : > { %v1957_v17 = vsel %vm948_vm6, %v1531_v0, %v1941_v61  ;;  %v18550_v4 = vpack.c.bf16 %v2754_v55, %v2753_v7  ;;  %v18554_v10 = vpack.c.bf16 %v2760_v59, %v2759_v58 }
 0x31c   : > { %v2863_v19 = vcombine.low %v1956_v9, %v1957_v17  ;;  %v2838_v20 = vrot.slane %v2831_v11, %v18134_v37  ;;  %v2854_v21 = vrot.slane %v2847_v13, %v18134_v37  ;;  %v2879_v22 = vrot.slane %v2822_v18, 7 }
 0x31d   : > { %v18552_v9 = vpack.c.bf16 %v2744_v57, %v2743_v56 }
 0x31e   : > { %v2895_v35 = vsel %vm948_vm6, 0.0, %v2879_v22  ;;  %v2881_v39 = vrot.slane %v2838_v20, 7  ;;  %v2883_v42 = vrot.slane %v2854_v21, 7  ;;  %v2870_v44 = vrot.slane %v2863_v19, %v18134_v37 }
 0x31f   : > { %v18487_v43 = vsel %vm2903_vm14, %v2895_v35, 0.0 }
 0x320   : > { %v2921_v8 = vcombine.high %v18487_v43, %v18487_v43  ;;  %v15642_v45 = vrot.slane %v18487_v43, 9  ;;  %v15667_v48 = vrot.slane %v18487_v43, 10  ;;  %v2897_v12 = vsel %vm948_vm6, 0.0, %v2881_v39 }
 0x321   : > { %v2899_v23 = vsel %vm948_vm6, 0.0, %v2883_v42  ;;  %v2885_v5 = vrot.slane %v2870_v44, 7  ;;  %v18519_v54 = vsel %vm2903_vm14, %v2897_v12, 0.0 }
 0x322   : > { %v2935_v47 = vrot.slane %v2921_v8, 5  ;;  %v3605_v40 = vrot.slane %v2921_v8, 6  ;;  %v18522_v15 = vsel %vm2903_vm14, %v2899_v23, 0.0  ;;  %v18538_v61 = vcombine.high %v18519_v54, %v18519_v54 }
 0x323   : > { %v2901_v31 = vsel %vm948_vm6, 0.0, %v2885_v5  ;;  %v18542_v46 = vcombine.high %v18522_v15, %v18522_v15  ;;  %v15644_v14 = vrot.slane %v18519_v54, 9  ;;  %v15669_v19 = vrot.slane %v18519_v54, 10 }
 0x324   : > { %v18506_v50 = vsel %vm18482_vm8, %v15642_v45, %v2935_v47  ;;  %v18510_v51 = vsel %vm18474_vm1, %v15667_v48, %v3605_v40  ;;  %v18548_v3 = vsel %vm2903_vm14, %v2901_v31, 0.0  ;;  %v2943_v18 = vrot.slane %v18538_v61, 5 }
 0x325   : > { %v18514_v52 = vcombine.low %v18494_v2, %v18506_v50  ;;  %v3627_v53 = vcombine.low %v18498_v63, %v18510_v51  ;;  %v15645_v20 = vrot.slane %v18522_v15, 9  ;;  %v2947_v21 = vrot.slane %v18542_v46, 5 }
 0x326   : > { %v3613_v44 = vrot.slane %v18538_v61, 6  ;;  %v15670_v8 = vrot.slane %v18522_v15, 10  ;;  %v2926_v40 = vcombine.high %v18548_v3, %v18548_v3 }
 0x327   : > { %16740 = vmatprep.mubr.msk.f32.mxu1 %vm546_vm2, %v18514_v52  ;;  %16796 = vmatprep.mubr.msk.f32.mxu0 %vm546_vm2, %v3627_v53  ;;  %v18574_v5 = vsel %vm18482_vm8, %v15645_v20, %v2947_v21  ;;  %v3617_v53 = vrot.slane %v18542_v46, 6 }
 0x32b   : > { %v2632_v60 = vpop.f32.mrb[8].mxu0 }
 0x32c   : > { %v2638_v16 = vcombine.high %v2632_v60, %v2632_v60  ;;  %v2645_v62 = vrot.slane %v2632_v60, %v18125_v30  ;;  %v16731_v0 = vpop.f32.mrb[9].mxu0 }
 0x32e   : > { %v2652_v11 = vrot.slane %v2638_v16, %v18125_v30  ;;  %v2653_v13 = vcombine.high %v2645_v62, %v2645_v62  ;;  %v2661_v17 = vrot.slane %v2645_v62, %v18125_v30 }
 0x330   : > { %v2654_v22 = vcombine.high %v2652_v11, %v2652_v11  ;;  %v2668_v27 = vrot.slane %v2652_v11, %v18125_v30  ;;  %v2675_v29 = vrot.slane %v2653_v13, %v18125_v30  ;;  %v2683_v32 = vcombine.high %v2661_v17, %v2661_v17  ;;  %v2273_v34 = vpop.f32.mrb[6].mxu1 }
 0x331   : > { %v2279_v35 = vcombine.high %v2273_v34, %v2273_v34  ;;  %v2286_v39 = vrot.slane %v2273_v34, %v18125_v30  ;;  %v16687_v42 = vpop.f32.mrb[7].mxu1  ;;  %v2690_v41 = vrot.slane %v2661_v17, %v18132_v36 }
 0x332   : > { %v2682_v45 = vrot.slane %v2654_v22, %v18125_v30  ;;  %v2684_v47 = vcombine.high %v2668_v27, %v2668_v27  ;;  %v2685_v48 = vcombine.high %v2675_v29, %v2675_v29  ;;  %v2694_v7 = vrot.slane %v2675_v29, %v18132_v36 }
 0x333   : > { %v2293_v12 = vrot.slane %v2279_v35, %v18125_v30  ;;  %v2294_v23 = vcombine.high %v2286_v39, %v2286_v39  ;;  %v2698_v55 = vrot.slane %v2683_v32, %v18132_v36  ;;  %v2302_v31 = vrot.slane %v2286_v39, %v18125_v30 }
 0x334   : > { %v2686_v6 = vcombine.high %v2682_v45, %v2682_v45  ;;  %v2702_v59 = vrot.slane %v2685_v48, %v18132_v36  ;;  %v2706_v60 = vrot.slane %v2668_v27, %v18132_v36  ;;  %v2710_v61 = vrot.slane %v2682_v45, %v18132_v36 }
 0x335   : > { %v2295_v56 = vcombine.high %v2293_v12, %v2293_v12  ;;  %v2309_v57 = vrot.slane %v2293_v12, %v18125_v30  ;;  %v2316_v58 = vrot.slane %v2294_v23, %v18125_v30  ;;  %v2714_v46 = vrot.slane %v2684_v47, %v18132_v36 }
 0x336   : > { %v2324_v62 = vcombine.high %v2302_v31, %v2302_v31  ;;  %v2718_v13 = vrot.slane %v2686_v6, %v18132_v36  ;;  %v2727_v17 = vsel %vm948_vm6, %v2302_v31, %v2690_v41  ;;  %v18599_v47 = vsel %vm18474_vm1, %v15670_v8, %v3617_v53 }
 0x337   : > { %v2323_v16 = vrot.slane %v2295_v56, %v18125_v30  ;;  %v2325_v0 = vcombine.high %v2309_v57, %v2309_v57  ;;  %v2326_v11 = vcombine.high %v2316_v58, %v2316_v58  ;;  %v2728_v20 = vsel %vm948_vm6, %v2316_v58, %v2694_v7 }
 0x338   : > { %v2731_v21 = vsel %vm948_vm6, %v2309_v57, %v2706_v60  ;;  %v2729_v27 = vsel %vm948_vm6, %v2324_v62, %v2698_v55  ;;  %v2823_v35 = vcombine.low %v2727_v17, %v2728_v20  ;;  %v2955_v48 = vrot.slane %v2926_v40, 5 }
 0x339   : > { %v2327_v22 = vcombine.high %v2323_v16, %v2323_v16  ;;  %v2730_v29 = vsel %vm948_vm6, %v2326_v11, %v2702_v59  ;;  %v2732_v32 = vsel %vm948_vm6, %v2323_v16, %v2710_v61  ;;  %v2733_v34 = vsel %vm948_vm6, %v2325_v0, %v2714_v46 }
 0x33a   : > { %v2839_v39 = vcombine.low %v2729_v27, %v2730_v29  ;;  %v2855_v42 = vcombine.low %v2731_v21, %v2732_v32  ;;  %v3625_v12 = vrot.slane %v2926_v40, 6  ;;  %v2830_v23 = vrot.slane %v2823_v35, %v18134_v37 }
 0x33b   : > { %v2734_v45 = vsel %vm948_vm6, %v2327_v22, %v2718_v13  ;;  %v2944_v55 = vsel %vm18482_vm8, %v15644_v14, %v2943_v18  ;;  %v3614_v56 = vsel %vm18474_vm1, %v15669_v19, %v3613_v44  ;;  %v15647_v31 = vrot.slane %v18548_v3, 9 }
 0x33c   : > { %v2846_v6 = vrot.slane %v2839_v39, %v18134_v37  ;;  %v2862_v41 = vrot.slane %v2855_v42, %v18134_v37  ;;  %v2871_v7 = vcombine.low %v2733_v34, %v2734_v45  ;;  %v15672_v8 = vrot.slane %v18548_v3, 10 }
 0x33d   : > { %v2880_v40 = vrot.slane %v2830_v23, 7  ;;  %v18613_v59 = vcombine.low %v18494_v2, %v18574_v5  ;;  %v3629_v60 = vcombine.low %v18498_v63, %v18599_v47  ;;  %v18619_v14 = vsel %vm18482_vm8, %v15647_v31, %v2955_v48 }
 0x33e   : > { %v2878_v53 = vrot.slane %v2871_v7, %v18134_v37  ;;  %v2882_v57 = vrot.slane %v2846_v6, 7  ;;  %v2884_v58 = vrot.slane %v2862_v41, 7  ;;  %v3054_v18 = vcombine.low %v18446_v49, %v18487_v43 }
 0x33f   : > { %v2896_v19 = vsel %vm948_vm6, 0.0, %v2880_v40  ;;  %v18628_v46 = vsel %vm18474_vm1, %v15672_v8, %v3625_v12 }
 0x340   : > { %v2898_v44 = vsel %vm948_vm6, 0.0, %v2882_v57  ;;  %v2900_v61 = vsel %vm948_vm6, 0.0, %v2884_v58  ;;  %v2886_v16 = vrot.slane %v2878_v53, 7  ;;  %v2906_v62 = vsel %vm2903_vm14, %v2896_v19, 0.0 }
 0x341   : > { %v18632_v0 = vsel %vm2903_vm14, %v2898_v44, 0.0  ;;  %v2910_v11 = vsel %vm2903_vm14, %v2900_v61, 0.0  ;;  %v2922_v13 = vcombine.high %v2906_v62, %v2906_v62  ;;  %v15643_v17 = vrot.slane %v2906_v62, 9 }
 0x342   : > { %v3254_v20 = vcombine.high %v18632_v0, %v18632_v0  ;;  %v15660_v21 = vrot.slane %v18632_v0, 9  ;;  %v15668_v22 = vrot.slane %v2906_v62, 10  ;;  %v15685_v27 = vrot.slane %v18632_v0, 10 }
 0x343   : > { %v2925_v29 = vcombine.high %v2910_v11, %v2910_v11  ;;  %v15646_v32 = vrot.slane %v2910_v11, 9  ;;  %v2939_v34 = vrot.slane %v2922_v13, 5  ;;  %v3609_v39 = vrot.slane %v2922_v13, 6 }
 0x344   : > { %v3258_v35 = vrot.slane %v3254_v20, 5  ;;  %v3900_v42 = vrot.slane %v3254_v20, 6  ;;  %v15671_v48 = vrot.slane %v2910_v11, 10  ;;  %v18640_v23 = vcombine.low %v2906_v62, %v18519_v54 }
 0x345   : > { %v2951_v45 = vrot.slane %v2925_v29, 5  ;;  %v3621_v12 = vrot.slane %v2925_v29, 6  ;;  %v2940_v6 = vsel %vm18482_vm8, %v15643_v17, %v2939_v34  ;;  %v3610_v7 = vsel %vm18474_vm1, %v15668_v22, %v3609_v39  ;;  %v2761_v29 = vld [vmem:[%s18416_s11 + $0xd0] sm:$0xff] }
 0x346   : > { %v3259_v41 = vsel %vm18482_vm8, %v15660_v21, %v3258_v35  ;;  %v18650_v31 = vsel %vm18474_vm1, %v15685_v27, %v3900_v42  ;;  %v18652_v8 = vcombine.low %v2940_v6, %v2944_v55  ;;  %v18659_v57 = vcombine.low %v3610_v7, %v3614_v56  ;;  %v2748_v35 = vld [vmem:[%s18416_s11 + $0x68] sm:$0xff] }
 0x347   : > { %v18654_v53 = vcombine.low %v2944_v55, %v3259_v41  ;;  %v18657_v40 = vcombine.low %v3259_v41, %v18494_v2  ;;  %v18662_v58 = vcombine.low %v3614_v56, %v18650_v31  ;;  %v5250_v19 = vcombine.low %v18650_v31, %v18498_v63  ;;  %v2772_v41 = vld [vmem:[%s18416_s11 + $0x128] sm:$0xff] }
 0x348   : > { %v2952_v44 = vsel %vm18482_vm8, %v15646_v32, %v2951_v45  ;;  %v3622_v61 = vsel %vm18474_vm1, %v15671_v48, %v3621_v12  ;;  %16741 = vmatmul.mubr.msk.f32.vlgmr.msra.gmra.mrb[8].mxu1 %vm546_vm2, %v18652_v8  ;;  %16797 = vmatmul.mubr.msk.f32.vlgmr.msra.gmra.mrb[10].mxu0 %vm546_vm2, %v18659_v57  ;;  %v18681_v13 = vcombine.low %v2910_v11, %v18548_v3  ;;  %v2902_v17 = vsel %vm948_vm6, 0.0, %v2886_v16  ;;  %v2745_v16 = vld [vmem:[%s18416_s11 + $0x50] sm:$0xff]  ;;  %v2766_v45 = vld [vmem:[%s18416_s11 + $0xf8] sm:$0xff] }
 0x349   : > { %v18675_v55 = vcombine.low %v2952_v44, %v18619_v14  ;;  %v18678_v56 = vcombine.low %v3622_v61, %v18628_v46  ;;  %16743 = vmatprep.mubr.msk.f32.mxu1 %vm546_vm2, %v18613_v59  ;;  %17503 = vmatpush3.bf16.msra.mxu1 %v18429_v24  ;;  %v18688_v20 = vcombine.low %v18487_v43, %v2906_v62  ;;  %v18698_v27 = vsel %vm2903_vm14, %v2902_v17, 0.0 }
 0x34a   : > { %v18691_v21 = vcombine.low %v18506_v50, %v2940_v6  ;;  %v18695_v22 = vcombine.low %v18519_v54, %v18632_v0  ;;  %16799 = vmatprep.mubr.msk.f32.mxu0 %vm546_vm2, %v3629_v60  ;;  %17535 = vmatpush3.bf16.msra.mxu0 %v18432_v26  ;;  %v18704_v24 = vcombine.low %v18522_v15, %v2910_v11  ;;  %v2746_v54 = vld [vmem:[%s18416_s11 + $0x58] sm:$0xff]  ;;  %v2771_v6 = vld [vmem:[%s18416_s11 + $0x120] sm:$0xff]  ;;  %v6129_v31 = vsel %vm948_vm6, %v18123_v28, 0.0 }
 0x34b   : > { %v18707_v62 = vcombine.low %v18574_v5, %v2952_v44  ;;  %v18711_v50 = vcombine.low %v18548_v3, %v18698_v27  ;;  %17505 = vmatprep.subr.bf16.mxu1 %v18545_v1  ;;  %17537 = vmatprep.subr.bf16.mxu0 %v18550_v4  ;;  %v2762_v60 = vld [vmem:[%s18416_s11 + $0xd8] sm:$0xff]  ;;  %v3255_v26 = vcombine.high %v18698_v27, %v18698_v27  ;;  %v2788_v44 = vld [vmem:[%s18416_s11 + $0x1a8] sm:$0xff] }
 0x34c   : > { %v18721_v11 = vcombine.low %v18510_v51, %v3610_v7  ;;  %v18724_v5 = vcombine.low %v18599_v47, %v3622_v61  ;;  %16744 = vmatmul.mubr.msk.f32.gmra.mrb[10].mxu1 %vm546_vm2, %v18675_v55  ;;  %16800 = vmatmul.mubr.msk.f32.gmra.mrb[12].mxu0 %vm546_vm2, %v18678_v56  ;;  %v15661_v51 = vrot.slane %v18698_v27, 9  ;;  %v15686_v47 = vrot.slane %v18698_v27, 10  ;;  %v2787_v7 = vld [vmem:[%s18416_s11 + $0x1a0] sm:$0xff] }
 0x34d   : > { %17507 = vmatpush3.bf16.msra.mxu1 %v18545_v1  ;;  %16754 = vmatprep.mubr.msk.f32.mxu1 %vm546_vm2, %v3054_v18  ;;  %v3262_v3 = vrot.slane %v3255_v26, 5  ;;  %v3904_v32 = vrot.slane %v3255_v26, 6  ;;  %v17512_v34 = vpack.c.bf16 %v2746_v54, %v2745_v16  ;;  %v17544_v1 = vpack.c.bf16 %v2762_v60, %v2761_v29  ;;  %v2773_v16 = vld [vmem:[%s18416_s11 + $0x130] sm:$0xff]  ;;  %v2774_v54 = vld [vmem:[%s18416_s11 + $0x138] sm:$0xff] }
 0x34e   : > { %17539 = vmatpush3.bf16.msra.mxu0 %v18550_v4  ;;  %16810 = vmatprep.mubr.msk.f32.mxu0 %vm546_vm2, %v18514_v52  ;;  %v3056_v43 = vcombine.low %v18446_v49, %v18522_v15  ;;  %v2747_v52 = vld [vmem:[%s18416_s11 + $0x60] sm:$0xff]  ;;  %v17556_v61 = vpack.c.bf16 %v2772_v41, %v2771_v6  ;;  %v17588_v17 = vpack.c.bf16 %v2788_v44, %v2787_v7  ;;  %v2789_v29 = vld [vmem:[%s18416_s11 + $0x1b0] sm:$0xff]  ;;  %v2790_v60 = vld [vmem:[%s18416_s11 + $0x1b8] sm:$0xff] }
 0x34f   : > { %17509 = vmatprep.subr.bf16.mxu1 %v18552_v9  ;;  %17541 = vmatprep.subr.bf16.mxu0 %v18554_v10  ;;  %v3263_v18 = vsel %vm18482_vm8, %v15661_v51, %v3262_v3  ;;  %v18748_v4 = vsel %vm18474_vm1, %v15686_v47, %v3904_v32  ;;  %v17560_v26 = vpack.c.bf16 %v2774_v54, %v2773_v16  ;;  %v2767_v3 = vld [vmem:[%s18416_s11 + $0x100] sm:$0xff]  ;;  %v2768_v47 = vld [vmem:[%s18416_s11 + $0x108] sm:$0xff] }
 0x350   : > { %16755 = vmatmul.mubr.msk.f32.vlgmr.msra.gmra.mrb[8].mxu1 %vm546_vm2, %v18640_v23  ;;  %v18755_v39 = vcombine.low %v18619_v14, %v3263_v18  ;;  %v18759_v42 = vcombine.low %v18628_v46, %v18748_v4  ;;  %v18762_v15 = vcombine.low %v3263_v18, %v18494_v2  ;;  %v5251_v25 = vcombine.low %v18748_v4, %v18498_v63  ;;  %v2764_v14 = vld [vmem:[%s18416_s11 + $0xe8] sm:$0xff]  ;;  %v2783_v32 = vld [vmem:[%s18416_s11 + $0x180] sm:$0xff]  ;;  %v2769_v18 = vld [vmem:[%s18416_s11 + $0x110] sm:$0xff] }
 0x351   : > { %16811 = vmatmul.mubr.msk.f32.vlgmr.msra.gmra.mrb[10].mxu0 %vm546_vm2, %v18652_v8  ;;  %16757 = vmatprep.mubr.msk.f32.mxu1 %vm546_vm2, %v3056_v43  ;;  %v17516_v2 = vpack.c.bf16 %v2748_v35, %v2747_v52  ;;  %v17548_v46 = vpack.c.bf16 %v2764_v14, %v2763_v38  ;;  %v17592_v51 = vpack.c.bf16 %v2790_v60, %v2789_v29  ;;  %v2770_v52 = vld [vmem:[%s18416_s11 + $0x118] sm:$0xff]  ;;  %v2785_v35 = vld [vmem:[%s18416_s11 + $0x190] sm:$0xff]  ;;  %v2779_v41 = vld [vmem:[%s18416_s11 + $0x160] sm:$0xff] }
 0x352   : > { %17511 = vmatpush3.bf16.msra.mxu1 %v18552_v9  ;;  %16813 = vmatprep.mubr.msk.f32.mxu0 %vm546_vm2, %v18613_v59  ;;  %v2749_v9 = vld [vmem:[%s18416_s11 + $0x70] sm:$0xff]  ;;  %v2750_v59 = vld [vmem:[%s18416_s11 + $0x78] sm:$0xff]  ;;  %v17568_v14 = vpack.c.bf16 %v2770_v52, %v2769_v18  ;;  %v2796_v7 = vld [vmem:[%s18416_s11 + $0x1e8] sm:$0xff] }
 0x353   : > { %17543 = vmatpush3.bf16.msra.mxu0 %v18554_v10  ;;  %17513 = vmatprep.subr.bf16.mxu1 %v17512_v34  ;;  %v2765_v10 = vld [vmem:[%s18416_s11 + $0xf0] sm:$0xff]  ;;  %v17520_v48 = vpack.c.bf16 %v2750_v59, %v2749_v9  ;;  %v2786_v38 = vld [vmem:[%s18416_s11 + $0x198] sm:$0xff]  ;;  %v2776_v9 = vld [vmem:[%s18416_s11 + $0x148] sm:$0xff] }
 0x354   : > { %16758 = vmatmul.mubr.msk.f32.gmra.mrb[10].mxu1 %vm546_vm2, %v18681_v13  ;;  %17545 = vmatprep.subr.bf16.mxu0 %v17544_v1  ;;  %v17552_v12 = vpack.c.bf16 %v2766_v45, %v2765_v10  ;;  %v2792_v59 = vld [vmem:[%s18416_s11 + $0x1c8] sm:$0xff]  ;;  %v2777_v45 = vld [vmem:[%s18416_s11 + $0x150] sm:$0xff] }
 0x355   : > { %16814 = vmatmul.mubr.msk.f32.gmra.mrb[12].mxu0 %vm546_vm2, %v18675_v55  ;;  %16768 = vmatprep.mubr.msk.f32.mxu1 %vm546_vm2, %v18688_v20 }
 0x356   : > { %17515 = vmatpush3.bf16.msra.mxu1 %v17512_v34  ;;  %16824 = vmatprep.mubr.msk.f32.mxu0 %vm546_vm2, %v18691_v21  ;;  %v2784_v34 = vld [vmem:[%s18416_s11 + $0x188] sm:$0xff] }
 0x357   : > { %17547 = vmatpush3.bf16.msra.mxu0 %v17544_v1  ;;  %17517 = vmatprep.subr.bf16.mxu1 %v17516_v2  ;;  %v17564_v1 = vpack.c.bf16 %v2768_v47, %v2767_v3  ;;  %v17596_v43 = vpack.c.bf16 %v2784_v34, %v2783_v32 }
 0x358   : > { %17549 = vmatprep.subr.bf16.mxu0 %v17548_v46 }
 0x359   : > { %16769 = vmatmul.mubr.msk.f32.vlgmr.msra.gmra.mrb[8].mxu1 %vm546_vm2, %v18695_v22 }
 0x35a   : > { %16825 = vmatmul.mubr.msk.f32.vlgmr.msra.gmra.mrb[10].mxu0 %vm546_vm2, %v18654_v53  ;;  %16771 = vmatprep.mubr.msk.f32.mxu1 %vm546_vm2, %v18704_v24 }
 0x35b   : > { %17519 = vmatpush3.bf16.msra.mxu1 %v17516_v2  ;;  %16827 = vmatprep.mubr.msk.f32.mxu0 %vm546_vm2, %v18707_v62  ;;  %v17600_v2 = vpack.c.bf16 %v2786_v38, %v2785_v35 }
 0x35c   : > { %17551 = vmatpush3.bf16.msra.mxu0 %v17548_v46  ;;  %17521 = vmatprep.subr.bf16.mxu1 %v17520_v48  ;;  %v2775_v46 = vld [vmem:[%s18416_s11 + $0x140] sm:$0xff] }
 0x35d   : > { %16772 = vmatmul.mubr.msk.f32.gmra.mrb[10].mxu1 %vm546_vm2, %v18711_v50  ;;  %17553 = vmatprep.subr.bf16.mxu0 %v17552_v12  ;;  %v17572_v10 = vpack.c.bf16 %v2776_v9, %v2775_v46 }
 0x35e   : > { %16828 = vmatmul.mubr.msk.f32.gmra.mrb[12].mxu0 %vm546_vm2, %v18755_v39  ;;  %16782 = vmatprep.mubr.msk.f32.mxu1 %vm546_vm2, %v18691_v21 }
 0x35f   : > { %17523 = vmatpush3.bf16.msra.mxu1 %v17520_v48  ;;  %16838 = vmatprep.mubr.msk.f32.mxu0 %vm546_vm2, %v18721_v11  ;;  %v2778_v48 = vld [vmem:[%s18416_s11 + $0x158] sm:$0xff] }
 0x360   : > { %17555 = vmatpush3.bf16.msra.mxu0 %v17552_v12  ;;  %17557 = vmatprep.subr.bf16.mxu1 %v17556_v61  ;;  %v2794_v12 = vld [vmem:[%s18416_s11 + $0x1d8] sm:$0xff]  ;;  %v17576_v6 = vpack.c.bf16 %v2778_v48, %v2777_v45 }
 0x361   : > { %17589 = vmatprep.subr.bf16.mxu0 %v17588_v17 }
 0x362   : > { %16783 = vmatmul.mubr.msk.f32.vlgmr.msra.gmra.mrb[8].mxu1 %vm546_vm2, %v18654_v53 }
 0x363   : > { %16839 = vmatmul.mubr.msk.f32.vlgmr.msra.gmra.mrb[10].mxu0 %vm546_vm2, %v18662_v58  ;;  %16785 = vmatprep.mubr.msk.f32.mxu1 %vm546_vm2, %v18707_v62 }
 0x364   : > { %16841 = vmatprep.mubr.msk.f32.mxu0 %vm546_vm2, %v18724_v5  ;;  %17559 = vmatpush3.bf16.msra.mxu1 %v17556_v61  ;;  %v2798_v61 = vld [vmem:[%s18416_s11 + $0x1f8] sm:$0xff] }
 0x365   : > { %17591 = vmatpush3.bf16.msra.mxu0 %v17588_v17  ;;  %17561 = vmatprep.subr.bf16.mxu1 %v17560_v26 }
 0x366   : > { %16786 = vmatmul.mubr.msk.f32.gmra.mrb[10].mxu1 %vm546_vm2, %v18755_v39  ;;  %17593 = vmatprep.subr.bf16.mxu0 %v17592_v51 }
 0x367   : > { %16842 = vmatmul.mubr.msk.f32.gmra.mrb[12].mxu0 %vm546_vm2, %v18759_v42  ;;  %16852 = vmatprep.mubr.msk.f32.mxu1 %vm546_vm2, %v18691_v21 }
 0x368   : > { %17563 = vmatpush3.bf16.msra.mxu1 %v17560_v26  ;;  %16908 = vmatprep.mubr.msk.f32.mxu0 %vm546_vm2, %v18721_v11  ;;  %v2791_v11 = vld [vmem:[%s18416_s11 + $0x1c0] sm:$0xff] }
 0x369   : > { %17595 = vmatpush3.bf16.msra.mxu0 %v17592_v51  ;;  %17565 = vmatprep.subr.bf16.mxu1 %v17564_v1 }
 0x36a   : > { %17597 = vmatprep.subr.bf16.mxu0 %v17596_v43 }
 0x36b   : > { %16853 = vmatmul.mubr.msk.f32.vlgmr.msra.gmra.mrb[12].mxu1 %vm546_vm2, %v18654_v53 }
 0x36c   : > { %16909 = vmatmul.mubr.msk.f32.vlgmr.msra.gmra.mrb[14].mxu0 %vm546_vm2, %v18662_v58  ;;  %16855 = vmatprep.mubr.msk.f32.mxu1 %vm546_vm2, %v18707_v62  ;;  %v17604_v58 = vpack.c.bf16 %v2792_v59, %v2791_v11 }
 0x36d   : > { %17567 = vmatpush3.bf16.msra.mxu1 %v17564_v1  ;;  %16911 = vmatprep.mubr.msk.f32.mxu0 %vm546_vm2, %v18724_v5  ;;  %v2793_v5 = vld [vmem:[%s18416_s11 + $0x1d0] sm:$0xff] }
 0x36e   : > { %17599 = vmatpush3.bf16.msra.mxu0 %v17596_v43  ;;  %17569 = vmatprep.subr.bf16.mxu1 %v17568_v14 }
 0x36f   : > { %16856 = vmatmul.mubr.msk.f32.gmra.mrb[14].mxu1 %vm546_vm2, %v18755_v39  ;;  %17601 = vmatprep.subr.bf16.mxu0 %v17600_v2 }
 0x370   : > { %16912 = vmatmul.mubr.msk.f32.gmra.mrb[16].mxu0 %vm546_vm2, %v18759_v42  ;;  %16866 = vmatprep.mubr.msk.f32.mxu1 %vm546_vm2, %v18688_v20  ;;  %v17608_v42 = vpack.c.bf16 %v2794_v12, %v2793_v5  ;;  %v2780_v20 = vld [vmem:[%s18416_s11 + $0x168] sm:$0xff] }
 0x371   : > { %17571 = vmatpush3.bf16.msra.mxu1 %v17568_v14  ;;  %16922 = vmatprep.mubr.msk.f32.mxu0 %vm546_vm2, %v18691_v21  ;;  %v2795_v21 = vld [vmem:[%s18416_s11 + $0x1e0] sm:$0xff] }
 0x372   : > { %17603 = vmatpush3.bf16.msra.mxu0 %v17600_v2  ;;  %17573 = vmatprep.subr.bf16.mxu1 %v17572_v10  ;;  %v17612_v44 = vpack.c.bf16 %v2796_v7, %v2795_v21 }
 0x373   : > { %17605 = vmatprep.subr.bf16.mxu0 %v17604_v58 }
 0x374   : > { %16867 = vmatmul.mubr.msk.f32.vlgmr.msra.gmra.mrb[12].mxu1 %vm546_vm2, %v18695_v22  ;;  %v17580_v22 = vpack.c.bf16 %v2780_v20, %v2779_v41 }
 0x375   : > { %16923 = vmatmul.mubr.msk.f32.vlgmr.msra.gmra.mrb[14].mxu0 %vm546_vm2, %v18654_v53  ;;  %16869 = vmatprep.mubr.msk.f32.mxu1 %vm546_vm2, %v18704_v24  ;;  %v2781_v53 = vld [vmem:[%s18416_s11 + $0x170] sm:$0xff]  ;;  %v2782_v24 = vld [vmem:[%s18416_s11 + $0x178] sm:$0xff] }
 0x376   : > { %17575 = vmatpush3.bf16.msra.mxu1 %v17572_v10  ;;  %16925 = vmatprep.mubr.msk.f32.mxu0 %vm546_vm2, %v18707_v62  ;;  %v2797_v62 = vld [vmem:[%s18416_s11 + $0x1f0] sm:$0xff]  ;;  %v17584_v17 = vpack.c.bf16 %v2782_v24, %v2781_v53 }
 0x377   : > { %17607 = vmatpush3.bf16.msra.mxu0 %v17604_v58  ;;  %17577 = vmatprep.subr.bf16.mxu1 %v17576_v6 }
 0x378   : > { %16870 = vmatmul.mubr.msk.f32.gmra.mrb[14].mxu1 %vm546_vm2, %v18711_v50  ;;  %17609 = vmatprep.subr.bf16.mxu0 %v17608_v42  ;;  %v4569_v50 = vcombine.low %v18632_v0, %v18446_v49  ;;  %v18927_v0 = vld [vmem:[%s18921_s20 + $0x10] sm:$0xff] }
 0x379   : > { %16926 = vmatmul.mubr.msk.f32.gmra.mrb[16].mxu0 %vm546_vm2, %v18755_v39  ;;  %16880 = vmatprep.mubr.msk.f32.mxu1 %vm546_vm2, %v18640_v23  ;;  %v17616_v39 = vpack.c.bf16 %v2798_v61, %v2797_v62  ;;  %v4570_v23 = vcombine.low %v18698_v27, %v18446_v49  ;;  %v18924_v49 = vld [vmem:[%s18921_s20] sm:$0xff]  ;;  %v7899_v63 = vrot.slane %v18927_v0, 4 }
 0x37a   : > { %17579 = vmatpush3.bf16.msra.mxu1 %v17576_v6  ;;  %16936 = vmatprep.mubr.msk.f32.mxu0 %vm546_vm2, %v18652_v8 }
 0x37b   : > { %17611 = vmatpush3.bf16.msra.mxu0 %v17608_v42  ;;  %17581 = vmatprep.subr.bf16.mxu1 %v17580_v22 }
 0x37c   : > { %17613 = vmatprep.subr.bf16.mxu0 %v17612_v44 }
 0x37d   : > { %16881 = vmatmul.mubr.msk.f32.vlgmr.msra.gmra.mrb[12].mxu1 %vm546_vm2, %v4569_v50 }
 0x37e   : > { %16937 = vmatmul.mubr.msk.f32.vlgmr.msra.gmra.mrb[14].mxu0 %vm546_vm2, %v18657_v40  ;;  %16883 = vmatprep.mubr.msk.f32.mxu1 %vm546_vm2, %v18681_v13 }
 0x37f   : > { %17583 = vmatpush3.bf16.msra.mxu1 %v17580_v22  ;;  %16939 = vmatprep.mubr.msk.f32.mxu0 %vm546_vm2, %v18675_v55 }
 0x380   : > { %17615 = vmatpush3.bf16.msra.mxu0 %v17612_v44  ;;  %17585 = vmatprep.subr.bf16.mxu1 %v17584_v17 }
 0x381   : > { %16884 = vmatmul.mubr.msk.f32.gmra.mrb[14].mxu1 %vm546_vm2, %v4570_v23  ;;  %17617 = vmatprep.subr.bf16.mxu0 %v17616_v39 }
 0x382   : > { %16940 = vmatmul.mubr.msk.f32.gmra.mrb[16].mxu0 %vm546_vm2, %v18762_v15  ;;  %16894 = vmatprep.mubr.msk.f32.mxu1 %vm546_vm2, %v18652_v8  ;;  %v6223_v8 = vrot.slane %v18924_v49, 4 }
 0x383   : > { %17587 = vmatpush3.bf16.msra.mxu1 %v17584_v17  ;;  %16950 = vmatprep.mubr.msk.f32.mxu0 %vm546_vm2, %v18659_v57  ;;  %v6178_v57 = vrot.slane %v6129_v31, 1 }
 0x384   : > { %17619 = vmatpush3.bf16.msra.mxu0 %v17616_v39  ;;  %16956 = vmatprep.subr.msk.mxu1 %vm841_vm4, %v6223_v8 }
 0x385   : > { %17060 = vmatprep.subr.msk.mxu0 %vm841_vm4, %v7899_v63 }
 0x386   : > { %16895 = vmatmul.mubr.msk.f32.vlgmr.msra.gmra.mrb[12].mxu1 %vm546_vm2, %v18657_v40  ;;  %v6177_v40 = vrot.slane %v18129_v33, 1 }
 0x387   : > { %16951 = vmatmul.mubr.msk.f32.vlgmr.msra.gmra.mrb[14].mxu0 %vm546_vm2, %v5250_v19  ;;  %16897 = vmatprep.mubr.msk.f32.mxu1 %vm546_vm2, %v18675_v55  ;;  %v7853_v19 = vrot.slane %v18129_v33, 2  ;;  %v7854_v55 = vrot.slane %v6129_v31, 2 }
 0x388   : > { %16953 = vmatprep.mubr.msk.f32.mxu0 %vm546_vm2, %v18678_v56  ;;  %16957 = vmatpush3.msk.msra.mxu1 %vm841_vm4, %v6223_v8 }
 0x389   : > { %v18944_v28 = vsel %vm843_vm5, %v7853_v19, %v7854_v55  ;;  %17061 = vmatpush3.msk.msra.mxu0 %vm841_vm4, %v7899_v63  ;;  %16982 = vmatprep.subr.msk.mxu1 %vm841_vm4, %v18924_v49 }
 0x38a   : > { %16898 = vmatmul.mubr.msk.f32.gmra.mrb[14].mxu1 %vm546_vm2, %v18762_v15  ;;  %24297 = vst [vmem:[#allocation6_spill] sm:$0xff] %v18944_v28  ;;  %17086 = vmatprep.subr.msk.mxu0 %vm841_vm4, %v18927_v0 }
 0x38b   : > { %16954 = vmatmul.mubr.msk.f32.gmra.mrb[16].mxu0 %vm546_vm2, %v5251_v25  ;;  %vm6176_vm2 = vcmask 1046528  }
 0x38c   : > { %v18938_v56 = vsel %vm6176_vm2, %v6177_v40, %v6178_v57  ;;  %17062 = vmatprep.mubr.msk.f32.mxu0 %vm6224_vm3, %v18944_v28 }
 0x38d   : > { %16958 = vmatprep.mubr.msk.f32.mxu1 %vm6224_vm3, %v18938_v56 }
 0x435   : > { %v16784_v13 = vpop.f32.mrb[8].mxu1 }
 0x436   : > { %v3418_v27 = vcombine.high %v16784_v13, %v16784_v13  ;;  %v3425_v4 = vrot.slane %v16784_v13, %v18125_v30  ;;  %v16840_v15 = vpop.f32.mrb[10].mxu0  ;;  %v3342_v25 = vpop.f32.mrb[9].mxu1 }
 0x437   : > { %v4060_v16 = vcombine.high %v16840_v15, %v16840_v15  ;;  %v4067_v54 = vrot.slane %v16840_v15, %v18125_v30  ;;  %v3369_v29 = vcombine.high %v3342_v25, %v3342_v25  ;;  %v3376_v60 = vrot.slane %v3342_v25, %v18125_v30  ;;  %v3984_v26 = vpop.f32.mrb[11].mxu0 }
 0x438   : > { %v3432_v51 = vrot.slane %v3418_v27, %v18125_v30  ;;  %v3433_v3 = vcombine.high %v3425_v4, %v3425_v4  ;;  %v3441_v47 = vrot.slane %v3425_v4, %v18125_v30  ;;  %v4011_v32 = vcombine.high %v3984_v26, %v3984_v26 }
 0x439   : > { %v4074_v34 = vrot.slane %v4060_v16, %v18125_v30  ;;  %v4075_v1 = vcombine.high %v4067_v54, %v4067_v54  ;;  %v4083_v43 = vrot.slane %v4067_v54, %v18125_v30  ;;  %v3383_v18 = vrot.slane %v3369_v29, %v18125_v30  ;;  %v18961_v52 = vpop.f32.mrb[10].mxu1 }
 0x43a   : > { %v3434_v35 = vcombine.high %v3432_v51, %v3432_v51  ;;  %v3448_v38 = vrot.slane %v3432_v51, %v18125_v30  ;;  %v3455_v14 = vrot.slane %v3433_v3, %v18125_v30  ;;  %v3463_v2 = vcombine.high %v3441_v47, %v3441_v47  ;;  %v18965_v46 = vpop.f32.mrb[12].mxu0  ;;  %v18967_v9 = vpop.f32.mrb[11].mxu1 }
 0x43b   : > { %v4076_v11 = vcombine.high %v4074_v34, %v4074_v34  ;;  %v4090_v59 = vrot.slane %v4074_v34, %v18125_v30  ;;  %v4097_v10 = vrot.slane %v4075_v1, %v18125_v30  ;;  %v4105_v58 = vcombine.high %v4083_v43, %v4083_v43  ;;  %v18971_v45 = vpop.f32.mrb[13].mxu0 }
 0x43c   : > { %v3462_v48 = vrot.slane %v3434_v35, %v18125_v30  ;;  %v3464_v5 = vcombine.high %v3448_v38, %v3448_v38  ;;  %v3465_v12 = vcombine.high %v3455_v14, %v3455_v14  ;;  %v4242_v6 = vrot.slane %v4083_v43, %v18132_v36 }
 0x43d   : > { %v4104_v42 = vrot.slane %v4076_v11, %v18125_v30  ;;  %v4106_v41 = vcombine.high %v4090_v59, %v4090_v59  ;;  %v4107_v20 = vcombine.high %v4097_v10, %v4097_v10  ;;  %v4246_v21 = vrot.slane %v4097_v10, %v18132_v36 }
 0x43e   : > { %v3466_v7 = vcombine.high %v3462_v48, %v3462_v48  ;;  %v4250_v22 = vrot.slane %v4105_v58, %v18132_v36  ;;  %v4258_v44 = vrot.slane %v4090_v59, %v18132_v36  ;;  %v4375_v53 = vsel %vm948_vm6, %v3441_v47, %v4242_v6 }
 0x43f   : > { %v4108_v24 = vcombine.high %v4104_v42, %v4104_v42  ;;  %v4254_v62 = vrot.slane %v4107_v20, %v18132_v36  ;;  %v4262_v61 = vrot.slane %v4104_v42, %v18132_v36  ;;  %v4266_v50 = vrot.slane %v4106_v41, %v18132_v36 }
 0x440   : > { %v4376_v17 = vsel %vm948_vm6, %v3455_v14, %v4246_v21  ;;  %v4377_v39 = vsel %vm948_vm6, %v3463_v2, %v4250_v22  ;;  %v4379_v23 = vsel %vm948_vm6, %v3448_v38, %v4258_v44  ;;  %v3384_v31 = vcombine.high %v3376_v60, %v3376_v60 }
 0x441   : > { %v4270_v8 = vrot.slane %v4108_v24, %v18132_v36  ;;  %v4378_v63 = vsel %vm948_vm6, %v3465_v12, %v4254_v62  ;;  %v4380_v40 = vsel %vm948_vm6, %v3462_v48, %v4262_v61  ;;  %v4381_v57 = vsel %vm948_vm6, %v3464_v5, %v4266_v50 }
 0x442   : > { %v5877_v19 = vcombine.low %v4375_v53, %v4376_v17  ;;  %v5878_v55 = vcombine.low %v4377_v39, %v4378_v63  ;;  %v5911_v13 = vcombine.low %v4379_v23, %v4380_v40  ;;  %v3385_v27 = vcombine.high %v3383_v18, %v3383_v18 }
 0x443   : > { %v4382_v4 = vsel %vm948_vm6, %v3466_v7, %v4270_v8  ;;  %v3392_v54 = vrot.slane %v3376_v60, %v18125_v30  ;;  %v3399_v51 = vrot.slane %v3383_v18, %v18125_v30  ;;  %v3406_v3 = vrot.slane %v3384_v31, %v18125_v30 }
 0x444   : > { %v5885_v15 = vrot.slane %v5877_v19, %v18134_v37  ;;  %v5892_v25 = vrot.slane %v5878_v55, %v18134_v37  ;;  %v5912_v16 = vcombine.low %v4381_v57, %v4382_v4  ;;  %v5919_v29 = vrot.slane %v5911_v13, %v18134_v37 }
 0x445   : > { %v3413_v47 = vrot.slane %v3385_v27, %v18125_v30  ;;  %v4018_v43 = vrot.slane %v3984_v26, %v18125_v30  ;;  %v4025_v35 = vrot.slane %v4011_v32, %v18125_v30  ;;  %v3516_v38 = vcombine.high %v18961_v52, %v18961_v52 }
 0x446   : > { %v5893_v34 = vcombine.low %v5885_v15, %v5892_v25  ;;  %v5926_v1 = vrot.slane %v5912_v16, %v18134_v37  ;;  %v3523_v18 = vrot.slane %v18961_v52, %v18125_v30  ;;  %v3414_v11 = vcombine.high %v3392_v54, %v3392_v54 }
 0x447   : > { %v4026_v60 = vcombine.high %v4018_v43, %v4018_v43  ;;  %v4027_v2 = vcombine.high %v4025_v35, %v4025_v35  ;;  %v4034_v59 = vrot.slane %v4018_v43, %v18125_v30  ;;  %v4041_v10 = vrot.slane %v4025_v35, %v18125_v30 }
 0x448   : > { %v5927_v14 = vcombine.low %v5919_v29, %v5926_v1  ;;  %v3415_v58 = vcombine.high %v3399_v51, %v3399_v51  ;;  %v3416_v48 = vcombine.high %v3406_v3, %v3406_v3  ;;  %v3417_v5 = vcombine.high %v3413_v47, %v3413_v47 }
 0x449   : > { %v4048_v26 = vrot.slane %v4026_v60, %v18125_v30  ;;  %v4055_v32 = vrot.slane %v4027_v2, %v18125_v30  ;;  %v4056_v12 = vcombine.high %v4034_v59, %v4034_v59  ;;  %v4057_v6 = vcombine.high %v4041_v10, %v4041_v10 }
 0x44a   : > { %v4158_v42 = vcombine.high %v18965_v46, %v18965_v46  ;;  %v4210_v52 = vrot.slane %v4034_v59, %v18132_v36  ;;  %v3530_v20 = vrot.slane %v3516_v38, %v18125_v30  ;;  %v3531_v21 = vcombine.high %v3523_v18, %v3523_v18 }
 0x44b   : > { %v4058_v41 = vcombine.high %v4048_v26, %v4048_v26  ;;  %v4059_v7 = vcombine.high %v4055_v32, %v4055_v32  ;;  %v4214_v22 = vrot.slane %v4048_v26, %v18132_v36  ;;  %v4218_v44 = vrot.slane %v4056_v12, %v18132_v36 }
 0x44c   : > { %v4226_v53 = vrot.slane %v4041_v10, %v18132_v36  ;;  %v4230_v62 = vrot.slane %v4055_v32, %v18132_v36  ;;  %v4234_v61 = vrot.slane %v4057_v6, %v18132_v36  ;;  %v4367_v50 = vsel %vm948_vm6, %v3392_v54, %v4210_v52 }
 0x44d   : > { %v4222_v24 = vrot.slane %v4058_v41, %v18132_v36  ;;  %v4238_v17 = vrot.slane %v4059_v7, %v18132_v36  ;;  %v4368_v39 = vsel %vm948_vm6, %v3406_v3, %v4214_v22  ;;  %v4369_v23 = vsel %vm948_vm6, %v3414_v11, %v4218_v44 }
 0x44e   : > { %v4371_v31 = vsel %vm948_vm6, %v3399_v51, %v4226_v53  ;;  %v4372_v63 = vsel %vm948_vm6, %v3413_v47, %v4230_v62  ;;  %v4373_v40 = vsel %vm948_vm6, %v3415_v58, %v4234_v61  ;;  %v5809_v57 = vcombine.low %v4367_v50, %v4368_v39 }
 0x44f   : > { %v4370_v8 = vsel %vm948_vm6, %v3416_v48, %v4222_v24  ;;  %v4374_v19 = vsel %vm948_vm6, %v3417_v5, %v4238_v17  ;;  %v5843_v13 = vcombine.low %v4371_v31, %v4372_v63  ;;  %v3532_v27 = vcombine.high %v3530_v20, %v3530_v20 }
 0x450   : > { %v5810_v55 = vcombine.low %v4369_v23, %v4370_v8  ;;  %v6085_v4 = vrot.slane %v5893_v34, 7  ;;  %v5844_v15 = vcombine.low %v4373_v40, %v4374_v19  ;;  %v5817_v25 = vrot.slane %v5809_v57, %v18134_v37 }
 0x451   : > { %v3539_v54 = vrot.slane %v3523_v18, %v18125_v30  ;;  %v3546_v29 = vrot.slane %v3530_v20, %v18125_v30  ;;  %v19033_v51 = vrot.slane %v5843_v13, %v18134_v37  ;;  %v3553_v47 = vrot.slane %v3531_v21, %v18125_v30 }
 0x452   : > { %v5824_v16 = vrot.slane %v5810_v55, %v18134_v37  ;;  %v19036_v3 = vrot.slane %v5844_v15, %v18134_v37  ;;  %v4165_v34 = vrot.slane %v18965_v46, %v18125_v30  ;;  %v19041_v1 = vrot.slane %v5927_v14, 7 }
 0x453   : > { %v3560_v35 = vrot.slane %v3532_v27, %v18125_v30  ;;  %v4172_v38 = vrot.slane %v4158_v42, %v18125_v30  ;;  %v19046_v60 = vsel %vm948_vm6, %v6085_v4, 0.0  ;;  %v3561_v59 = vcombine.high %v3539_v54, %v3539_v54 }
 0x454   : > { %v5825_v43 = vcombine.low %v5817_v25, %v5824_v16  ;;  %v5859_v2 = vcombine.low %v19033_v51, %v19036_v3  ;;  %v4173_v18 = vcombine.high %v4165_v34, %v4165_v34  ;;  %v4181_v11 = vrot.slane %v4165_v34, %v18125_v30 }
 0x455   : > { %v3562_v10 = vcombine.high %v3546_v29, %v3546_v29  ;;  %v4174_v58 = vcombine.high %v4172_v38, %v4172_v38  ;;  %v4188_v46 = vrot.slane %v4172_v38, %v18125_v30  ;;  %v3563_v14 = vcombine.high %v3553_v47, %v3553_v47 }
 0x456   : > { %v4195_v48 = vrot.slane %v4173_v18, %v18125_v30  ;;  %v4203_v5 = vcombine.high %v4181_v11, %v4181_v11  ;;  %v4306_v26 = vrot.slane %v4181_v11, %v18132_v36  ;;  %v3564_v32 = vcombine.high %v3560_v35, %v3560_v35 }
 0x457   : > { %v4202_v12 = vrot.slane %v4174_v58, %v18125_v30  ;;  %v4204_v6 = vcombine.high %v4188_v46, %v4188_v46  ;;  %v4322_v42 = vrot.slane %v4188_v46, %v18132_v36  ;;  %v3467_v21 = vcombine.high %v18967_v9, %v18967_v9 }
 0x458   : > { %v4205_v52 = vcombine.high %v4195_v48, %v4195_v48  ;;  %v4310_v20 = vrot.slane %v4195_v48, %v18132_v36  ;;  %v3474_v7 = vrot.slane %v18967_v9, %v18125_v30  ;;  %v4314_v24 = vrot.slane %v4203_v5, %v18132_v36 }
 0x459   : > { %v19056_v41 = vpop.f32.mrb[12].mxu1  ;;  %v4206_v53 = vcombine.high %v4202_v12, %v4202_v12  ;;  %v4326_v62 = vrot.slane %v4202_v12, %v18132_v36  ;;  %v4330_v61 = vrot.slane %v4204_v6, %v18132_v36  ;;  %v4391_v39 = vsel %vm948_vm6, %v3539_v54, %v4306_v26 }
 0x45a   : > { %v19063_v22 = vpop.f32.mrb[14].mxu0  ;;  %v19065_v44 = vpop.f32.mrb[13].mxu1  ;;  %v4318_v17 = vrot.slane %v4205_v52, %v18132_v36  ;;  %v4392_v23 = vsel %vm948_vm6, %v3553_v47, %v4310_v20  ;;  %v4395_v9 = vsel %vm948_vm6, %v3546_v29, %v4322_v42  ;;  %v4393_v8 = vsel %vm948_vm6, %v3561_v59, %v4314_v24 }
 0x45b   : > { %v19070_v50 = vpop.f32.mrb[15].mxu0  ;;  %v4334_v31 = vrot.slane %v4206_v53, %v18132_v36  ;;  %v4396_v63 = vsel %vm948_vm6, %v3560_v35, %v4326_v62  ;;  %v4397_v40 = vsel %vm948_vm6, %v3562_v10, %v4330_v61  ;;  %v6013_v55 = vcombine.low %v4391_v39, %v4392_v23 }
 0x45c   : > { %v4394_v19 = vsel %vm948_vm6, %v3563_v14, %v4318_v17  ;;  %v6047_v13 = vcombine.low %v4395_v9, %v4396_v63  ;;  %v3481_v27 = vrot.slane %v3467_v21, %v18125_v30  ;;  %v19089_v16 = vsel %vm948_vm6, 0.0, %v6085_v4 }
 0x45d   : > { %v19080_v57 = vpop.f32.mrb[14].mxu1  ;;  %v4398_v54 = vsel %vm948_vm6, %v3564_v32, %v4334_v31  ;;  %v6014_v29 = vcombine.low %v4393_v8, %v4394_v19  ;;  %v3482_v47 = vcombine.high %v3474_v7, %v3474_v7  ;;  %v6081_v38 = vrot.slane %v5825_v43, 7 }
 0x45e   : > { %v19084_v15 = vpop.f32.mrb[16].mxu0  ;;  %v19086_v25 = vpop.f32.mrb[15].mxu1  ;;  %v6048_v18 = vcombine.low %v4397_v40, %v4398_v54  ;;  %v3483_v11 = vcombine.high %v3481_v27, %v3481_v27  ;;  %v6021_v59 = vrot.slane %v6013_v55, %v18134_v37  ;;  %v6055_v58 = vrot.slane %v6047_v13, %v18134_v37 }
 0x45f   : > { %v19092_v34 = vpop.f32.mrb[17].mxu0  ;;  %v6028_v10 = vrot.slane %v6014_v29, %v18134_v37  ;;  %v3490_v4 = vrot.slane %v3474_v7, %v18125_v30  ;;  %v3497_v14 = vrot.slane %v3481_v27, %v18125_v30  ;;  %v4109_v48 = vcombine.high %v18971_v45, %v18971_v45 }
 0x460   : > { %v6062_v46 = vrot.slane %v6048_v18, %v18134_v37  ;;  %v4116_v43 = vrot.slane %v18971_v45, %v18125_v30  ;;  %v19107_v5 = vsel %vm948_vm6, 0.0, %v19041_v1  ;;  %v3504_v32 = vrot.slane %v3482_v47, %v18125_v30 }
 0x461   : > { %v6029_v26 = vcombine.low %v6021_v59, %v6028_v10  ;;  %v3511_v12 = vrot.slane %v3483_v11, %v18125_v30  ;;  %v19114_v6 = vrot.slane %v5859_v2, 7  ;;  %v4123_v52 = vrot.slane %v4109_v48, %v18125_v30 }
 0x462   : > { %v6063_v42 = vcombine.low %v6055_v58, %v6062_v46  ;;  %v4124_v20 = vcombine.high %v4116_v43, %v4116_v43  ;;  %v19118_v45 = vsel %vm948_vm6, 0.0, %v6081_v38  ;;  %v3512_v21 = vcombine.high %v3490_v4, %v3490_v4 }
 0x463   : > { %24298 = vst [vmem:[#allocation7_spill] sm:$0xff] %v19118_v45  ;;  %v4132_v7 = vrot.slane %v4116_v43, %v18125_v30  ;;  %v6130_v53 = vsel %vm948_vm6, %v6081_v38, 0.0  ;;  %v3513_v24 = vcombine.high %v3497_v14, %v3497_v14  ;;  %v4125_v62 = vcombine.high %v4123_v52, %v4123_v52 }
 0x464   : > { %v4139_v61 = vrot.slane %v4123_v52, %v18125_v30  ;;  %v4146_v51 = vrot.slane %v4124_v20, %v18125_v30  ;;  %v3514_v3 = vcombine.high %v3504_v32, %v3504_v32  ;;  %v3515_v2 = vcombine.high %v3511_v12, %v3511_v12  ;;  %v19145_v52 = vld [vmem:[%s18921_s20 + $0x8] sm:$0xff] }
 0x465   : > { %v4154_v17 = vcombine.high %v4132_v7, %v4132_v7  ;;  %v4274_v39 = vrot.slane %v4132_v7, %v18132_v36  ;;  %v6093_v23 = vrot.slane %v6029_v26, 7  ;;  %v4153_v9 = vrot.slane %v4125_v62, %v18125_v30  ;;  %24300 = vst [vmem:[#allocation9_spill] sm:$0xff] %v19145_v52 }
 0x466   : > { %v6180_v31 = vrot.slane %v19118_v45, 1  ;;  %v6181_v8 = vrot.slane %v6130_v53, 1  ;;  %v4155_v63 = vcombine.high %v4139_v61, %v4139_v61  ;;  %v4156_v40 = vcombine.high %v4146_v51, %v4146_v51 }
 0x467   : > { %v4278_v19 = vrot.slane %v4146_v51, %v18132_v36  ;;  %v4282_v55 = vrot.slane %v4154_v17, %v18132_v36  ;;  %v4157_v13 = vcombine.high %v4153_v9, %v4153_v9  ;;  %v4290_v27 = vrot.slane %v4139_v61, %v18132_v36 }
 0x468   : > { %v4294_v54 = vrot.slane %v4153_v9, %v18132_v36  ;;  %v4383_v29 = vsel %vm948_vm6, %v3490_v4, %v4274_v39  ;;  %v4286_v47 = vrot.slane %v4156_v40, %v18132_v36  ;;  %v4298_v38 = vrot.slane %v4155_v63, %v18132_v36  ;;  %v19172_v39 = vld [vmem:[%s18921_s20 + $0x18] sm:$0xff] }
 0x469   : > { %v4384_v18 = vsel %vm948_vm6, %v3504_v32, %v4278_v19  ;;  %v4385_v11 = vsel %vm948_vm6, %v3512_v21, %v4282_v55  ;;  %v4302_v59 = vrot.slane %v4157_v13, %v18132_v36  ;;  %v4387_v10 = vsel %vm948_vm6, %v3497_v14, %v4290_v27  ;;  %24302 = vst [vmem:[#allocation11_spill] sm:$0xff] %v19172_v39 }
 0x46a   : > { %v4388_v58 = vsel %vm948_vm6, %v3511_v12, %v4294_v54  ;;  %v5945_v46 = vcombine.low %v4383_v29, %v4384_v18  ;;  %v4386_v48 = vsel %vm948_vm6, %v3514_v3, %v4286_v47  ;;  %v4389_v43 = vsel %vm948_vm6, %v3513_v24, %v4298_v38 }
 0x46b   : > { %v5979_v4 = vcombine.low %v4387_v10, %v4388_v58  ;;  %v19142_v26 = vsel %vm6176_vm2, %v6180_v31, %v6181_v8  ;;  %v6095_v32 = vrot.slane %v6063_v42, 7  ;;  %v4390_v20 = vsel %vm948_vm6, %v3515_v2, %v4302_v59 }
 0x46c   : > { %24299 = vst [vmem:[#allocation8_spill] sm:$0xff] %v19142_v26  ;;  %v5946_v21 = vcombine.low %v4385_v11, %v4386_v48  ;;  %16959 = vmatmul.mubr.msk.f32.vlgmr.msra.gmra.mrb[16].mxu1 %vm6224_vm3, %v19142_v26  ;;  %v7856_v14 = vrot.slane %v19118_v45, 2  ;;  %v5953_v12 = vrot.slane %v5945_v46, %v18134_v37  ;;  %v5980_v7 = vcombine.low %v4389_v43, %v4390_v20 }
 0x46d   : > { %v7857_v24 = vrot.slane %v6130_v53, 2  ;;  %v4812_v62 = vcombine.high %v19056_v41, %v19056_v41  ;;  %16983 = vmatpush3.msk.msra.mxu1 %vm841_vm4, %v18924_v49  ;;  %v4819_v61 = vrot.slane %v19056_v41, %v18125_v30  ;;  %v5398_v51 = vcombine.high %v19063_v22, %v19063_v22 }
 0x46e   : > { %v5960_v42 = vrot.slane %v5946_v21, %v18134_v37  ;;  %v5405_v3 = vrot.slane %v19063_v22, %v18125_v30  ;;  %17008 = vmatprep.subr.msk.mxu1 %vm841_vm4, %v19145_v52  ;;  %v5987_v53 = vrot.slane %v5979_v4, %v18134_v37  ;;  %v5994_v2 = vrot.slane %v5980_v7, %v18134_v37 }
 0x46f   : > { %v19168_v49 = vsel %vm843_vm5, %v7856_v14, %v7857_v24  ;;  %v4826_v17 = vrot.slane %v4812_v62, %v18125_v30  ;;  %v19176_v41 = vsel %vm948_vm6, %v19041_v1, 0.0  ;;  %v4827_v22 = vcombine.high %v4819_v61, %v4819_v61 }
 0x470   : > { %24301 = vst [vmem:[#allocation10_spill] sm:$0xff] %v19168_v49  ;;  %v5961_v9 = vcombine.low %v5953_v12, %v5960_v42  ;;  %17063 = vmatmul.mubr.msk.f32.vlgmr.msra.gmra.mrb[18].mxu0 %vm6224_vm3, %v19168_v49  ;;  %v5412_v31 = vrot.slane %v5398_v51, %v18125_v30  ;;  %v19182_v8 = vsel %vm948_vm6, %v6093_v23, 0.0  ;;  %v5995_v63 = vcombine.low %v5987_v53, %v5994_v2 }
 0x471   : > { %v4835_v40 = vrot.slane %v4819_v61, %v18125_v30  ;;  %v5413_v19 = vcombine.high %v5405_v3, %v5405_v3  ;;  %17087 = vmatpush3.msk.msra.mxu0 %vm841_vm4, %v18927_v0  ;;  %v19189_v1 = vsel %vm948_vm6, 0.0, %v19114_v6  ;;  %v19193_v55 = vsel %vm948_vm6, %v19114_v6, 0.0 }
 0x472   : > { %v19196_v13 = vsel %vm948_vm6, 0.0, %v6093_v23  ;;  %v19199_v27 = vsel %vm948_vm6, 0.0, %v6095_v32  ;;  %17112 = vmatprep.subr.msk.mxu0 %vm841_vm4, %v19172_v39  ;;  %v19204_v54 = vsel %vm948_vm6, %v6095_v32, 0.0  ;;  %v4828_v0 = vcombine.high %v4826_v17, %v4826_v17 }
 0x473   : > { %v19207_v29 = vrot.slane %v4826_v17, %v18125_v30  ;;  %v5421_v47 = vrot.slane %v5405_v3, %v18125_v30  ;;  %v4849_v23 = vrot.slane %v4827_v22, %v18125_v30  ;;  %v19213_v38 = vrot.slane %v5412_v31, %v18125_v30 }
 0x474   : > { %v5435_v18 = vrot.slane %v5413_v19, %v18125_v30  ;;  %v19216_v11 = vrot.slane %v5961_v9, 7  ;;  %v4857_v59 = vcombine.high %v4835_v40, %v4835_v40  ;;  %v5414_v10 = vcombine.high %v5412_v31, %v5412_v31 }
 0x475   : > { %v4763_v58 = vcombine.high %v19065_v44, %v19065_v44  ;;  %v6091_v46 = vrot.slane %v5995_v63, 7  ;;  %v5443_v48 = vcombine.high %v5421_v47, %v5421_v47  ;;  %v5580_v4 = vrot.slane %v5421_v47, %v18132_v36 }
 0x476   : > { %v5445_v43 = vcombine.high %v5435_v18, %v5435_v18  ;;  %v19222_v32 = vrot.slane %v4828_v0, %v18125_v30  ;;  %v5584_v21 = vrot.slane %v5435_v18, %v18132_v36  ;;  %v5596_v14 = vrot.slane %v19213_v38, %v18132_v36 }
 0x477   : > { %v4859_v12 = vcombine.high %v4849_v23, %v4849_v23  ;;  %v5588_v7 = vrot.slane %v5443_v48, %v18132_v36  ;;  %v5713_v62 = vsel %vm948_vm6, %v4835_v40, %v5580_v4  ;;  %v19234_v42 = vsel %vm948_vm6, 0.0, %v19216_v11 }
 0x478   : > { %v5592_v24 = vrot.slane %v5445_v43, %v18132_v36  ;;  %v5714_v61 = vsel %vm948_vm6, %v4849_v23, %v5584_v21  ;;  %v19239_v51 = vsel %vm948_vm6, %v19207_v29, %v5596_v14  ;;  %v4770_v3 = vrot.slane %v19065_v44, %v18125_v30 }
 0x479   : > { %v5715_v53 = vsel %vm948_vm6, %v4857_v59, %v5588_v7  ;;  %v5894_v17 = vcombine.low %v5713_v62, %v5714_v61  ;;  %v4777_v9 = vrot.slane %v4763_v58, %v18125_v30  ;;  %v19247_v22 = vsel %vm948_vm6, 0.0, %v6091_v46 }
 0x47a   : > { %v5716_v2 = vsel %vm948_vm6, %v4859_v12, %v5592_v24  ;;  %v4778_v63 = vcombine.high %v4770_v3, %v4770_v3  ;;  %v5349_v40 = vcombine.high %v19070_v50, %v19070_v50  ;;  %v19252_v19 = vsel %vm948_vm6, %v6091_v46, 0.0 }
 0x47b   : > { %v5895_v31 = vcombine.low %v5715_v53, %v5716_v2  ;;  %v4779_v0 = vcombine.high %v4777_v9, %v4777_v9  ;;  %v4786_v44 = vrot.slane %v4770_v3, %v18125_v30  ;;  %v5356_v47 = vrot.slane %v19070_v50, %v18125_v30 }
 0x47c   : > { %v5902_v23 = vrot.slane %v5894_v17, %v18134_v37  ;;  %v4793_v59 = vrot.slane %v4777_v9, %v18125_v30  ;;  %v5363_v58 = vrot.slane %v5349_v40, %v18125_v30  ;;  %v19262_v48 = vrot.slane %v5414_v10, %v18125_v30 }
 0x47d   : > { %v5909_v18 = vrot.slane %v5895_v31, %v18134_v37  ;;  %v4800_v46 = vrot.slane %v4778_v63, %v18125_v30  ;;  %v5364_v43 = vcombine.high %v5356_v47, %v5356_v47  ;;  %v5372_v4 = vrot.slane %v5356_v47, %v18125_v30 }
 0x47e   : > { %v4807_v14 = vrot.slane %v4779_v0, %v18125_v30  ;;  %v5365_v50 = vcombine.high %v5363_v58, %v5363_v58  ;;  %v5379_v12 = vrot.slane %v5363_v58, %v18125_v30  ;;  %v4808_v7 = vcombine.high %v4786_v44, %v4786_v44 }
 0x47f   : > { %v5910_v21 = vcombine.low %v5902_v23, %v5909_v18  ;;  %v5386_v24 = vrot.slane %v5364_v43, %v18125_v30  ;;  %v5394_v62 = vcombine.high %v5372_v4, %v5372_v4  ;;  %v5548_v61 = vrot.slane %v5372_v4, %v18132_v36 }
 0x480   : > { %v4809_v3 = vcombine.high %v4793_v59, %v4793_v59  ;;  %v5393_v10 = vrot.slane %v5365_v50, %v18125_v30  ;;  %v5395_v53 = vcombine.high %v5379_v12, %v5379_v12  ;;  %v5564_v2 = vrot.slane %v5379_v12, %v18132_v36 }
 0x481   : > { %v5396_v17 = vcombine.high %v5386_v24, %v5386_v24  ;;  %v5552_v9 = vrot.slane %v5386_v24, %v18132_v36  ;;  %v5556_v31 = vrot.slane %v5394_v62, %v18132_v36  ;;  %v5705_v63 = vsel %vm948_vm6, %v4786_v44, %v5548_v61 }
 0x482   : > { %v4810_v40 = vcombine.high %v4800_v46, %v4800_v46  ;;  %v4811_v0 = vcombine.high %v4807_v14, %v4807_v14  ;;  %v5397_v47 = vcombine.high %v5393_v10, %v5393_v10  ;;  %v5568_v23 = vrot.slane %v5393_v10, %v18132_v36 }
 0x483   : > { %v6086_v18 = vrot.slane %v5910_v21, 7  ;;  %v5560_v58 = vrot.slane %v5396_v17, %v18132_v36  ;;  %v5572_v43 = vrot.slane %v5395_v53, %v18132_v36  ;;  %v5706_v4 = vsel %vm948_vm6, %v4800_v46, %v5552_v9 }
 0x484   : > { %v5576_v50 = vrot.slane %v5397_v47, %v18132_v36  ;;  %v5707_v12 = vsel %vm948_vm6, %v4808_v7, %v5556_v31  ;;  %v5709_v24 = vsel %vm948_vm6, %v4793_v59, %v5564_v2  ;;  %v5710_v44 = vsel %vm948_vm6, %v4807_v14, %v5568_v23 }
 0x485   : > { %v5708_v62 = vsel %vm948_vm6, %v4810_v40, %v5560_v58  ;;  %v5711_v61 = vsel %vm948_vm6, %v4809_v3, %v5572_v43  ;;  %v5826_v10 = vcombine.low %v5705_v63, %v5706_v4  ;;  %v5860_v21 = vcombine.low %v5709_v24, %v5710_v44 }
 0x486   : > { %v5712_v17 = vsel %vm948_vm6, %v4811_v0, %v5576_v50  ;;  %v5827_v20 = vcombine.low %v5707_v12, %v5708_v62  ;;  %v4910_v46 = vcombine.high %v19080_v57, %v19080_v57  ;;  %v4917_v53 = vrot.slane %v19080_v57, %v18125_v30 }
 0x487   : > { %v5444_v59 = vcombine.high %v19213_v38, %v19213_v38  ;;  %v5446_v14 = vcombine.high %v19262_v48, %v19262_v48  ;;  %v5861_v7 = vcombine.low %v5711_v61, %v5712_v17  ;;  %v5496_v3 = vcombine.high %v19084_v15, %v19084_v15 }
 0x488   : > { %v5834_v2 = vrot.slane %v5826_v10, %v18134_v37  ;;  %v5841_v9 = vrot.slane %v5827_v20, %v18134_v37  ;;  %v4924_v31 = vrot.slane %v4910_v46, %v18125_v30  ;;  %v4925_v63 = vcombine.high %v4917_v53, %v4917_v53 }
 0x489   : > { %v5868_v40 = vrot.slane %v5860_v21, %v18134_v37  ;;  %v5875_v57 = vrot.slane %v5861_v7, %v18134_v37  ;;  %v5503_v38 = vrot.slane %v19084_v15, %v18125_v30  ;;  %v5510_v0 = vrot.slane %v5496_v3, %v18125_v30 }
 0x48a   : > { %v19307_v23 = vsel %vm948_vm6, %v6086_v18, 0.0  ;;  %v5842_v58 = vcombine.low %v5834_v2, %v5841_v9  ;;  %v4933_v20 = vrot.slane %v4917_v53, %v18125_v30  ;;  %v4926_v4 = vcombine.high %v4924_v31, %v4924_v31 }
 0x48b   : > { %v5876_v43 = vcombine.low %v5868_v40, %v5875_v57  ;;  %v19311_v50 = vrot.slane %v4924_v31, %v18125_v30  ;;  %v5511_v12 = vcombine.high %v5503_v38, %v5503_v38  ;;  %v19316_v24 = vrot.slane %v5444_v59, %v18132_v36 }
 0x48c   : > { %v19319_v44 = vrot.slane %v5446_v14, %v18132_v36  ;;  %v4947_v62 = vrot.slane %v4925_v63, %v18125_v30  ;;  %v6082_v61 = vrot.slane %v5842_v58, 7  ;;  %v5519_v10 = vrot.slane %v5503_v38, %v18125_v30 }
 0x48d   : > { %24303 = vst [vmem:[#allocation12_spill] sm:$0xff] %v19311_v50  ;;  %v19324_v21 = vrot.slane %v5510_v0, %v18125_v30  ;;  %v5533_v17 = vrot.slane %v5511_v12, %v18125_v30  ;;  %v19328_v46 = vsel %vm948_vm6, 0.0, %v6086_v18  ;;  %v5512_v59 = vcombine.high %v5510_v0, %v5510_v0 }
 0x48e   : > { %v4861_v14 = vcombine.high %v19086_v25, %v19086_v25  ;;  %v19334_v7 = vrot.slane %v4926_v4, %v18125_v30  ;;  %v4955_v3 = vcombine.high %v4933_v20, %v4933_v20  ;;  %v5541_v9 = vcombine.high %v5519_v10, %v5519_v10 }
 0x48f   : > { %v6084_v31 = vrot.slane %v5876_v43, 7  ;;  %v4957_v63 = vcombine.high %v4947_v62, %v4947_v62  ;;  %v5543_v40 = vcombine.high %v5533_v17, %v5533_v17  ;;  %v5644_v18 = vrot.slane %v5519_v10, %v18132_v36 }
 0x490   : > { %v19340_v57 = vsel %vm948_vm6, 0.0, %v6082_v61  ;;  %v5648_v38 = vrot.slane %v5533_v17, %v18132_v36  ;;  %v5652_v0 = vrot.slane %v5541_v9, %v18132_v36  ;;  %v5660_v58 = vrot.slane %v19324_v21, %v18132_v36 }
 0x491   : > { %v19347_v4 = vsel %vm948_vm6, %v6082_v61, 0.0  ;;  %v19350_v12 = vrot.slane %v5512_v59, %v18125_v30  ;;  %v5656_v43 = vrot.slane %v5543_v40, %v18132_v36  ;;  %v5729_v10 = vsel %vm948_vm6, %v4933_v20, %v5644_v18 }
 0x492   : > { %v5730_v2 = vsel %vm948_vm6, %v4947_v62, %v5648_v38  ;;  %v5731_v47 = vsel %vm948_vm6, %v4955_v3, %v5652_v0  ;;  %v19358_v17 = vsel %vm948_vm6, %v19311_v50, %v5660_v58  ;;  %v4868_v9 = vrot.slane %v19086_v25, %v18125_v30 }
 0x493   : > { %24304 = vst [vmem:[#allocation13_spill] sm:$0xff] %v19358_v17  ;;  %v5732_v61 = vsel %vm948_vm6, %v4957_v63, %v5656_v43  ;;  %v6030_v15 = vcombine.low %v5729_v10, %v5730_v2  ;;  %v4875_v59 = vrot.slane %v4861_v14, %v18125_v30  ;;  %v5447_v40 = vcombine.high %v19092_v34, %v19092_v34 }
 0x494   : > { %v19367_v20 = vsel %vm948_vm6, 0.0, %v6084_v31  ;;  %v6031_v62 = vcombine.low %v5731_v47, %v5732_v61  ;;  %v4876_v3 = vcombine.high %v4868_v9, %v4868_v9  ;;  %v5454_v18 = vrot.slane %v19092_v34, %v18125_v30 }
 0x495   : > { %v19372_v38 = vsel %vm948_vm6, %v6084_v31, 0.0  ;;  %v6184_v25 = vrot.slane %v19347_v4, 1  ;;  %v4877_v63 = vcombine.high %v4875_v59, %v4875_v59  ;;  %v5461_v2 = vrot.slane %v5447_v40, %v18125_v30 }
 0x496   : > { %v19377_v14 = vrot.slane %v6030_v15, %v18134_v37  ;;  %v19380_v0 = vrot.slane %v6031_v62, %v18134_v37  ;;  %v4884_v47 = vrot.slane %v4868_v9, %v18125_v30  ;;  %v5462_v58 = vcombine.high %v5454_v18, %v5454_v18 }
 0x497   : > { %v4891_v31 = vrot.slane %v4875_v59, %v18125_v30  ;;  %v5463_v43 = vcombine.high %v5461_v2, %v5461_v2  ;;  %v5470_v10 = vrot.slane %v5454_v18, %v18125_v30  ;;  %v4898_v15 = vrot.slane %v4876_v3, %v18125_v30 }
 0x498   : > { %v5477_v40 = vrot.slane %v5461_v2, %v18125_v30  ;;  %v5484_v62 = vrot.slane %v5462_v58, %v18125_v30  ;;  %v4905_v9 = vrot.slane %v4877_v63, %v18125_v30  ;;  %v4906_v59 = vcombine.high %v4884_v47, %v4884_v47 }
 0x499   : > { %v5491_v6 = vrot.slane %v5463_v43, %v18125_v30  ;;  %v5492_v53 = vcombine.high %v5470_v10, %v5470_v10  ;;  %v5612_v34 = vrot.slane %v5470_v10, %v18132_v36  ;;  %v4907_v58 = vcombine.high %v4891_v31, %v4891_v31 }
 0x49a   : > { %v5493_v35 = vcombine.high %v5477_v40, %v5477_v40  ;;  %v5494_v49 = vcombine.high %v5484_v62, %v5484_v62  ;;  %v5616_v18 = vrot.slane %v5484_v62, %v18132_v36  ;;  %v5628_v3 = vrot.slane %v5477_v40, %v18132_v36 }
 0x49b   : > { %v5495_v26 = vcombine.high %v5491_v6, %v5491_v6  ;;  %v5620_v61 = vrot.slane %v5492_v53, %v18132_v36  ;;  %v5632_v2 = vrot.slane %v5491_v6, %v18132_v36  ;;  %v4908_v52 = vcombine.high %v4898_v15, %v4898_v15 }
 0x49c   : > { %v5624_v63 = vrot.slane %v5494_v49, %v18132_v36  ;;  %v5636_v43 = vrot.slane %v5493_v35, %v18132_v36  ;;  %v4909_v30 = vcombine.high %v4905_v9, %v4905_v9  ;;  %v5721_v45 = vsel %vm948_vm6, %v4884_v47, %v5612_v34 }
 0x49d   : > { %v5640_v10 = vrot.slane %v5495_v26, %v18132_v36  ;;  %v5722_v62 = vsel %vm948_vm6, %v4898_v15, %v5616_v18  ;;  %v5723_v39 = vsel %vm948_vm6, %v4906_v59, %v5620_v61  ;;  %v5725_v40 = vsel %vm948_vm6, %v4891_v31, %v5628_v3 }
 0x49e   : > { %v5724_v53 = vsel %vm948_vm6, %v4908_v52, %v5624_v63  ;;  %v5726_v6 = vsel %vm948_vm6, %v4905_v9, %v5632_v2  ;;  %v5727_v33 = vsel %vm948_vm6, %v4907_v58, %v5636_v43  ;;  %v5962_v35 = vcombine.low %v5721_v45, %v5722_v62 }
 0x49f   : > { %v5728_v49 = vsel %vm948_vm6, %v4909_v30, %v5640_v10  ;;  %v5963_v17 = vcombine.low %v5723_v39, %v5724_v53  ;;  %v5996_v50 = vcombine.low %v5725_v40, %v5726_v6  ;;  %v6183_v47 = vrot.slane %v19340_v57, 1 }
 0x4a0   : > { %v5997_v26 = vcombine.low %v5727_v33, %v5728_v49  ;;  %v7859_v34 = vrot.slane %v19340_v57, 2  ;;  %v5970_v61 = vrot.slane %v5962_v35, %v18134_v37  ;;  %v7860_v31 = vrot.slane %v19347_v4, 2 }
 0x4a1   : > { %v5977_v52 = vrot.slane %v5963_v17, %v18134_v37  ;;  %v6186_v15 = vrot.slane %v19189_v1, 1  ;;  %v6004_v9 = vrot.slane %v5996_v50, %v18134_v37  ;;  %v19419_v45 = vsel %vm6176_vm2, %v6183_v47, %v6184_v25 }
 0x4a2   : > { %v6011_v30 = vrot.slane %v5997_v26, %v18134_v37  ;;  %v6187_v33 = vrot.slane %v19193_v55, 1  ;;  %16961 = vmatprep.mubr.msk.f32.mxu1 %vm6224_vm3, %v19419_v45  ;;  %v19425_v59 = vsel %vm843_vm5, %v7859_v34, %v7860_v31  ;;  %v7862_v4 = vrot.slane %v19189_v1, 2 }
 0x4a3   : > { %v5978_v39 = vcombine.low %v5970_v61, %v5977_v52  ;;  %v7863_v17 = vrot.slane %v19193_v55, 2  ;;  %17065 = vmatprep.mubr.msk.f32.mxu0 %vm6224_vm3, %v19425_v59  ;;  %v6189_v25 = vrot.slane %v19367_v20, 1  ;;  %v6190_v3 = vrot.slane %v19372_v38, 1 }
 0x4a4   : > { %v6012_v18 = vcombine.low %v6004_v9, %v6011_v30  ;;  %v19432_v50 = vsel %vm6176_vm2, %v6186_v15, %v6187_v33  ;;  %v7865_v55 = vrot.slane %v19367_v20, 2  ;;  %v7866_v63 = vrot.slane %v19372_v38, 2 }
 0x4a5   : > { %v6090_v2 = vrot.slane %v5978_v39, 7  ;;  %16962 = vmatmul.mubr.msk.f32.gmra.mrb[18].mxu1 %vm6224_vm3, %v19432_v50  ;;  %v19439_v58 = vsel %vm843_vm5, %v7862_v4, %v7863_v17  ;;  %v19446_v10 = vsel %vm6176_vm2, %v6189_v25, %v6190_v3  ;;  %v6192_v62 = vrot.slane %v19089_v16, 1 }
 0x4a6   : > { %v6092_v43 = vrot.slane %v6012_v18, 7  ;;  %17066 = vmatmul.mubr.msk.f32.gmra.mrb[20].mxu0 %vm6224_vm3, %v19439_v58  ;;  %v7868_v53 = vrot.slane %v19089_v16, 2  ;;  %v5544_v40 = vcombine.high %v19350_v12, %v19350_v12  ;;  %v24305_v6 = vcombine.low %v19377_v14, %v19380_v0  ;;  %16964 = vmatprep.mubr.msk.f32.mxu1 %vm6224_vm3, %v19446_v10 }
 0x4a7   : > { %v19458_v38 = vsel %vm843_vm5, %v7865_v55, %v7866_v63  ;;  %v7869_v35 = vrot.slane %v19046_v60, 2  ;;  %v19462_v26 = vsel %vm948_vm6, 0.0, %v6090_v2  ;;  %v6139_v34 = vsel %vm948_vm6, %v6090_v2, 0.0 }
 0x4a8   : > { %v6094_v49 = vrot.slane %v24305_v6, 7  ;;  %v19465_v47 = vsel %vm948_vm6, 0.0, %v6092_v43  ;;  %17068 = vmatprep.mubr.msk.f32.mxu0 %vm6224_vm3, %v19458_v38  ;;  %v24306_v14 = vrot.slane %v19046_v60, 1  ;;  %v6195_v52 = vrot.slane %v19328_v46, 1 }
 0x4a9   : > { %v19478_v61 = vsel %vm843_vm5, %v7868_v53, %v7869_v35  ;;  %v7871_v31 = vrot.slane %v19328_v46, 2  ;;  %v7872_v15 = vrot.slane %v19307_v23, 2  ;;  %v6198_v60 = vrot.slane %v19107_v5, 1 }
 0x4aa   : > { %v19473_v0 = vsel %vm6176_vm2, %v6192_v62, %v24306_v14  ;;  %17069 = vmatmul.mubr.msk.f32.gmra.mrb[22].mxu0 %vm6224_vm3, %v19478_v61  ;;  %v6199_v9 = vrot.slane %v19176_v41, 1  ;;  %v7874_v30 = vrot.slane %v19107_v5, 2  ;;  %v7875_v33 = vrot.slane %v19176_v41, 2 }
 0x4ab   : > { %16965 = vmatmul.mubr.msk.f32.gmra.mrb[20].mxu1 %vm6224_vm3, %v19473_v0  ;;  %v24307_v39 = vrot.slane %v19307_v23, 1  ;;  %v19495_v17 = vsel %vm843_vm5, %v7871_v31, %v7872_v15  ;;  %v6138_v18 = vsel %vm948_vm6, %v19216_v11, 0.0  ;;  %v6201_v25 = vrot.slane %v19234_v42, 1 }
 0x4ac   : > { %v6141_v3 = vsel %vm948_vm6, %v6092_v43, 0.0  ;;  %17071 = vmatprep.mubr.msk.f32.mxu0 %vm6224_vm3, %v19495_v17  ;;  %v19506_v41 = vsel %vm6176_vm2, %v6198_v60, %v6199_v9  ;;  %v6202_v23 = vrot.slane %v6138_v18, 1  ;;  %v7877_v2 = vrot.slane %v19234_v42, 2 }
 0x4ad   : > { %v19492_v4 = vsel %vm6176_vm2, %v6195_v52, %v24307_v39  ;;  %v6205_v55 = vrot.slane %v6139_v34, 1  ;;  %v19512_v11 = vsel %vm843_vm5, %v7874_v30, %v7875_v33  ;;  %v7878_v63 = vrot.slane %v6138_v18, 2 }
 0x4ae   : > { %16967 = vmatprep.mubr.msk.f32.mxu1 %vm6224_vm3, %v19492_v4  ;;  %v6204_v43 = vrot.slane %v19462_v26, 1  ;;  %v19516_v62 = vsel %vm948_vm6, 0.0, %v6094_v49  ;;  %v19519_v53 = vsel %vm948_vm6, %v6094_v49, 0.0  ;;  %17072 = vmatmul.mubr.msk.f32.gmra.mrb[24].mxu0 %vm6224_vm3, %v19512_v11  ;;  %v7880_v6 = vrot.slane %v19462_v26, 2 }
 0x4af   : > { %16968 = vmatmul.mubr.msk.f32.gmra.mrb[22].mxu1 %vm6224_vm3, %v19506_v41  ;;  %v7881_v35 = vrot.slane %v6139_v34, 2  ;;  %17074 = vmatprep.mubr.msk.f32.mxu0 %vm6224_vm3, %v18944_v28  ;;  %v19529_v14 = vsel %vm6176_vm2, %v6201_v25, %v6202_v23  ;;  %v6207_v52 = vrot.slane %v19247_v22, 1  ;;  %v6208_v49 = vrot.slane %v19252_v19, 1 }
 0x4b0   : > { %16970 = vmatprep.mubr.msk.f32.mxu1 %vm6224_vm3, %v18938_v56  ;;  %v7883_v31 = vrot.slane %v19247_v22, 2  ;;  %v19535_v15 = vsel %vm843_vm5, %v7877_v2, %v7878_v63  ;;  %v7884_v60 = vrot.slane %v19252_v19, 2  ;;  %v6210_v9 = vrot.slane %v19465_v47, 1 }
 0x4b1   : > { %24308 = vst [vmem:[#allocation14_spill] sm:$0xff] %v19535_v15  ;;  %v6211_v34 = vrot.slane %v6141_v3, 1  ;;  %v19542_v30 = vsel %vm6176_vm2, %v6204_v43, %v6205_v55  ;;  %v7886_v33 = vrot.slane %v19465_v47, 2  ;;  %v7887_v39 = vrot.slane %v6141_v3, 2 }
 0x4b2   : > { %v6213_v18 = vrot.slane %v19196_v13, 1  ;;  %v4958_v25 = vcombine.high %v19334_v7, %v19334_v7  ;;  %17075 = vmatmul.mubr.msk.f32.gmra.mrb[26].mxu0 %vm6224_vm3, %v19535_v15  ;;  %v19553_v19 = vsel %vm843_vm5, %v7880_v6, %v7881_v35  ;;  %v7889_v23 = vrot.slane %v19196_v13, 2 }
 0x4b3   : > { %16971 = vmatmul.mubr.msk.f32.gmra.mrb[24].mxu1 %vm6224_vm3, %v19529_v14  ;;  %v7890_v2 = vrot.slane %v19182_v8, 2  ;;  %v5664_v3 = vrot.slane %v19350_v12, %v18132_v36  ;;  %v24309_v55 = vcombine.high %v19324_v21, %v19324_v21  ;;  %v5672_v43 = vrot.slane %v5544_v40, %v18132_v36  ;;  %17077 = vmatprep.mubr.msk.f32.mxu0 %vm6224_vm3, %v19553_v19 }
 0x4b4   : > { %16973 = vmatprep.mubr.msk.f32.mxu1 %vm6224_vm3, %v19542_v30  ;;  %v6217_v6 = vrot.slane %v19519_v53, 1  ;;  %v19571_v35 = vsel %vm6176_vm2, %v6207_v52, %v6208_v49  ;;  %v19574_v28 = vsel %vm843_vm5, %v7883_v31, %v7884_v60  ;;  %v19577_v15 = vsel %vm6176_vm2, %v6210_v9, %v6211_v34 }
 0x4b5   : > { %v5668_v63 = vrot.slane %v24309_v55, %v18132_v36  ;;  %v6216_v21 = vrot.slane %v19516_v62, 1  ;;  %v19583_v12 = vsel %vm843_vm5, %v7886_v33, %v7887_v39  ;;  %v24310_v40 = vrot.slane %v19182_v8, 1 }
 0x4b6   : > { %v7892_v52 = vrot.slane %v19516_v62, 2  ;;  %v7893_v49 = vrot.slane %v19519_v53, 2  ;;  %17078 = vmatmul.mubr.msk.f32.gmra.mrb[28].mxu0 %vm6224_vm3, %v19574_v28  ;;  %v19597_v31 = vsel %vm843_vm5, %v7889_v23, %v7890_v2  ;;  %v6219_v60 = vrot.slane %v19199_v27, 1 }
 0x4b7   : > { %16974 = vmatmul.mubr.msk.f32.gmra.mrb[26].mxu1 %vm6224_vm3, %v19571_v35  ;;  %v19588_v55 = vsel %vm6176_vm2, %v6213_v18, %v24310_v40  ;;  %v24311_v8 = vrot.slane %v19262_v48, %v18132_v36  ;;  %v24312_v53 = vcombine.high %v19207_v29, %v19207_v29  ;;  %17080 = vmatprep.mubr.msk.f32.mxu0 %vm6224_vm3, %v19583_v12  ;;  %v6220_v33 = vrot.slane %v19204_v54, 1  ;;  %v24314_v29 = vld [vmem:[#allocation12_spill] sm:$0xff] }
 0x4b8   : > { %16976 = vmatprep.mubr.msk.f32.mxu1 %vm6224_vm3, %v19577_v15  ;;  %v24313_v39 = vcombine.high %v19222_v32, %v19222_v32  ;;  %v5734_v23 = vsel %vm948_vm6, %v19334_v7, %v5664_v3 }
 0x4b9   : > { %v5718_v9 = vsel %vm948_vm6, %v19222_v32, %v24311_v8  ;;  %v5719_v34 = vsel %vm948_vm6, %v24312_v53, %v19316_v24  ;;  %v24315_v24 = vcombine.high %v24314_v29, %v24314_v29  ;;  %v5736_v8 = vsel %vm948_vm6, %v4958_v25, %v5672_v43  ;;  %v24316_v53 = vld [vmem:[#allocation13_spill] sm:$0xff] }
 0x4ba   : > { %v5720_v48 = vsel %vm948_vm6, %v24313_v39, %v19319_v44  ;;  %v5928_v18 = vcombine.low %v19239_v51, %v5718_v9  ;;  %v6064_v36 = vcombine.low %v24316_v53, %v5734_v23  ;;  %v19630_v32 = vsel %vm6176_vm2, %v6216_v21, %v6217_v6  ;;  %17081 = vmatmul.mubr.msk.f32.gmra.mrb[30].mxu0 %vm6224_vm3, %v19597_v31  ;;  %v19741_v23 = vld [vmem:[%s18921_s20 + $0x20] sm:$0xff] }
 0x4bb   : > { %v5929_v2 = vcombine.low %v5719_v34, %v5720_v48  ;;  %v5735_v40 = vsel %vm948_vm6, %v24315_v24, %v5668_v63  ;;  %16977 = vmatmul.mubr.msk.f32.gmra.mrb[28].mxu1 %vm6224_vm3, %v19588_v55  ;;  %v7895_v51 = vrot.slane %v19199_v27, 2  ;;  %v7896_v44 = vrot.slane %v19204_v54, 2  ;;  %v24319_v34 = vld [vmem:[#allocation7_spill] sm:$0xff]  ;;  %v24321_v48 = vld [vmem:[#allocation8_spill] sm:$0xff] }
 0x4bc   : > { %v6065_v7 = vcombine.low %v5735_v40, %v5736_v8  ;;  %16979 = vmatprep.mubr.msk.f32.mxu1 %vm6224_vm3, %v19630_v32  ;;  %v19639_v25 = vsel %vm843_vm5, %v7892_v52, %v7893_v49  ;;  %v5936_v3 = vrot.slane %v5928_v18, %v18134_v37  ;;  %v19646_v43 = vrot.slane %v6064_v36, %v18134_v37  ;;  %v24317_v36 = vld [vmem:[#allocation4_spill] sm:$0xff]  ;;  %v19734_v18 = vld [vmem:[%s18921_s20 + $0x30] sm:$0xff] }
 0x4bd   : > { %v5943_v63 = vrot.slane %v5929_v2, %v18134_v37  ;;  %17083 = vmatprep.mubr.msk.f32.mxu0 %vm6224_vm3, %v19639_v25  ;;  %v19652_v6 = vsel %vm6176_vm2, %v6219_v60, %v6220_v33  ;;  %v19657_v52 = vsel %vm843_vm5, %v7895_v51, %v7896_v44  ;;  %v24318_v60 = vld [vmem:[#allocation11_spill] sm:$0xff]  ;;  %v24320_v33 = vld [vmem:[#allocation9_spill] sm:$0xff]  ;;  %v11683_v2 = vrot.slane %v19734_v18, 4 }
 0x4be   : > { %v19649_v54 = vrot.slane %v6065_v7, %v18134_v37  ;;  %17084 = vmatmul.mubr.msk.f32.gmra.mrb[32].mxu0 %vm6224_vm3, %v19657_v52  ;;  %v8394_v9 = vrot.slane %v24318_v60, 4  ;;  %v6757_v39 = vrot.slane %v24320_v33, 4  ;;  %v10131_v29 = vrot.slane %v19741_v23, 4 }
 0x4bf   : > { %v5944_v21 = vcombine.low %v5936_v3, %v5943_v63  ;;  %16980 = vmatmul.mubr.msk.f32.gmra.mrb[30].mxu1 %vm6224_vm3, %v19652_v6  ;;  %17088 = vmatprep.mubr.msk.f32.mxu0 %vm6224_vm3, %v18938_v56 }
 0x4c0   : > { %v6080_v49 = vcombine.low %v19646_v43, %v19649_v54  ;;  %16984 = vmatprep.mubr.msk.f32.mxu1 %vm6224_vm3, %v24317_v36 }
 0x4c1   : > { %v6088_v24 = vrot.slane %v5944_v21, 7 }
 0x4c2   : > { %17089 = vmatmul.mubr.msk.f32.vlgmr.msra.gmra.mrb[18].mxu0 %vm6224_vm3, %v24321_v48  ;;  %v6096_v7 = vrot.slane %v6080_v49, 7  ;;  %v24322_v49 = vld [vmem:[#allocation10_spill] sm:$0xff] }
 0x4c3   : > { %16985 = vmatmul.mubr.msk.f32.vlgmr.msra.gmra.mrb[16].mxu1 %vm6224_vm3, %v24319_v34  ;;  %17091 = vmatprep.mubr.msk.f32.mxu0 %vm6224_vm3, %v19419_v45  ;;  %v19766_v40 = vsel %vm948_vm6, 0.0, %v6088_v24  ;;  %v6137_v8 = vsel %vm948_vm6, %v6088_v24, 0.0 }
 0x4c4   : > { %16987 = vmatprep.mubr.msk.f32.mxu1 %vm6224_vm3, %v19340_v57  ;;  %17113 = vmatpush3.msk.msra.mxu0 %vm841_vm4, %v24318_v60  ;;  %v6751_v53 = vrot.slane %v19766_v40, 1  ;;  %v6752_v51 = vrot.slane %v6137_v8, 1  ;;  %v19809_v3 = vsel %vm948_vm6, 0.0, %v6096_v7  ;;  %v6145_v63 = vsel %vm948_vm6, %v6096_v7, 0.0 }
 0x4c5   : > { %17009 = vmatpush3.msk.msra.mxu1 %vm841_vm4, %v24320_v33  ;;  %17138 = vmatprep.subr.msk.mxu0 %vm841_vm4, %v8394_v9  ;;  %v6754_v43 = vrot.slane %v19809_v3, 1  ;;  %v6755_v54 = vrot.slane %v6145_v63, 1  ;;  %v8388_v60 = vrot.slane %v19766_v40, 2 }
 0x4c6   : > { %17034 = vmatprep.subr.msk.mxu1 %vm841_vm4, %v6757_v39  ;;  %17092 = vmatmul.mubr.msk.f32.gmra.mrb[20].mxu0 %vm6224_vm3, %v19432_v50  ;;  %v19783_v44 = vsel %vm6176_vm2, %v6751_v53, %v6752_v51  ;;  %v19922_v53 = vld [vmem:[%s18921_s20 + $0x28] sm:$0xff] }
 0x4c7   : > { %16988 = vmatmul.mubr.msk.f32.gmra.mrb[18].mxu1 %vm6224_vm3, %v19189_v1  ;;  %17094 = vmatprep.mubr.msk.f32.mxu0 %vm6224_vm3, %v19446_v10  ;;  %v19826_v21 = vsel %vm6176_vm2, %v6754_v43, %v6755_v54 }
 0x4c8   : > { %16990 = vmatprep.mubr.msk.f32.mxu1 %vm6224_vm3, %v19367_v20 }
 0x4ca   : > { %17095 = vmatmul.mubr.msk.f32.gmra.mrb[22].mxu0 %vm6224_vm3, %v19473_v0 }
 0x4cb   : > { %16991 = vmatmul.mubr.msk.f32.gmra.mrb[20].mxu1 %vm6224_vm3, %v19089_v16  ;;  %17097 = vmatprep.mubr.msk.f32.mxu0 %vm6224_vm3, %v19492_v4 }
 0x4cc   : > { %16993 = vmatprep.mubr.msk.f32.mxu1 %vm6224_vm3, %v19328_v46 }
 0x4ce   : > { %17098 = vmatmul.mubr.msk.f32.gmra.mrb[24].mxu0 %vm6224_vm3, %v19506_v41 }
 0x4cf   : > { %16994 = vmatmul.mubr.msk.f32.gmra.mrb[22].mxu1 %vm6224_vm3, %v19107_v5  ;;  %17100 = vmatprep.mubr.msk.f32.mxu0 %vm6224_vm3, %v18938_v56 }
 0x4d0   : > { %16996 = vmatprep.mubr.msk.f32.mxu1 %vm6224_vm3, %v24317_v36 }
 0x4d2   : > { %17101 = vmatmul.mubr.msk.f32.gmra.mrb[26].mxu0 %vm6224_vm3, %v19529_v14 }
 0x4d3   : > { %16997 = vmatmul.mubr.msk.f32.gmra.mrb[24].mxu1 %vm6224_vm3, %v19234_v42  ;;  %17103 = vmatprep.mubr.msk.f32.mxu0 %vm6224_vm3, %v19542_v30 }
 0x4d4   : > { %16999 = vmatprep.mubr.msk.f32.mxu1 %vm6224_vm3, %v19462_v26 }
 0x4d6   : > { %17104 = vmatmul.mubr.msk.f32.gmra.mrb[28].mxu0 %vm6224_vm3, %v19571_v35 }
 0x4d7   : > { %17000 = vmatmul.mubr.msk.f32.gmra.mrb[26].mxu1 %vm6224_vm3, %v19247_v22  ;;  %17106 = vmatprep.mubr.msk.f32.mxu0 %vm6224_vm3, %v19577_v15 }
 0x4d8   : > { %17002 = vmatprep.mubr.msk.f32.mxu1 %vm6224_vm3, %v19465_v47 }
 0x4da   : > { %17107 = vmatmul.mubr.msk.f32.gmra.mrb[30].mxu0 %vm6224_vm3, %v19588_v55 }
 0x4db   : > { %17003 = vmatmul.mubr.msk.f32.gmra.mrb[28].mxu1 %vm6224_vm3, %v19196_v13  ;;  %17109 = vmatprep.mubr.msk.f32.mxu0 %vm6224_vm3, %v19630_v32 }
 0x4dc   : > { %17005 = vmatprep.mubr.msk.f32.mxu1 %vm6224_vm3, %v19516_v62 }
 0x4de   : > { %17110 = vmatmul.mubr.msk.f32.gmra.mrb[32].mxu0 %vm6224_vm3, %v19652_v6 }
 0x4df   : > { %17006 = vmatmul.mubr.msk.f32.gmra.mrb[30].mxu1 %vm6224_vm3, %v19199_v27  ;;  %17114 = vmatprep.mubr.msk.f32.mxu0 %vm6224_vm3, %v24321_v48 }
 0x4e0   : > { %17010 = vmatprep.mubr.msk.f32.mxu1 %vm6224_vm3, %v24319_v34 }
 0x4e2   : > { %17115 = vmatmul.mubr.msk.f32.vlgmr.msra.gmra.mrb[18].mxu0 %vm6224_vm3, %v19419_v45 }
 0x4e3   : > { %17011 = vmatmul.mubr.msk.f32.vlgmr.msra.gmra.mrb[16].mxu1 %vm6224_vm3, %v19340_v57  ;;  %17117 = vmatprep.mubr.msk.f32.mxu0 %vm6224_vm3, %v19432_v50 }
 0x4e4   : > { %17013 = vmatprep.mubr.msk.f32.mxu1 %vm6224_vm3, %v19189_v1  ;;  %17139 = vmatpush3.msk.msra.mxu0 %vm841_vm4, %v8394_v9  ;;  %v8389_v9 = vrot.slane %v6137_v8, 2  ;;  %v19915_v8 = vld [vmem:[%s18921_s20 + $0x38] sm:$0xff] }
 0x4e5   : > { %17035 = vmatpush3.msk.msra.mxu1 %vm841_vm4, %v6757_v39  ;;  %17268 = vmatprep.subr.msk.mxu0 %vm841_vm4, %v11683_v2  ;;  %v24323_v39 = vld [vmem:[#allocation14_spill] sm:$0xff] }
 0x4e6   : > { %17164 = vmatprep.subr.msk.mxu1 %vm841_vm4, %v10131_v29  ;;  %17118 = vmatmul.mubr.msk.f32.gmra.mrb[20].mxu0 %vm6224_vm3, %v19446_v10  ;;  %v19868_v33 = vsel %vm843_vm5, %v8388_v60, %v8389_v9 }
 0x4e7   : > { %17014 = vmatmul.mubr.msk.f32.gmra.mrb[18].mxu1 %vm6224_vm3, %v19367_v20  ;;  %17120 = vmatprep.mubr.msk.f32.mxu0 %vm6224_vm3, %v19473_v0 }
 0x4e8   : > { %17016 = vmatprep.mubr.msk.f32.mxu1 %vm6224_vm3, %v19089_v16 }
 0x4ea   : > { %17121 = vmatmul.mubr.msk.f32.gmra.mrb[22].mxu0 %vm6224_vm3, %v19492_v4 }
 0x4eb   : > { %17017 = vmatmul.mubr.msk.f32.gmra.mrb[20].mxu1 %vm6224_vm3, %v19328_v46  ;;  %17123 = vmatprep.mubr.msk.f32.mxu0 %vm6224_vm3, %v19506_v41 }
 0x4ec   : > { %17019 = vmatprep.mubr.msk.f32.mxu1 %vm6224_vm3, %v19107_v5 }
 0x4ee   : > { %17124 = vmatmul.mubr.msk.f32.gmra.mrb[24].mxu0 %vm6224_vm3, %v19783_v44 }
 0x4ef   : > { %17020 = vmatmul.mubr.msk.f32.gmra.mrb[22].mxu1 %vm6224_vm3, %v19766_v40  ;;  %17126 = vmatprep.mubr.msk.f32.mxu0 %vm6224_vm3, %v19529_v14 }
 0x4f0   : > { %17022 = vmatprep.mubr.msk.f32.mxu1 %vm6224_vm3, %v19234_v42 }
 0x4f2   : > { %17127 = vmatmul.mubr.msk.f32.gmra.mrb[26].mxu0 %vm6224_vm3, %v19542_v30 }
 0x4f3   : > { %17023 = vmatmul.mubr.msk.f32.gmra.mrb[24].mxu1 %vm6224_vm3, %v19462_v26  ;;  %17129 = vmatprep.mubr.msk.f32.mxu0 %vm6224_vm3, %v19571_v35 }
 0x4f4   : > { %17025 = vmatprep.mubr.msk.f32.mxu1 %vm6224_vm3, %v19247_v22 }
 0x4f6   : > { %17130 = vmatmul.mubr.msk.f32.gmra.mrb[28].mxu0 %vm6224_vm3, %v19577_v15 }
 0x4f7   : > { %17026 = vmatmul.mubr.msk.f32.gmra.mrb[26].mxu1 %vm6224_vm3, %v19465_v47  ;;  %17132 = vmatprep.mubr.msk.f32.mxu0 %vm6224_vm3, %v19588_v55 }
 0x4f8   : > { %17028 = vmatprep.mubr.msk.f32.mxu1 %vm6224_vm3, %v19196_v13 }
 0x4fa   : > { %17133 = vmatmul.mubr.msk.f32.gmra.mrb[30].mxu0 %vm6224_vm3, %v19630_v32 }
 0x4fb   : > { %17029 = vmatmul.mubr.msk.f32.gmra.mrb[28].mxu1 %vm6224_vm3, %v19516_v62  ;;  %17135 = vmatprep.mubr.msk.f32.mxu0 %vm6224_vm3, %v19652_v6 }
 0x4fc   : > { %17031 = vmatprep.mubr.msk.f32.mxu1 %vm6224_vm3, %v19199_v27 }
 0x4fe   : > { %17136 = vmatmul.mubr.msk.f32.gmra.mrb[32].mxu0 %vm6224_vm3, %v19826_v21 }
 0x4ff   : > { %17032 = vmatmul.mubr.msk.f32.gmra.mrb[30].mxu1 %vm6224_vm3, %v19809_v3  ;;  %17140 = vmatprep.mubr.msk.f32.mxu0 %vm6224_vm3, %v24322_v49 }
 0x500   : > { %17036 = vmatprep.mubr.msk.f32.mxu1 %vm6224_vm3, %v24321_v48 }
 0x502   : > { %17141 = vmatmul.mubr.msk.f32.vlgmr.msra.gmra.mrb[18].mxu0 %vm6224_vm3, %v19425_v59 }
 0x503   : > { %17037 = vmatmul.mubr.msk.f32.vlgmr.msra.gmra.mrb[16].mxu1 %vm6224_vm3, %v19419_v45  ;;  %17143 = vmatprep.mubr.msk.f32.mxu0 %vm6224_vm3, %v19439_v58 }
 0x504   : > { %17039 = vmatprep.mubr.msk.f32.mxu1 %vm6224_vm3, %v19432_v50  ;;  %17269 = vmatpush3.msk.msra.mxu0 %vm841_vm4, %v11683_v2  ;;  %v8391_v2 = vrot.slane %v19809_v3, 2 }
 0x505   : > { %17165 = vmatpush3.msk.msra.mxu1 %vm841_vm4, %v10131_v29  ;;  %17294 = vmatprep.subr.msk.mxu0 %vm841_vm4, %v19734_v18  ;;  %v8392_v29 = vrot.slane %v6145_v63, 2 }
 0x506   : > { %17190 = vmatprep.subr.msk.mxu1 %vm841_vm4, %v19741_v23  ;;  %17144 = vmatmul.mubr.msk.f32.gmra.mrb[20].mxu0 %vm6224_vm3, %v19458_v38 }
 0x507   : > { %17040 = vmatmul.mubr.msk.f32.gmra.mrb[18].mxu1 %vm6224_vm3, %v19446_v10  ;;  %17146 = vmatprep.mubr.msk.f32.mxu0 %vm6224_vm3, %v19478_v61  ;;  %v19904_v24 = vsel %vm843_vm5, %v8391_v2, %v8392_v29 }
 0x508   : > { %17042 = vmatprep.mubr.msk.f32.mxu1 %vm6224_vm3, %v19473_v0 }
 0x50a   : > { %17147 = vmatmul.mubr.msk.f32.gmra.mrb[22].mxu0 %vm6224_vm3, %v19495_v17 }
 0x50b   : > { %17043 = vmatmul.mubr.msk.f32.gmra.mrb[20].mxu1 %vm6224_vm3, %v19492_v4  ;;  %17149 = vmatprep.mubr.msk.f32.mxu0 %vm6224_vm3, %v19512_v11 }
 0x50c   : > { %17045 = vmatprep.mubr.msk.f32.mxu1 %vm6224_vm3, %v19506_v41 }
 0x50e   : > { %17150 = vmatmul.mubr.msk.f32.gmra.mrb[24].mxu0 %vm6224_vm3, %v19868_v33 }
 0x50f   : > { %17046 = vmatmul.mubr.msk.f32.gmra.mrb[22].mxu1 %vm6224_vm3, %v19783_v44  ;;  %17152 = vmatprep.mubr.msk.f32.mxu0 %vm6224_vm3, %v24323_v39 }
 0x510   : > { %17048 = vmatprep.mubr.msk.f32.mxu1 %vm6224_vm3, %v19529_v14 }
 0x512   : > { %17153 = vmatmul.mubr.msk.f32.gmra.mrb[26].mxu0 %vm6224_vm3, %v19553_v19 }
 0x513   : > { %17049 = vmatmul.mubr.msk.f32.gmra.mrb[24].mxu1 %vm6224_vm3, %v19542_v30  ;;  %17155 = vmatprep.mubr.msk.f32.mxu0 %vm6224_vm3, %v19574_v28 }
 0x514   : > { %17051 = vmatprep.mubr.msk.f32.mxu1 %vm6224_vm3, %v19571_v35 }
 0x516   : > { %17156 = vmatmul.mubr.msk.f32.gmra.mrb[28].mxu0 %vm6224_vm3, %v19583_v12 }
 0x517   : > { %17052 = vmatmul.mubr.msk.f32.gmra.mrb[26].mxu1 %vm6224_vm3, %v19577_v15  ;;  %17158 = vmatprep.mubr.msk.f32.mxu0 %vm6224_vm3, %v19597_v31 }
 0x518   : > { %17054 = vmatprep.mubr.msk.f32.mxu1 %vm6224_vm3, %v19588_v55 }
 0x51a   : > { %17159 = vmatmul.mubr.msk.f32.gmra.mrb[30].mxu0 %vm6224_vm3, %v19639_v25 }
 0x51b   : > { %17055 = vmatmul.mubr.msk.f32.gmra.mrb[28].mxu1 %vm6224_vm3, %v19630_v32  ;;  %17161 = vmatprep.mubr.msk.f32.mxu0 %vm6224_vm3, %v19657_v52 }
 0x51c   : > { %17057 = vmatprep.mubr.msk.f32.mxu1 %vm6224_vm3, %v19652_v6 }
 0x51e   : > { %17162 = vmatmul.mubr.msk.f32.gmra.mrb[32].mxu0 %vm6224_vm3, %v19904_v24 }
 0x51f   : > { %17058 = vmatmul.mubr.msk.f32.gmra.mrb[30].mxu1 %vm6224_vm3, %v19826_v21  ;;  %17270 = vmatprep.mubr.msk.f32.mxu0 %vm6224_vm3, %v24322_v49 }
 0x520   : > { %17166 = vmatprep.mubr.msk.f32.mxu1 %vm6224_vm3, %v24321_v48 }
 0x522   : > { %17271 = vmatmul.mubr.msk.f32.vlgmr.msra.gmra.mrb[34].mxu0 %vm6224_vm3, %v19425_v59 }
 0x523   : > { %17167 = vmatmul.mubr.msk.f32.vlgmr.msra.gmra.mrb[32].mxu1 %vm6224_vm3, %v19419_v45  ;;  %17273 = vmatprep.mubr.msk.f32.mxu0 %vm6224_vm3, %v19439_v58 }
 0x524   : > { %17169 = vmatprep.mubr.msk.f32.mxu1 %vm6224_vm3, %v19432_v50  ;;  %17295 = vmatpush3.msk.msra.mxu0 %vm841_vm4, %v19734_v18  ;;  %v12142_v18 = vrot.slane %v19915_v8, 4 }
 0x525   : > { %17191 = vmatpush3.msk.msra.mxu1 %vm841_vm4, %v19741_v23  ;;  %17320 = vmatprep.subr.msk.mxu0 %vm841_vm4, %v19915_v8  ;;  %v10590_v23 = vrot.slane %v19922_v53, 4 }
 0x526   : > { %17216 = vmatprep.subr.msk.mxu1 %vm841_vm4, %v19922_v53  ;;  %17274 = vmatmul.mubr.msk.f32.gmra.mrb[36].mxu0 %vm6224_vm3, %v19458_v38 }
 0x527   : > { %17170 = vmatmul.mubr.msk.f32.gmra.mrb[34].mxu1 %vm6224_vm3, %v19446_v10  ;;  %17276 = vmatprep.mubr.msk.f32.mxu0 %vm6224_vm3, %v19478_v61 }
 0x528   : > { %17172 = vmatprep.mubr.msk.f32.mxu1 %vm6224_vm3, %v19473_v0 }
 0x52a   : > { %17277 = vmatmul.mubr.msk.f32.gmra.mrb[38].mxu0 %vm6224_vm3, %v19495_v17 }
 0x52b   : > { %17173 = vmatmul.mubr.msk.f32.gmra.mrb[36].mxu1 %vm6224_vm3, %v19492_v4  ;;  %17279 = vmatprep.mubr.msk.f32.mxu0 %vm6224_vm3, %v19512_v11 }
 0x52c   : > { %17175 = vmatprep.mubr.msk.f32.mxu1 %vm6224_vm3, %v19506_v41 }
 0x52e   : > { %17280 = vmatmul.mubr.msk.f32.gmra.mrb[40].mxu0 %vm6224_vm3, %v19868_v33 }
 0x52f   : > { %17176 = vmatmul.mubr.msk.f32.gmra.mrb[38].mxu1 %vm6224_vm3, %v19783_v44  ;;  %17282 = vmatprep.mubr.msk.f32.mxu0 %vm6224_vm3, %v24323_v39 }
 0x530   : > { %17178 = vmatprep.mubr.msk.f32.mxu1 %vm6224_vm3, %v19529_v14 }
 0x532   : > { %17283 = vmatmul.mubr.msk.f32.gmra.mrb[42].mxu0 %vm6224_vm3, %v19553_v19 }
 0x533   : > { %17179 = vmatmul.mubr.msk.f32.gmra.mrb[40].mxu1 %vm6224_vm3, %v19542_v30  ;;  %17285 = vmatprep.mubr.msk.f32.mxu0 %vm6224_vm3, %v19574_v28 }
 0x534   : > { %17181 = vmatprep.mubr.msk.f32.mxu1 %vm6224_vm3, %v19571_v35 }
 0x536   : > { %17286 = vmatmul.mubr.msk.f32.gmra.mrb[44].mxu0 %vm6224_vm3, %v19583_v12 }
 0x537   : > { %17182 = vmatmul.mubr.msk.f32.gmra.mrb[42].mxu1 %vm6224_vm3, %v19577_v15  ;;  %17288 = vmatprep.mubr.msk.f32.mxu0 %vm6224_vm3, %v19597_v31 }
 0x538   : > { %17184 = vmatprep.mubr.msk.f32.mxu1 %vm6224_vm3, %v19588_v55 }
 0x53a   : > { %17289 = vmatmul.mubr.msk.f32.gmra.mrb[46].mxu0 %vm6224_vm3, %v19639_v25 }
 0x53b   : > { %17185 = vmatmul.mubr.msk.f32.gmra.mrb[44].mxu1 %vm6224_vm3, %v19630_v32  ;;  %17291 = vmatprep.mubr.msk.f32.mxu0 %vm6224_vm3, %v19657_v52 }
 0x53c   : > { %17187 = vmatprep.mubr.msk.f32.mxu1 %vm6224_vm3, %v19652_v6 }
 0x53e   : > { %17292 = vmatmul.mubr.msk.f32.gmra.mrb[48].mxu0 %vm6224_vm3, %v19904_v24 }
 0x53f   : > { %17188 = vmatmul.mubr.msk.f32.gmra.mrb[46].mxu1 %vm6224_vm3, %v19826_v21  ;;  %17296 = vmatprep.mubr.msk.f32.mxu0 %vm6224_vm3, %v24321_v48 }
 0x540   : > { %17192 = vmatprep.mubr.msk.f32.mxu1 %vm6224_vm3, %v24319_v34 }
 0x542   : > { %17297 = vmatmul.mubr.msk.f32.vlgmr.msra.gmra.mrb[34].mxu0 %vm6224_vm3, %v19419_v45 }
 0x543   : > { %17193 = vmatmul.mubr.msk.f32.vlgmr.msra.gmra.mrb[32].mxu1 %vm6224_vm3, %v19340_v57  ;;  %17299 = vmatprep.mubr.msk.f32.mxu0 %vm6224_vm3, %v19432_v50 }
 0x544   : > { %17195 = vmatprep.mubr.msk.f32.mxu1 %vm6224_vm3, %v19189_v1  ;;  %17321 = vmatpush3.msk.msra.mxu0 %vm841_vm4, %v19915_v8 }
 0x545   : > { %17217 = vmatpush3.msk.msra.mxu1 %vm841_vm4, %v19922_v53  ;;  %17346 = vmatprep.subr.msk.mxu0 %vm841_vm4, %v12142_v18 }
 0x546   : > { %17242 = vmatprep.subr.msk.mxu1 %vm841_vm4, %v10590_v23  ;;  %17300 = vmatmul.mubr.msk.f32.gmra.mrb[36].mxu0 %vm6224_vm3, %v19446_v10 }
 0x547   : > { %17196 = vmatmul.mubr.msk.f32.gmra.mrb[34].mxu1 %vm6224_vm3, %v19367_v20  ;;  %17302 = vmatprep.mubr.msk.f32.mxu0 %vm6224_vm3, %v19473_v0 }
 0x548   : > { %17198 = vmatprep.mubr.msk.f32.mxu1 %vm6224_vm3, %v19089_v16 }
 0x54a   : > { %17303 = vmatmul.mubr.msk.f32.gmra.mrb[38].mxu0 %vm6224_vm3, %v19492_v4 }
 0x54b   : > { %17199 = vmatmul.mubr.msk.f32.gmra.mrb[36].mxu1 %vm6224_vm3, %v19328_v46  ;;  %17305 = vmatprep.mubr.msk.f32.mxu0 %vm6224_vm3, %v19506_v41 }
 0x54c   : > { %17201 = vmatprep.mubr.msk.f32.mxu1 %vm6224_vm3, %v19107_v5 }
 0x54e   : > { %17306 = vmatmul.mubr.msk.f32.gmra.mrb[40].mxu0 %vm6224_vm3, %v19783_v44 }
 0x54f   : > { %17202 = vmatmul.mubr.msk.f32.gmra.mrb[38].mxu1 %vm6224_vm3, %v19766_v40  ;;  %17308 = vmatprep.mubr.msk.f32.mxu0 %vm6224_vm3, %v19529_v14 }
 0x550   : > { %17204 = vmatprep.mubr.msk.f32.mxu1 %vm6224_vm3, %v19234_v42 }
 0x552   : > { %17309 = vmatmul.mubr.msk.f32.gmra.mrb[42].mxu0 %vm6224_vm3, %v19542_v30 }
 0x553   : > { %17205 = vmatmul.mubr.msk.f32.gmra.mrb[40].mxu1 %vm6224_vm3, %v19462_v26  ;;  %17311 = vmatprep.mubr.msk.f32.mxu0 %vm6224_vm3, %v19571_v35 }
 0x554   : > { %17207 = vmatprep.mubr.msk.f32.mxu1 %vm6224_vm3, %v19247_v22 }
 0x556   : > { %17312 = vmatmul.mubr.msk.f32.gmra.mrb[44].mxu0 %vm6224_vm3, %v19577_v15 }
 0x557   : > { %17208 = vmatmul.mubr.msk.f32.gmra.mrb[42].mxu1 %vm6224_vm3, %v19465_v47  ;;  %17314 = vmatprep.mubr.msk.f32.mxu0 %vm6224_vm3, %v19588_v55 }
 0x558   : > { %17210 = vmatprep.mubr.msk.f32.mxu1 %vm6224_vm3, %v19196_v13 }
 0x55a   : > { %17315 = vmatmul.mubr.msk.f32.gmra.mrb[46].mxu0 %vm6224_vm3, %v19630_v32 }
 0x55b   : > { %17211 = vmatmul.mubr.msk.f32.gmra.mrb[44].mxu1 %vm6224_vm3, %v19516_v62  ;;  %17317 = vmatprep.mubr.msk.f32.mxu0 %vm6224_vm3, %v19652_v6 }
 0x55c   : > { %17213 = vmatprep.mubr.msk.f32.mxu1 %vm6224_vm3, %v19199_v27 }
 0x55e   : > { %17318 = vmatmul.mubr.msk.f32.gmra.mrb[48].mxu0 %vm6224_vm3, %v19826_v21 }
 0x55f   : > { %17214 = vmatmul.mubr.msk.f32.gmra.mrb[46].mxu1 %vm6224_vm3, %v19809_v3  ;;  %17322 = vmatprep.mubr.msk.f32.mxu0 %vm6224_vm3, %v19419_v45 }
 0x560   : > { %17218 = vmatprep.mubr.msk.f32.mxu1 %vm6224_vm3, %v19340_v57 }
 0x562   : > { %17323 = vmatmul.mubr.msk.f32.vlgmr.msra.gmra.mrb[34].mxu0 %vm6224_vm3, %v19432_v50 }
 0x563   : > { %17219 = vmatmul.mubr.msk.f32.vlgmr.msra.gmra.mrb[32].mxu1 %vm6224_vm3, %v19189_v1  ;;  %17325 = vmatprep.mubr.msk.f32.mxu0 %vm6224_vm3, %v19446_v10  ;;  %v24325_v1 = vld [vmem:[#allocation3_spill] sm:$0xff] }
 0x564   : > { %17221 = vmatprep.mubr.msk.f32.mxu1 %vm6224_vm3, %v19367_v20  ;;  %17347 = vmatpush3.msk.msra.mxu0 %vm841_vm4, %v12142_v18 }
 0x565   : > { %17243 = vmatpush3.msk.msra.mxu1 %vm841_vm4, %v10590_v23 }
 0x566   : > { %17326 = vmatmul.mubr.msk.f32.gmra.mrb[36].mxu0 %vm6224_vm3, %v19473_v0 }
 0x567   : > { %17222 = vmatmul.mubr.msk.f32.gmra.mrb[34].mxu1 %vm6224_vm3, %v19089_v16  ;;  %17328 = vmatprep.mubr.msk.f32.mxu0 %vm6224_vm3, %v19492_v4  ;;  %v24324_v16 = vld [vmem:[#allocation6_spill] sm:$0xff] }
 0x568   : > { %17224 = vmatprep.mubr.msk.f32.mxu1 %vm6224_vm3, %v19328_v46 }
 0x56a   : > { %17329 = vmatmul.mubr.msk.f32.gmra.mrb[38].mxu0 %vm6224_vm3, %v19506_v41 }
 0x56b   : > { %17225 = vmatmul.mubr.msk.f32.gmra.mrb[36].mxu1 %vm6224_vm3, %v19107_v5  ;;  %17331 = vmatprep.mubr.msk.f32.mxu0 %vm6224_vm3, %v19783_v44 }
 0x56c   : > { %17227 = vmatprep.mubr.msk.f32.mxu1 %vm6224_vm3, %v19766_v40 }
 0x56e   : > { %17332 = vmatmul.mubr.msk.f32.gmra.mrb[40].mxu0 %vm6224_vm3, %v18938_v56 }
 0x56f   : > { %17228 = vmatmul.mubr.msk.f32.gmra.mrb[38].mxu1 %vm6224_vm3, %v24317_v36  ;;  %17334 = vmatprep.mubr.msk.f32.mxu0 %vm6224_vm3, %v19542_v30 }
 0x570   : > { %17230 = vmatprep.mubr.msk.f32.mxu1 %vm6224_vm3, %v19462_v26 }
 0x572   : > { %17335 = vmatmul.mubr.msk.f32.gmra.mrb[42].mxu0 %vm6224_vm3, %v19571_v35 }
 0x573   : > { %17231 = vmatmul.mubr.msk.f32.gmra.mrb[40].mxu1 %vm6224_vm3, %v19247_v22  ;;  %17337 = vmatprep.mubr.msk.f32.mxu0 %vm6224_vm3, %v19577_v15 }
 0x574   : > { %17233 = vmatprep.mubr.msk.f32.mxu1 %vm6224_vm3, %v19465_v47 }
 0x576   : > { %17338 = vmatmul.mubr.msk.f32.gmra.mrb[44].mxu0 %vm6224_vm3, %v19588_v55 }
 0x577   : > { %17234 = vmatmul.mubr.msk.f32.gmra.mrb[42].mxu1 %vm6224_vm3, %v19196_v13  ;;  %17340 = vmatprep.mubr.msk.f32.mxu0 %vm6224_vm3, %v19630_v32 }
 0x578   : > { %17236 = vmatprep.mubr.msk.f32.mxu1 %vm6224_vm3, %v19516_v62 }
 0x57a   : > { %17341 = vmatmul.mubr.msk.f32.gmra.mrb[46].mxu0 %vm6224_vm3, %v19652_v6 }
 0x57b   : > { %17237 = vmatmul.mubr.msk.f32.gmra.mrb[44].mxu1 %vm6224_vm3, %v19199_v27  ;;  %17343 = vmatprep.mubr.msk.f32.mxu0 %vm6224_vm3, %v19826_v21 }
 0x57c   : > { %17239 = vmatprep.mubr.msk.f32.mxu1 %vm6224_vm3, %v19809_v3 }
 0x57e   : > { %17344 = vmatmul.mubr.msk.f32.gmra.mrb[48].mxu0 %vm6224_vm3, %v18938_v56 }
 0x57f   : > { %17240 = vmatmul.mubr.msk.f32.gmra.mrb[46].mxu1 %vm6224_vm3, %v24317_v36  ;;  %17348 = vmatprep.mubr.msk.f32.mxu0 %vm6224_vm3, %v19425_v59 }
 0x580   : > { %17244 = vmatprep.mubr.msk.f32.mxu1 %vm6224_vm3, %v19419_v45 }
 0x582   : > { %17349 = vmatmul.mubr.msk.f32.vlgmr.msra.gmra.mrb[34].mxu0 %vm6224_vm3, %v19439_v58 }
 0x583   : > { %17245 = vmatmul.mubr.msk.f32.vlgmr.msra.gmra.mrb[32].mxu1 %vm6224_vm3, %v19432_v50  ;;  %17351 = vmatprep.mubr.msk.f32.mxu0 %vm6224_vm3, %v19458_v38 }
 0x584   : > { %17247 = vmatprep.mubr.msk.f32.mxu1 %vm6224_vm3, %v19446_v10 }
 0x586   : > { %17352 = vmatmul.mubr.msk.f32.gmra.mrb[36].mxu0 %vm6224_vm3, %v19478_v61 }
 0x587   : > { %17248 = vmatmul.mubr.msk.f32.gmra.mrb[34].mxu1 %vm6224_vm3, %v19473_v0  ;;  %17354 = vmatprep.mubr.msk.f32.mxu0 %vm6224_vm3, %v19495_v17 }
 0x588   : > { %17250 = vmatprep.mubr.msk.f32.mxu1 %vm6224_vm3, %v19492_v4 }
 0x58a   : > { %17355 = vmatmul.mubr.msk.f32.gmra.mrb[38].mxu0 %vm6224_vm3, %v19512_v11 }
 0x58b   : > { %17251 = vmatmul.mubr.msk.f32.gmra.mrb[36].mxu1 %vm6224_vm3, %v19506_v41  ;;  %17357 = vmatprep.mubr.msk.f32.mxu0 %vm6224_vm3, %v19868_v33 }
 0x58c   : > { %17253 = vmatprep.mubr.msk.f32.mxu1 %vm6224_vm3, %v19783_v44 }
 0x58e   : > { %17358 = vmatmul.mubr.msk.f32.gmra.mrb[40].mxu0 %vm6224_vm3, %v24324_v16 }
 0x58f   : > { %17254 = vmatmul.mubr.msk.f32.gmra.mrb[38].mxu1 %vm6224_vm3, %v18938_v56  ;;  %17360 = vmatprep.mubr.msk.f32.mxu0 %vm6224_vm3, %v19553_v19 }
 0x590   : > { %17256 = vmatprep.mubr.msk.f32.mxu1 %vm6224_vm3, %v19542_v30 }
 0x592   : > { %17361 = vmatmul.mubr.msk.f32.gmra.mrb[42].mxu0 %vm6224_vm3, %v19574_v28 }
 0x593   : > { %17257 = vmatmul.mubr.msk.f32.gmra.mrb[40].mxu1 %vm6224_vm3, %v19571_v35  ;;  %17363 = vmatprep.mubr.msk.f32.mxu0 %vm6224_vm3, %v19583_v12 }
 0x594   : > { %17259 = vmatprep.mubr.msk.f32.mxu1 %vm6224_vm3, %v19577_v15 }
 0x596   : > { %17364 = vmatmul.mubr.msk.f32.gmra.mrb[44].mxu0 %vm6224_vm3, %v19597_v31 }
 0x597   : > { %17260 = vmatmul.mubr.msk.f32.gmra.mrb[42].mxu1 %vm6224_vm3, %v19588_v55  ;;  %17366 = vmatprep.mubr.msk.f32.mxu0 %vm6224_vm3, %v19639_v25 }
 0x598   : > { %17262 = vmatprep.mubr.msk.f32.mxu1 %vm6224_vm3, %v19630_v32  ;;  %v24329_v32 = vld [vmem:[#allocation5_spill] sm:$0xff] }
 0x59a   : > { %17367 = vmatmul.mubr.msk.f32.gmra.mrb[46].mxu0 %vm6224_vm3, %v19657_v52 }
 0x59b   : > { %17263 = vmatmul.mubr.msk.f32.gmra.mrb[44].mxu1 %vm6224_vm3, %v19652_v6  ;;  %17369 = vmatprep.mubr.msk.f32.mxu0 %vm6224_vm3, %v19904_v24 }
 0x59c   : > { %17265 = vmatprep.mubr.msk.f32.mxu1 %vm6224_vm3, %v19826_v21 }
 0x59e   : > { %17370 = vmatmul.mubr.msk.f32.gmra.mrb[48].mxu0 %vm6224_vm3, %v24324_v16 }
 0x59f   : > { %17266 = vmatmul.mubr.msk.f32.gmra.mrb[46].mxu1 %vm6224_vm3, %v18938_v56 }
 0x5d5   : > { %v17142_v27 = vpop.f32.mrb[18].mxu0 }
 0x5d6   : > { %v17038_v28 = vpop.f32.mrb[16].mxu1  ;;  %v8627_v22 = vcombine.high %v17142_v27, %v17142_v27  ;;  %v8634_v46 = vrot.slane %v17142_v27, %v24325_v1  ;;  %v8467_v45 = vpop.f32.mrb[19].mxu0 }
 0x5d7   : > { %v6990_v5 = vcombine.high %v17038_v28, %v17038_v28  ;;  %v6997_v13 = vrot.slane %v17038_v28, %v24325_v1  ;;  %v6830_v42 = vpop.f32.mrb[17].mxu1  ;;  %v8578_v58 = vcombine.high %v8467_v45, %v8467_v45  ;;  %v8585_v29 = vrot.slane %v8467_v45, %v24325_v1 }
 0x5d8   : > { %v6941_v57 = vcombine.high %v6830_v42, %v6830_v42  ;;  %v6948_v20 = vrot.slane %v6830_v42, %v24325_v1  ;;  %v8641_v10 = vrot.slane %v8627_v22, %v24325_v1  ;;  %v8642_v38 = vcombine.high %v8634_v46, %v8634_v46 }
 0x5d9   : > { %v7004_v59 = vrot.slane %v6990_v5, %v24325_v1  ;;  %v7005_v50 = vcombine.high %v6997_v13, %v6997_v13  ;;  %v20193_v56 = vrot.slane %v6997_v13, %v24325_v1  ;;  %v20197_v26 = vrot.slane %v8634_v46, %v24325_v1  ;;  %v20208_v11 = vpop.f32.mrb[20].mxu0 }
 0x5da   : > { %v6955_v47 = vrot.slane %v6941_v57, %v24325_v1  ;;  %v17041_v0 = vpop.f32.mrb[18].mxu1  ;;  %v8643_v14 = vcombine.high %v8641_v10, %v8641_v10  ;;  %v20213_v15 = vrot.slane %v8641_v10, %v24325_v1  ;;  %v20216_v30 = vrot.slane %v8642_v38, %v24325_v1  ;;  %v20220_v35 = vpop.f32.mrb[21].mxu0 }
 0x5db   : > { %v7006_v61 = vcombine.high %v7004_v59, %v7004_v59  ;;  %v20201_v4 = vrot.slane %v7004_v59, %v24325_v1  ;;  %v20204_v17 = vrot.slane %v7005_v50, %v24325_v1  ;;  %v20210_v62 = vpop.f32.mrb[19].mxu1  ;;  %v8672_v19 = vcombine.high %v20197_v26, %v20197_v26 }
 0x5dc   : > { %24327 = vst [vmem:[#allocation13_spill] sm:$0xff] %v20213_v15  ;;  %v20232_v6 = vrot.slane %v8643_v14, %v24325_v1  ;;  %v8673_v52 = vcombine.high %v20213_v15, %v20213_v15  ;;  %v8674_v36 = vcombine.high %v20216_v30, %v20216_v30  ;;  %v6956_v7 = vcombine.high %v6948_v20, %v6948_v20 }
 0x5dd   : > { %24326 = vst [vmem:[#allocation12_spill] sm:$0xff] %v20201_v4  ;;  %v20223_v12 = vrot.slane %v7006_v61, %v24325_v1  ;;  %v20245_v51 = vrot.slane %v8672_v19, %v24329_v32  ;;  %v20249_v3 = vpop.f32.mrb[22].mxu0  ;;  %v6957_v9 = vcombine.high %v6955_v47, %v6955_v47  ;;  %v20266_v33 = vrot.slane %v6948_v20, %v24325_v1 }
 0x5de   : > { %24330 = vst [vmem:[#allocation11_spill] sm:$0xff] %v20232_v6  ;;  %v20240_v48 = vpop.f32.mrb[20].mxu1  ;;  %v20256_v54 = vrot.slane %v8674_v36, %v24329_v32  ;;  %v20261_v49 = vrot.slane %v8673_v52, %v24329_v32  ;;  %v20263_v60 = vpop.f32.mrb[23].mxu0  ;;  %v20269_v39 = vrot.slane %v6955_v47, %v24325_v1  ;;  %v20272_v2 = vrot.slane %v6956_v7, %v24325_v1 }
 0x5df   : > { %24328 = vst [vmem:[#allocation4_spill] sm:$0xff] %v20223_v12  ;;  %v20251_v63 = vpop.f32.mrb[21].mxu1  ;;  %v8592_v24 = vrot.slane %v8578_v58, %v24325_v1  ;;  %v7088_v8 = vcombine.high %v17041_v0, %v17041_v0  ;;  %v7095_v53 = vrot.slane %v17041_v0, %v24325_v1  ;;  %v20280_v23 = vrot.slane %v6957_v9, %v24325_v1 }
 0x5e0   : > { %24331 = vst [vmem:[#allocation7_spill] sm:$0xff] %v20261_v49  ;;  %v8593_v42 = vcombine.high %v8585_v29, %v8585_v29  ;;  %v20293_v46 = vrot.slane %v8585_v29, %v24325_v1  ;;  %v8725_v44 = vcombine.high %v20208_v11, %v20208_v11  ;;  %v8732_v43 = vrot.slane %v20208_v11, %v24325_v1 }
 0x5e1   : > { %v20288_v13 = vpop.f32.mrb[24].mxu0  ;;  %v8594_v22 = vcombine.high %v8592_v24, %v8592_v24  ;;  %v20296_v57 = vrot.slane %v8592_v24, %v24325_v1  ;;  %v7102_v59 = vrot.slane %v7088_v8, %v24325_v1  ;;  %v7103_v50 = vcombine.high %v7095_v53, %v7095_v53 }
 0x5e2   : > { %v20277_v18 = vpop.f32.mrb[22].mxu1  ;;  %v20298_v20 = vpop.f32.mrb[25].mxu0  ;;  %v20304_v58 = vrot.slane %v7095_v53, %v24325_v1  ;;  %v20307_v10 = vrot.slane %v8593_v42, %v24325_v1  ;;  %v8623_v47 = vcombine.high %v20293_v46, %v20293_v46  ;;  %v7039_v21 = vcombine.high %v20210_v62, %v20210_v62 }
 0x5e3   : > { %v20290_v27 = vpop.f32.mrb[23].mxu1  ;;  %v20310_v38 = vrot.slane %v8594_v22, %v24325_v1  ;;  %v8624_v0 = vcombine.high %v20296_v57, %v20296_v57  ;;  %v7104_v52 = vcombine.high %v7102_v59, %v7102_v59  ;;  %v20323_v36 = vrot.slane %v7102_v59, %v24325_v1 }
 0x5e4   : > { %24332 = vst [vmem:[#allocation9_spill] sm:$0xff] %v20304_v58  ;;  %v20336_v53 = vrot.slane %v8623_v47, %v24329_v32  ;;  %v20346_v40 = vrot.slane %v7103_v50, %v24325_v1  ;;  %v7046_v47 = vrot.slane %v20210_v62, %v24325_v1  ;;  %v8739_v11 = vrot.slane %v8725_v44, %v24325_v1 }
 0x5e5   : > { %24333 = vst [vmem:[#allocation8_spill] sm:$0xff] %v20323_v36  ;;  %v20325_v7 = vpop.f32.mrb[26].mxu0  ;;  %v20343_v59 = vrot.slane %v8624_v0, %v24329_v32  ;;  %v20349_v55 = vrot.slane %v7104_v52, %v24325_v1  ;;  %v8740_v34 = vcombine.high %v8732_v43, %v8732_v43  ;;  %v20375_v25 = vrot.slane %v8732_v43, %v24325_v1 }
 0x5e6   : > { %v20316_v61 = vpop.f32.mrb[24].mxu1  ;;  %v20338_v42 = vpop.f32.mrb[27].mxu0  ;;  %24334 = vst [vmem:[#allocation10_spill] sm:$0xff] %v20346_v40  ;;  %v8676_v50 = vcombine.high %v20220_v35, %v20220_v35  ;;  %v7053_v45 = vrot.slane %v7039_v21, %v24325_v1  ;;  %v7054_v28 = vcombine.high %v7046_v47, %v7046_v47  ;;  %v20383_v62 = vrot.slane %v7046_v47, %v24325_v1 }
 0x5e7   : > { %v20327_v9 = vpop.f32.mrb[25].mxu1  ;;  %24335 = vst [vmem:[#allocation14_spill] sm:$0xff] %v20349_v55  ;;  %24336 = vst [vmem:[#allocation6_spill] sm:$0xff] %v20375_v25  ;;  %v8683_v22 = vrot.slane %v20220_v35, %v24325_v1  ;;  %v8741_v19 = vcombine.high %v8739_v11, %v8739_v11  ;;  %v20388_v44 = vrot.slane %v8739_v11, %v24325_v1 }
 0x5e8   : > { %24337 = vst [vmem:[#allocation3_spill] sm:$0xff] %v20383_v62  ;;  %v20391_v43 = vrot.slane %v8740_v34, %v24325_v1  ;;  %v8770_v24 = vcombine.high %v20375_v25, %v20375_v25  ;;  %v7055_v47 = vcombine.high %v7053_v45, %v7053_v45  ;;  %v20400_v16 = vrot.slane %v7053_v45, %v24325_v1 }
 0x5e9   : > { %v20369_v31 = vpop.f32.mrb[28].mxu0  ;;  %24338 = vst [vmem:[#allocation5_spill] sm:$0xff] %v20388_v44  ;;  %v20403_v35 = vrot.slane %v7054_v28, %v24325_v1  ;;  %v20410_v34 = vrot.slane %v8741_v19, %v24325_v1  ;;  %v8771_v14 = vcombine.high %v20388_v44, %v20388_v44  ;;  %v8691_v45 = vcombine.high %v8683_v22, %v8683_v22 }
 0x5ea   : > { %v20359_v0 = vpop.f32.mrb[26].mxu1  ;;  %v20379_v52 = vpop.f32.mrb[29].mxu0  ;;  %24339 = vst [vmem:[#allocation15_spill] sm:$0xff] %v20391_v43  ;;  %24340 = vst [vmem:[#allocation16_spill] sm:$0xff] %v20400_v16  ;;  %v8772_v21 = vcombine.high %v20391_v43, %v20391_v43  ;;  %v20421_v28 = vrot.slane %v8770_v24, %v24329_v32  ;;  %v20426_v19 = vrot.slane %v7055_v47, %v24325_v1 }
 0x5eb   : > { %v20371_v41 = vpop.f32.mrb[27].mxu1  ;;  %24341 = vst [vmem:[#allocation17_spill] sm:$0xff] %v20403_v35  ;;  %24342 = vst [vmem:[#allocation18_spill] sm:$0xff] %v20410_v34  ;;  %v20438_v24 = vrot.slane %v8771_v14, %v24329_v32  ;;  %v20454_v14 = vrot.slane %v8683_v22, %v24325_v1  ;;  %v7193_v47 = vrot.slane %v20240_v48, %v24325_v1 }
 0x5ec   : > { %24343 = vst [vmem:[#allocation19_spill] sm:$0xff] %v20421_v28  ;;  %24344 = vst [vmem:[#allocation20_spill] sm:$0xff] %v20426_v19  ;;  %v20433_v58 = vrot.slane %v8772_v21, %v24329_v32  ;;  %v8690_v21 = vrot.slane %v8676_v50, %v24325_v1  ;;  %v8823_v50 = vcombine.high %v20249_v3, %v20249_v3 }
 0x5ed   : > { %v20405_v11 = vpop.f32.mrb[30].mxu0  ;;  %24346 = vst [vmem:[#allocation22_spill] sm:$0xff] %v20438_v24  ;;  %24347 = vst [vmem:[#allocation23_spill] sm:$0xff] %v20454_v14  ;;  %v7186_v24 = vcombine.high %v20240_v48, %v20240_v48  ;;  %v20470_v22 = vrot.slane %v8691_v45, %v24325_v1  ;;  %v8721_v43 = vcombine.high %v20454_v14, %v20454_v14 }
 0x5ee   : > { %v20395_v5 = vpop.f32.mrb[28].mxu1  ;;  %v20418_v29 = vpop.f32.mrb[31].mxu0  ;;  %24345 = vst [vmem:[#allocation21_spill] sm:$0xff] %v20433_v58  ;;  %v8692_v34 = vcombine.high %v8690_v21, %v8690_v21  ;;  %v20463_v40 = vrot.slane %v8690_v21, %v24325_v1  ;;  %v8830_v58 = vrot.slane %v20249_v3, %v24325_v1  ;;  %v7201_v16 = vcombine.high %v7193_v47, %v7193_v47 }
 0x5ef   : > { %v20407_v8 = vpop.f32.mrb[29].mxu1  ;;  %24349 = vst [vmem:[#allocation25_spill] sm:$0xff] %v20470_v22  ;;  %v7200_v25 = vrot.slane %v7186_v24, %v24325_v1  ;;  %v8723_v45 = vcombine.high %v20470_v22, %v20470_v22  ;;  %v20489_v48 = vrot.slane %v8721_v43, %v24329_v32  ;;  %v20499_v3 = vrot.slane %v7193_v47, %v24325_v1 }
 0x5f0   : > { %24348 = vst [vmem:[#allocation24_spill] sm:$0xff] %v20463_v40  ;;  %v20478_v21 = vrot.slane %v8692_v34, %v24325_v1  ;;  %v8722_v19 = vcombine.high %v20463_v40, %v20463_v40  ;;  %v20508_v43 = vrot.slane %v7201_v16, %v24325_v1  ;;  %v20517_v47 = vrot.slane %v8830_v58, %v24325_v1 }
 0x5f1   : > { %v20449_v36 = vpop.f32.mrb[32].mxu0  ;;  %24351 = vst [vmem:[#allocation27_spill] sm:$0xff] %v20489_v48  ;;  %v7202_v24 = vcombine.high %v7200_v25, %v7200_v25  ;;  %24353 = vst [vmem:[#allocation29_spill] sm:$0xff] %v20499_v3  ;;  %v20502_v40 = vrot.slane %v8723_v45, %v24329_v32  ;;  %v20505_v35 = vrot.slane %v7200_v25, %v24325_v1 }
 0x5f2   : > { %v20440_v28 = vpop.f32.mrb[30].mxu1  ;;  %v20460_v55 = vpop.f32.mrb[33].mxu0  ;;  %24350 = vst [vmem:[#allocation26_spill] sm:$0xff] %v20478_v21  ;;  %v20496_v14 = vrot.slane %v8722_v19, %v24329_v32  ;;  %24356 = vst [vmem:[#allocation32_spill] sm:$0xff] %v20508_v43  ;;  %v8837_v19 = vrot.slane %v8823_v50, %v24325_v1  ;;  %v7144_v25 = vrot.slane %v20251_v63, %v24325_v1 }
 0x5f3   : > { %v20451_v44 = vpop.f32.mrb[31].mxu1  ;;  %24354 = vst [vmem:[#allocation30_spill] sm:$0xff] %v20502_v40  ;;  %24355 = vst [vmem:[#allocation31_spill] sm:$0xff] %v20505_v35  ;;  %v20511_v34 = vrot.slane %v7202_v24, %v24325_v1  ;;  %v7137_v24 = vcombine.high %v20251_v63, %v20251_v63  ;;  %v8774_v40 = vcombine.high %v20263_v60, %v20263_v60 }
 0x5f4   : > { %24352 = vst [vmem:[#allocation28_spill] sm:$0xff] %v20496_v14  ;;  %v8838_v14 = vcombine.high %v8830_v58, %v8830_v58  ;;  %24358 = vst [vmem:[#allocation34_spill] sm:$0xff] %v20517_v47  ;;  %v8839_v21 = vcombine.high %v8837_v19, %v8837_v19  ;;  %v20528_v62 = vrot.slane %v8837_v19, %v24325_v1 }
 0x5f5   : > { %24357 = vst [vmem:[#allocation33_spill] sm:$0xff] %v20511_v34  ;;  %v8868_v58 = vcombine.high %v20517_v47, %v20517_v47  ;;  %v7151_v16 = vrot.slane %v7137_v24, %v24325_v1  ;;  %v7152_v24 = vcombine.high %v7144_v25, %v7144_v25  ;;  %v8788_v43 = vrot.slane %v8774_v40, %v24325_v1 }
 0x5f6   : > { %24359 = vst [vmem:[#allocation35_spill] sm:$0xff] %v20528_v62  ;;  %v20531_v50 = vrot.slane %v8838_v14, %v24325_v1  ;;  %v20543_v19 = vrot.slane %v8839_v21, %v24325_v1  ;;  %v8869_v14 = vcombine.high %v20528_v62, %v20528_v62 }
 0x5f7   : > { %v20552_v22 = vrot.slane %v8868_v58, %v24329_v32  ;;  %v7153_v34 = vcombine.high %v7151_v16, %v7151_v16  ;;  %v20567_v58 = vrot.slane %v7144_v25, %v24325_v1  ;;  %v20570_v45 = vrot.slane %v7151_v16, %v24325_v1 }
 0x5f8   : > { %24360 = vst [vmem:[#allocation36_spill] sm:$0xff] %v20531_v50  ;;  %24361 = vst [vmem:[#allocation37_spill] sm:$0xff] %v20543_v19  ;;  %v8870_v48 = vcombine.high %v20531_v50, %v20531_v50  ;;  %v20564_v3 = vrot.slane %v8869_v14, %v24329_v32  ;;  %v20573_v63 = vrot.slane %v7152_v24, %v24325_v1 }
 0x5f9   : > { %24362 = vst [vmem:[#allocation38_spill] sm:$0xff] %v20552_v22  ;;  %v20576_v21 = vrot.slane %v7153_v34, %v24325_v1  ;;  %v7284_v14 = vcombine.high %v20277_v18, %v20277_v18  ;;  %v7291_v25 = vrot.slane %v20277_v18, %v24325_v1  ;;  %v8790_v40 = vcombine.high %v8788_v43, %v8788_v43 }
 0x5fa   : > { %v20559_v35 = vrot.slane %v8870_v48, %v24329_v32  ;;  %24364 = vst [vmem:[#allocation40_spill] sm:$0xff] %v20564_v3  ;;  %v8781_v48 = vrot.slane %v20263_v60, %v24325_v1  ;;  %v20597_v19 = vrot.slane %v8788_v43, %v24325_v1  ;;  %v8921_v24 = vcombine.high %v20288_v13, %v20288_v13 }
 0x5fb   : > { %v7298_v18 = vrot.slane %v7284_v14, %v24325_v1  ;;  %v7299_v16 = vcombine.high %v7291_v25, %v7291_v25  ;;  %v20609_v60 = vrot.slane %v8790_v40, %v24325_v1  ;;  %v7242_v40 = vrot.slane %v20290_v27, %v24325_v1 }
 0x5fc   : > { %24363 = vst [vmem:[#allocation39_spill] sm:$0xff] %v20559_v35  ;;  %v8789_v3 = vcombine.high %v8781_v48, %v8781_v48  ;;  %v20594_v62 = vrot.slane %v8781_v48, %v24325_v1  ;;  %v20601_v35 = vrot.slane %v7291_v25, %v24325_v1  ;;  %v8820_v43 = vcombine.high %v20597_v19, %v20597_v19 }
 0x5fd   : > { %v7300_v22 = vcombine.high %v7298_v18, %v7298_v18  ;;  %v20620_v50 = vrot.slane %v7298_v18, %v24325_v1  ;;  %v20637_v18 = vrot.slane %v7299_v16, %v24325_v1  ;;  %v8935_v14 = vrot.slane %v8921_v24, %v24325_v1 }
 0x5fe   : > { %24365 = vst [vmem:[#allocation41_spill] sm:$0xff] %v20601_v35  ;;  %v20606_v34 = vrot.slane %v8789_v3, %v24325_v1  ;;  %v8819_v48 = vcombine.high %v20594_v62, %v20594_v62  ;;  %v20634_v25 = vrot.slane %v8820_v43, %v24329_v32  ;;  %v7250_v43 = vcombine.high %v7242_v40, %v7242_v40 }
 0x5ff   : > { %24366 = vst [vmem:[#allocation42_spill] sm:$0xff] %v20620_v50  ;;  %24367 = vst [vmem:[#allocation43_spill] sm:$0xff] %v20637_v18  ;;  %v20640_v3 = vrot.slane %v7300_v22, %v24325_v1  ;;  %v7235_v22 = vcombine.high %v20290_v27, %v20290_v27  ;;  %v8937_v12 = vcombine.high %v8935_v14, %v8935_v14 }
 0x600   : > { %v20629_v49 = vrot.slane %v8819_v48, %v24329_v32  ;;  %v8928_v48 = vrot.slane %v20288_v13, %v24325_v1  ;;  %v20661_v13 = vrot.slane %v8935_v14, %v24325_v1  ;;  %v20665_v50 = vrot.slane %v7242_v40, %v24325_v1 }
 0x601   : > { %24368 = vst [vmem:[#allocation44_spill] sm:$0xff] %v20640_v3  ;;  %v7249_v24 = vrot.slane %v7235_v22, %v24325_v1  ;;  %v8872_v16 = vcombine.high %v20298_v20, %v20298_v20  ;;  %v20673_v27 = vrot.slane %v8937_v12, %v24325_v1  ;;  %v8879_v22 = vrot.slane %v20298_v20, %v24325_v1 }
 0x602   : > { %v8936_v35 = vcombine.high %v8928_v48, %v8928_v48  ;;  %v20658_v47 = vrot.slane %v8928_v48, %v24325_v1  ;;  %24370 = vst [vmem:[#allocation46_spill] sm:$0xff] %v20661_v13  ;;  %24371 = vst [vmem:[#allocation47_spill] sm:$0xff] %v20665_v50  ;;  %v8967_v14 = vcombine.high %v20661_v13, %v20661_v13 }
 0x603   : > { %24373 = vst [vmem:[#allocation49_spill] sm:$0xff] %v20673_v27  ;;  %v7251_v18 = vcombine.high %v7249_v24, %v7249_v24  ;;  %v20684_v4 = vrot.slane %v7249_v24, %v24325_v1  ;;  %v20701_v24 = vrot.slane %v7250_v43, %v24325_v1  ;;  %v20723_v15 = vrot.slane %v8879_v22, %v24325_v1 }
 0x604   : > { %24369 = vst [vmem:[#allocation45_spill] sm:$0xff] %v20658_v47  ;;  %v20670_v3 = vrot.slane %v8936_v35, %v24325_v1  ;;  %v8966_v48 = vcombine.high %v20658_v47, %v20658_v47  ;;  %v20698_v40 = vrot.slane %v8967_v14, %v24329_v32  ;;  %v9019_v20 = vcombine.high %v20325_v7, %v20325_v7 }
 0x605   : > { %24374 = vst [vmem:[#allocation50_spill] sm:$0xff] %v20684_v4  ;;  %24377 = vst [vmem:[#allocation53_spill] sm:$0xff] %v20701_v24  ;;  %v20704_v13 = vrot.slane %v7251_v18, %v24325_v1  ;;  %v8886_v18 = vrot.slane %v8872_v16, %v24325_v1  ;;  %v9026_v16 = vrot.slane %v20325_v7, %v24325_v1 }
 0x606   : > { %24372 = vst [vmem:[#allocation48_spill] sm:$0xff] %v20670_v3  ;;  %v8968_v12 = vcombine.high %v20670_v3, %v20670_v3  ;;  %v20693_v6 = vrot.slane %v8966_v48, %v24329_v32  ;;  %24376 = vst [vmem:[#allocation52_spill] sm:$0xff] %v20698_v40  ;;  %v8887_v40 = vcombine.high %v8879_v22, %v8879_v22 }
 0x607   : > { %24378 = vst [vmem:[#allocation54_spill] sm:$0xff] %v20704_v13  ;;  %24380 = vst [vmem:[#allocation56_spill] sm:$0xff] %v20723_v15  ;;  %v7389_v48 = vrot.slane %v20316_v61, %v24325_v1  ;;  %v8888_v27 = vcombine.high %v8886_v18, %v8886_v18  ;;  %v20730_v14 = vrot.slane %v8886_v18, %v24325_v1 }
 0x608   : > { %24375 = vst [vmem:[#allocation51_spill] sm:$0xff] %v20693_v6  ;;  %v20707_v35 = vrot.slane %v8968_v12, %v24329_v32  ;;  %v7382_v12 = vcombine.high %v20316_v61, %v20316_v61  ;;  %v8917_v22 = vcombine.high %v20723_v15, %v20723_v15 }
 0x609   : > { %24381 = vst [vmem:[#allocation57_spill] sm:$0xff] %v20730_v14  ;;  %v7397_v6 = vcombine.high %v7389_v48, %v7389_v48  ;;  %v20743_v3 = vrot.slane %v8888_v27, %v24325_v1  ;;  %v8918_v18 = vcombine.high %v20730_v14, %v20730_v14  ;;  %v20757_v61 = vrot.slane %v7389_v48, %v24325_v1 }
 0x60a   : > { %24379 = vst [vmem:[#allocation55_spill] sm:$0xff] %v20707_v35  ;;  %v7396_v43 = vrot.slane %v7382_v12, %v24325_v1  ;;  %v20736_v35 = vrot.slane %v8887_v40, %v24325_v1  ;;  %v20754_v13 = vrot.slane %v8917_v22, %v24329_v32  ;;  %v7340_v27 = vrot.slane %v20327_v9, %v24325_v1 }
 0x60b   : > { %24383 = vst [vmem:[#allocation59_spill] sm:$0xff] %v20743_v3  ;;  %24385 = vst [vmem:[#allocation61_spill] sm:$0xff] %v20757_v61  ;;  %v20764_v12 = vrot.slane %v8918_v18, %v24329_v32  ;;  %v20773_v22 = vrot.slane %v7397_v6, %v24325_v1  ;;  %v9033_v18 = vrot.slane %v9019_v20, %v24325_v1 }
 0x60c   : > { %24382 = vst [vmem:[#allocation58_spill] sm:$0xff] %v20736_v35  ;;  %v7398_v7 = vcombine.high %v7396_v43, %v7396_v43  ;;  %v8919_v40 = vcombine.high %v20736_v35, %v20736_v35  ;;  %24384 = vst [vmem:[#allocation60_spill] sm:$0xff] %v20754_v13  ;;  %v20767_v14 = vrot.slane %v7396_v43, %v24325_v1 }
 0x60d   : > { %24386 = vst [vmem:[#allocation62_spill] sm:$0xff] %v20764_v12  ;;  %24389 = vst [vmem:[#allocation65_spill] sm:$0xff] %v20773_v22  ;;  %v9034_v12 = vcombine.high %v9026_v16, %v9026_v16  ;;  %v20784_v43 = vrot.slane %v9026_v16, %v24325_v1  ;;  %v9035_v61 = vcombine.high %v9033_v18, %v9033_v18 }
 0x60e   : > { %24387 = vst [vmem:[#allocation63_spill] sm:$0xff] %v20767_v14  ;;  %v20770_v47 = vrot.slane %v8919_v40, %v24329_v32  ;;  %v20776_v48 = vrot.slane %v7398_v7, %v24325_v1  ;;  %v7333_v7 = vcombine.high %v20327_v9, %v20327_v9  ;;  %v20795_v4 = vrot.slane %v9033_v18, %v24325_v1 }
 0x60f   : > { %24391 = vst [vmem:[#allocation67_spill] sm:$0xff] %v20784_v43  ;;  %v20798_v20 = vrot.slane %v9034_v12, %v24325_v1  ;;  %v9064_v16 = vcombine.high %v20784_v43, %v20784_v43  ;;  %v20806_v14 = vrot.slane %v7340_v27, %v24325_v1  ;;  %v20809_v9 = vrot.slane %v9035_v61, %v24325_v1 }
 0x610   : > { %24388 = vst [vmem:[#allocation64_spill] sm:$0xff] %v20770_v47  ;;  %24390 = vst [vmem:[#allocation66_spill] sm:$0xff] %v20776_v48  ;;  %v7347_v6 = vrot.slane %v7333_v7, %v24325_v1  ;;  %v7348_v48 = vcombine.high %v7340_v27, %v7340_v27  ;;  %v9065_v18 = vcombine.high %v20795_v4, %v20795_v4 }
 0x611   : > { %24392 = vst [vmem:[#allocation68_spill] sm:$0xff] %v20795_v4  ;;  %24393 = vst [vmem:[#allocation69_spill] sm:$0xff] %v20798_v20  ;;  %v9066_v12 = vcombine.high %v20798_v20, %v20798_v20  ;;  %v20818_v40 = vrot.slane %v9064_v16, %v24329_v32  ;;  %v9067_v61 = vcombine.high %v20809_v9, %v20809_v9 }
 0x612   : > { %24394 = vst [vmem:[#allocation70_spill] sm:$0xff] %v20806_v14  ;;  %24395 = vst [vmem:[#allocation71_spill] sm:$0xff] %v20809_v9  ;;  %v7349_v27 = vcombine.high %v7347_v6, %v7347_v6  ;;  %v20823_v43 = vrot.slane %v7347_v6, %v24325_v1  ;;  %v20833_v22 = vrot.slane %v9065_v18, %v24329_v32 }
 0x613   : > { %24396 = vst [vmem:[#allocation72_spill] sm:$0xff] %v20818_v40  ;;  %v20828_v3 = vrot.slane %v9066_v12, %v24329_v32  ;;  %v20836_v16 = vrot.slane %v7348_v48, %v24325_v1  ;;  %v20846_v12 = vrot.slane %v9067_v61, %v24329_v32  ;;  %v8970_v47 = vcombine.high %v20338_v42, %v20338_v42 }
 0x614   : > { %24397 = vst [vmem:[#allocation73_spill] sm:$0xff] %v20823_v43  ;;  %24399 = vst [vmem:[#allocation75_spill] sm:$0xff] %v20833_v22  ;;  %v20839_v7 = vrot.slane %v7349_v27, %v24325_v1  ;;  %v8977_v18 = vrot.slane %v20338_v42, %v24325_v1  ;;  %v24403_v48 = vcombine.high %v20307_v10, %v20307_v10 }
 0x615   : > { %24398 = vst [vmem:[#allocation74_spill] sm:$0xff] %v20828_v3  ;;  %24400 = vst [vmem:[#allocation76_spill] sm:$0xff] %v20836_v16  ;;  %v24404_v61 = vrot.slane %v20293_v46, %v24329_v32  ;;  %v24405_v42 = vrot.slane %v20307_v10, %v24329_v32  ;;  %v24407_v4 = vcombine.high %v20266_v33, %v20266_v33 }
 0x616   : > { %24401 = vst [vmem:[#allocation77_spill] sm:$0xff] %v20839_v7  ;;  %24402 = vst [vmem:[#allocation78_spill] sm:$0xff] %v20846_v12  ;;  %v9377_v27 = vrot.slane %v24403_v48, %v24329_v32  ;;  %v8984_v48 = vrot.slane %v8970_v47, %v24325_v1  ;;  %v8985_v9 = vcombine.high %v8977_v18, %v8977_v18 }
 0x617   : > { %v10002_v12 = vsel %vm948_vm6, %v20266_v33, %v24404_v61  ;;  %v10003_v22 = vsel %vm948_vm6, %v20272_v2, %v24405_v42  ;;  %v20872_v6 = vrot.slane %v8977_v18, %v24325_v1  ;;  %v10004_v46 = vsel %vm948_vm6, %v24407_v4, %v20336_v53 }
 0x618   : > { %v24408_v61 = vcombine.high %v20272_v2, %v20272_v2  ;;  %v14002_v3 = vcombine.low %v10002_v12, %v10003_v22  ;;  %v7480_v42 = vcombine.high %v20359_v0, %v20359_v0  ;;  %v7487_v47 = vrot.slane %v20359_v0, %v24325_v1 }
 0x619   : > { %24406 = vst [vmem:[#allocation79_spill] sm:$0xff] %v20872_v6  ;;  %v8986_v18 = vcombine.high %v8984_v48, %v8984_v48  ;;  %v20888_v40 = vrot.slane %v8984_v48, %v24325_v1  ;;  %v20891_v33 = vrot.slane %v8985_v9, %v24325_v1  ;;  %v9015_v4 = vcombine.high %v20872_v6, %v20872_v6 }
 0x61a   : > { %v10005_v10 = vsel %vm948_vm6, %v24408_v61, %v9377_v27  ;;  %v14010_v22 = vrot.slane %v14002_v3, %v18134_v37  ;;  %v7494_v12 = vrot.slane %v7480_v42, %v24325_v1  ;;  %v20925_v7 = vrot.slane %v7487_v47, %v24325_v1 }
 0x61b   : > { %24409 = vst [vmem:[#allocation80_spill] sm:$0xff] %v20888_v40  ;;  %24410 = vst [vmem:[#allocation81_spill] sm:$0xff] %v20891_v33  ;;  %v14003_v53 = vcombine.low %v10004_v46, %v10005_v10  ;;  %v20900_v0 = vrot.slane %v8986_v18, %v24325_v1  ;;  %v9016_v27 = vcombine.high %v20888_v40, %v20888_v40 }
 0x61c   : > { %v9017_v9 = vcombine.high %v20891_v33, %v20891_v33  ;;  %v20909_v61 = vrot.slane %v9015_v4, %v24329_v32  ;;  %v7495_v10 = vcombine.high %v7487_v47, %v7487_v47  ;;  %v7496_v20 = vcombine.high %v7494_v12, %v7494_v12  ;;  %24415 = vst [vmem:[#allocation86_spill] sm:$0xff] %v20925_v7 }
 0x61d   : > { %24411 = vst [vmem:[#allocation82_spill] sm:$0xff] %v20900_v0  ;;  %v14017_v46 = vrot.slane %v14003_v53, %v18134_v37  ;;  %v9018_v42 = vcombine.high %v20900_v0, %v20900_v0  ;;  %v20922_v48 = vrot.slane %v9016_v27, %v24329_v32  ;;  %v20928_v53 = vrot.slane %v7494_v12, %v24325_v1 }
 0x61e   : > { %24412 = vst [vmem:[#allocation83_spill] sm:$0xff] %v20909_v61  ;;  %v20917_v18 = vrot.slane %v9017_v9, %v24329_v32  ;;  %v20934_v9 = vrot.slane %v7495_v10, %v24325_v1  ;;  %v9117_v2 = vcombine.high %v20369_v31, %v20369_v31  ;;  %v9124_v27 = vrot.slane %v20369_v31, %v24325_v1 }
 0x61f   : > { %24414 = vst [vmem:[#allocation85_spill] sm:$0xff] %v20922_v48  ;;  %v14018_v4 = vcombine.low %v14010_v22, %v14017_v46  ;;  %24416 = vst [vmem:[#allocation87_spill] sm:$0xff] %v20928_v53  ;;  %v20931_v3 = vrot.slane %v9018_v42, %v24329_v32  ;;  %v20941_v22 = vrot.slane %v7496_v20, %v24325_v1 }
 0x620   : > { %24413 = vst [vmem:[#allocation84_spill] sm:$0xff] %v20917_v18  ;;  %24418 = vst [vmem:[#allocation89_spill] sm:$0xff] %v20934_v9  ;;  %v7431_v46 = vcombine.high %v20371_v41, %v20371_v41  ;;  %v9131_v42 = vrot.slane %v9117_v2, %v24325_v1  ;;  %v20953_v31 = vrot.slane %v9124_v27, %v24325_v1 }
 0x621   : > { %24417 = vst [vmem:[#allocation88_spill] sm:$0xff] %v20931_v3  ;;  %14578 = vxpose.xlu0.b32.start [1/16] (narrow) %v14018_v4, 8  ;;  %24419 = vst [vmem:[#allocation90_spill] sm:$0xff] %v20941_v22  ;;  %v9132_v3 = vcombine.high %v9124_v27, %v9124_v27  ;;  %v7438_v4 = vrot.slane %v20371_v41, %v24325_v1  ;;  %v9068_v47 = vcombine.high %v20379_v52, %v20379_v52 }
 0x622   : > { %24420 = vst [vmem:[#allocation91_spill] sm:$0xff] %v20953_v31  ;;  %v7445_v12 = vrot.slane %v7431_v46, %v24325_v1  ;;  %v9133_v53 = vcombine.high %v9131_v42, %v9131_v42  ;;  %v20963_v10 = vrot.slane %v9131_v42, %v24325_v1  ;;  %v9162_v27 = vcombine.high %v20953_v31, %v20953_v31 }
 0x623   : > { %v20966_v2 = vrot.slane %v9132_v3, %v24325_v1  ;;  %v7446_v22 = vcombine.high %v7438_v4, %v7438_v4  ;;  %v20973_v46 = vrot.slane %v7438_v4, %v24325_v1  ;;  %v9075_v7 = vrot.slane %v20379_v52, %v24325_v1 }
 0x624   : > { %24421 = vst [vmem:[#allocation92_spill] sm:$0xff] %v20963_v10  ;;  %v7447_v41 = vcombine.high %v7445_v12, %v7445_v12  ;;  %v20976_v9 = vrot.slane %v9133_v53, %v24325_v1  ;;  %v9163_v42 = vcombine.high %v20963_v10, %v20963_v10  ;;  %v20985_v48 = vrot.slane %v9162_v27, %v24329_v32 }
 0x625   : > { %24422 = vst [vmem:[#allocation93_spill] sm:$0xff] %v20966_v2  ;;  %24423 = vst [vmem:[#allocation94_spill] sm:$0xff] %v20973_v46  ;;  %v9164_v3 = vcombine.high %v20966_v2, %v20966_v2  ;;  %v20990_v4 = vrot.slane %v7445_v12, %v24325_v1  ;;  %v20993_v53 = vrot.slane %v7446_v22, %v24325_v1 }
 0x626   : > { %24424 = vst [vmem:[#allocation95_spill] sm:$0xff] %v20976_v9  ;;  %24425 = vst [vmem:[#allocation96_spill] sm:$0xff] %v20985_v48  ;;  %v9165_v31 = vcombine.high %v20976_v9, %v20976_v9  ;;  %v21003_v27 = vrot.slane %v9163_v42, %v24329_v32  ;;  %v21006_v20 = vrot.slane %v7447_v41, %v24325_v1 }
 0x627   : > { %24426 = vst [vmem:[#allocation97_spill] sm:$0xff] %v20990_v4  ;;  %24427 = vst [vmem:[#allocation98_spill] sm:$0xff] %v20993_v53  ;;  %v20998_v0 = vrot.slane %v9164_v3, %v24329_v32  ;;  %v9082_v42 = vrot.slane %v9068_v47, %v24325_v1  ;;  %v24432_v41 = vcombine.high %v20310_v38, %v20310_v38 }
 0x628   : > { %24429 = vst [vmem:[#allocation100_spill] sm:$0xff] %v21003_v27  ;;  %24430 = vst [vmem:[#allocation101_spill] sm:$0xff] %v21006_v20  ;;  %v21015_v3 = vrot.slane %v9165_v31, %v24329_v32  ;;  %v24433_v22 = vrot.slane %v20296_v57, %v24329_v32  ;;  %v24434_v10 = vrot.slane %v20310_v38, %v24329_v32 }
 0x629   : > { %24428 = vst [vmem:[#allocation99_spill] sm:$0xff] %v20998_v0  ;;  %v9393_v27 = vrot.slane %v24432_v41, %v24329_v32  ;;  %v24435_v47 = vcombine.high %v20269_v39, %v20269_v39  ;;  %v9084_v12 = vcombine.high %v9082_v42, %v9082_v42  ;;  %v21042_v9 = vrot.slane %v9075_v7, %v24325_v1 }
 0x62a   : > { %24431 = vst [vmem:[#allocation102_spill] sm:$0xff] %v21015_v3  ;;  %v10006_v31 = vsel %vm948_vm6, %v20269_v39, %v24433_v22  ;;  %v10007_v52 = vsel %vm948_vm6, %v20280_v23, %v24434_v10  ;;  %v9083_v3 = vcombine.high %v9075_v7, %v9075_v7  ;;  %v21045_v57 = vrot.slane %v9082_v42, %v24325_v1 }
 0x62b   : > { %v10008_v41 = vsel %vm948_vm6, %v24435_v47, %v20343_v59  ;;  %24436 = vst [vmem:[#allocation103_spill] sm:$0xff] %v21042_v9  ;;  %v24438_v38 = vcombine.high %v20280_v23, %v20280_v23  ;;  %v14019_v10 = vcombine.low %v10006_v31, %v10007_v52  ;;  %v7578_v0 = vcombine.high %v20395_v5, %v20395_v5 }
 0x62c   : > { %24437 = vst [vmem:[#allocation104_spill] sm:$0xff] %v21045_v57  ;;  %v7585_v39 = vrot.slane %v20395_v5, %v24325_v1  ;;  %v21056_v59 = vrot.slane %v9083_v3, %v24325_v1  ;;  %v21059_v7 = vrot.slane %v9084_v12, %v24325_v1  ;;  %v9113_v42 = vcombine.high %v21042_v9, %v21042_v9 }
 0x62d   : > { %v10009_v22 = vsel %vm948_vm6, %v24438_v38, %v9393_v27  ;;  %v9114_v23 = vcombine.high %v21045_v57, %v21045_v57  ;;  %v14027_v5 = vrot.slane %v14019_v10, %v18134_v37  ;;  %v24463_v53 = vrot.slane %v20606_v34, %v24329_v32 }
 0x62e   : > { %24439 = vst [vmem:[#allocation105_spill] sm:$0xff] %v21056_v59  ;;  %24440 = vst [vmem:[#allocation106_spill] sm:$0xff] %v21059_v7  ;;  %v14020_v52 = vcombine.low %v10008_v41, %v10009_v22  ;;  %v9115_v3 = vcombine.high %v21056_v59, %v21056_v59  ;;  %v9116_v12 = vcombine.high %v21059_v7, %v21059_v7 }
 0x62f   : > { %v21077_v38 = vrot.slane %v9113_v42, %v24329_v32  ;;  %v21082_v31 = vrot.slane %v9114_v23, %v24329_v32  ;;  %v7592_v22 = vrot.slane %v7578_v0, %v24325_v1  ;;  %v7593_v47 = vcombine.high %v7585_v39, %v7585_v39 }
 0x630   : > { %v14034_v41 = vrot.slane %v14020_v52, %v18134_v37  ;;  %v21087_v10 = vrot.slane %v9115_v3, %v24329_v32  ;;  %v21090_v48 = vrot.slane %v9116_v12, %v24329_v32  ;;  %v21093_v42 = vrot.slane %v7585_v39, %v24325_v1 }
 0x631   : > { %24441 = vst [vmem:[#allocation107_spill] sm:$0xff] %v21077_v38  ;;  %24442 = vst [vmem:[#allocation108_spill] sm:$0xff] %v21082_v31  ;;  %v7594_v20 = vcombine.high %v7592_v22, %v7592_v22  ;;  %v21096_v27 = vrot.slane %v7592_v22, %v24325_v1  ;;  %v9215_v23 = vcombine.high %v20405_v11, %v20405_v11 }
 0x632   : > { %24443 = vst [vmem:[#allocation109_spill] sm:$0xff] %v21087_v10  ;;  %24444 = vst [vmem:[#allocation110_spill] sm:$0xff] %v21090_v48  ;;  %v14035_v2 = vcombine.low %v14027_v5, %v14034_v41  ;;  %v21101_v0 = vrot.slane %v7593_v47, %v24325_v1  ;;  %v9222_v3 = vrot.slane %v20405_v11, %v24325_v1 }
 0x633   : > { %24445 = vst [vmem:[#allocation111_spill] sm:$0xff] %v21093_v42  ;;  %24446 = vst [vmem:[#allocation112_spill] sm:$0xff] %v21096_v27  ;;  %v7529_v39 = vcombine.high %v20407_v8, %v20407_v8  ;;  %v21110_v5 = vrot.slane %v7594_v20, %v24325_v1  ;;  %v9229_v41 = vrot.slane %v9215_v23, %v24325_v1 }
 0x634   : > { %24447 = vst [vmem:[#allocation113_spill] sm:$0xff] %v21101_v0  ;;  %14579 = vxpose.xlu0.b32.cont [2/16] (narrow) %v14035_v2, 8  ;;  %v7536_v47 = vrot.slane %v20407_v8, %v24325_v1  ;;  %v9230_v52 = vcombine.high %v9222_v3, %v9222_v3  ;;  %v21120_v11 = vrot.slane %v9222_v3, %v24325_v1 }
 0x635   : > { %24448 = vst [vmem:[#allocation114_spill] sm:$0xff] %v21110_v5  ;;  %v7543_v2 = vrot.slane %v7529_v39, %v24325_v1  ;;  %v9231_v48 = vcombine.high %v9229_v41, %v9229_v41  ;;  %v21126_v12 = vrot.slane %v9229_v41, %v24325_v1 }
 0x636   : > { %24449 = vst [vmem:[#allocation115_spill] sm:$0xff] %v21120_v11  ;;  %v7544_v23 = vcombine.high %v7536_v47, %v7536_v47  ;;  %v21129_v31 = vrot.slane %v9230_v52, %v24325_v1  ;;  %v9260_v8 = vcombine.high %v21120_v11, %v21120_v11  ;;  %v21143_v7 = vrot.slane %v7536_v47, %v24325_v1 }
 0x637   : > { %24450 = vst [vmem:[#allocation116_spill] sm:$0xff] %v21126_v12  ;;  %v7545_v22 = vcombine.high %v7543_v2, %v7543_v2  ;;  %v21136_v39 = vrot.slane %v9231_v48, %v24325_v1  ;;  %v9261_v20 = vcombine.high %v21126_v12, %v21126_v12  ;;  %v21153_v48 = vrot.slane %v7543_v2, %v24325_v1 }
 0x638   : > { %24451 = vst [vmem:[#allocation117_spill] sm:$0xff] %v21129_v31  ;;  %24453 = vst [vmem:[#allocation119_spill] sm:$0xff] %v21143_v7  ;;  %v9262_v52 = vcombine.high %v21129_v31, %v21129_v31  ;;  %v21150_v3 = vrot.slane %v9260_v8, %v24329_v32  ;;  %v21163_v10 = vrot.slane %v7544_v23, %v24325_v1 }
 0x639   : > { %24452 = vst [vmem:[#allocation118_spill] sm:$0xff] %v21136_v39  ;;  %24455 = vst [vmem:[#allocation121_spill] sm:$0xff] %v21153_v48  ;;  %v9263_v57 = vcombine.high %v21136_v39, %v21136_v39  ;;  %v21160_v47 = vrot.slane %v9261_v20, %v24329_v32  ;;  %v21169_v8 = vrot.slane %v7545_v22, %v24325_v1 }
 0x63a   : > { %24454 = vst [vmem:[#allocation120_spill] sm:$0xff] %v21150_v3  ;;  %24457 = vst [vmem:[#allocation123_spill] sm:$0xff] %v21163_v10  ;;  %v21166_v4 = vrot.slane %v9262_v52, %v24329_v32  ;;  %v9166_v23 = vcombine.high %v20418_v29, %v20418_v29  ;;  %v9173_v52 = vrot.slane %v20418_v29, %v24325_v1 }
 0x63b   : > { %24456 = vst [vmem:[#allocation122_spill] sm:$0xff] %v21160_v47  ;;  %24459 = vst [vmem:[#allocation125_spill] sm:$0xff] %v21169_v8  ;;  %v21176_v41 = vrot.slane %v9263_v57, %v24329_v32  ;;  %v24461_v2 = vcombine.high %v20606_v34, %v20606_v34  ;;  %v24462_v57 = vrot.slane %v20594_v62, %v24329_v32 }
 0x63c   : > { %24458 = vst [vmem:[#allocation124_spill] sm:$0xff] %v21166_v4  ;;  %v10035_v29 = vsel %vm948_vm6, %v20573_v63, %v24463_v53  ;;  %v9180_v59 = vrot.slane %v9166_v23, %v24325_v1  ;;  %v9181_v22 = vcombine.high %v9173_v52, %v9173_v52  ;;  %v21202_v46 = vrot.slane %v9173_v52, %v24325_v1 }
 0x63d   : > { %24460 = vst [vmem:[#allocation126_spill] sm:$0xff] %v21176_v41  ;;  %v9505_v38 = vrot.slane %v24461_v2, %v24329_v32  ;;  %v10034_v20 = vsel %vm948_vm6, %v20567_v58, %v24462_v57  ;;  %v24465_v2 = vcombine.high %v20567_v58, %v20567_v58  ;;  %v24466_v57 = vcombine.high %v20573_v63, %v20573_v63 }
 0x63e   : > { %24464 = vst [vmem:[#allocation127_spill] sm:$0xff] %v21202_v46  ;;  %v14274_v9 = vcombine.low %v10034_v20, %v10035_v29  ;;  %v7676_v53 = vcombine.high %v20440_v28, %v20440_v28  ;;  %v7683_v23 = vrot.slane %v20440_v28, %v24325_v1  ;;  %v9182_v52 = vcombine.high %v9180_v59, %v9180_v59 }
 0x63f   : > { %v10036_v62 = vsel %vm948_vm6, %v24465_v2, %v20629_v49  ;;  %v10037_v34 = vsel %vm948_vm6, %v24466_v57, %v9505_v38  ;;  %v21218_v41 = vrot.slane %v9180_v59, %v24325_v1  ;;  %v21221_v58 = vrot.slane %v9181_v22, %v24325_v1 }
 0x640   : > { %v9211_v49 = vcombine.high %v21202_v46, %v21202_v46  ;;  %v14275_v38 = vcombine.low %v10036_v62, %v10037_v34  ;;  %v14282_v20 = vrot.slane %v14274_v9, %v18134_v37  ;;  %v7690_v29 = vrot.slane %v7676_v53, %v24325_v1 }
 0x641   : > { %24467 = vst [vmem:[#allocation128_spill] sm:$0xff] %v21218_v41  ;;  %24468 = vst [vmem:[#allocation129_spill] sm:$0xff] %v21221_v58  ;;  %v21230_v28 = vrot.slane %v9182_v52, %v24325_v1  ;;  %v9212_v59 = vcombine.high %v21218_v41, %v21218_v41  ;;  %v9213_v22 = vcombine.high %v21221_v58, %v21221_v58 }
 0x642   : > { %v21239_v57 = vrot.slane %v9211_v49, %v24329_v32  ;;  %v14289_v62 = vrot.slane %v14275_v38, %v18134_v37  ;;  %v7691_v34 = vcombine.high %v7683_v23, %v7683_v23  ;;  %v7692_v47 = vcombine.high %v7690_v29, %v7690_v29 }
 0x643   : > { %24469 = vst [vmem:[#allocation130_spill] sm:$0xff] %v21230_v28  ;;  %v9214_v53 = vcombine.high %v21230_v28, %v21230_v28  ;;  %v21247_v52 = vrot.slane %v9213_v22, %v24329_v32  ;;  %v21252_v2 = vrot.slane %v9212_v59, %v24329_v32  ;;  %v21255_v5 = vrot.slane %v7683_v23, %v24325_v1 }
 0x644   : > { %24470 = vst [vmem:[#allocation131_spill] sm:$0xff] %v21239_v57  ;;  %v14290_v49 = vcombine.low %v14282_v20, %v14289_v62  ;;  %v21258_v38 = vrot.slane %v7690_v29, %v24325_v1  ;;  %v21264_v22 = vrot.slane %v7691_v34, %v24325_v1  ;;  %v9313_v63 = vcombine.high %v20449_v36, %v20449_v36 }
 0x645   : > { %24471 = vst [vmem:[#allocation132_spill] sm:$0xff] %v21247_v52  ;;  %24472 = vst [vmem:[#allocation133_spill] sm:$0xff] %v21252_v2  ;;  %v21261_v9 = vrot.slane %v9214_v53, %v24329_v32  ;;  %v9320_v59 = vrot.slane %v20449_v36, %v24325_v1  ;;  %v21271_v20 = vrot.slane %v7692_v47, %v24325_v1 }
 0x646   : > { %24473 = vst [vmem:[#allocation134_spill] sm:$0xff] %v21255_v5  ;;  %24474 = vst [vmem:[#allocation135_spill] sm:$0xff] %v21258_v38  ;;  %14610 = vxpose.xlu1.b32.start [1/16] (narrow) %v14290_v49, 8  ;;  %v7627_v62 = vcombine.high %v20451_v44, %v20451_v44  ;;  %v9327_v36 = vrot.slane %v9313_v63, %v24325_v1  ;;  %v7634_v38 = vrot.slane %v20451_v44, %v24325_v1 }
 0x647   : > { %24475 = vst [vmem:[#allocation136_spill] sm:$0xff] %v21261_v9  ;;  %24476 = vst [vmem:[#allocation137_spill] sm:$0xff] %v21264_v22  ;;  %v9328_v49 = vcombine.high %v9320_v59, %v9320_v59  ;;  %v21285_v47 = vrot.slane %v9320_v59, %v24325_v1  ;;  %v9264_v53 = vcombine.high %v20460_v55, %v20460_v55 }
 0x648   : > { %24477 = vst [vmem:[#allocation138_spill] sm:$0xff] %v21271_v20  ;;  %v7641_v5 = vrot.slane %v7627_v62, %v24325_v1  ;;  %v9329_v22 = vcombine.high %v9327_v36, %v9327_v36  ;;  %v21301_v59 = vrot.slane %v9327_v36, %v24325_v1  ;;  %v7642_v20 = vcombine.high %v7634_v38, %v7634_v38 }
 0x649   : > { %24478 = vst [vmem:[#allocation139_spill] sm:$0xff] %v21285_v47  ;;  %v21304_v27 = vrot.slane %v9328_v49, %v24325_v1  ;;  %v9358_v29 = vcombine.high %v21285_v47, %v21285_v47  ;;  %v21311_v12 = vrot.slane %v7634_v38, %v24325_v1 }
 0x64a   : > { %24479 = vst [vmem:[#allocation140_spill] sm:$0xff] %v21301_v59  ;;  %v7643_v62 = vcombine.high %v7641_v5, %v7641_v5  ;;  %v21316_v3 = vrot.slane %v9329_v22, %v24325_v1  ;;  %v9359_v36 = vcombine.high %v21301_v59, %v21301_v59  ;;  %v21334_v31 = vrot.slane %v7641_v5, %v24325_v1 }
 0x64b   : > { %24480 = vst [vmem:[#allocation141_spill] sm:$0xff] %v21304_v27  ;;  %24481 = vst [vmem:[#allocation142_spill] sm:$0xff] %v21311_v12  ;;  %v9360_v49 = vcombine.high %v21304_v27, %v21304_v27  ;;  %v21329_v38 = vrot.slane %v9358_v29, %v24329_v32  ;;  %v21337_v42 = vrot.slane %v7642_v20, %v24325_v1 }
 0x64c   : > { %24482 = vst [vmem:[#allocation143_spill] sm:$0xff] %v21316_v3  ;;  %24484 = vst [vmem:[#allocation145_spill] sm:$0xff] %v21334_v31  ;;  %v9361_v0 = vcombine.high %v21316_v3, %v21316_v3  ;;  %v21352_v5 = vrot.slane %v7643_v62, %v24325_v1  ;;  %v9278_v62 = vrot.slane %v9264_v53, %v24325_v1 }
 0x64d   : > { %24483 = vst [vmem:[#allocation144_spill] sm:$0xff] %v21329_v38  ;;  %24485 = vst [vmem:[#allocation146_spill] sm:$0xff] %v21337_v42  ;;  %v21344_v27 = vrot.slane %v9360_v49, %v24329_v32  ;;  %v21349_v38 = vrot.slane %v9359_v36, %v24329_v32  ;;  %v9271_v36 = vrot.slane %v20460_v55, %v24325_v1 }
 0x64e   : > { %24488 = vst [vmem:[#allocation149_spill] sm:$0xff] %v21352_v5  ;;  %v24490_v29 = vcombine.high %v20609_v60, %v20609_v60  ;;  %v24492_v53 = vrot.slane %v20609_v60, %v24329_v32  ;;  %v9280_v5 = vcombine.high %v9278_v62, %v9278_v62  ;;  %v24496_v60 = vcombine.high %v20576_v21, %v20576_v21 }
 0x64f   : > { %24486 = vst [vmem:[#allocation147_spill] sm:$0xff] %v21344_v27  ;;  %24487 = vst [vmem:[#allocation148_spill] sm:$0xff] %v21349_v38  ;;  %v21363_v27 = vrot.slane %v9361_v0, %v24329_v32  ;;  %v24491_v0 = vrot.slane %v20597_v19, %v24329_v32  ;;  %v9279_v59 = vcombine.high %v9271_v36, %v9271_v36 }
 0x650   : > { %v9521_v20 = vrot.slane %v24490_v29, %v24329_v32  ;;  %v24493_v29 = vcombine.high %v20570_v45, %v20570_v45  ;;  %v21396_v19 = vrot.slane %v9271_v36, %v24325_v1 }
 0x651   : > { %24489 = vst [vmem:[#allocation150_spill] sm:$0xff] %v21363_v27  ;;  %v10038_v55 = vsel %vm948_vm6, %v20570_v45, %v24491_v0  ;;  %v10039_v27 = vsel %vm948_vm6, %v20576_v21, %v24492_v53  ;;  %v21399_v0 = vrot.slane %v9278_v62, %v24325_v1  ;;  %v21412_v36 = vrot.slane %v9279_v59, %v24325_v1 }
 0x652   : > { %v10040_v3 = vsel %vm948_vm6, %v24493_v29, %v20634_v25  ;;  %24494 = vst [vmem:[#allocation151_spill] sm:$0xff] %v21396_v19  ;;  %v10041_v53 = vsel %vm948_vm6, %v24496_v60, %v9521_v20  ;;  %v14291_v42 = vcombine.low %v10038_v55, %v10039_v27  ;;  %v21415_v62 = vrot.slane %v9280_v5, %v24325_v1 }
 0x653   : > { %24495 = vst [vmem:[#allocation152_spill] sm:$0xff] %v21399_v0  ;;  %24497 = vst [vmem:[#allocation153_spill] sm:$0xff] %v21412_v36  ;;  %v9309_v21 = vcombine.high %v21396_v19, %v21396_v19  ;;  %v9310_v27 = vcombine.high %v21399_v0, %v21399_v0  ;;  %v14292_v60 = vcombine.low %v10040_v3, %v10041_v53 }
 0x654   : > { %24498 = vst [vmem:[#allocation154_spill] sm:$0xff] %v21415_v62  ;;  %v14299_v5 = vrot.slane %v14291_v42, %v18134_v37  ;;  %v9311_v9 = vcombine.high %v21412_v36, %v21412_v36  ;;  %v9312_v2 = vcombine.high %v21415_v62, %v21415_v62 }
 0x655   : > { %v21287_v39 = vpop.f32.mrb[34].mxu0  ;;  %v21439_v28 = vrot.slane %v9309_v21, %v24329_v32  ;;  %v21444_v3 = vrot.slane %v9310_v27, %v24329_v32  ;;  %v14306_v42 = vrot.slane %v14292_v60, %v18134_v37 }
 0x656   : > { %v21279_v34 = vpop.f32.mrb[32].mxu1  ;;  %v21298_v63 = vpop.f32.mrb[35].mxu0  ;;  %v21451_v0 = vrot.slane %v9311_v9, %v24329_v32  ;;  %v21454_v8 = vrot.slane %v9312_v2, %v24329_v32  ;;  %v12371_v9 = vcombine.high %v21287_v39, %v21287_v39 }
 0x657   : > { %v21289_v23 = vpop.f32.mrb[33].mxu1  ;;  %v10819_v45 = vcombine.high %v21279_v34, %v21279_v34  ;;  %v10826_v25 = vrot.slane %v21279_v34, %v24325_v1  ;;  %24499 = vst [vmem:[#allocation155_spill] sm:$0xff] %v21439_v28  ;;  %24500 = vst [vmem:[#allocation156_spill] sm:$0xff] %v21444_v3  ;;  %v14307_v3 = vcombine.low %v14299_v5, %v14306_v42 }
 0x658   : > { %24501 = vst [vmem:[#allocation157_spill] sm:$0xff] %v21451_v0  ;;  %24502 = vst [vmem:[#allocation158_spill] sm:$0xff] %v21454_v8  ;;  %v12378_v8 = vrot.slane %v21287_v39, %v24325_v1  ;;  %v10770_v5 = vcombine.high %v21289_v23, %v21289_v23  ;;  %v12385_v0 = vrot.slane %v12371_v9, %v24325_v1 }
 0x659   : > { %v21324_v44 = vpop.f32.mrb[36].mxu0  ;;  %v10833_v53 = vrot.slane %v10819_v45, %v24325_v1  ;;  %v10834_v21 = vcombine.high %v10826_v25, %v10826_v25  ;;  %v21457_v28 = vrot.slane %v10826_v25, %v24325_v1  ;;  %14611 = vxpose.xlu1.b32.cont [2/16] (narrow) %v14307_v3, 8  ;;  %v12329_v16 = vrot.slane %v21298_v63, %v24325_v1 }
 0x65a   : > { %v21313_v4 = vpop.f32.mrb[34].mxu1  ;;  %v21339_v11 = vpop.f32.mrb[37].mxu0  ;;  %v12386_v25 = vcombine.high %v12378_v8, %v12378_v8  ;;  %v21492_v19 = vrot.slane %v12378_v8, %v24325_v1  ;;  %v10784_v3 = vrot.slane %v10770_v5, %v24325_v1  ;;  %v12476_v33 = vrot.slane %v21324_v44, %v24325_v1 }
 0x65b   : > { %v21326_v47 = vpop.f32.mrb[35].mxu1  ;;  %24503 = vst [vmem:[#allocation159_spill] sm:$0xff] %v21457_v28  ;;  %v10835_v60 = vcombine.high %v10833_v53, %v10833_v53  ;;  %v21464_v45 = vrot.slane %v10833_v53, %v24325_v1  ;;  %v21471_v2 = vrot.slane %v10834_v21, %v24325_v1  ;;  %v10777_v21 = vrot.slane %v21289_v23, %v24325_v1 }
 0x65c   : > { %24507 = vst [vmem:[#allocation163_spill] sm:$0xff] %v21492_v19  ;;  %v12387_v53 = vcombine.high %v12385_v0, %v12385_v0  ;;  %v21502_v23 = vrot.slane %v12385_v0, %v24325_v1  ;;  %v21507_v39 = vrot.slane %v12386_v25, %v24325_v1  ;;  %v12416_v8 = vcombine.high %v21492_v19, %v21492_v19 }
 0x65d   : > { %v21372_v38 = vpop.f32.mrb[38].mxu0  ;;  %24504 = vst [vmem:[#allocation160_spill] sm:$0xff] %v21464_v45  ;;  %24505 = vst [vmem:[#allocation161_spill] sm:$0xff] %v21471_v2  ;;  %v21480_v42 = vrot.slane %v10835_v60, %v24325_v1  ;;  %v10785_v41 = vcombine.high %v10777_v21, %v10777_v21  ;;  %v10786_v57 = vcombine.high %v10784_v3, %v10784_v3 }
 0x65e   : > { %v21360_v49 = vpop.f32.mrb[36].mxu1  ;;  %v21393_v31 = vpop.f32.mrb[39].mxu0  ;;  %24508 = vst [vmem:[#allocation164_spill] sm:$0xff] %v21502_v23  ;;  %24509 = vst [vmem:[#allocation165_spill] sm:$0xff] %v21507_v39  ;;  %v21514_v10 = vrot.slane %v12387_v53, %v24325_v1  ;;  %v12417_v0 = vcombine.high %v21502_v23, %v21502_v23  ;;  %v21521_v58 = vrot.slane %v10777_v21, %v24325_v1 }
 0x65f   : > { %v21374_v22 = vpop.f32.mrb[37].mxu1  ;;  %24506 = vst [vmem:[#allocation162_spill] sm:$0xff] %v21480_v42  ;;  %v12418_v7 = vcombine.high %v21507_v39, %v21507_v39  ;;  %v21530_v53 = vrot.slane %v12416_v8, %v24329_v32  ;;  %v21533_v46 = vrot.slane %v10784_v3, %v24325_v1  ;;  %v21547_v5 = vrot.slane %v10785_v41, %v24325_v1 }
 0x660   : > { %24510 = vst [vmem:[#allocation166_spill] sm:$0xff] %v21514_v10  ;;  %v21544_v18 = vrot.slane %v12417_v0, %v24329_v32  ;;  %v21555_v61 = vrot.slane %v10786_v57, %v24325_v1  ;;  %v12322_v41 = vcombine.high %v21298_v63, %v21298_v63  ;;  %v10924_v40 = vrot.slane %v21313_v4, %v24325_v1 }
 0x661   : > { %v21421_v20 = vpop.f32.mrb[40].mxu0  ;;  %24511 = vst [vmem:[#allocation167_spill] sm:$0xff] %v21530_v53  ;;  %v21552_v3 = vrot.slane %v12418_v7, %v24329_v32  ;;  %v10917_v7 = vcombine.high %v21313_v4, %v21313_v4  ;;  %v12469_v0 = vcombine.high %v21324_v44, %v21324_v44  ;;  %v12337_v13 = vcombine.high %v12329_v16, %v12329_v16 }
 0x662   : > { %v21409_v29 = vpop.f32.mrb[38].mxu1  ;;  %v21430_v12 = vpop.f32.mrb[41].mxu0  ;;  %24512 = vst [vmem:[#allocation168_spill] sm:$0xff] %v21544_v18  ;;  %v12336_v6 = vrot.slane %v12322_v41, %v24325_v1  ;;  %v21585_v24 = vrot.slane %v12329_v16, %v24325_v1  ;;  %v10932_v4 = vcombine.high %v10924_v40, %v10924_v40  ;;  %v21591_v50 = vrot.slane %v10924_v40, %v24325_v1 }
 0x663   : > { %v21423_v55 = vpop.f32.mrb[39].mxu1  ;;  %24513 = vst [vmem:[#allocation169_spill] sm:$0xff] %v21552_v3  ;;  %v10931_v21 = vrot.slane %v10917_v7, %v24325_v1  ;;  %v12483_v44 = vrot.slane %v12469_v0, %v24325_v1  ;;  %v12484_v15 = vcombine.high %v12476_v33, %v12476_v33  ;;  %v21598_v41 = vrot.slane %v12337_v13, %v24325_v1 }
 0x664   : > { %24514 = vst [vmem:[#allocation170_spill] sm:$0xff] %v21591_v50  ;;  %v12338_v18 = vcombine.high %v12336_v6, %v12336_v6  ;;  %v21595_v42 = vrot.slane %v12336_v6, %v24325_v1  ;;  %v12367_v16 = vcombine.high %v21585_v24, %v21585_v24  ;;  %v21608_v0 = vrot.slane %v10932_v4, %v24325_v1 }
 0x665   : > { %v21459_v59 = vpop.f32.mrb[42].mxu0  ;;  %v10933_v45 = vcombine.high %v10931_v21, %v10931_v21  ;;  %v21605_v40 = vrot.slane %v10931_v21, %v24325_v1  ;;  %v12369_v6 = vcombine.high %v21598_v41, %v21598_v41  ;;  %v12485_v50 = vcombine.high %v12483_v44, %v12483_v44 }
 0x666   : > { %v21448_v34 = vpop.f32.mrb[40].mxu1  ;;  %v21468_v62 = vpop.f32.mrb[43].mxu0  ;;  %24516 = vst [vmem:[#allocation172_spill] sm:$0xff] %v21608_v0  ;;  %v21611_v23 = vrot.slane %v12338_v18, %v24325_v1  ;;  %v12368_v13 = vcombine.high %v21595_v42, %v21595_v42  ;;  %v21620_v7 = vrot.slane %v12367_v16, %v24329_v32  ;;  %v21646_v3 = vrot.slane %v12476_v33, %v24325_v1 }
 0x667   : > { %v21461_v27 = vpop.f32.mrb[41].mxu1  ;;  %24515 = vst [vmem:[#allocation171_spill] sm:$0xff] %v21605_v40  ;;  %v21625_v4 = vrot.slane %v10933_v45, %v24325_v1  ;;  %v21632_v53 = vrot.slane %v12369_v6, %v24329_v32  ;;  %v21649_v6 = vrot.slane %v12483_v44, %v24325_v1  ;;  %v21652_v10 = vrot.slane %v12484_v15, %v24325_v1 }
 0x668   : > { %v21637_v16 = vrot.slane %v12368_v13, %v24329_v32  ;;  %24518 = vst [vmem:[#allocation174_spill] sm:$0xff] %v21646_v3  ;;  %v10868_v13 = vcombine.high %v21326_v47, %v21326_v47  ;;  %v21657_v21 = vrot.slane %v12485_v50, %v24325_v1  ;;  %v10875_v45 = vrot.slane %v21326_v47, %v24325_v1 }
 0x669   : > { %v21495_v60 = vpop.f32.mrb[44].mxu0  ;;  %24517 = vst [vmem:[#allocation173_spill] sm:$0xff] %v21625_v4  ;;  %24519 = vst [vmem:[#allocation175_spill] sm:$0xff] %v21649_v6  ;;  %v12420_v18 = vcombine.high %v21339_v11, %v21339_v11  ;;  %v12427_v33 = vrot.slane %v21339_v11, %v24325_v1  ;;  %v12514_v44 = vcombine.high %v21646_v3, %v21646_v3 }
 0x66a   : > { %v21487_v36 = vpop.f32.mrb[42].mxu1  ;;  %v21504_v52 = vpop.f32.mrb[45].mxu0  ;;  %24520 = vst [vmem:[#allocation176_spill] sm:$0xff] %v21652_v10  ;;  %24521 = vst [vmem:[#allocation177_spill] sm:$0xff] %v21657_v21  ;;  %v12515_v15 = vcombine.high %v21649_v6, %v21649_v6  ;;  %v12516_v4 = vcombine.high %v21652_v10, %v21652_v10  ;;  %v10882_v47 = vrot.slane %v10868_v13, %v24325_v1 }
 0x66b   : > { %v21497_v48 = vpop.f32.mrb[43].mxu1  ;;  %v21682_v2 = vrot.slane %v12514_v44, %v24329_v32  ;;  %v10883_v3 = vcombine.high %v10875_v45, %v10875_v45  ;;  %v21692_v40 = vrot.slane %v10875_v45, %v24325_v1  ;;  %v12434_v11 = vrot.slane %v12420_v18, %v24325_v1 }
 0x66c   : > { %v21685_v39 = vrot.slane %v12516_v4, %v24329_v32  ;;  %v21688_v50 = vrot.slane %v12515_v15, %v24329_v32  ;;  %v12435_v6 = vcombine.high %v12427_v33, %v12427_v33  ;;  %v10884_v10 = vcombine.high %v10882_v47, %v10882_v47 }
 0x66d   : > { %v21535_v43 = vpop.f32.mrb[46].mxu0  ;;  %24522 = vst [vmem:[#allocation178_spill] sm:$0xff] %v21682_v2  ;;  %24525 = vst [vmem:[#allocation181_spill] sm:$0xff] %v21692_v40  ;;  %v21696_v0 = vrot.slane %v10882_v47, %v24325_v1  ;;  %v21699_v44 = vrot.slane %v12427_v33, %v24325_v1  ;;  %v11015_v4 = vcombine.high %v21360_v49, %v21360_v49 }
 0x66e   : > { %v21523_v25 = vpop.f32.mrb[44].mxu1  ;;  %v21549_v8 = vpop.f32.mrb[47].mxu0  ;;  %24523 = vst [vmem:[#allocation179_spill] sm:$0xff] %v21685_v39  ;;  %24524 = vst [vmem:[#allocation180_spill] sm:$0xff] %v21688_v50  ;;  %v21704_v15 = vrot.slane %v10883_v3, %v24325_v1  ;;  %v12436_v13 = vcombine.high %v12434_v11, %v12434_v11  ;;  %v21709_v18 = vrot.slane %v12434_v11, %v24325_v1 }
 0x66f   : > { %v21537_v9 = vpop.f32.mrb[45].mxu1  ;;  %24526 = vst [vmem:[#allocation182_spill] sm:$0xff] %v21696_v0  ;;  %24527 = vst [vmem:[#allocation183_spill] sm:$0xff] %v21699_v44  ;;  %v21712_v50 = vrot.slane %v10884_v10, %v24325_v1  ;;  %v21717_v47 = vrot.slane %v12435_v6, %v24325_v1  ;;  %v12465_v3 = vcombine.high %v21699_v44, %v21699_v44 }
 0x670   : > { %24528 = vst [vmem:[#allocation184_spill] sm:$0xff] %v21704_v15  ;;  %24529 = vst [vmem:[#allocation185_spill] sm:$0xff] %v21709_v18  ;;  %v21724_v45 = vrot.slane %v12436_v13, %v24325_v1  ;;  %v12466_v11 = vcombine.high %v21709_v18, %v21709_v18  ;;  %v11022_v39 = vrot.slane %v21360_v49, %v24325_v1 }
 0x671   : > { %v21579_v14 = vpop.f32.mrb[48].mxu0  ;;  %24530 = vst [vmem:[#allocation186_spill] sm:$0xff] %v21712_v50  ;;  %24531 = vst [vmem:[#allocation187_spill] sm:$0xff] %v21717_v47  ;;  %v12467_v6 = vcombine.high %v21717_v47, %v21717_v47  ;;  %v21737_v21 = vrot.slane %v12465_v3, %v24329_v32  ;;  %v11029_v3 = vrot.slane %v11015_v4, %v24325_v1 }
 0x672   : > { %v21569_v57 = vpop.f32.mrb[46].mxu1  ;;  %v21588_v35 = vpop.f32.mrb[49].mxu0  ;;  %24532 = vst [vmem:[#allocation188_spill] sm:$0xff] %v21724_v45  ;;  %v21746_v33 = vrot.slane %v12466_v11, %v24329_v32  ;;  %v12567_v13 = vcombine.high %v21372_v38, %v21372_v38  ;;  %v12574_v2 = vrot.slane %v21372_v38, %v24325_v1  ;;  %v10966_v10 = vcombine.high %v21374_v22, %v21374_v22 }
 0x673   : > { %v21581_v63 = vpop.f32.mrb[47].mxu1  ;;  %24533 = vst [vmem:[#allocation189_spill] sm:$0xff] %v21737_v21  ;;  %v21749_v50 = vrot.slane %v12467_v6, %v24329_v32  ;;  %v10973_v11 = vrot.slane %v21374_v22, %v24325_v1  ;;  %v12518_v6 = vcombine.high %v21393_v31, %v21393_v31  ;;  %v11031_v0 = vcombine.high %v11029_v3, %v11029_v3 }
 0x674   : > { %24534 = vst [vmem:[#allocation190_spill] sm:$0xff] %v21746_v33  ;;  %v11030_v33 = vcombine.high %v11022_v39, %v11022_v39  ;;  %v21765_v49 = vrot.slane %v11022_v39, %v24325_v1  ;;  %v21768_v4 = vrot.slane %v11029_v3, %v24325_v1  ;;  %v12581_v18 = vrot.slane %v12567_v13, %v24325_v1 }
 0x675   : > { %24535 = vst [vmem:[#allocation191_spill] sm:$0xff] %v21749_v50  ;;  %v12582_v38 = vcombine.high %v12574_v2, %v12574_v2  ;;  %v21772_v45 = vrot.slane %v12574_v2, %v24325_v1  ;;  %v10980_v50 = vrot.slane %v10966_v10, %v24325_v1  ;;  %v21779_v21 = vrot.slane %v11031_v0, %v24325_v1 }
 0x676   : > { %24536 = vst [vmem:[#allocation192_spill] sm:$0xff] %v21765_v49  ;;  %24537 = vst [vmem:[#allocation193_spill] sm:$0xff] %v21768_v4  ;;  %v21776_v22 = vrot.slane %v11030_v33, %v24325_v1  ;;  %v12583_v15 = vcombine.high %v12581_v18, %v12581_v18  ;;  %v21786_v13 = vrot.slane %v12581_v18, %v24325_v1 }
 0x677   : > { %24538 = vst [vmem:[#allocation194_spill] sm:$0xff] %v21772_v45  ;;  %24540 = vst [vmem:[#allocation196_spill] sm:$0xff] %v21779_v21  ;;  %v21789_v2 = vrot.slane %v12582_v38, %v24325_v1  ;;  %v12612_v33 = vcombine.high %v21772_v45, %v21772_v45  ;;  %v10981_v3 = vcombine.high %v10973_v11, %v10973_v11 }
 0x678   : > { %24539 = vst [vmem:[#allocation195_spill] sm:$0xff] %v21776_v22  ;;  %24541 = vst [vmem:[#allocation197_spill] sm:$0xff] %v21786_v13  ;;  %v21800_v47 = vrot.slane %v12583_v15, %v24325_v1  ;;  %v12613_v18 = vcombine.high %v21786_v13, %v21786_v13  ;;  %v10982_v39 = vcombine.high %v10980_v50, %v10980_v50 }
 0x679   : > { %24542 = vst [vmem:[#allocation198_spill] sm:$0xff] %v21789_v2  ;;  %v12614_v38 = vcombine.high %v21789_v2, %v21789_v2  ;;  %v21809_v0 = vrot.slane %v12612_v33, %v24329_v32  ;;  %v21814_v44 = vrot.slane %v10973_v11, %v24325_v1  ;;  %v21827_v33 = vrot.slane %v10980_v50, %v24325_v1 }
 0x67a   : > { %24543 = vst [vmem:[#allocation199_spill] sm:$0xff] %v21800_v47  ;;  %v21824_v40 = vrot.slane %v12613_v18, %v24329_v32  ;;  %v21830_v10 = vrot.slane %v10981_v3, %v24325_v1  ;;  %v21833_v11 = vrot.slane %v10982_v39, %v24325_v1  ;;  %v12532_v4 = vrot.slane %v12518_v6, %v24325_v1 }
 0x67b   : > { %24544 = vst [vmem:[#allocation200_spill] sm:$0xff] %v21809_v0  ;;  %v21819_v21 = vrot.slane %v12614_v38, %v24329_v32  ;;  %v12525_v38 = vrot.slane %v21393_v31, %v24325_v1  ;;  %v11113_v18 = vcombine.high %v21409_v29, %v21409_v29  ;;  %v11120_v50 = vrot.slane %v21409_v29, %v24325_v1 }
 0x67c   : > { %24546 = vst [vmem:[#allocation202_spill] sm:$0xff] %v21824_v40  ;;  %v12665_v31 = vcombine.high %v21421_v20, %v21421_v20  ;;  %v12534_v6 = vcombine.high %v12532_v4, %v12532_v4  ;;  %v21856_v47 = vrot.slane %v12532_v4, %v24325_v1  ;;  %v12672_v15 = vrot.slane %v21421_v20, %v24325_v1 }
 0x67d   : > { %24545 = vst [vmem:[#allocation201_spill] sm:$0xff] %v21819_v21  ;;  %v12533_v40 = vcombine.high %v12525_v38, %v12525_v38  ;;  %v21853_v13 = vrot.slane %v12525_v38, %v24325_v1  ;;  %v11127_v29 = vrot.slane %v11113_v18, %v24325_v1  ;;  %v11128_v3 = vcombine.high %v11120_v50, %v11120_v50 }
 0x67e   : > { %v21860_v21 = vrot.slane %v11120_v50, %v24325_v1  ;;  %v21868_v0 = vrot.slane %v12534_v6, %v24325_v1  ;;  %v12564_v4 = vcombine.high %v21856_v47, %v21856_v47  ;;  %v12679_v18 = vrot.slane %v12665_v31, %v24325_v1 }
 0x67f   : > { %v21865_v39 = vrot.slane %v12533_v40, %v24325_v1  ;;  %v12563_v38 = vcombine.high %v21853_v13, %v21853_v13  ;;  %v11129_v22 = vcombine.high %v11127_v29, %v11127_v29  ;;  %v21879_v20 = vrot.slane %v11127_v29, %v24325_v1 }
 0x680   : > { %24547 = vst [vmem:[#allocation203_spill] sm:$0xff] %v21860_v21  ;;  %v21893_v50 = vrot.slane %v12564_v4, %v24329_v32  ;;  %v21896_v29 = vrot.slane %v11128_v3, %v24325_v1  ;;  %v12680_v28 = vcombine.high %v12672_v15, %v12672_v15  ;;  %v21917_v19 = vrot.slane %v12679_v18, %v24325_v1 }
 0x681   : > { %24548 = vst [vmem:[#allocation204_spill] sm:$0xff] %v21879_v20  ;;  %v12565_v40 = vcombine.high %v21865_v39, %v21865_v39  ;;  %v21888_v49 = vrot.slane %v12563_v38, %v24329_v32  ;;  %v21899_v45 = vrot.slane %v11129_v22, %v24325_v1  ;;  %v21914_v22 = vrot.slane %v12672_v15, %v24325_v1 }
 0x682   : > { %24549 = vst [vmem:[#allocation205_spill] sm:$0xff] %v21893_v50  ;;  %24550 = vst [vmem:[#allocation206_spill] sm:$0xff] %v21896_v29  ;;  %v11064_v2 = vcombine.high %v21423_v55, %v21423_v55  ;;  %v11071_v31 = vrot.slane %v21423_v55, %v24325_v1  ;;  %v21924_v38 = vrot.slane %v12680_v28, %v24325_v1 }
 0x683   : > { %24551 = vst [vmem:[#allocation207_spill] sm:$0xff] %v21899_v45  ;;  %v21902_v6 = vrot.slane %v12565_v40, %v24329_v32  ;;  %24552 = vst [vmem:[#allocation208_spill] sm:$0xff] %v21914_v22  ;;  %v12681_v40 = vcombine.high %v12679_v18, %v12679_v18  ;;  %v12710_v3 = vcombine.high %v21914_v22, %v21914_v22 }
 0x684   : > { %24553 = vst [vmem:[#allocation209_spill] sm:$0xff] %v21917_v19  ;;  %24554 = vst [vmem:[#allocation210_spill] sm:$0xff] %v21924_v38  ;;  %v12616_v4 = vcombine.high %v21430_v12, %v21430_v12  ;;  %v12711_v45 = vcombine.high %v21917_v19, %v21917_v19  ;;  %v11078_v28 = vrot.slane %v11064_v2, %v24325_v1 }
 0x685   : > { %v21933_v18 = vrot.slane %v12681_v40, %v24325_v1  ;;  %v12712_v20 = vcombine.high %v21924_v38, %v21924_v38  ;;  %v21945_v29 = vrot.slane %v12710_v3, %v24329_v32  ;;  %v11079_v21 = vcombine.high %v11071_v31, %v11071_v31 }
 0x686   : > { %v21952_v55 = vrot.slane %v12711_v45, %v24329_v32  ;;  %v11080_v2 = vcombine.high %v11078_v28, %v11078_v28  ;;  %v21958_v50 = vrot.slane %v11071_v31, %v24325_v1  ;;  %v21961_v3 = vrot.slane %v11078_v28, %v24325_v1 }
 0x687   : > { %24555 = vst [vmem:[#allocation211_spill] sm:$0xff] %v21933_v18  ;;  %24556 = vst [vmem:[#allocation212_spill] sm:$0xff] %v21945_v29  ;;  %v21955_v19 = vrot.slane %v12712_v20, %v24329_v32  ;;  %v21964_v15 = vrot.slane %v11079_v21, %v24325_v1  ;;  %v12623_v45 = vrot.slane %v21430_v12, %v24325_v1 }
 0x688   : > { %24557 = vst [vmem:[#allocation213_spill] sm:$0xff] %v21952_v55  ;;  %24559 = vst [vmem:[#allocation215_spill] sm:$0xff] %v21961_v3  ;;  %v21967_v40 = vrot.slane %v11080_v2, %v24325_v1  ;;  %v12630_v22 = vrot.slane %v12616_v4, %v24325_v1  ;;  %v11211_v20 = vcombine.high %v21448_v34, %v21448_v34 }
 0x689   : > { %24558 = vst [vmem:[#allocation214_spill] sm:$0xff] %v21955_v19  ;;  %v11218_v2 = vrot.slane %v21448_v34, %v24325_v1  ;;  %v12631_v55 = vcombine.high %v12623_v45, %v12623_v45  ;;  %v21985_v18 = vrot.slane %v12623_v45, %v24325_v1  ;;  %v12763_v3 = vcombine.high %v21459_v59, %v21459_v59 }
 0x68a   : > { %24560 = vst [vmem:[#allocation216_spill] sm:$0xff] %v21967_v40  ;;  %v12632_v4 = vcombine.high %v12630_v22, %v12630_v22  ;;  %v21988_v19 = vrot.slane %v12630_v22, %v24325_v1  ;;  %v11225_v31 = vrot.slane %v11211_v20, %v24325_v1 }
 0x68b   : > { %v11226_v28 = vcombine.high %v11218_v2, %v11218_v2  ;;  %v21992_v29 = vrot.slane %v11218_v2, %v24325_v1  ;;  %v21995_v21 = vrot.slane %v12631_v55, %v24325_v1  ;;  %v12661_v12 = vcombine.high %v21985_v18, %v21985_v18 }
 0x68c   : > { %24561 = vst [vmem:[#allocation217_spill] sm:$0xff] %v21988_v19  ;;  %v21998_v34 = vrot.slane %v12632_v4, %v24325_v1  ;;  %v12662_v22 = vcombine.high %v21988_v19, %v21988_v19  ;;  %v11227_v2 = vcombine.high %v11225_v31, %v11225_v31  ;;  %v22009_v38 = vrot.slane %v11225_v31, %v24325_v1 }
 0x68d   : > { %24562 = vst [vmem:[#allocation218_spill] sm:$0xff] %v21992_v29  ;;  %v12663_v55 = vcombine.high %v21995_v21, %v21995_v21  ;;  %v22018_v45 = vrot.slane %v12661_v12, %v24329_v32  ;;  %v22026_v31 = vrot.slane %v11226_v28, %v24325_v1  ;;  %v12777_v40 = vrot.slane %v12763_v3, %v24325_v1 }
 0x68e   : > { %24563 = vst [vmem:[#allocation219_spill] sm:$0xff] %v21998_v34  ;;  %24564 = vst [vmem:[#allocation220_spill] sm:$0xff] %v22009_v38  ;;  %v22023_v20 = vrot.slane %v12662_v22, %v24329_v32  ;;  %v22029_v19 = vrot.slane %v11227_v2, %v24325_v1  ;;  %v12770_v2 = vrot.slane %v21459_v59, %v24325_v1 }
 0x68f   : > { %24565 = vst [vmem:[#allocation221_spill] sm:$0xff] %v22018_v45  ;;  %24567 = vst [vmem:[#allocation223_spill] sm:$0xff] %v22026_v31  ;;  %v22032_v4 = vrot.slane %v12663_v55, %v24329_v32  ;;  %v11162_v55 = vcombine.high %v21461_v27, %v21461_v27  ;;  %v11169_v12 = vrot.slane %v21461_v27, %v24325_v1 }
 0x690   : > { %24566 = vst [vmem:[#allocation222_spill] sm:$0xff] %v22023_v20  ;;  %24568 = vst [vmem:[#allocation224_spill] sm:$0xff] %v22029_v19  ;;  %v12714_v38 = vcombine.high %v21468_v62, %v21468_v62  ;;  %v12721_v22 = vrot.slane %v21468_v62, %v24325_v1  ;;  %v12778_v31 = vcombine.high %v12770_v2, %v12770_v2 }
 0x691   : > { %24569 = vst [vmem:[#allocation225_spill] sm:$0xff] %v22032_v4  ;;  %v22056_v28 = vrot.slane %v12770_v2, %v24325_v1  ;;  %v11176_v59 = vrot.slane %v11162_v55, %v24325_v1  ;;  %v24571_v19 = vrot.slane %v21585_v24, %v24329_v32  ;;  %v12779_v29 = vcombine.high %v12777_v40, %v12777_v40 }
 0x692   : > { %v22065_v27 = vrot.slane %v12777_v40, %v24325_v1  ;;  %v11177_v20 = vcombine.high %v11169_v12, %v11169_v12  ;;  %v22068_v34 = vrot.slane %v11169_v12, %v24325_v1  ;;  %v22071_v62 = vrot.slane %v12778_v31, %v24325_v1 }
 0x693   : > { %24570 = vst [vmem:[#allocation226_spill] sm:$0xff] %v22056_v28  ;;  %v13746_v3 = vsel %vm948_vm6, %v21521_v58, %v24571_v19  ;;  %v12808_v2 = vcombine.high %v22056_v28, %v22056_v28  ;;  %v11178_v55 = vcombine.high %v11176_v59, %v11176_v59  ;;  %v22078_v19 = vrot.slane %v12779_v29, %v24325_v1 }
 0x694   : > { %24572 = vst [vmem:[#allocation227_spill] sm:$0xff] %v22065_v27  ;;  %24573 = vst [vmem:[#allocation228_spill] sm:$0xff] %v22071_v62  ;;  %v12809_v40 = vcombine.high %v22065_v27, %v22065_v27  ;;  %v22085_v4 = vrot.slane %v11176_v59, %v24325_v1  ;;  %v12810_v31 = vcombine.high %v22071_v62, %v22071_v62 }
 0x695   : > { %24574 = vst [vmem:[#allocation229_spill] sm:$0xff] %v22078_v19  ;;  %v22092_v24 = vrot.slane %v12808_v2, %v24329_v32  ;;  %v22095_v29 = vrot.slane %v11177_v20, %v24325_v1  ;;  %v12811_v28 = vcombine.high %v22078_v19, %v22078_v19  ;;  %v22105_v27 = vrot.slane %v11178_v55, %v24325_v1 }
 0x696   : > { %v22102_v59 = vrot.slane %v12809_v40, %v24329_v32  ;;  %v22108_v45 = vrot.slane %v12810_v31, %v24329_v32  ;;  %v12728_v55 = vrot.slane %v12714_v38, %v24325_v1  ;;  %v22123_v31 = vrot.slane %v12721_v22, %v24325_v1 }
 0x697   : > { %24575 = vst [vmem:[#allocation230_spill] sm:$0xff] %v22092_v24  ;;  %v22117_v12 = vrot.slane %v12811_v28, %v24329_v32  ;;  %v24579_v2 = vrot.slane %v21598_v41, %v24329_v32  ;;  %v24580_v28 = vcombine.high %v21521_v58, %v21521_v58  ;;  %v24581_v38 = vcombine.high %v21547_v5, %v21547_v5 }
 0x698   : > { %24576 = vst [vmem:[#allocation231_spill] sm:$0xff] %v22102_v59  ;;  %24577 = vst [vmem:[#allocation232_spill] sm:$0xff] %v22108_v45  ;;  %v12729_v59 = vcombine.high %v12721_v22, %v12721_v22  ;;  %v12730_v22 = vcombine.high %v12728_v55, %v12728_v55  ;;  %v12759_v19 = vcombine.high %v22123_v31, %v22123_v31 }
 0x699   : > { %24578 = vst [vmem:[#allocation233_spill] sm:$0xff] %v22117_v12  ;;  %v13747_v20 = vsel %vm948_vm6, %v21547_v5, %v24579_v2  ;;  %v13748_v24 = vsel %vm948_vm6, %v24580_v28, %v21620_v7  ;;  %v13749_v40 = vsel %vm948_vm6, %v24581_v38, %v21632_v53  ;;  %v22141_v12 = vrot.slane %v12728_v55, %v24325_v1 }
 0x69a   : > { %v22144_v41 = vrot.slane %v12729_v59, %v24325_v1  ;;  %v14036_v2 = vcombine.low %v13746_v3, %v13747_v20  ;;  %v14037_v7 = vcombine.low %v13748_v24, %v13749_v40  ;;  %v11309_v5 = vcombine.high %v21487_v36, %v21487_v36 }
 0x69b   : > { %v22153_v53 = vrot.slane %v12730_v22, %v24325_v1  ;;  %v12760_v55 = vcombine.high %v22141_v12, %v22141_v12  ;;  %v22162_v20 = vrot.slane %v12759_v19, %v24329_v32  ;;  %v11316_v24 = vrot.slane %v21487_v36, %v24325_v1 }
 0x69c   : > { %v12761_v59 = vcombine.high %v22144_v41, %v22144_v41  ;;  %v14044_v40 = vrot.slane %v14036_v2, %v18134_v37  ;;  %v14051_v28 = vrot.slane %v14037_v7, %v18134_v37  ;;  %v11323_v2 = vrot.slane %v11309_v5, %v24325_v1 }
 0x69d   : > { %v12762_v38 = vcombine.high %v22153_v53, %v22153_v53  ;;  %v22176_v3 = vrot.slane %v12760_v55, %v24329_v32  ;;  %v12861_v7 = vcombine.high %v21495_v60, %v21495_v60  ;;  %v11260_v58 = vcombine.high %v21497_v48, %v21497_v48 }
 0x69e   : > { %v22171_v22 = vrot.slane %v12761_v59, %v24329_v32  ;;  %v14052_v19 = vcombine.low %v14044_v40, %v14051_v28  ;;  %v12868_v59 = vrot.slane %v21495_v60, %v24325_v1  ;;  %v11267_v55 = vrot.slane %v21497_v48, %v24325_v1 }
 0x69f   : > { %24582 = vst [vmem:[#allocation234_spill] sm:$0xff] %v22176_v3  ;;  %v22184_v45 = vrot.slane %v12762_v38, %v24329_v32  ;;  %v11324_v40 = vcombine.high %v11316_v24, %v11316_v24  ;;  %v11325_v36 = vcombine.high %v11323_v2, %v11323_v2  ;;  %v22193_v5 = vrot.slane %v11316_v24, %v24325_v1 }
 0x6a0   : > { %14580 = vxpose.xlu0.b32.cont [3/16] (narrow) %v14052_v19, 8  ;;  %v22196_v28 = vrot.slane %v11323_v2, %v24325_v1  ;;  %v12875_v38 = vrot.slane %v12861_v7, %v24325_v1  ;;  %v12876_v62 = vcombine.high %v12868_v59, %v12868_v59  ;;  %v22200_v60 = vrot.slane %v12868_v59, %v24325_v1 }
 0x6a1   : > { %24583 = vst [vmem:[#allocation235_spill] sm:$0xff] %v22184_v45  ;;  %24584 = vst [vmem:[#allocation236_spill] sm:$0xff] %v22193_v5  ;;  %v11274_v45 = vrot.slane %v11260_v58, %v24325_v1  ;;  %v22204_v3 = vrot.slane %v11324_v40, %v24325_v1  ;;  %v22207_v48 = vrot.slane %v11325_v36, %v24325_v1 }
 0x6a2   : > { %24585 = vst [vmem:[#allocation237_spill] sm:$0xff] %v22196_v28  ;;  %24586 = vst [vmem:[#allocation238_spill] sm:$0xff] %v22200_v60  ;;  %v12877_v2 = vcombine.high %v12875_v38, %v12875_v38  ;;  %v22214_v7 = vrot.slane %v12875_v38, %v24325_v1  ;;  %v22217_v59 = vrot.slane %v12876_v62, %v24325_v1 }
 0x6a3   : > { %24587 = vst [vmem:[#allocation239_spill] sm:$0xff] %v22204_v3  ;;  %24588 = vst [vmem:[#allocation240_spill] sm:$0xff] %v22207_v48  ;;  %v12906_v58 = vcombine.high %v22200_v60, %v22200_v60  ;;  %v11275_v19 = vcombine.high %v11267_v55, %v11267_v55  ;;  %v11276_v24 = vcombine.high %v11274_v45, %v11274_v45 }
 0x6a4   : > { %24589 = vst [vmem:[#allocation241_spill] sm:$0xff] %v22214_v7  ;;  %24590 = vst [vmem:[#allocation242_spill] sm:$0xff] %v22217_v59  ;;  %v22228_v28 = vrot.slane %v12877_v2, %v24325_v1  ;;  %v12907_v62 = vcombine.high %v22214_v7, %v22214_v7  ;;  %v12908_v38 = vcombine.high %v22217_v59, %v22217_v59 }
 0x6a5   : > { %v22237_v40 = vrot.slane %v12906_v58, %v24329_v32  ;;  %v22242_v48 = vrot.slane %v11267_v55, %v24325_v1  ;;  %v22255_v58 = vrot.slane %v11274_v45, %v24325_v1  ;;  %v22258_v36 = vrot.slane %v11275_v19, %v24325_v1 }
 0x6a6   : > { %24591 = vst [vmem:[#allocation243_spill] sm:$0xff] %v22228_v28  ;;  %v12909_v2 = vcombine.high %v22228_v28, %v22228_v28  ;;  %v22247_v3 = vrot.slane %v12908_v38, %v24329_v32  ;;  %v22252_v5 = vrot.slane %v12907_v62, %v24329_v32  ;;  %v22261_v55 = vrot.slane %v11276_v24, %v24325_v1 }
 0x6a7   : > { %24592 = vst [vmem:[#allocation244_spill] sm:$0xff] %v22237_v40  ;;  %24593 = vst [vmem:[#allocation245_spill] sm:$0xff] %v22242_v48  ;;  %v12812_v60 = vcombine.high %v21504_v52, %v21504_v52  ;;  %v12819_v62 = vrot.slane %v21504_v52, %v24325_v1  ;;  %v24600_v45 = vcombine.high %v21611_v23, %v21611_v23 }
 0x6a8   : > { %24594 = vst [vmem:[#allocation246_spill] sm:$0xff] %v22247_v3  ;;  %24595 = vst [vmem:[#allocation247_spill] sm:$0xff] %v22252_v5  ;;  %v22266_v38 = vrot.slane %v12909_v2, %v24329_v32  ;;  %v24603_v24 = vrot.slane %v21611_v23, %v24329_v32  ;;  %v24604_v2 = vcombine.high %v21533_v46, %v21533_v46 }
 0x6a9   : > { %24596 = vst [vmem:[#allocation248_spill] sm:$0xff] %v22255_v58  ;;  %24597 = vst [vmem:[#allocation249_spill] sm:$0xff] %v22258_v36  ;;  %v13137_v19 = vrot.slane %v24600_v45, %v24329_v32  ;;  %v12826_v5 = vrot.slane %v12812_v60, %v24325_v1  ;;  %v12827_v28 = vcombine.high %v12819_v62, %v12819_v62 }
 0x6aa   : > { %24598 = vst [vmem:[#allocation250_spill] sm:$0xff] %v22261_v55  ;;  %24599 = vst [vmem:[#allocation251_spill] sm:$0xff] %v22266_v38  ;;  %v24601_v38 = vrot.slane %v21595_v42, %v24329_v32  ;;  %v22289_v45 = vrot.slane %v12819_v62, %v24325_v1  ;;  %v13751_v7 = vsel %vm948_vm6, %v21555_v61, %v24603_v24 }
 0x6ab   : > { %v13752_v42 = vsel %vm948_vm6, %v24604_v2, %v21637_v16  ;;  %v11407_v62 = vcombine.high %v21523_v25, %v21523_v25  ;;  %v12828_v40 = vcombine.high %v12826_v5, %v12826_v5  ;;  %v22308_v23 = vrot.slane %v12826_v5, %v24325_v1 }
 0x6ac   : > { %v13750_v52 = vsel %vm948_vm6, %v21533_v46, %v24601_v38  ;;  %24602 = vst [vmem:[#allocation252_spill] sm:$0xff] %v22289_v45  ;;  %v24605_v38 = vcombine.high %v21555_v61, %v21555_v61  ;;  %v22311_v24 = vrot.slane %v12827_v28, %v24325_v1  ;;  %v12857_v46 = vcombine.high %v22289_v45, %v22289_v45 }
 0x6ad   : > { %v14053_v3 = vcombine.low %v13750_v52, %v13751_v7  ;;  %24606 = vst [vmem:[#allocation253_spill] sm:$0xff] %v22308_v23  ;;  %v11414_v7 = vrot.slane %v21523_v25, %v24325_v1  ;;  %v22321_v2 = vrot.slane %v12828_v40, %v24325_v1  ;;  %v12858_v5 = vcombine.high %v22308_v23, %v22308_v23 }
 0x6ae   : > { %v13753_v60 = vsel %vm948_vm6, %v24605_v38, %v13137_v19  ;;  %24607 = vst [vmem:[#allocation254_spill] sm:$0xff] %v22311_v24  ;;  %v12859_v28 = vcombine.high %v22311_v24, %v22311_v24  ;;  %v22330_v38 = vrot.slane %v12857_v46, %v24329_v32  ;;  %v11421_v40 = vrot.slane %v11407_v62, %v24325_v1 }
 0x6af   : > { %v14054_v61 = vcombine.low %v13752_v42, %v13753_v60  ;;  %v14061_v19 = vrot.slane %v14053_v3, %v18134_v37  ;;  %24608 = vst [vmem:[#allocation255_spill] sm:$0xff] %v22321_v2  ;;  %v12860_v42 = vcombine.high %v22321_v2, %v22321_v2  ;;  %v22344_v52 = vrot.slane %v12858_v5, %v24329_v32 }
 0x6b0   : > { %24609 = vst [vmem:[#allocation256_spill] sm:$0xff] %v22330_v38  ;;  %v22339_v60 = vrot.slane %v12859_v28, %v24329_v32  ;;  %v11422_v59 = vcombine.high %v11414_v7, %v11414_v7  ;;  %v11423_v55 = vcombine.high %v11421_v40, %v11421_v40  ;;  %v22347_v3 = vrot.slane %v11414_v7, %v24325_v1 }
 0x6b1   : > { %v14068_v25 = vrot.slane %v14054_v61, %v18134_v37  ;;  %24611 = vst [vmem:[#allocation258_spill] sm:$0xff] %v22344_v52  ;;  %v22350_v62 = vrot.slane %v12860_v42, %v24329_v32  ;;  %v22353_v61 = vrot.slane %v11421_v40, %v24325_v1  ;;  %v12959_v28 = vcombine.high %v21535_v43, %v21535_v43 }
 0x6b2   : > { %24610 = vst [vmem:[#allocation257_spill] sm:$0xff] %v22339_v60  ;;  %v12966_v16 = vrot.slane %v21535_v43, %v24325_v1  ;;  %v22363_v5 = vrot.slane %v11423_v55, %v24325_v1  ;;  %v24615_v36 = vrot.slane %v20216_v30, %v24329_v32  ;;  %v24616_v24 = vcombine.high %v20193_v56, %v20193_v56 }
 0x6b3   : > { %v14069_v46 = vcombine.low %v14061_v19, %v14068_v25  ;;  %24612 = vst [vmem:[#allocation259_spill] sm:$0xff] %v22350_v62  ;;  %v22360_v19 = vrot.slane %v11422_v59, %v24325_v1  ;;  %v11358_v25 = vcombine.high %v21537_v9, %v21537_v9  ;;  %v12973_v42 = vrot.slane %v12959_v28, %v24325_v1 }
 0x6b4   : > { %v12974_v62 = vcombine.high %v12966_v16, %v12966_v16  ;;  %v22373_v43 = vrot.slane %v12966_v16, %v24325_v1 }
 0x6b5   : > { %14581 = vxpose.xlu0.b32.cont [4/16] (narrow) %v14069_v46, 8  ;;  %v11365_v46 = vrot.slane %v21537_v9, %v24325_v1  ;;  %v11372_v7 = vrot.slane %v11358_v25, %v24325_v1  ;;  %v12975_v52 = vcombine.high %v12973_v42, %v12973_v42  ;;  %v22383_v40 = vrot.slane %v12973_v42, %v24325_v1 }
 0x6b6   : > { %v22386_v28 = vrot.slane %v12974_v62, %v24325_v1  ;;  %v13004_v16 = vcombine.high %v22373_v43, %v22373_v43  ;;  %v12910_v42 = vcombine.high %v21549_v8, %v21549_v8 }
 0x6b7   : > { %v11373_v2 = vcombine.high %v11365_v46, %v11365_v46  ;;  %v11374_v55 = vcombine.high %v11372_v7, %v11372_v7  ;;  %v22393_v58 = vrot.slane %v11365_v46, %v24325_v1  ;;  %v22396_v9 = vrot.slane %v12975_v52, %v24325_v1 }
 0x6b8   : > { %v13005_v25 = vcombine.high %v22383_v40, %v22383_v40  ;;  %v13006_v62 = vcombine.high %v22386_v28, %v22386_v28  ;;  %v22405_v23 = vrot.slane %v13004_v16, %v24329_v32  ;;  %v22410_v46 = vrot.slane %v11372_v7, %v24325_v1 }
 0x6b9   : > { %v22413_v52 = vrot.slane %v11373_v2, %v24325_v1  ;;  %v13007_v60 = vcombine.high %v22396_v9, %v22396_v9  ;;  %v22426_v59 = vrot.slane %v11374_v55, %v24325_v1  ;;  %v24614_v55 = vrot.slane %v20197_v26, %v24329_v32 }
 0x6ba   : > { %v22418_v38 = vrot.slane %v13006_v62, %v24329_v32  ;;  %v22423_v16 = vrot.slane %v13005_v25, %v24329_v32  ;;  %v12917_v25 = vrot.slane %v21549_v8, %v24325_v1  ;;  %v10012_v8 = vsel %vm948_vm6, %v24616_v24, %v20245_v51 }
 0x6bb   : > { %v22435_v62 = vrot.slane %v13007_v60, %v24329_v32  ;;  %v10010_v7 = vsel %vm948_vm6, %v20193_v56, %v24614_v55  ;;  %v10011_v60 = vsel %vm948_vm6, %v20204_v17, %v24615_v36  ;;  %v24617_v26 = vcombine.high %v20204_v17, %v20204_v17 }
 0x6bc   : > { %v12924_v2 = vrot.slane %v12910_v42, %v24325_v1  ;;  %v12925_v48 = vcombine.high %v12917_v25, %v12917_v25  ;;  %v22465_v30 = vrot.slane %v12917_v25, %v24325_v1  ;;  %v14070_v45 = vcombine.low %v10010_v7, %v10011_v60 }
 0x6bd   : > { %24613 = vst [vmem:[#allocation260_spill] sm:$0xff] %v22435_v62  ;;  %v10013_v55 = vsel %vm948_vm6, %v24617_v26, %v20256_v54  ;;  %v24618_v62 = vrot.slane %v21853_v13, %v24329_v32  ;;  %v24619_v51 = vrot.slane %v21865_v39, %v24329_v32  ;;  %v24620_v54 = vcombine.high %v21814_v44, %v21814_v44 }
 0x6be   : > { %v14071_v36 = vcombine.low %v10012_v8, %v10013_v55  ;;  %v12926_v42 = vcombine.high %v12924_v2, %v12924_v2  ;;  %v22483_v7 = vrot.slane %v12924_v2, %v24325_v1  ;;  %v22486_v13 = vrot.slane %v12925_v48, %v24325_v1 }
 0x6bf   : > { %v13778_v56 = vsel %vm948_vm6, %v21814_v44, %v24618_v62  ;;  %v13779_v17 = vsel %vm948_vm6, %v21830_v10, %v24619_v51  ;;  %v13780_v24 = vsel %vm948_vm6, %v24620_v54, %v21888_v49  ;;  %v12955_v62 = vcombine.high %v22465_v30, %v22465_v30 }
 0x6c0   : > { %v14078_v25 = vrot.slane %v14070_v45, %v18134_v37  ;;  %v14085_v60 = vrot.slane %v14071_v36, %v18134_v37  ;;  %v24621_v44 = vcombine.high %v21830_v10, %v21830_v10  ;;  %v22500_v2 = vrot.slane %v12926_v42, %v24325_v1 }
 0x6c1   : > { %v12956_v48 = vcombine.high %v22483_v7, %v22483_v7  ;;  %v12957_v8 = vcombine.high %v22486_v13, %v22486_v13  ;;  %v22509_v26 = vrot.slane %v12955_v62, %v24329_v32 }
 0x6c2   : > { %v13781_v49 = vsel %vm948_vm6, %v24621_v44, %v21902_v6  ;;  %v14086_v55 = vcombine.low %v14078_v25, %v14085_v60  ;;  %v14308_v6 = vcombine.low %v13778_v56, %v13779_v17  ;;  %v12958_v36 = vcombine.high %v22500_v2, %v22500_v2 }
 0x6c3   : > { %v22516_v51 = vrot.slane %v12957_v8, %v24329_v32  ;;  %v22521_v42 = vrot.slane %v12956_v48, %v24329_v32  ;;  %v14309_v62 = vcombine.low %v13780_v24, %v13781_v49  ;;  %v11505_v25 = vcombine.high %v21569_v57, %v21569_v57 }
 0x6c4   : > { %14582 = vxpose.xlu0.b32.cont [5/16] (narrow) %v14086_v55, 8  ;;  %v14316_v44 = vrot.slane %v14308_v6, %v18134_v37  ;;  %v11512_v56 = vrot.slane %v21569_v57, %v24325_v1  ;;  %v22529_v17 = vrot.slane %v12958_v36, %v24329_v32  ;;  %v13057_v60 = vcombine.high %v21579_v14, %v21579_v14 }
 0x6c5   : > { %v13064_v48 = vrot.slane %v21579_v14, %v24325_v1  ;;  %v11456_v24 = vcombine.high %v21581_v63, %v21581_v63  ;;  %v14323_v49 = vrot.slane %v14309_v62, %v18134_v37  ;;  %v11519_v8 = vrot.slane %v11505_v25, %v24325_v1 }
 0x6c6   : > { %v11520_v55 = vcombine.high %v11512_v56, %v11512_v56  ;;  %v22540_v6 = vrot.slane %v11512_v56, %v24325_v1  ;;  %v13071_v57 = vrot.slane %v13057_v60, %v24325_v1  ;;  %v11463_v14 = vrot.slane %v21581_v63, %v24325_v1 }
 0x6c7   : > { %v13072_v36 = vcombine.high %v13064_v48, %v13064_v48  ;;  %v22544_v54 = vrot.slane %v13064_v48, %v24325_v1  ;;  %v14324_v10 = vcombine.low %v14316_v44, %v14323_v49  ;;  %v11521_v45 = vcombine.high %v11519_v8, %v11519_v8 }
 0x6c8   : > { %24622 = vst [vmem:[#allocation261_spill] sm:$0xff] %v22540_v6  ;;  %v22549_v39 = vrot.slane %v11519_v8, %v24325_v1  ;;  %v22552_v62 = vrot.slane %v11520_v55, %v24325_v1  ;;  %v13073_v56 = vcombine.high %v13071_v57, %v13071_v57  ;;  %v22557_v60 = vrot.slane %v13071_v57, %v24325_v1 }
 0x6c9   : > { %24623 = vst [vmem:[#allocation262_spill] sm:$0xff] %v22544_v54  ;;  %v22560_v48 = vrot.slane %v13072_v36, %v24325_v1  ;;  %14612 = vxpose.xlu1.b32.cont [3/16] (narrow) %v14324_v10, 8  ;;  %v22563_v63 = vrot.slane %v11521_v45, %v24325_v1  ;;  %v13102_v8 = vcombine.high %v22544_v54, %v22544_v54  ;;  %v24635_v45 = vld [vmem:[#allocation11_spill] sm:$0xff] }
 0x6ca   : > { %24624 = vst [vmem:[#allocation263_spill] sm:$0xff] %v22549_v39  ;;  %24625 = vst [vmem:[#allocation264_spill] sm:$0xff] %v22552_v62  ;;  %v22572_v55 = vrot.slane %v13073_v56, %v24325_v1  ;;  %v13103_v57 = vcombine.high %v22557_v60, %v22557_v60  ;;  %v11470_v44 = vrot.slane %v11456_v24, %v24325_v1 }
 0x6cb   : > { %24626 = vst [vmem:[#allocation265_spill] sm:$0xff] %v22557_v60  ;;  %24627 = vst [vmem:[#allocation266_spill] sm:$0xff] %v22560_v48  ;;  %v13104_v10 = vcombine.high %v22560_v48, %v22560_v48  ;;  %v22585_v49 = vrot.slane %v13102_v8, %v24329_v32  ;;  %v22601_v8 = vrot.slane %v11463_v14, %v24325_v1 }
 0x6cc   : > { %24628 = vst [vmem:[#allocation267_spill] sm:$0xff] %v22563_v63  ;;  %24629 = vst [vmem:[#allocation268_spill] sm:$0xff] %v22572_v55  ;;  %v13105_v25 = vcombine.high %v22572_v55, %v22572_v55  ;;  %v22597_v36 = vrot.slane %v13103_v57, %v24329_v32  ;;  %v11471_v63 = vcombine.high %v11463_v14, %v11463_v14  ;;  %v24637_v55 = vld [vmem:[#allocation13_spill] sm:$0xff] }
 0x6cd   : > { %24630 = vst [vmem:[#allocation269_spill] sm:$0xff] %v22585_v49  ;;  %v22592_v39 = vrot.slane %v13104_v10, %v24329_v32  ;;  %24633 = vst [vmem:[#allocation272_spill] sm:$0xff] %v22601_v8  ;;  %v13008_v56 = vcombine.high %v21588_v35, %v21588_v35  ;;  %v13015_v10 = vrot.slane %v21588_v35, %v24325_v1 }
 0x6ce   : > { %24632 = vst [vmem:[#allocation271_spill] sm:$0xff] %v22597_v36  ;;  %v22606_v60 = vrot.slane %v13105_v25, %v24329_v32  ;;  %v24636_v57 = vcombine.high %v24635_v45, %v24635_v45  ;;  %v24638_v24 = vrot.slane %v24637_v55, %v24329_v32  ;;  %v11472_v49 = vcombine.high %v11470_v44, %v11470_v44 }
 0x6cf   : > { %24631 = vst [vmem:[#allocation270_spill] sm:$0xff] %v22592_v39  ;;  %v24639_v39 = vld [vmem:[#allocation12_spill] sm:$0xff]  ;;  %v22620_v62 = vrot.slane %v11470_v44, %v24325_v1  ;;  %v22623_v25 = vrot.slane %v11471_v63, %v24325_v1  ;;  %v13023_v48 = vcombine.high %v13015_v10, %v13015_v10  ;;  %v24642_v55 = vrot.slane %v24635_v45, %v24329_v32 }
 0x6d0   : > { %24634 = vst [vmem:[#allocation273_spill] sm:$0xff] %v22606_v60  ;;  %v9425_v36 = vrot.slane %v24636_v57, %v24329_v32  ;;  %v10014_v14 = vsel %vm948_vm6, %v24639_v39, %v24638_v24  ;;  %v13022_v60 = vrot.slane %v13008_v56, %v24325_v1  ;;  %v22629_v57 = vrot.slane %v13015_v10, %v24325_v1  ;;  %v24643_v24 = vld [vmem:[#allocation4_spill] sm:$0xff]  ;;  %v24645_v56 = vld [vmem:[#allocation7_spill] sm:$0xff] }
 0x6d1   : > { %24640 = vst [vmem:[#allocation11_spill] sm:$0xff] %v22620_v62  ;;  %24641 = vst [vmem:[#allocation13_spill] sm:$0xff] %v22623_v25  ;;  %v10015_v6 = vsel %vm948_vm6, %v24643_v24, %v24642_v55  ;;  %v22637_v44 = vrot.slane %v11472_v49, %v24325_v1  ;;  %v24646_v10 = vcombine.high %v24639_v39, %v24639_v39  ;;  %v24693_v25 = vld [vmem:[#allocation35_spill] sm:$0xff] }
 0x6d2   : > { %v13024_v8 = vcombine.high %v13022_v60, %v13022_v60  ;;  %v22649_v45 = vrot.slane %v13022_v60, %v24325_v1  ;;  %v22652_v55 = vrot.slane %v13023_v48, %v24325_v1  ;;  %v13053_v49 = vcombine.high %v22629_v57, %v22629_v57 }
 0x6d3   : > { %24644 = vst [vmem:[#allocation12_spill] sm:$0xff] %v22637_v44  ;;  %v10016_v54 = vsel %vm948_vm6, %v24646_v10, %v24645_v56  ;;  %v24649_v39 = vcombine.high %v24643_v24, %v24643_v24  ;;  %v14087_v10 = vcombine.low %v10014_v14, %v10015_v6  ;;  %v24656_v24 = vrot.slane %v21868_v0, %v24329_v32 }
 0x6d4   : > { %24647 = vst [vmem:[#allocation4_spill] sm:$0xff] %v22649_v45  ;;  %24648 = vst [vmem:[#allocation7_spill] sm:$0xff] %v22652_v55  ;;  %v22665_v60 = vrot.slane %v13024_v8, %v24325_v1  ;;  %v13054_v48 = vcombine.high %v22649_v45, %v22649_v45  ;;  %v13055_v62 = vcombine.high %v22652_v55, %v22652_v55  ;;  %v24717_v55 = vld [vmem:[#allocation200_spill] sm:$0xff] }
 0x6d5   : > { %v10017_v56 = vsel %vm948_vm6, %v24649_v39, %v9425_v36  ;;  %v22674_v35 = vrot.slane %v13053_v49, %v24329_v32  ;;  %v14095_v6 = vrot.slane %v14087_v10, %v18134_v37  ;;  %v24655_v10 = vrot.slane %v21856_v47, %v24329_v32  ;;  %v24660_v47 = vld [vmem:[#allocation163_spill] sm:$0xff] }
 0x6d6   : > { %24650 = vst [vmem:[#allocation274_spill] sm:$0xff] %v22665_v60  ;;  %v14088_v36 = vcombine.low %v10016_v54, %v10017_v56  ;;  %v13056_v1 = vcombine.high %v22665_v60, %v22665_v60  ;;  %v22682_v8 = vrot.slane %v13055_v62, %v24329_v32  ;;  %v22687_v39 = vrot.slane %v13054_v48, %v24329_v32 }
 0x6d7   : > { %24651 = vst [vmem:[#allocation275_spill] sm:$0xff] %v22674_v35  ;;  %v24654_v54 = vcombine.high %v21868_v0, %v21868_v0  ;;  %v13782_v62 = vsel %vm948_vm6, %v21827_v33, %v24655_v10  ;;  %v13783_v48 = vsel %vm948_vm6, %v21833_v11, %v24656_v24  ;;  %v24659_v63 = vcombine.high %v21827_v33, %v21827_v33  ;;  %v24662_v10 = vld [vmem:[#allocation159_spill] sm:$0xff]  ;;  %v24674_v35 = vld [vmem:[#allocation36_spill] sm:$0xff] }
 0x6d8   : > { %24652 = vst [vmem:[#allocation276_spill] sm:$0xff] %v22682_v8  ;;  %24653 = vst [vmem:[#allocation277_spill] sm:$0xff] %v22687_v39  ;;  %v14102_v49 = vrot.slane %v14088_v36, %v18134_v37  ;;  %v22705_v14 = vrot.slane %v13056_v1, %v24329_v32  ;;  %v24658_v36 = vld [vmem:[#allocation205_spill] sm:$0xff]  ;;  %v14325_v39 = vcombine.low %v13782_v62, %v13783_v48 }
 0x6d9   : > { %v13265_v56 = vrot.slane %v24654_v54, %v24329_v32  ;;  %v13784_v54 = vsel %vm948_vm6, %v24659_v63, %v24658_v36  ;;  %v24661_v44 = vrot.slane %v24660_v47, %v24329_v32  ;;  %v24663_v24 = vcombine.high %v21833_v11, %v21833_v11  ;;  %v24666_v8 = vld [vmem:[#allocation161_spill] sm:$0xff]  ;;  %v24667_v63 = vld [vmem:[#allocation167_spill] sm:$0xff]  ;;  %v24671_v47 = vld [vmem:[#allocation34_spill] sm:$0xff] }
 0x6da   : > { %24657 = vst [vmem:[#allocation278_spill] sm:$0xff] %v22705_v14  ;;  %v14103_v0 = vcombine.low %v14095_v6, %v14102_v49  ;;  %v24664_v14 = vld [vmem:[#allocation165_spill] sm:$0xff]  ;;  %v24668_v62 = vcombine.high %v24662_v10, %v24662_v10  ;;  %v24670_v11 = vcombine.high %v24666_v8, %v24666_v8 }
 0x6db   : > { %v13754_v60 = vsel %vm948_vm6, %v24662_v10, %v24661_v44  ;;  %v13785_v1 = vsel %vm948_vm6, %v24663_v24, %v13265_v56  ;;  %v24665_v45 = vrot.slane %v24664_v14, %v24329_v32  ;;  %v14333_v44 = vrot.slane %v14325_v39, %v18134_v37  ;;  %v24669_v6 = vld [vmem:[#allocation169_spill] sm:$0xff] }
 0x6dc   : > { %v13756_v48 = vsel %vm948_vm6, %v24668_v62, %v24667_v63  ;;  %v14326_v36 = vcombine.low %v13784_v54, %v13785_v1  ;;  %v13757_v49 = vsel %vm948_vm6, %v24670_v11, %v24669_v6  ;;  %14583 = vxpose.xlu0.b32.cont [6/16] (narrow) %v14103_v0, 8  ;;  %v24673_v24 = vld [vmem:[#allocation29_spill] sm:$0xff]  ;;  %v24675_v54 = vrot.slane %v24674_v35, %v24329_v32  ;;  %v24676_v1 = vld [vmem:[#allocation32_spill] sm:$0xff]  ;;  %v24677_v63 = vld [vmem:[#allocation38_spill] sm:$0xff] }
 0x6dd   : > { %v13755_v33 = vsel %vm948_vm6, %v24666_v8, %v24665_v45  ;;  %v14105_v14 = vcombine.low %v13756_v48, %v13757_v49  ;;  %v24672_v45 = vrot.slane %v24671_v47, %v24329_v32  ;;  %v24678_v8 = vcombine.high %v24673_v24, %v24673_v24  ;;  %v24679_v62 = vld [vmem:[#allocation39_spill] sm:$0xff]  ;;  %v24681_v47 = vld [vmem:[#allocation166_spill] sm:$0xff] }
 0x6de   : > { %v14104_v56 = vcombine.low %v13754_v60, %v13755_v33  ;;  %v10043_v39 = vsel %vm948_vm6, %v24676_v1, %v24675_v54  ;;  %v14340_v0 = vrot.slane %v14326_v36, %v18134_v37  ;;  %v24680_v48 = vcombine.high %v24676_v1, %v24676_v1  ;;  %v24683_v54 = vld [vmem:[#allocation164_spill] sm:$0xff] }
 0x6df   : > { %v10042_v10 = vsel %vm948_vm6, %v24673_v24, %v24672_v45  ;;  %v10044_v60 = vsel %vm948_vm6, %v24678_v8, %v24677_v63  ;;  %v14119_v11 = vrot.slane %v14105_v14, %v18134_v37  ;;  %v24682_v45 = vcombine.high %v24681_v47, %v24681_v47  ;;  %v24685_v63 = vld [vmem:[#allocation160_spill] sm:$0xff] }
 0x6e0   : > { %v14112_v33 = vrot.slane %v14104_v56, %v18134_v37  ;;  %v10045_v6 = vsel %vm948_vm6, %v24680_v48, %v24679_v62  ;;  %v14342_v35 = vcombine.low %v10042_v10, %v10043_v39  ;;  %v24684_v36 = vrot.slane %v24683_v54, %v24329_v32  ;;  %v24687_v39 = vld [vmem:[#allocation162_spill] sm:$0xff]  ;;  %v24691_v54 = vld [vmem:[#allocation37_spill] sm:$0xff] }
 0x6e1   : > { %v14343_v49 = vcombine.low %v10044_v60, %v10045_v6  ;;  %v13169_v24 = vrot.slane %v24682_v45, %v24329_v32  ;;  %v14341_v8 = vcombine.low %v14333_v44, %v14340_v0  ;;  %v24686_v10 = vrot.slane %v24681_v47, %v24329_v32  ;;  %v24688_v60 = vld [vmem:[#allocation168_spill] sm:$0xff] }
 0x6e2   : > { %v13758_v56 = vsel %vm948_vm6, %v24685_v63, %v24684_v36  ;;  %v14350_v1 = vrot.slane %v14342_v35, %v18134_v37  ;;  %v24689_v62 = vcombine.high %v24685_v63, %v24685_v63  ;;  %v14120_v6 = vcombine.low %v14112_v33, %v14119_v11 }
 0x6e3   : > { %v13759_v14 = vsel %vm948_vm6, %v24687_v39, %v24686_v10  ;;  %v14357_v45 = vrot.slane %v14343_v49, %v18134_v37  ;;  %v24690_v44 = vcombine.high %v24687_v39, %v24687_v39  ;;  %14613 = vxpose.xlu1.b32.cont [4/16] (narrow) %v14341_v8, 8  ;;  %v24692_v36 = vcombine.high %v24691_v54, %v24691_v54  ;;  %v24697_v49 = vld [vmem:[#allocation33_spill] sm:$0xff]  ;;  %v24698_v39 = vld [vmem:[#allocation40_spill] sm:$0xff] }
 0x6e4   : > { %v13760_v48 = vsel %vm948_vm6, %v24689_v62, %v24688_v60  ;;  %v14121_v35 = vcombine.low %v13758_v56, %v13759_v14  ;;  %v24694_v63 = vrot.slane %v24693_v25, %v24329_v32  ;;  %v24695_v60 = vld [vmem:[#allocation31_spill] sm:$0xff]  ;;  %v24696_v11 = vrot.slane %v24691_v54, %v24329_v32  ;;  %14584 = vxpose.xlu0.b32.cont [7/16] (narrow) %v14120_v6, 8 }
 0x6e5   : > { %v13761_v0 = vsel %vm948_vm6, %v24690_v44, %v13169_v24  ;;  %v9553_v10 = vrot.slane %v24692_v36, %v24329_v32  ;;  %v14358_v56 = vcombine.low %v14350_v1, %v14357_v45  ;;  %v24699_v14 = vcombine.high %v24695_v60, %v24695_v60  ;;  %v24701_v54 = vld [vmem:[#allocation23_spill] sm:$0xff] }
 0x6e6   : > { %v14122_v47 = vcombine.low %v13760_v48, %v13761_v0  ;;  %v10046_v33 = vsel %vm948_vm6, %v24695_v60, %v24694_v63  ;;  %v10047_v24 = vsel %vm948_vm6, %v24697_v49, %v24696_v11  ;;  %v14129_v8 = vrot.slane %v14121_v35, %v18134_v37  ;;  %v24703_v1 = vld [vmem:[#allocation3_spill] sm:$0xff]  ;;  %v24704_v35 = vld [vmem:[#allocation25_spill] sm:$0xff] }
 0x6e7   : > { %v10048_v62 = vsel %vm948_vm6, %v24699_v14, %v24698_v39  ;;  %v14359_v25 = vcombine.low %v10046_v33, %v10047_v24  ;;  %v24700_v44 = vcombine.high %v24697_v49, %v24697_v49  ;;  %v24702_v6 = vrot.slane %v24701_v54, %v24329_v32  ;;  %v24706_v63 = vld [vmem:[#allocation17_spill] sm:$0xff]  ;;  %v24707_v11 = vld [vmem:[#allocation27_spill] sm:$0xff]  ;;  %v24709_v24 = vld [vmem:[#allocation30_spill] sm:$0xff]  ;;  %14614 = vxpose.xlu1.b32.cont [5/16] (narrow) %v14358_v56, 8 }
 0x6e8   : > { %v14136_v48 = vrot.slane %v14122_v47, %v18134_v37  ;;  %v24705_v36 = vrot.slane %v24704_v35, %v24329_v32  ;;  %v24708_v49 = vcombine.high %v24703_v1, %v24703_v1  ;;  %v24710_v39 = vcombine.high %v24706_v63, %v24706_v63  ;;  %v24711_v35 = vld [vmem:[#allocation194_spill] sm:$0xff] }
 0x6e9   : > { %v10049_v0 = vsel %vm948_vm6, %v24700_v44, %v9553_v10  ;;  %v10018_v45 = vsel %vm948_vm6, %v24703_v1, %v24702_v6  ;;  %v14367_v47 = vrot.slane %v14359_v25, %v18134_v37  ;;  %v24713_v25 = vld [vmem:[#allocation192_spill] sm:$0xff] }
 0x6ea   : > { %v10019_v60 = vsel %vm948_vm6, %v24706_v63, %v24705_v36  ;;  %v14360_v33 = vcombine.low %v10048_v62, %v10049_v0  ;;  %v10020_v10 = vsel %vm948_vm6, %v24708_v49, %v24707_v11  ;;  %v10021_v14 = vsel %vm948_vm6, %v24710_v39, %v24709_v24  ;;  %v24714_v36 = vld [vmem:[#allocation198_spill] sm:$0xff]  ;;  %v24716_v49 = vld [vmem:[#allocation195_spill] sm:$0xff] }
 0x6eb   : > { %v14137_v44 = vcombine.low %v14129_v8, %v14136_v48  ;;  %v14138_v54 = vcombine.low %v10018_v45, %v10019_v60  ;;  %v14139_v6 = vcombine.low %v10020_v10, %v10021_v14  ;;  %v24712_v62 = vrot.slane %v24711_v35, %v24329_v32  ;;  %v24719_v48 = vld [vmem:[#allocation201_spill] sm:$0xff]  ;;  %v24721_v35 = vld [vmem:[#allocation26_spill] sm:$0xff] }
 0x6ec   : > { %v14374_v1 = vrot.slane %v14360_v33, %v18134_v37  ;;  %v24715_v11 = vrot.slane %v24714_v36, %v24329_v32  ;;  %v24718_v56 = vcombine.high %v24713_v25, %v24713_v25  ;;  %v24720_v45 = vcombine.high %v24716_v49, %v24716_v49 }
 0x6ed   : > { %v13786_v0 = vsel %vm948_vm6, %v24713_v25, %v24712_v62  ;;  %14585 = vxpose.xlu0.b32.cont [8/16] (narrow) %v14137_v44, 8  ;;  %v14146_v33 = vrot.slane %v14138_v54, %v18134_v37  ;;  %v14153_v10 = vrot.slane %v14139_v6, %v18134_v37  ;;  %v24722_v62 = vcombine.high %v24721_v35, %v24721_v35  ;;  %v24727_v54 = vld [vmem:[#allocation20_spill] sm:$0xff] }
 0x6ee   : > { %v13787_v63 = vsel %vm948_vm6, %v24716_v49, %v24715_v11  ;;  %v13788_v8 = vsel %vm948_vm6, %v24718_v56, %v24717_v55  ;;  %v13789_v60 = vsel %vm948_vm6, %v24720_v45, %v24719_v48  ;;  %v14375_v14 = vcombine.low %v14367_v47, %v14374_v1  ;;  %v24723_v55 = vld [vmem:[#allocation24_spill] sm:$0xff] }
 0x6ef   : > { %v14376_v24 = vcombine.low %v13786_v0, %v13787_v63  ;;  %v14377_v39 = vcombine.low %v13788_v8, %v13789_v60  ;;  %v9457_v25 = vrot.slane %v24722_v62, %v24329_v32  ;;  %v24724_v36 = vrot.slane %v24723_v55, %v24329_v32  ;;  %v24725_v11 = vld [vmem:[#allocation16_spill] sm:$0xff]  ;;  %v24735_v62 = vld [vmem:[#allocation193_spill] sm:$0xff] }
 0x6f0   : > { %v24726_v44 = vrot.slane %v24721_v35, %v24329_v32  ;;  %v14154_v0 = vcombine.low %v14146_v33, %v14153_v10  ;;  %v24728_v63 = vld [vmem:[#allocation28_spill] sm:$0xff]  ;;  %v24729_v56 = vcombine.high %v24725_v11, %v24725_v11  ;;  %14615 = vxpose.xlu1.b32.cont [6/16] (narrow) %v14375_v14, 8  ;;  %v24730_v48 = vcombine.high %v24727_v54, %v24727_v54  ;;  %v24731_v35 = vld [vmem:[#allocation199_spill] sm:$0xff] }
 0x6f1   : > { %v10022_v49 = vsel %vm948_vm6, %v24725_v11, %v24724_v36  ;;  %v14384_v47 = vrot.slane %v14376_v24, %v18134_v37  ;;  %v14391_v1 = vrot.slane %v14377_v39, %v18134_v37  ;;  %v24732_v33 = vcombine.high %v24731_v35, %v24731_v35  ;;  %v24733_v24 = vld [vmem:[#allocation197_spill] sm:$0xff] }
 0x6f2   : > { %v10023_v6 = vsel %vm948_vm6, %v24727_v54, %v24726_v44  ;;  %v10024_v8 = vsel %vm948_vm6, %v24729_v56, %v24728_v63  ;;  %v10025_v45 = vsel %vm948_vm6, %v24730_v48, %v9457_v25  ;;  %v24734_v39 = vrot.slane %v24733_v24, %v24329_v32  ;;  %14586 = vxpose.xlu0.b32.cont [9/16] (narrow) %v14154_v0, 8  ;;  %v24737_v44 = vld [vmem:[#allocation196_spill] sm:$0xff]  ;;  %v24743_v48 = vld [vmem:[#allocation181_spill] sm:$0xff]  ;;  %v24744_v24 = vld [vmem:[#allocation187_spill] sm:$0xff] }
 0x6f3   : > { %v14155_v60 = vcombine.low %v10022_v49, %v10023_v6  ;;  %v13297_v10 = vrot.slane %v24732_v33, %v24329_v32  ;;  %v14392_v36 = vcombine.low %v14384_v47, %v14391_v1  ;;  %v14156_v14 = vcombine.low %v10024_v8, %v10025_v45  ;;  %v24738_v49 = vld [vmem:[#allocation202_spill] sm:$0xff]  ;;  %v24741_v1 = vld [vmem:[#allocation183_spill] sm:$0xff] }
 0x6f4   : > { %v13790_v55 = vsel %vm948_vm6, %v24735_v62, %v24734_v39  ;;  %v24736_v11 = vrot.slane %v24731_v35, %v24329_v32  ;;  %v24739_v54 = vcombine.high %v24735_v62, %v24735_v62  ;;  %v24740_v56 = vcombine.high %v24737_v44, %v24737_v44  ;;  %v24746_v62 = vld [vmem:[#allocation184_spill] sm:$0xff] }
 0x6f5   : > { %v14163_v63 = vrot.slane %v14155_v60, %v18134_v37  ;;  %v24742_v8 = vrot.slane %v24741_v1, %v24329_v32  ;;  %v14170_v35 = vrot.slane %v14156_v14, %v18134_v37  ;;  %v24745_v39 = vrot.slane %v24744_v24, %v24329_v32  ;;  %14616 = vxpose.xlu1.b32.cont [7/16] (narrow) %v14392_v36, 8  ;;  %v24754_v36 = vld [vmem:[#allocation58_spill] sm:$0xff] }
 0x6f6   : > { %v13791_v25 = vsel %vm948_vm6, %v24737_v44, %v24736_v11  ;;  %v13792_v6 = vsel %vm948_vm6, %v24739_v54, %v24738_v49  ;;  %v13793_v0 = vsel %vm948_vm6, %v24740_v56, %v13297_v10  ;;  %v24747_v11 = vld [vmem:[#allocation189_spill] sm:$0xff]  ;;  %v24748_v10 = vcombine.high %v24743_v48, %v24743_v48 }
 0x6f7   : > { %v14393_v47 = vcombine.low %v13790_v55, %v13791_v25  ;;  %v13762_v45 = vsel %vm948_vm6, %v24743_v48, %v24742_v8  ;;  %v14394_v33 = vcombine.low %v13792_v6, %v13793_v0  ;;  %v13763_v60 = vsel %vm948_vm6, %v24746_v62, %v24745_v39  ;;  %v24749_v25 = vld [vmem:[#allocation191_spill] sm:$0xff]  ;;  %v24751_v6 = vld [vmem:[#allocation56_spill] sm:$0xff]  ;;  %v24756_v39 = vld [vmem:[#allocation53_spill] sm:$0xff] }
 0x6f8   : > { %v13764_v55 = vsel %vm948_vm6, %v24748_v10, %v24747_v11  ;;  %v24750_v14 = vcombine.high %v24746_v62, %v24746_v62  ;;  %v14172_v54 = vcombine.low %v13762_v45, %v13763_v60  ;;  %v24752_v56 = vrot.slane %v24751_v6, %v24329_v32  ;;  %v24753_v0 = vld [vmem:[#allocation47_spill] sm:$0xff]  ;;  %v24757_v10 = vld [vmem:[#allocation60_spill] sm:$0xff] }
 0x6f9   : > { %v14401_v44 = vrot.slane %v14393_v47, %v18134_v37  ;;  %v14171_v8 = vcombine.low %v14163_v63, %v14170_v35  ;;  %v14408_v48 = vrot.slane %v14394_v33, %v18134_v37  ;;  %v24755_v47 = vrot.slane %v24754_v36, %v24329_v32  ;;  %v24763_v36 = vld [vmem:[#allocation185_spill] sm:$0xff] }
 0x6fa   : > { %v13765_v49 = vsel %vm948_vm6, %v24750_v14, %v24749_v25  ;;  %v10050_v1 = vsel %vm948_vm6, %v24753_v0, %v24752_v56  ;;  %v14180_v62 = vrot.slane %v14172_v54, %v18134_v37  ;;  %v24758_v45 = vcombine.high %v24753_v0, %v24753_v0  ;;  %v24759_v25 = vld [vmem:[#allocation64_spill] sm:$0xff] }
 0x6fb   : > { %v14173_v24 = vcombine.low %v13764_v55, %v13765_v49  ;;  %v10051_v11 = vsel %vm948_vm6, %v24756_v39, %v24755_v47  ;;  %v24760_v63 = vcombine.high %v24756_v39, %v24756_v39  ;;  %14587 = vxpose.xlu0.b32.cont [10/16] (narrow) %v14171_v8, 8  ;;  %v14409_v55 = vcombine.low %v14401_v44, %v14408_v48  ;;  %v24761_v54 = vld [vmem:[#allocation188_spill] sm:$0xff]  ;;  %v24767_v44 = vld [vmem:[#allocation186_spill] sm:$0xff] }
 0x6fc   : > { %v10052_v60 = vsel %vm948_vm6, %v24758_v45, %v24757_v10  ;;  %v14410_v33 = vcombine.low %v10050_v1, %v10051_v11  ;;  %v24762_v6 = vcombine.high %v24761_v54, %v24761_v54  ;;  %v24764_v47 = vrot.slane %v24763_v36, %v24329_v32  ;;  %v24765_v10 = vld [vmem:[#allocation182_spill] sm:$0xff] }
 0x6fd   : > { %v10053_v35 = vsel %vm948_vm6, %v24760_v63, %v24759_v25  ;;  %v14187_v14 = vrot.slane %v14173_v24, %v18134_v37  ;;  %v24766_v1 = vrot.slane %v24761_v54, %v24329_v32  ;;  %v24768_v48 = vld [vmem:[#allocation190_spill] sm:$0xff]  ;;  %v24769_v24 = vcombine.high %v24765_v10, %v24765_v10  ;;  %14617 = vxpose.xlu1.b32.cont [8/16] (narrow) %v14409_v55, 8  ;;  %v24771_v54 = vld [vmem:[#allocation59_spill] sm:$0xff] }
 0x6fe   : > { %v14411_v49 = vcombine.low %v10052_v60, %v10053_v35  ;;  %v13201_v56 = vrot.slane %v24762_v6, %v24329_v32  ;;  %v14418_v0 = vrot.slane %v14410_v33, %v18134_v37  ;;  %v13766_v39 = vsel %vm948_vm6, %v24765_v10, %v24764_v47  ;;  %v24773_v47 = vld [vmem:[#allocation57_spill] sm:$0xff] }
 0x6ff   : > { %v13767_v8 = vsel %vm948_vm6, %v24767_v44, %v24766_v1  ;;  %v13768_v11 = vsel %vm948_vm6, %v24769_v24, %v24768_v48  ;;  %v14188_v45 = vcombine.low %v14180_v62, %v14187_v14  ;;  %v24770_v25 = vcombine.high %v24767_v44, %v24767_v44  ;;  %v24775_v1 = vld [vmem:[#allocation50_spill] sm:$0xff] }
 0x700   : > { %v14425_v60 = vrot.slane %v14411_v49, %v18134_v37  ;;  %v14189_v35 = vcombine.low %v13766_v39, %v13767_v8  ;;  %v24772_v6 = vcombine.high %v24771_v54, %v24771_v54  ;;  %v24774_v10 = vrot.slane %v24773_v47, %v24329_v32  ;;  %v24777_v14 = vld [vmem:[#allocation54_spill] sm:$0xff] }
 0x701   : > { %v13769_v63 = vsel %vm948_vm6, %v24770_v25, %v13201_v56  ;;  %v24776_v55 = vrot.slane %v24771_v54, %v24329_v32  ;;  %14588 = vxpose.xlu0.b32.cont [11/16] (narrow) %v14188_v45, 8  ;;  %v24778_v44 = vld [vmem:[#allocation62_spill] sm:$0xff]  ;;  %v24779_v8 = vcombine.high %v24775_v1, %v24775_v1  ;;  %v24780_v25 = vcombine.high %v24777_v14, %v24777_v14 }
 0x702   : > { %v14190_v33 = vcombine.low %v13768_v11, %v13769_v63  ;;  %v9585_v36 = vrot.slane %v24772_v6, %v24329_v32  ;;  %v10054_v62 = vsel %vm948_vm6, %v24775_v1, %v24774_v10  ;;  %v14426_v56 = vcombine.low %v14418_v0, %v14425_v60  ;;  %v24781_v54 = vld [vmem:[#allocation6_spill] sm:$0xff]  ;;  %v24783_v0 = vld [vmem:[#allocation9_spill] sm:$0xff] }
 0x703   : > { %v10055_v49 = vsel %vm948_vm6, %v24777_v14, %v24776_v55  ;;  %v14197_v39 = vrot.slane %v14189_v35, %v18134_v37  ;;  %v10056_v48 = vsel %vm948_vm6, %v24779_v8, %v24778_v44  ;;  %v24782_v45 = vrot.slane %v24781_v54, %v24329_v32  ;;  %v24784_v35 = vld [vmem:[#allocation15_spill] sm:$0xff]  ;;  %v24786_v47 = vld [vmem:[#allocation10_spill] sm:$0xff]  ;;  %v24789_v14 = vld [vmem:[#allocation21_spill] sm:$0xff] }
 0x704   : > { %v14427_v24 = vcombine.low %v10054_v62, %v10055_v49  ;;  %v14204_v11 = vrot.slane %v14190_v33, %v18134_v37  ;;  %v10057_v63 = vsel %vm948_vm6, %v24780_v25, %v9585_v36  ;;  %v24785_v6 = vrot.slane %v24784_v35, %v24329_v32  ;;  %14618 = vxpose.xlu1.b32.cont [9/16] (narrow) %v14426_v56, 8  ;;  %v24787_v62 = vld [vmem:[#allocation19_spill] sm:$0xff] }
 0x705   : > { %v10026_v60 = vsel %vm948_vm6, %v24783_v0, %v24782_v45  ;;  %v14428_v1 = vcombine.low %v10056_v48, %v10057_v63  ;;  %v24788_v36 = vcombine.high %v24783_v0, %v24783_v0  ;;  %v24790_v49 = vcombine.high %v24786_v47, %v24786_v47  ;;  %v24793_v0 = vld [vmem:[#allocation221_spill] sm:$0xff] }
 0x706   : > { %v10027_v10 = vsel %vm948_vm6, %v24786_v47, %v24785_v6  ;;  %v14435_v33 = vrot.slane %v14427_v24, %v18134_v37  ;;  %v14205_v8 = vcombine.low %v14197_v39, %v14204_v11  ;;  %v24791_v56 = vrot.slane %v21985_v18, %v24329_v32 }
 0x707   : > { %v10028_v55 = vsel %vm948_vm6, %v24788_v36, %v24787_v62  ;;  %v10029_v44 = vsel %vm948_vm6, %v24790_v49, %v24789_v14  ;;  %v14206_v25 = vcombine.low %v10026_v60, %v10027_v10  ;;  %v14442_v24 = vrot.slane %v14428_v1, %v18134_v37  ;;  %v24795_v60 = vld [vmem:[#allocation225_spill] sm:$0xff]  ;;  %v24797_v62 = vld [vmem:[#allocation18_spill] sm:$0xff]  ;;  %v24801_v49 = vld [vmem:[#allocation8_spill] sm:$0xff] }
 0x708   : > { %v14207_v54 = vcombine.low %v10028_v55, %v10029_v44  ;;  %v13794_v48 = vsel %vm948_vm6, %v21958_v50, %v24791_v56  ;;  %v24792_v63 = vrot.slane %v21995_v21, %v24329_v32  ;;  %v24794_v39 = vcombine.high %v21958_v50, %v21958_v50  ;;  %14589 = vxpose.xlu0.b32.cont [12/16] (narrow) %v14205_v8, 8  ;;  %v24799_v55 = vld [vmem:[#allocation5_spill] sm:$0xff]  ;;  %v24803_v8 = vld [vmem:[#allocation14_spill] sm:$0xff] }
 0x709   : > { %v24796_v18 = vcombine.high %v21964_v15, %v21964_v15  ;;  %v14214_v6 = vrot.slane %v14206_v25, %v18134_v37  ;;  %v14443_v1 = vcombine.low %v14435_v33, %v14442_v24  ;;  %v24798_v50 = vcombine.high %v24797_v62, %v24797_v62 }
 0x70a   : > { %v13795_v45 = vsel %vm948_vm6, %v21964_v15, %v24792_v63  ;;  %v13796_v11 = vsel %vm948_vm6, %v24794_v39, %v24793_v0  ;;  %v14221_v21 = vrot.slane %v14207_v54, %v18134_v37  ;;  %v24800_v14 = vrot.slane %v24799_v55, %v24329_v32  ;;  %v24814_v55 = vld [vmem:[#allocation222_spill] sm:$0xff] }
 0x70b   : > { %v13797_v35 = vsel %vm948_vm6, %v24796_v18, %v24795_v60  ;;  %v14444_v47 = vcombine.low %v13794_v48, %v13795_v45  ;;  %v9489_v36 = vrot.slane %v24798_v50, %v24329_v32  ;;  %v24802_v44 = vrot.slane %v24797_v62, %v24329_v32  ;;  %v24804_v48 = vld [vmem:[#allocation22_spill] sm:$0xff]  ;;  %14619 = vxpose.xlu1.b32.cont [10/16] (narrow) %v14443_v1, 8  ;;  %v24813_v50 = vld [vmem:[#allocation216_spill] sm:$0xff] }
 0x70c   : > { %v14445_v10 = vcombine.low %v13796_v11, %v13797_v35  ;;  %v10030_v15 = vsel %vm948_vm6, %v24801_v49, %v24800_v14  ;;  %v14222_v54 = vcombine.low %v14214_v6, %v14221_v21  ;;  %v24805_v24 = vcombine.high %v24801_v49, %v24801_v49  ;;  %v24807_v11 = vld [vmem:[#allocation219_spill] sm:$0xff]  ;;  %v24809_v35 = vld [vmem:[#allocation217_spill] sm:$0xff] }
 0x70d   : > { %v10031_v25 = vsel %vm948_vm6, %v24803_v8, %v24802_v44  ;;  %v14452_v33 = vrot.slane %v14444_v47, %v18134_v37  ;;  %v24806_v45 = vcombine.high %v24803_v8, %v24803_v8  ;;  %v24808_v60 = vcombine.high %v24807_v11, %v24807_v11  ;;  %v24811_v21 = vld [vmem:[#allocation215_spill] sm:$0xff] }
 0x70e   : > { %v14459_v56 = vrot.slane %v14445_v10, %v18134_v37  ;;  %v10032_v63 = vsel %vm948_vm6, %v24805_v24, %v24804_v48  ;;  %v14223_v39 = vcombine.low %v10030_v15, %v10031_v25  ;;  %v24810_v6 = vrot.slane %v24809_v35, %v24329_v32  ;;  %14590 = vxpose.xlu0.b32.cont [13/16] (narrow) %v14222_v54, 8  ;;  %v24817_v54 = vld [vmem:[#allocation174_spill] sm:$0xff] }
 0x70f   : > { %v10033_v0 = vsel %vm948_vm6, %v24806_v45, %v9489_v36  ;;  %v13329_v18 = vrot.slane %v24808_v60, %v24329_v32  ;;  %v24812_v62 = vrot.slane %v24807_v11, %v24329_v32  ;;  %v24815_v14 = vcombine.high %v24811_v21, %v24811_v21  ;;  %v24820_v45 = vld [vmem:[#allocation176_spill] sm:$0xff]  ;;  %v24823_v60 = vld [vmem:[#allocation178_spill] sm:$0xff] }
 0x710   : > { %v13798_v47 = vsel %vm948_vm6, %v24811_v21, %v24810_v6  ;;  %v14460_v10 = vcombine.low %v14452_v33, %v14459_v56  ;;  %v14224_v1 = vcombine.low %v10032_v63, %v10033_v0  ;;  %v14231_v15 = vrot.slane %v14223_v39, %v18134_v37  ;;  %v24819_v56 = vld [vmem:[#allocation170_spill] sm:$0xff]  ;;  %v24822_v11 = vld [vmem:[#allocation172_spill] sm:$0xff]  ;;  %v24825_v21 = vld [vmem:[#allocation179_spill] sm:$0xff] }
 0x711   : > { %v13799_v36 = vsel %vm948_vm6, %v24813_v50, %v24812_v62  ;;  %v13800_v49 = vsel %vm948_vm6, %v24815_v14, %v24814_v55  ;;  %v24816_v44 = vcombine.high %v24813_v50, %v24813_v50  ;;  %v24818_v33 = vrot.slane %v24817_v54, %v24329_v32  ;;  %v24827_v50 = vld [vmem:[#allocation45_spill] sm:$0xff]  ;;  %v24832_v54 = vld [vmem:[#allocation43_spill] sm:$0xff] }
 0x712   : > { %v14461_v25 = vcombine.low %v13798_v47, %v13799_v36  ;;  %v14238_v24 = vrot.slane %v14224_v1, %v18134_v37  ;;  %v24821_v0 = vrot.slane %v24820_v45, %v24329_v32  ;;  %14620 = vxpose.xlu1.b32.cont [11/16] (narrow) %v14460_v10, 8  ;;  %v24826_v47 = vcombine.high %v24822_v11, %v24822_v11  ;;  %v24829_v55 = vld [vmem:[#allocation41_spill] sm:$0xff]  ;;  %v24830_v10 = vld [vmem:[#allocation48_spill] sm:$0xff]  ;;  %v24833_v45 = vld [vmem:[#allocation51_spill] sm:$0xff] }
 0x713   : > { %v13801_v8 = vsel %vm948_vm6, %v24816_v44, %v13329_v18  ;;  %v13770_v48 = vsel %vm948_vm6, %v24819_v56, %v24818_v33  ;;  %v24824_v18 = vcombine.high %v24819_v56, %v24819_v56  ;;  %v24828_v36 = vrot.slane %v24827_v50, %v24329_v32 }
 0x714   : > { %v14462_v63 = vcombine.low %v13800_v49, %v13801_v8  ;;  %v13771_v39 = vsel %vm948_vm6, %v24822_v11, %v24821_v0  ;;  %v14469_v6 = vrot.slane %v14461_v25, %v18134_v37  ;;  %v13773_v1 = vsel %vm948_vm6, %v24826_v47, %v24825_v21  ;;  %v24835_v11 = vld [vmem:[#allocation55_spill] sm:$0xff] }
 0x715   : > { %v13772_v35 = vsel %vm948_vm6, %v24824_v18, %v24823_v60  ;;  %v14240_v62 = vcombine.low %v13770_v48, %v13771_v39  ;;  %v10058_v14 = vsel %vm948_vm6, %v24829_v55, %v24828_v36  ;;  %v14239_v49 = vcombine.low %v14231_v15, %v14238_v24  ;;  %v24841_v36 = vld [vmem:[#allocation171_spill] sm:$0xff] }
 0x716   : > { %v14476_v44 = vrot.slane %v14462_v63, %v18134_v37  ;;  %v14241_v8 = vcombine.low %v13772_v35, %v13773_v1  ;;  %v24831_v25 = vrot.slane %v24830_v10, %v24329_v32  ;;  %v24834_v48 = vcombine.high %v24829_v55, %v24829_v55  ;;  %v24837_v35 = vld [vmem:[#allocation177_spill] sm:$0xff] }
 0x717   : > { %v14248_v56 = vrot.slane %v14240_v62, %v18134_v37  ;;  %v24836_v15 = vcombine.high %v24832_v54, %v24832_v54  ;;  %14591 = vxpose.xlu0.b32.cont [14/16] (narrow) %v14239_v49, 8  ;;  %v24838_v21 = vcombine.high %v24837_v35, %v24837_v35  ;;  %v24839_v62 = vld [vmem:[#allocation175_spill] sm:$0xff] }
 0x718   : > { %v10059_v33 = vsel %vm948_vm6, %v24832_v54, %v24831_v25  ;;  %v10060_v0 = vsel %vm948_vm6, %v24834_v48, %v24833_v45  ;;  %v14477_v39 = vcombine.low %v14469_v6, %v14476_v44  ;;  %v14255_v60 = vrot.slane %v14241_v8, %v18134_v37  ;;  %v24843_v6 = vld [vmem:[#allocation173_spill] sm:$0xff]  ;;  %v24844_v44 = vld [vmem:[#allocation180_spill] sm:$0xff] }
 0x719   : > { %v10061_v24 = vsel %vm948_vm6, %v24836_v15, %v24835_v11  ;;  %v14478_v63 = vcombine.low %v10058_v14, %v10059_v33  ;;  %v13233_v47 = vrot.slane %v24838_v21, %v24329_v32  ;;  %v24840_v50 = vrot.slane %v24839_v62, %v24329_v32  ;;  %v24847_v11 = vld [vmem:[#allocation49_spill] sm:$0xff]  ;;  %v24851_v21 = vld [vmem:[#allocation42_spill] sm:$0xff] }
 0x71a   : > { %v14479_v18 = vcombine.low %v10060_v0, %v10061_v24  ;;  %v24842_v14 = vrot.slane %v24837_v35, %v24329_v32  ;;  %v24845_v8 = vcombine.high %v24841_v36, %v24841_v36  ;;  %14621 = vxpose.xlu1.b32.cont [12/16] (narrow) %v14477_v39, 8  ;;  %v14256_v25 = vcombine.low %v14248_v56, %v14255_v60  ;;  %v24853_v60 = vld [vmem:[#allocation44_spill] sm:$0xff] }
 0x71b   : > { %v14486_v1 = vrot.slane %v14478_v63, %v18134_v37  ;;  %v13774_v55 = vsel %vm948_vm6, %v24841_v36, %v24840_v50  ;;  %v24846_v33 = vcombine.high %v24843_v6, %v24843_v6  ;;  %v24848_v15 = vcombine.high %v24847_v11, %v24847_v11  ;;  %v24849_v63 = vld [vmem:[#allocation46_spill] sm:$0xff]  ;;  %v24854_v50 = vld [vmem:[#allocation52_spill] sm:$0xff] }
 0x71c   : > { %v13775_v49 = vsel %vm948_vm6, %v24843_v6, %v24842_v14  ;;  %v13776_v10 = vsel %vm948_vm6, %v24845_v8, %v24844_v44  ;;  %v14493_v54 = vrot.slane %v14479_v18, %v18134_v37  ;;  %v24850_v35 = vrot.slane %v24849_v63, %v24329_v32  ;;  %14592 = vxpose.xlu0.b32.cont [15/16] (narrow) %v14256_v25, 8  ;;  %v24857_v8 = vld [vmem:[#allocation79_spill] sm:$0xff] }
 0x71d   : > { %v13777_v45 = vsel %vm948_vm6, %v24846_v33, %v13233_v47  ;;  %v14257_v48 = vcombine.low %v13774_v55, %v13775_v49  ;;  %v9617_v24 = vrot.slane %v24848_v15, %v24329_v32  ;;  %v24852_v39 = vrot.slane %v24847_v11, %v24329_v32  ;;  %v24863_v15 = vld [vmem:[#allocation83_spill] sm:$0xff] }
 0x71e   : > { %v14258_v0 = vcombine.low %v13776_v10, %v13777_v45  ;;  %v10062_v56 = vsel %vm948_vm6, %v24851_v21, %v24850_v35  ;;  %v14494_v47 = vcombine.low %v14486_v1, %v14493_v54  ;;  %v24855_v36 = vcombine.high %v24851_v21, %v24851_v21  ;;  %v24859_v1 = vld [vmem:[#allocation70_spill] sm:$0xff]  ;;  %v24860_v54 = vld [vmem:[#allocation81_spill] sm:$0xff]  ;;  %v24862_v45 = vld [vmem:[#allocation76_spill] sm:$0xff] }
 0x71f   : > { %v10063_v18 = vsel %vm948_vm6, %v24853_v60, %v24852_v39  ;;  %v14265_v62 = vrot.slane %v14257_v48, %v18134_v37  ;;  %v24856_v49 = vcombine.high %v24853_v60, %v24853_v60  ;;  %v24858_v10 = vrot.slane %v24857_v8, %v24329_v32  ;;  %v24865_v35 = vld [vmem:[#allocation84_spill] sm:$0xff]  ;;  %v24872_v8 = vld [vmem:[#allocation206_spill] sm:$0xff] }
 0x720   : > { %v10064_v55 = vsel %vm948_vm6, %v24855_v36, %v24854_v50  ;;  %v14495_v14 = vcombine.low %v10062_v56, %v10063_v18  ;;  %v14272_v6 = vrot.slane %v14258_v0, %v18134_v37  ;;  %v24861_v33 = vrot.slane %v24860_v54, %v24329_v32  ;;  %14622 = vxpose.xlu1.b32.cont [13/16] (narrow) %v14494_v47, 8  ;;  %v24867_v50 = vld [vmem:[#allocation208_spill] sm:$0xff]  ;;  %v24869_v36 = vld [vmem:[#allocation203_spill] sm:$0xff] }
 0x721   : > { %v10065_v44 = vsel %vm948_vm6, %v24856_v49, %v9617_v24  ;;  %v10066_v25 = vsel %vm948_vm6, %v24859_v1, %v24858_v10  ;;  %v24864_v24 = vcombine.high %v24859_v1, %v24859_v1  ;;  %v24866_v21 = vcombine.high %v24862_v45, %v24862_v45  ;;  %v24870_v49 = vld [vmem:[#allocation210_spill] sm:$0xff]  ;;  %v24873_v1 = vld [vmem:[#allocation212_spill] sm:$0xff] }
 0x722   : > { %v10067_v48 = vsel %vm948_vm6, %v24862_v45, %v24861_v33  ;;  %v14496_v11 = vcombine.low %v10064_v55, %v10065_v44  ;;  %v14503_v0 = vrot.slane %v14495_v14, %v18134_v37  ;;  %v14273_v39 = vcombine.low %v14265_v62, %v14272_v6 }
 0x723   : > { %v10068_v63 = vsel %vm948_vm6, %v24864_v24, %v24863_v15  ;;  %v10069_v56 = vsel %vm948_vm6, %v24866_v21, %v24865_v35  ;;  %v14770_v60 = vcombine.low %v10066_v25, %v10067_v48  ;;  %v24868_v47 = vrot.slane %v24867_v50, %v24329_v32  ;;  %v24875_v25 = vld [vmem:[#allocation214_spill] sm:$0xff]  ;;  %v24879_v21 = vld [vmem:[#allocation73_spill] sm:$0xff] }
 0x724   : > { %v14771_v18 = vcombine.low %v10068_v63, %v10069_v56  ;;  %v14510_v14 = vrot.slane %v14496_v11, %v18134_v37  ;;  %v24871_v44 = vrot.slane %v24870_v49, %v24329_v32  ;;  %v24874_v62 = vcombine.high %v24869_v36, %v24869_v36  ;;  %14593 = vxpose.xlu0.b32.end [16/16] (narrow) %v14273_v39, 8  ;;  %v24877_v63 = vld [vmem:[#allocation80_spill] sm:$0xff]  ;;  %v24880_v50 = vld [vmem:[#allocation82_spill] sm:$0xff]  ;;  %v24883_v39 = vld [vmem:[#allocation85_spill] sm:$0xff] }
 0x725   : > { %v13802_v55 = vsel %vm948_vm6, %v24869_v36, %v24868_v47  ;;  %v24876_v54 = vcombine.high %v24872_v8, %v24872_v8  ;;  %v14778_v45 = vrot.slane %v14770_v60, %v18134_v37  ;;  %v24878_v35 = vrot.slane %v24877_v63, %v24329_v32  ;;  %v24882_v36 = vld [vmem:[#allocation77_spill] sm:$0xff] }
 0x726   : > { %v13803_v10 = vsel %vm948_vm6, %v24872_v8, %v24871_v44  ;;  %v13804_v6 = vsel %vm948_vm6, %v24874_v62, %v24873_v1  ;;  %v14785_v48 = vrot.slane %v14771_v18, %v18134_v37  ;;  %v14511_v24 = vcombine.low %v14503_v0, %v14510_v14  ;;  %v24885_v44 = vld [vmem:[#allocation88_spill] sm:$0xff] }
 0x727   : > { %v13805_v33 = vsel %vm948_vm6, %v24876_v54, %v24875_v25  ;;  %v14512_v11 = vcombine.low %v13802_v55, %v13803_v10  ;;  %v10070_v56 = vsel %vm948_vm6, %v24879_v21, %v24878_v35  ;;  %v24881_v47 = vrot.slane %v24880_v50, %v24329_v32  ;;  %v24893_v35 = vld [vmem:[#allocation207_spill] sm:$0xff] }
 0x728   : > { %v14513_v15 = vcombine.low %v13804_v6, %v13805_v33  ;;  %v24884_v60 = vcombine.high %v24879_v21, %v24879_v21  ;;  %v14786_v55 = vcombine.low %v14778_v45, %v14785_v48  ;;  %v24886_v8 = vcombine.high %v24882_v36, %v24882_v36  ;;  %14623 = vxpose.xlu1.b32.cont [14/16] (narrow) %v14511_v24, 8  ;;  %v24887_v6 = vld [vmem:[#allocation211_spill] sm:$0xff]  ;;  %v24889_v33 = vld [vmem:[#allocation209_spill] sm:$0xff]  ;;  %v24891_v48 = vld [vmem:[#allocation204_spill] sm:$0xff] }
 0x729   : > { %v10071_v49 = vsel %vm948_vm6, %v24882_v36, %v24881_v47  ;;  %v14520_v0 = vrot.slane %v14512_v11, %v18134_v37  ;;  %v24888_v25 = vcombine.high %v24887_v6, %v24887_v6  ;;  %v24890_v45 = vrot.slane %v24889_v33, %v24329_v32  ;;  %v24894_v21 = vld [vmem:[#allocation213_spill] sm:$0xff]  ;;  %v24896_v47 = vld [vmem:[#allocation127_spill] sm:$0xff] }
 0x72a   : > { %v10072_v18 = vsel %vm948_vm6, %v24884_v60, %v24883_v39  ;;  %v14527_v14 = vrot.slane %v14513_v15, %v18134_v37  ;;  %v10073_v10 = vsel %vm948_vm6, %v24886_v8, %v24885_v44  ;;  %v14787_v1 = vcombine.low %v10070_v56, %v10071_v49  ;;  %15346 = vxpose.xlu0.b32.start [1/16] (narrow) %v14786_v55, 8  ;;  %v24898_v49 = vld [vmem:[#allocation119_spill] sm:$0xff]  ;;  %v24900_v8 = vld [vmem:[#allocation129_spill] sm:$0xff] }
 0x72b   : > { %v14788_v62 = vcombine.low %v10072_v18, %v10073_v10  ;;  %v13361_v54 = vrot.slane %v24888_v25, %v24329_v32  ;;  %v13806_v11 = vsel %vm948_vm6, %v24891_v48, %v24890_v45  ;;  %v24892_v63 = vrot.slane %v24887_v6, %v24329_v32  ;;  %v24902_v6 = vld [vmem:[#allocation123_spill] sm:$0xff] }
 0x72c   : > { %v14528_v15 = vcombine.low %v14520_v0, %v14527_v14  ;;  %v24895_v56 = vcombine.high %v24891_v48, %v24891_v48  ;;  %v24897_v36 = vrot.slane %v24896_v47, %v24329_v32  ;;  %v14795_v60 = vrot.slane %v14787_v1, %v18134_v37  ;;  %v24903_v33 = vld [vmem:[#allocation131_spill] sm:$0xff] }
 0x72d   : > { %v13807_v24 = vsel %vm948_vm6, %v24893_v35, %v24892_v63  ;;  %v14802_v18 = vrot.slane %v14788_v62, %v18134_v37  ;;  %v24899_v55 = vcombine.high %v24893_v35, %v24893_v35  ;;  %v24901_v10 = vrot.slane %v24900_v8, %v24329_v32  ;;  %v24905_v62 = vld [vmem:[#allocation132_spill] sm:$0xff]  ;;  %v24914_v8 = vld [vmem:[#allocation130_spill] sm:$0xff] }
 0x72e   : > { %v13808_v50 = vsel %vm948_vm6, %v24895_v56, %v24894_v21  ;;  %v10098_v39 = vsel %vm948_vm6, %v24898_v49, %v24897_v36  ;;  %v14529_v14 = vcombine.low %v13806_v11, %v13807_v24  ;;  %v24904_v45 = vcombine.high %v24898_v49, %v24898_v49  ;;  %14624 = vxpose.xlu1.b32.cont [15/16] (narrow) %v14528_v15, 8 }
 0x72f   : > { %v13809_v0 = vsel %vm948_vm6, %v24899_v55, %v13361_v54  ;;  %v10099_v25 = vsel %vm948_vm6, %v24902_v6, %v24901_v10  ;;  %v24906_v48 = vcombine.high %v24902_v6, %v24902_v6  ;;  %v14803_v11 = vcombine.low %v14795_v60, %v14802_v18  ;;  %v24916_v6 = vld [vmem:[#allocation125_spill] sm:$0xff] }
 0x730   : > { %v14530_v44 = vcombine.low %v13808_v50, %v13809_v0  ;;  %v10100_v1 = vsel %vm948_vm6, %v24904_v45, %v24903_v33  ;;  %v14537_v63 = vrot.slane %v14529_v14, %v18134_v37  ;;  %v15042_v35 = vcombine.low %v10098_v39, %v10099_v25  ;;  %v24911_v14 = vld [vmem:[#allocation128_spill] sm:$0xff]  ;;  %v24917_v45 = vld [vmem:[#allocation133_spill] sm:$0xff] }
 0x731   : > { %v10101_v54 = vsel %vm948_vm6, %v24906_v48, %v24905_v62  ;;  %v24907_v56 = vrot.slane %v22123_v31, %v24329_v32  ;;  %v24908_v47 = vrot.slane %v22144_v41, %v24329_v32  ;;  %v24909_v15 = vcombine.high %v22068_v34, %v22068_v34  ;;  %15347 = vxpose.xlu0.b32.cont [2/16] (narrow) %v14803_v11, 8  ;;  %v24919_v62 = vld [vmem:[#allocation136_spill] sm:$0xff] }
 0x732   : > { %v15043_v24 = vcombine.low %v10100_v1, %v10101_v54  ;;  %v14544_v21 = vrot.slane %v14530_v44, %v18134_v37  ;;  %v15050_v39 = vrot.slane %v15042_v35, %v18134_v37  ;;  %v24910_v60 = vcombine.high %v22095_v29, %v22095_v29 }
 0x733   : > { %v13810_v50 = vsel %vm948_vm6, %v22068_v34, %v24907_v56  ;;  %v13811_v36 = vsel %vm948_vm6, %v22095_v29, %v24908_v47  ;;  %v13812_v49 = vsel %vm948_vm6, %v24909_v15, %v22162_v20  ;;  %v24912_v44 = vrot.slane %v24911_v14, %v24329_v32  ;;  %v24913_v34 = vld [vmem:[#allocation121_spill] sm:$0xff]  ;;  %v24923_v47 = vld [vmem:[#allocation234_spill] sm:$0xff] }
 0x734   : > { %v15057_v31 = vrot.slane %v15043_v24, %v18134_v37  ;;  %v13813_v41 = vsel %vm948_vm6, %v24910_v60, %v22171_v22  ;;  %v14804_v18 = vcombine.low %v13810_v50, %v13811_v36  ;;  %v14545_v55 = vcombine.low %v14537_v63, %v14544_v21 }
 0x735   : > { %v14805_v0 = vcombine.low %v13812_v49, %v13813_v41  ;;  %v10102_v20 = vsel %vm948_vm6, %v24913_v34, %v24912_v44  ;;  %v24915_v10 = vrot.slane %v24914_v8, %v24329_v32  ;;  %v24918_v22 = vcombine.high %v24913_v34, %v24913_v34  ;;  %v24925_v49 = vld [vmem:[#allocation235_spill] sm:$0xff]  ;;  %v24929_v41 = vld [vmem:[#allocation61_spill] sm:$0xff]  ;;  %v24933_v8 = vld [vmem:[#allocation72_spill] sm:$0xff] }
 0x736   : > { %v15058_v33 = vcombine.low %v15050_v39, %v15057_v31  ;;  %v14812_v29 = vrot.slane %v14804_v18, %v18134_v37  ;;  %v24920_v48 = vcombine.high %v24916_v6, %v24916_v6  ;;  %14625 = vxpose.xlu1.b32.end [16/16] (narrow) %v14545_v55, 8  ;;  %v24921_v24 = vrot.slane %v22141_v12, %v24329_v32  ;;  %v24927_v31 = vld [vmem:[#allocation67_spill] sm:$0xff]  ;;  %v24930_v44 = vld [vmem:[#allocation69_spill] sm:$0xff] }
 0x737   : > { %v10103_v25 = vsel %vm948_vm6, %v24916_v6, %v24915_v10  ;;  %v10104_v1 = vsel %vm948_vm6, %v24918_v22, %v24917_v45  ;;  %v14819_v11 = vrot.slane %v14805_v0, %v18134_v37  ;;  %v24922_v56 = vrot.slane %v22153_v53, %v24329_v32 }
 0x738   : > { %v10105_v54 = vsel %vm948_vm6, %v24920_v48, %v24919_v62  ;;  %v15059_v63 = vcombine.low %v10102_v20, %v10103_v25  ;;  %v13814_v21 = vsel %vm948_vm6, %v22085_v4, %v24921_v24  ;;  %v24924_v36 = vcombine.high %v22085_v4, %v22085_v4  ;;  %v24932_v20 = vld [vmem:[#allocation65_spill] sm:$0xff]  ;;  %v24935_v25 = vld [vmem:[#allocation74_spill] sm:$0xff] }
 0x739   : > { %v15060_v35 = vcombine.low %v10104_v1, %v10105_v54  ;;  %v13815_v50 = vsel %vm948_vm6, %v22105_v27, %v24922_v56  ;;  %v24926_v39 = vcombine.high %v22105_v27, %v22105_v27  ;;  %v24928_v60 = vrot.slane %v24927_v31, %v24329_v32 }
 0x73a   : > { %v13816_v15 = vsel %vm948_vm6, %v24924_v36, %v24923_v47  ;;  %v14820_v18 = vcombine.low %v14812_v29, %v14819_v11  ;;  %v15067_v55 = vrot.slane %v15059_v63, %v18134_v37  ;;  %v14821_v4 = vcombine.low %v13814_v21, %v13815_v50  ;;  %15378 = vxpose.xlu1.b32.start [1/16] (narrow) %v15058_v33, 8 }
 0x73b   : > { %v13817_v12 = vsel %vm948_vm6, %v24926_v39, %v24925_v49  ;;  %v10074_v53 = vsel %vm948_vm6, %v24929_v41, %v24928_v60  ;;  %v15074_v0 = vrot.slane %v15060_v35, %v18134_v37  ;;  %v24931_v34 = vrot.slane %v24930_v44, %v24329_v32  ;;  %v24941_v49 = vld [vmem:[#allocation68_spill] sm:$0xff] }
 0x73c   : > { %v14822_v14 = vcombine.low %v13816_v15, %v13817_v12  ;;  %v24934_v10 = vcombine.high %v24929_v41, %v24929_v41  ;;  %v24936_v29 = vcombine.high %v24932_v20, %v24932_v20  ;;  %15348 = vxpose.xlu0.b32.cont [3/16] (narrow) %v14820_v18, 8  ;;  %v14829_v1 = vrot.slane %v14821_v4, %v18134_v37  ;;  %v24943_v12 = vld [vmem:[#allocation63_spill] sm:$0xff] }
 0x73d   : > { %v10075_v27 = vsel %vm948_vm6, %v24932_v20, %v24931_v34  ;;  %v15075_v22 = vcombine.low %v15067_v55, %v15074_v0  ;;  %v24937_v11 = vrot.slane %v22465_v30, %v24329_v32  ;;  %v24938_v35 = vrot.slane %v22486_v13, %v24329_v32  ;;  %v24947_v41 = vld [vmem:[#allocation75_spill] sm:$0xff]  ;;  %v24949_v55 = vld [vmem:[#allocation78_spill] sm:$0xff] }
 0x73e   : > { %v10076_v6 = vsel %vm948_vm6, %v24934_v10, %v24933_v8  ;;  %v10077_v45 = vsel %vm948_vm6, %v24936_v29, %v24935_v25  ;;  %v14838_v62 = vcombine.low %v10074_v53, %v10075_v27  ;;  %v14836_v48 = vrot.slane %v14822_v14, %v18134_v37 }
 0x73f   : > { %v14839_v54 = vcombine.low %v10076_v6, %v10077_v45  ;;  %v13842_v63 = vsel %vm948_vm6, %v22393_v58, %v24937_v11  ;;  %v13843_v33 = vsel %vm948_vm6, %v22413_v52, %v24938_v35  ;;  %v24939_v21 = vcombine.high %v22393_v58, %v22393_v58  ;;  %15379 = vxpose.xlu1.b32.cont [2/16] (narrow) %v15075_v22, 8 }
 0x740   : > { %v14846_v24 = vrot.slane %v14838_v62, %v18134_v37  ;;  %v24940_v30 = vcombine.high %v22413_v52, %v22413_v52  ;;  %v15076_v47 = vcombine.low %v13842_v63, %v13843_v33  ;;  %v14837_v36 = vcombine.low %v14829_v1, %v14836_v48  ;;  %v24946_v52 = vld [vmem:[#allocation66_spill] sm:$0xff]  ;;  %v24960_v33 = vld [vmem:[#allocation223_spill] sm:$0xff] }
 0x741   : > { %v13844_v56 = vsel %vm948_vm6, %v24939_v21, %v22509_v26  ;;  %v14853_v13 = vrot.slane %v14839_v54, %v18134_v37  ;;  %v24942_v39 = vrot.slane %v24941_v49, %v24329_v32  ;;  %v24944_v26 = vld [vmem:[#allocation71_spill] sm:$0xff]  ;;  %v24948_v53 = vcombine.high %v24943_v12, %v24943_v12  ;;  %v24955_v54 = vld [vmem:[#allocation226_spill] sm:$0xff] }
 0x742   : > { %v13845_v50 = vsel %vm948_vm6, %v24940_v30, %v22516_v51  ;;  %v15084_v58 = vrot.slane %v15076_v47, %v18134_v37  ;;  %v24945_v60 = vrot.slane %v24944_v26, %v24329_v32  ;;  %v24950_v0 = vcombine.high %v24946_v52, %v24946_v52  ;;  %15349 = vxpose.xlu0.b32.cont [4/16] (narrow) %v14837_v36, 8  ;;  %v24957_v63 = vld [vmem:[#allocation218_spill] sm:$0xff]  ;;  %v24968_v26 = vld [vmem:[#allocation117_spill] sm:$0xff] }
 0x743   : > { %v15077_v15 = vcombine.low %v13844_v56, %v13845_v50  ;;  %v10078_v31 = vsel %vm948_vm6, %v24943_v12, %v24942_v39  ;;  %v10080_v18 = vsel %vm948_vm6, %v24948_v53, %v24947_v41  ;;  %v14854_v14 = vcombine.low %v14846_v24, %v14853_v13  ;;  %v24963_v50 = vld [vmem:[#allocation232_spill] sm:$0xff]  ;;  %v24965_v39 = vld [vmem:[#allocation115_spill] sm:$0xff] }
 0x744   : > { %v10079_v51 = vsel %vm948_vm6, %v24946_v52, %v24945_v60  ;;  %v10081_v4 = vsel %vm948_vm6, %v24950_v0, %v24949_v55  ;;  %v24951_v27 = vrot.slane %v22483_v7, %v24329_v32  ;;  %v24952_v10 = vrot.slane %v22500_v2, %v24329_v32  ;;  %v24970_v52 = vld [vmem:[#allocation113_spill] sm:$0xff]  ;;  %v24971_v41 = vld [vmem:[#allocation120_spill] sm:$0xff] }
 0x745   : > { %v15091_v44 = vrot.slane %v15077_v15, %v18134_v37  ;;  %v14855_v34 = vcombine.low %v10078_v31, %v10079_v51  ;;  %v14856_v20 = vcombine.low %v10080_v18, %v10081_v4  ;;  %v24953_v25 = vcombine.high %v22410_v46, %v22410_v46  ;;  %v24967_v31 = vld [vmem:[#allocation111_spill] sm:$0xff]  ;;  %v24973_v55 = vld [vmem:[#allocation124_spill] sm:$0xff] }
 0x746   : > { %v13846_v8 = vsel %vm948_vm6, %v22410_v46, %v24951_v27  ;;  %v13847_v6 = vsel %vm948_vm6, %v22426_v59, %v24952_v10  ;;  %v24954_v45 = vcombine.high %v22426_v59, %v22426_v59  ;;  %v24956_v11 = vrot.slane %v24955_v54, %v24329_v32  ;;  %15350 = vxpose.xlu0.b32.cont [5/16] (narrow) %v14854_v14, 8  ;;  %v24975_v14 = vld [vmem:[#allocation227_spill] sm:$0xff] }
 0x747   : > { %v13848_v29 = vsel %vm948_vm6, %v24953_v25, %v22521_v42  ;;  %v15092_v22 = vcombine.low %v15084_v58, %v15091_v44  ;;  %v14863_v1 = vrot.slane %v14855_v34, %v18134_v37  ;;  %v14870_v2 = vrot.slane %v14856_v20, %v18134_v37  ;;  %v24958_v42 = vld [vmem:[#allocation228_spill] sm:$0xff] }
 0x748   : > { %v13849_v7 = vsel %vm948_vm6, %v24954_v45, %v22529_v17  ;;  %v15093_v62 = vcombine.low %v13846_v8, %v13847_v6  ;;  %v13818_v46 = vsel %vm948_vm6, %v24957_v63, %v24956_v11  ;;  %v24959_v35 = vrot.slane %v24958_v42, %v24329_v32  ;;  %v24961_v17 = vld [vmem:[#allocation230_spill] sm:$0xff]  ;;  %v24977_v34 = vld [vmem:[#allocation220_spill] sm:$0xff] }
 0x749   : > { %v15094_v48 = vcombine.low %v13848_v29, %v13849_v7  ;;  %v24962_v24 = vcombine.high %v24957_v63, %v24957_v63  ;;  %15380 = vxpose.xlu1.b32.cont [3/16] (narrow) %v15092_v22, 8  ;;  %v14871_v56 = vcombine.low %v14863_v1, %v14870_v2  ;;  %v24964_v47 = vcombine.high %v24960_v33, %v24960_v33  ;;  %v24978_v29 = vld [vmem:[#allocation229_spill] sm:$0xff]  ;;  %v24980_v7 = vld [vmem:[#allocation224_spill] sm:$0xff]  ;;  %v24981_v1 = vld [vmem:[#allocation231_spill] sm:$0xff] }
 0x74a   : > { %v13819_v59 = vsel %vm948_vm6, %v24960_v33, %v24959_v35  ;;  %v15101_v30 = vrot.slane %v15093_v62, %v18134_v37  ;;  %v24966_v12 = vrot.slane %v24965_v39, %v24329_v32  ;;  %v24969_v60 = vrot.slane %v24968_v26, %v24329_v32 }
 0x74b   : > { %v13820_v21 = vsel %vm948_vm6, %v24962_v24, %v24961_v17  ;;  %v13821_v36 = vsel %vm948_vm6, %v24964_v47, %v24963_v50  ;;  %v15108_v13 = vrot.slane %v15094_v48, %v18134_v37  ;;  %v14872_v15 = vcombine.low %v13818_v46, %v13819_v59  ;;  %15351 = vxpose.xlu0.b32.cont [6/16] (narrow) %v14871_v56, 8  ;;  %v24983_v48 = vld [vmem:[#allocation233_spill] sm:$0xff]  ;;  %v24985_v59 = vld [vmem:[#allocation116_spill] sm:$0xff]  ;;  %v24988_v56 = vld [vmem:[#allocation118_spill] sm:$0xff] }
 0x74c   : > { %v14873_v49 = vcombine.low %v13820_v21, %v13821_v36  ;;  %v10106_v58 = vsel %vm948_vm6, %v24967_v31, %v24966_v12  ;;  %v10107_v51 = vsel %vm948_vm6, %v24970_v52, %v24969_v60  ;;  %v24972_v53 = vcombine.high %v24967_v31, %v24967_v31  ;;  %v24987_v24 = vld [vmem:[#allocation112_spill] sm:$0xff]  ;;  %v24990_v50 = vld [vmem:[#allocation114_spill] sm:$0xff] }
 0x74d   : > { %v24974_v0 = vcombine.high %v24970_v52, %v24970_v52  ;;  %v24976_v44 = vrot.slane %v24975_v14, %v24329_v32  ;;  %v15109_v27 = vcombine.low %v15101_v30, %v15108_v13  ;;  %v14880_v8 = vrot.slane %v14872_v15, %v18134_v37  ;;  %v24991_v36 = vld [vmem:[#allocation122_spill] sm:$0xff] }
 0x74e   : > { %v10108_v18 = vsel %vm948_vm6, %v24972_v53, %v24971_v41  ;;  %v14887_v10 = vrot.slane %v14873_v49, %v18134_v37  ;;  %v15110_v6 = vcombine.low %v10106_v58, %v10107_v51  ;;  %v24979_v45 = vrot.slane %v24978_v29, %v24329_v32  ;;  %v24993_v12 = vld [vmem:[#allocation126_spill] sm:$0xff]  ;;  %v24995_v51 = vld [vmem:[#allocation103_spill] sm:$0xff] }
 0x74f   : > { %v10109_v4 = vsel %vm948_vm6, %v24974_v0, %v24973_v55  ;;  %v13822_v20 = vsel %vm948_vm6, %v24977_v34, %v24976_v44  ;;  %v24982_v2 = vcombine.high %v24977_v34, %v24977_v34  ;;  %v24984_v54 = vcombine.high %v24980_v7, %v24980_v7  ;;  %15381 = vxpose.xlu1.b32.cont [4/16] (narrow) %v15109_v27, 8  ;;  %v24997_v53 = vld [vmem:[#allocation94_spill] sm:$0xff]  ;;  %v24998_v55 = vld [vmem:[#allocation105_spill] sm:$0xff] }
 0x750   : > { %v15111_v25 = vcombine.low %v10108_v18, %v10109_v4  ;;  %v13823_v22 = vsel %vm948_vm6, %v24980_v7, %v24979_v45  ;;  %v14888_v63 = vcombine.low %v14880_v8, %v14887_v10  ;;  %v15118_v46 = vrot.slane %v15110_v6, %v18134_v37  ;;  %v25000_v4 = vld [vmem:[#allocation98_spill] sm:$0xff]  ;;  %v25003_v10 = vld [vmem:[#allocation109_spill] sm:$0xff] }
 0x751   : > { %v13824_v62 = vsel %vm948_vm6, %v24982_v2, %v24981_v1  ;;  %v13825_v11 = vsel %vm948_vm6, %v24984_v54, %v24983_v48  ;;  %v14889_v42 = vcombine.low %v13822_v20, %v13823_v22  ;;  %v24986_v17 = vrot.slane %v24985_v59, %v24329_v32  ;;  %v25001_v20 = vld [vmem:[#allocation107_spill] sm:$0xff] }
 0x752   : > { %v14890_v35 = vcombine.low %v13824_v62, %v13825_v11  ;;  %v15125_v33 = vrot.slane %v15111_v25, %v18134_v37  ;;  %v24989_v30 = vrot.slane %v24988_v56, %v24329_v32  ;;  %v24992_v13 = vcombine.high %v24987_v24, %v24987_v24  ;;  %15352 = vxpose.xlu0.b32.cont [7/16] (narrow) %v14888_v63, 8  ;;  %v25009_v63 = vld [vmem:[#allocation104_spill] sm:$0xff] }
 0x753   : > { %v10110_v21 = vsel %vm948_vm6, %v24987_v24, %v24986_v17  ;;  %v14897_v49 = vrot.slane %v14889_v42, %v18134_v37  ;;  %v24994_v31 = vcombine.high %v24990_v50, %v24990_v50  ;;  %v24996_v41 = vrot.slane %v24995_v51, %v24329_v32  ;;  %v25011_v42 = vld [vmem:[#allocation97_spill] sm:$0xff]  ;;  %v25012_v17 = vld [vmem:[#allocation106_spill] sm:$0xff] }
 0x754   : > { %v10111_v47 = vsel %vm948_vm6, %v24990_v50, %v24989_v30  ;;  %v10112_v15 = vsel %vm948_vm6, %v24992_v13, %v24991_v36  ;;  %v14904_v39 = vrot.slane %v14890_v35, %v18134_v37  ;;  %v15126_v60 = vcombine.low %v15118_v46, %v15125_v33  ;;  %v25017_v50 = vld [vmem:[#allocation110_spill] sm:$0xff] }
 0x755   : > { %v10113_v58 = vsel %vm948_vm6, %v24994_v31, %v24993_v12  ;;  %v15127_v26 = vcombine.low %v10110_v21, %v10111_v47  ;;  %v10082_v18 = vsel %vm948_vm6, %v24997_v53, %v24996_v41  ;;  %v24999_v0 = vrot.slane %v24998_v55, %v24329_v32  ;;  %v25015_v21 = vld [vmem:[#allocation108_spill] sm:$0xff] }
 0x756   : > { %v15128_v52 = vcombine.low %v10112_v15, %v10113_v58  ;;  %v14905_v44 = vcombine.low %v14897_v49, %v14904_v39  ;;  %v25002_v27 = vcombine.high %v24997_v53, %v24997_v53  ;;  %v25004_v6 = vcombine.high %v25000_v4, %v25000_v4  ;;  %15382 = vxpose.xlu1.b32.cont [5/16] (narrow) %v15126_v60, 8  ;;  %v25022_v53 = vld [vmem:[#allocation260_spill] sm:$0xff] }
 0x757   : > { %v10083_v14 = vsel %vm948_vm6, %v25000_v4, %v24999_v0  ;;  %v15135_v34 = vrot.slane %v15127_v26, %v18134_v37  ;;  %v25005_v22 = vrot.slane %v22373_v43, %v24329_v32  ;;  %v25006_v2 = vrot.slane %v22386_v28, %v24329_v32 }
 0x758   : > { %v10084_v8 = vsel %vm948_vm6, %v25002_v27, %v25001_v20  ;;  %v10085_v25 = vsel %vm948_vm6, %v25004_v6, %v25003_v10  ;;  %v15142_v29 = vrot.slane %v15128_v52, %v18134_v37  ;;  %v14906_v45 = vcombine.low %v10082_v18, %v10083_v14  ;;  %15353 = vxpose.xlu0.b32.cont [8/16] (narrow) %v14905_v44, 8  ;;  %v25024_v14 = vld [vmem:[#allocation252_spill] sm:$0xff]  ;;  %v25029_v27 = vld [vmem:[#allocation249_spill] sm:$0xff] }
 0x759   : > { %v14907_v7 = vcombine.low %v10084_v8, %v10085_v25  ;;  %v13850_v1 = vsel %vm948_vm6, %v22347_v3, %v25005_v22  ;;  %v13851_v62 = vsel %vm948_vm6, %v22360_v19, %v25006_v2  ;;  %v25007_v48 = vcombine.high %v22347_v3, %v22347_v3  ;;  %v25030_v6 = vld [vmem:[#allocation256_spill] sm:$0xff] }
 0x75a   : > { %v25008_v11 = vcombine.high %v22360_v19, %v22360_v19  ;;  %v25010_v46 = vrot.slane %v25009_v63, %v24329_v32  ;;  %v15143_v35 = vcombine.low %v15135_v34, %v15142_v29  ;;  %v14914_v33 = vrot.slane %v14906_v45, %v18134_v37  ;;  %v25014_v19 = vld [vmem:[#allocation101_spill] sm:$0xff]  ;;  %v25027_v34 = vld [vmem:[#allocation254_spill] sm:$0xff] }
 0x75b   : > { %v13852_v54 = vsel %vm948_vm6, %v25007_v48, %v22405_v23  ;;  %v14921_v3 = vrot.slane %v14907_v7, %v18134_v37  ;;  %v15144_v59 = vcombine.low %v13850_v1, %v13851_v62  ;;  %v25013_v24 = vrot.slane %v25012_v17, %v24329_v32  ;;  %v25032_v45 = vld [vmem:[#allocation257_spill] sm:$0xff]  ;;  %v25034_v48 = vld [vmem:[#allocation151_spill] sm:$0xff] }
 0x75c   : > { %v13853_v43 = vsel %vm948_vm6, %v25008_v11, %v22418_v38  ;;  %v10086_v28 = vsel %vm948_vm6, %v25011_v42, %v25010_v46  ;;  %v25016_v56 = vcombine.high %v25011_v42, %v25011_v42  ;;  %v25018_v47 = vcombine.high %v25014_v19, %v25014_v19  ;;  %15383 = vxpose.xlu1.b32.cont [6/16] (narrow) %v15143_v35, 8  ;;  %v25036_v11 = vld [vmem:[#allocation142_spill] sm:$0xff]  ;;  %v25037_v63 = vld [vmem:[#allocation153_spill] sm:$0xff]  ;;  %v25040_v35 = vld [vmem:[#allocation155_spill] sm:$0xff] }
 0x75d   : > { %v15145_v23 = vcombine.low %v13852_v54, %v13853_v43  ;;  %v10087_v38 = vsel %vm948_vm6, %v25014_v19, %v25013_v24  ;;  %v14922_v13 = vcombine.low %v14914_v33, %v14921_v3  ;;  %v15152_v15 = vrot.slane %v15144_v59, %v18134_v37  ;;  %v25039_v42 = vld [vmem:[#allocation146_spill] sm:$0xff]  ;;  %v25042_v59 = vld [vmem:[#allocation157_spill] sm:$0xff] }
 0x75e   : > { %v10088_v30 = vsel %vm948_vm6, %v25016_v56, %v25015_v21  ;;  %v10089_v36 = vsel %vm948_vm6, %v25018_v47, %v25017_v50  ;;  %v14923_v49 = vcombine.low %v10086_v28, %v10087_v38  ;;  %v25019_v31 = vrot.slane %v22383_v40, %v24329_v32  ;;  %v25044_v24 = vld [vmem:[#allocation253_spill] sm:$0xff]  ;;  %v25046_v38 = vld [vmem:[#allocation248_spill] sm:$0xff] }
 0x75f   : > { %v14924_v39 = vcombine.low %v10088_v30, %v10089_v36  ;;  %v15159_v12 = vrot.slane %v15145_v23, %v18134_v37  ;;  %v25020_v26 = vrot.slane %v22396_v9, %v24329_v32  ;;  %v25021_v52 = vcombine.high %v22353_v61, %v22353_v61  ;;  %15354 = vxpose.xlu0.b32.cont [9/16] (narrow) %v14922_v13, 8  ;;  %v25047_v13 = vld [vmem:[#allocation255_spill] sm:$0xff] }
 0x760   : > { %v13854_v58 = vsel %vm948_vm6, %v22353_v61, %v25019_v31  ;;  %v14931_v41 = vrot.slane %v14923_v49, %v18134_v37  ;;  %v25023_v18 = vcombine.high %v22363_v5, %v22363_v5  ;;  %v25025_v44 = vrot.slane %v25024_v14, %v24329_v32  ;;  %v25026_v61 = vld [vmem:[#allocation245_spill] sm:$0xff]  ;;  %v25049_v49 = vld [vmem:[#allocation250_spill] sm:$0xff] }
 0x761   : > { %v13855_v60 = vsel %vm948_vm6, %v22363_v5, %v25020_v26  ;;  %v13856_v51 = vsel %vm948_vm6, %v25021_v52, %v22423_v16  ;;  %v14938_v40 = vrot.slane %v14924_v39, %v18134_v37  ;;  %v15160_v0 = vcombine.low %v15152_v15, %v15159_v12  ;;  %v25050_v12 = vld [vmem:[#allocation258_spill] sm:$0xff]  ;;  %v25052_v26 = vld [vmem:[#allocation259_spill] sm:$0xff] }
 0x762   : > { %v13857_v9 = vsel %vm948_vm6, %v25023_v18, %v25022_v53  ;;  %v15161_v55 = vcombine.low %v13854_v58, %v13855_v60  ;;  %v13826_v16 = vsel %vm948_vm6, %v25026_v61, %v25025_v44  ;;  %v25028_v20 = vrot.slane %v25027_v34, %v24329_v32  ;;  %v25057_v14 = vld [vmem:[#allocation154_spill] sm:$0xff]  ;;  %v25060_v34 = vld [vmem:[#allocation156_spill] sm:$0xff] }
 0x763   : > { %v15162_v4 = vcombine.low %v13856_v51, %v13857_v9  ;;  %v14939_v10 = vcombine.low %v14931_v41, %v14938_v40  ;;  %v25031_v25 = vcombine.high %v25026_v61, %v25026_v61  ;;  %v25033_v7 = vcombine.high %v25029_v27, %v25029_v27  ;;  %15384 = vxpose.xlu1.b32.cont [7/16] (narrow) %v15160_v0, 8  ;;  %v25054_v9 = vld [vmem:[#allocation152_spill] sm:$0xff]  ;;  %v25056_v0 = vld [vmem:[#allocation145_spill] sm:$0xff] }
 0x764   : > { %v13827_v8 = vsel %vm948_vm6, %v25029_v27, %v25028_v20  ;;  %v15169_v5 = vrot.slane %v15161_v55, %v18134_v37  ;;  %v25035_v54 = vrot.slane %v25034_v48, %v24329_v32  ;;  %v25038_v46 = vrot.slane %v25037_v63, %v24329_v32  ;;  %v25059_v61 = vld [vmem:[#allocation149_spill] sm:$0xff] }
 0x765   : > { %v13828_v29 = vsel %vm948_vm6, %v25031_v25, %v25030_v6  ;;  %v13829_v22 = vsel %vm948_vm6, %v25033_v7, %v25032_v45  ;;  %v15176_v1 = vrot.slane %v15162_v4, %v18134_v37  ;;  %v14940_v2 = vcombine.low %v13826_v16, %v13827_v8  ;;  %15355 = vxpose.xlu0.b32.cont [10/16] (narrow) %v14939_v10, 8  ;;  %v25067_v48 = vld [vmem:[#allocation93_spill] sm:$0xff] }
 0x766   : > { %v14941_v62 = vcombine.low %v13828_v29, %v13829_v22  ;;  %v10114_v43 = vsel %vm948_vm6, %v25036_v11, %v25035_v54  ;;  %v10115_v28 = vsel %vm948_vm6, %v25039_v42, %v25038_v46  ;;  %v25041_v33 = vcombine.high %v25036_v11, %v25036_v11  ;;  %v25064_v22 = vld [vmem:[#allocation91_spill] sm:$0xff]  ;;  %v25069_v11 = vld [vmem:[#allocation89_spill] sm:$0xff] }
 0x767   : > { %v25043_v23 = vcombine.high %v25039_v42, %v25039_v42  ;;  %v25045_v19 = vrot.slane %v25044_v24, %v24329_v32  ;;  %v15177_v56 = vcombine.low %v15169_v5, %v15176_v1  ;;  %v14948_v30 = vrot.slane %v14940_v2, %v18134_v37  ;;  %v25062_v5 = vld [vmem:[#allocation158_spill] sm:$0xff]  ;;  %v25070_v42 = vld [vmem:[#allocation96_spill] sm:$0xff] }
 0x768   : > { %v10116_v3 = vsel %vm948_vm6, %v25041_v33, %v25040_v35  ;;  %v14955_v50 = vrot.slane %v14941_v62, %v18134_v37  ;;  %v15178_v47 = vcombine.low %v10114_v43, %v10115_v28  ;;  %v25048_v15 = vrot.slane %v25047_v13, %v24329_v32  ;;  %v25066_v2 = vld [vmem:[#allocation86_spill] sm:$0xff]  ;;  %v25072_v33 = vld [vmem:[#allocation99_spill] sm:$0xff] }
 0x769   : > { %v10117_v17 = vsel %vm948_vm6, %v25043_v23, %v25042_v59  ;;  %v13830_v21 = vsel %vm948_vm6, %v25046_v38, %v25045_v19  ;;  %v25051_v31 = vcombine.high %v25046_v38, %v25046_v38  ;;  %v25053_v60 = vcombine.high %v25049_v49, %v25049_v49  ;;  %15385 = vxpose.xlu1.b32.cont [8/16] (narrow) %v15177_v56, 8  ;;  %v25075_v38 = vld [vmem:[#allocation272_spill] sm:$0xff]  ;;  %v25076_v56 = vld [vmem:[#allocation7_spill] sm:$0xff] }
 0x76a   : > { %v15179_v36 = vcombine.low %v10116_v3, %v10117_v17  ;;  %v13831_v39 = vsel %vm948_vm6, %v25049_v49, %v25048_v15  ;;  %v14956_v51 = vcombine.low %v14948_v30, %v14955_v50  ;;  %v15186_v41 = vrot.slane %v15178_v47, %v18134_v37  ;;  %v25078_v50 = vld [vmem:[#allocation13_spill] sm:$0xff]  ;;  %v25081_v49 = vld [vmem:[#allocation276_spill] sm:$0xff] }
 0x76b   : > { %v13832_v58 = vsel %vm948_vm6, %v25051_v31, %v25050_v12  ;;  %v13833_v52 = vsel %vm948_vm6, %v25053_v60, %v25052_v26  ;;  %v14957_v40 = vcombine.low %v13830_v21, %v13831_v39  ;;  %v25055_v55 = vrot.slane %v25054_v9, %v24329_v32  ;;  %v25083_v12 = vld [vmem:[#allocation92_spill] sm:$0xff]  ;;  %v25088_v9 = vld [vmem:[#allocation90_spill] sm:$0xff] }
 0x76c   : > { %v14958_v53 = vcombine.low %v13832_v58, %v13833_v52  ;;  %v15193_v18 = vrot.slane %v15179_v36, %v18134_v37  ;;  %v25058_v44 = vrot.slane %v25057_v14, %v24329_v32  ;;  %v25061_v20 = vcombine.high %v25056_v0, %v25056_v0  ;;  %15356 = vxpose.xlu0.b32.cont [11/16] (narrow) %v14956_v51, 8  ;;  %v25079_v36 = vld [vmem:[#allocation275_spill] sm:$0xff] }
 0x76d   : > { %v10118_v4 = vsel %vm948_vm6, %v25056_v0, %v25055_v55  ;;  %v14965_v8 = vrot.slane %v14957_v40, %v18134_v37  ;;  %v25063_v6 = vcombine.high %v25059_v61, %v25059_v61  ;;  %v25065_v1 = vrot.slane %v25064_v22, %v24329_v32  ;;  %v25085_v58 = vld [vmem:[#allocation87_spill] sm:$0xff]  ;;  %v25089_v0 = vld [vmem:[#allocation100_spill] sm:$0xff] }
 0x76e   : > { %v10119_v16 = vsel %vm948_vm6, %v25059_v61, %v25058_v44  ;;  %v10120_v27 = vsel %vm948_vm6, %v25061_v20, %v25060_v34  ;;  %v14972_v10 = vrot.slane %v14958_v53, %v18134_v37  ;;  %v15194_v45 = vcombine.low %v15186_v41, %v15193_v18  ;;  %v25086_v53 = vld [vmem:[#allocation95_spill] sm:$0xff]  ;;  %v25091_v44 = vld [vmem:[#allocation102_spill] sm:$0xff]  ;;  %v25098_v22 = vld [vmem:[#allocation12_spill] sm:$0xff] }
 0x76f   : > { %v10121_v25 = vsel %vm948_vm6, %v25063_v6, %v25062_v5  ;;  %v15195_v29 = vcombine.low %v10118_v4, %v10119_v16  ;;  %v10090_v62 = vsel %vm948_vm6, %v25066_v2, %v25065_v1  ;;  %v25068_v54 = vrot.slane %v25067_v48, %v24329_v32  ;;  %v25093_v5 = vld [vmem:[#allocation4_spill] sm:$0xff] }
 0x770   : > { %v15196_v7 = vcombine.low %v10120_v27, %v10121_v25  ;;  %v14973_v63 = vcombine.low %v14965_v8, %v14972_v10  ;;  %v25071_v28 = vcombine.high %v25066_v2, %v25066_v2  ;;  %v25073_v3 = vcombine.high %v25069_v11, %v25069_v11  ;;  %15386 = vxpose.xlu1.b32.cont [9/16] (narrow) %v15194_v45, 8  ;;  %v25095_v25 = vld [vmem:[#allocation11_spill] sm:$0xff]  ;;  %v25096_v45 = vld [vmem:[#allocation274_spill] sm:$0xff]  ;;  %v25099_v2 = vld [vmem:[#allocation277_spill] sm:$0xff] }
 0x771   : > { %v10091_v43 = vsel %vm948_vm6, %v25069_v11, %v25068_v54  ;;  %v15203_v46 = vrot.slane %v15195_v29, %v18134_v37  ;;  %v25074_v19 = vrot.slane %v22629_v57, %v24329_v32  ;;  %v25077_v30 = vrot.slane %v25076_v56, %v24329_v32 }
 0x772   : > { %v10092_v35 = vsel %vm948_vm6, %v25071_v28, %v25070_v42  ;;  %v10093_v59 = vsel %vm948_vm6, %v25073_v3, %v25072_v33  ;;  %v15210_v23 = vrot.slane %v15196_v7, %v18134_v37  ;;  %v14974_v17 = vcombine.low %v10090_v62, %v10091_v43  ;;  %15357 = vxpose.xlu0.b32.cont [12/16] (narrow) %v14973_v63, 8  ;;  %v25101_v43 = vld [vmem:[#allocation278_spill] sm:$0xff] }
 0x773   : > { %v14975_v24 = vcombine.low %v10092_v35, %v10093_v59  ;;  %v13858_v21 = vsel %vm948_vm6, %v25075_v38, %v25074_v19  ;;  %v13859_v47 = vsel %vm948_vm6, %v25078_v50, %v25077_v30  ;;  %v25080_v13 = vcombine.high %v25075_v38, %v25075_v38  ;;  %v25103_v33 = vld [vmem:[#allocation238_spill] sm:$0xff]  ;;  %v25105_v59 = vld [vmem:[#allocation236_spill] sm:$0xff]  ;;  %v25108_v19 = vld [vmem:[#allocation239_spill] sm:$0xff] }
 0x774   : > { %v25082_v57 = vcombine.high %v25078_v50, %v25078_v50  ;;  %v25084_v31 = vrot.slane %v25083_v12, %v24329_v32  ;;  %v15211_v60 = vcombine.low %v15203_v46, %v15210_v23  ;;  %v14982_v52 = vrot.slane %v14974_v17, %v18134_v37  ;;  %v25106_v17 = vld [vmem:[#allocation242_spill] sm:$0xff]  ;;  %v25109_v30 = vld [vmem:[#allocation244_spill] sm:$0xff]  ;;  %v25113_v12 = vld [vmem:[#allocation139_spill] sm:$0xff] }
 0x775   : > { %v13860_v15 = vsel %vm948_vm6, %v25080_v13, %v25079_v36  ;;  %v14989_v51 = vrot.slane %v14975_v24, %v18134_v37  ;;  %v15212_v41 = vcombine.low %v13858_v21, %v13859_v47  ;;  %v25087_v18 = vrot.slane %v25086_v53, %v24329_v32  ;;  %v25111_v36 = vld [vmem:[#allocation246_spill] sm:$0xff] }
 0x776   : > { %v13861_v39 = vsel %vm948_vm6, %v25082_v57, %v25081_v49  ;;  %v10094_v26 = vsel %vm948_vm6, %v25085_v58, %v25084_v31  ;;  %v25090_v4 = vcombine.high %v25085_v58, %v25085_v58  ;;  %v25092_v61 = vcombine.high %v25088_v9, %v25088_v9  ;;  %15387 = vxpose.xlu1.b32.cont [10/16] (narrow) %v15211_v60, 8  ;;  %v25115_v58 = vld [vmem:[#allocation134_spill] sm:$0xff]  ;;  %v25116_v60 = vld [vmem:[#allocation141_spill] sm:$0xff] }
 0x777   : > { %v15213_v40 = vcombine.low %v13860_v15, %v13861_v39  ;;  %v10095_v55 = vsel %vm948_vm6, %v25088_v9, %v25087_v18  ;;  %v14990_v34 = vcombine.low %v14982_v52, %v14989_v51  ;;  %v15220_v20 = vrot.slane %v15212_v41, %v18134_v37  ;;  %v25118_v51 = vld [vmem:[#allocation137_spill] sm:$0xff]  ;;  %v25121_v9 = vld [vmem:[#allocation147_spill] sm:$0xff] }
 0x778   : > { %v10096_v14 = vsel %vm948_vm6, %v25090_v4, %v25089_v0  ;;  %v10097_v16 = vsel %vm948_vm6, %v25092_v61, %v25091_v44  ;;  %v14991_v27 = vcombine.low %v10094_v26, %v10095_v55  ;;  %v25094_v6 = vrot.slane %v25093_v5, %v24329_v32  ;;  %v25123_v4 = vld [vmem:[#allocation241_spill] sm:$0xff] }
 0x779   : > { %v14992_v8 = vcombine.low %v10096_v14, %v10097_v16  ;;  %v15227_v10 = vrot.slane %v15213_v40, %v18134_v37  ;;  %v25097_v7 = vrot.slane %v25096_v45, %v24329_v32  ;;  %v25100_v62 = vcombine.high %v25095_v25, %v25095_v25  ;;  %15358 = vxpose.xlu0.b32.cont [13/16] (narrow) %v14990_v34, 8  ;;  %v25119_v40 = vld [vmem:[#allocation144_spill] sm:$0xff]  ;;  %v25125_v44 = vld [vmem:[#allocation237_spill] sm:$0xff] }
 0x77a   : > { %v13862_v29 = vsel %vm948_vm6, %v25095_v25, %v25094_v6  ;;  %v14999_v54 = vrot.slane %v14991_v27, %v18134_v37  ;;  %v25102_v63 = vcombine.high %v25098_v22, %v25098_v22  ;;  %v25104_v3 = vrot.slane %v25103_v33, %v24329_v32  ;;  %v25128_v6 = vld [vmem:[#allocation240_spill] sm:$0xff] }
 0x77b   : > { %v13863_v1 = vsel %vm948_vm6, %v25098_v22, %v25097_v7  ;;  %v13864_v48 = vsel %vm948_vm6, %v25100_v62, %v25099_v2  ;;  %v15006_v11 = vrot.slane %v14992_v8, %v18134_v37  ;;  %v15228_v28 = vcombine.low %v15220_v20, %v15227_v10  ;;  %v25126_v10 = vld [vmem:[#allocation243_spill] sm:$0xff] }
 0x77c   : > { %v13865_v46 = vsel %vm948_vm6, %v25102_v63, %v25101_v43  ;;  %v15229_v42 = vcombine.low %v13862_v29, %v13863_v1  ;;  %v13834_v23 = vsel %vm948_vm6, %v25105_v59, %v25104_v3  ;;  %v25107_v24 = vrot.slane %v25106_v17, %v24329_v32  ;;  %v25129_v29 = vld [vmem:[#allocation247_spill] sm:$0xff]  ;;  %v25133_v63 = vld [vmem:[#allocation140_spill] sm:$0xff]  ;;  %v25138_v3 = vld [vmem:[#allocation138_spill] sm:$0xff] }
 0x77d   : > { %v15230_v35 = vcombine.low %v13864_v48, %v13865_v46  ;;  %v15007_v21 = vcombine.low %v14999_v54, %v15006_v11  ;;  %v25110_v50 = vcombine.high %v25105_v59, %v25105_v59  ;;  %v25112_v13 = vcombine.high %v25108_v19, %v25108_v19  ;;  %15388 = vxpose.xlu1.b32.cont [11/16] (narrow) %v15228_v28, 8  ;;  %v25131_v22 = vld [vmem:[#allocation251_spill] sm:$0xff] }
 0x77e   : > { %v13835_v38 = vsel %vm948_vm6, %v25108_v19, %v25107_v24  ;;  %v15237_v56 = vrot.slane %v15229_v42, %v18134_v37  ;;  %v25114_v31 = vrot.slane %v25113_v12, %v24329_v32  ;;  %v25117_v52 = vrot.slane %v25116_v60, %v24329_v32  ;;  %v25135_v42 = vld [vmem:[#allocation135_spill] sm:$0xff] }
 0x77f   : > { %v13836_v47 = vsel %vm948_vm6, %v25110_v50, %v25109_v30  ;;  %v13837_v15 = vsel %vm948_vm6, %v25112_v13, %v25111_v36  ;;  %v15244_v49 = vrot.slane %v15230_v35, %v18134_v37  ;;  %v15008_v57 = vcombine.low %v13834_v23, %v13835_v38  ;;  %15359 = vxpose.xlu0.b32.cont [14/16] (narrow) %v15007_v21, 8  ;;  %v25136_v35 = vld [vmem:[#allocation143_spill] sm:$0xff]  ;;  %v25139_v23 = vld [vmem:[#allocation148_spill] sm:$0xff]  ;;  %v25141_v21 = vld [vmem:[#allocation150_spill] sm:$0xff] }
 0x780   : > { %v15009_v39 = vcombine.low %v13836_v47, %v13837_v15  ;;  %v10122_v26 = vsel %vm948_vm6, %v25115_v58, %v25114_v31  ;;  %v10123_v41 = vsel %vm948_vm6, %v25118_v51, %v25117_v52  ;;  %v25120_v53 = vcombine.high %v25115_v58, %v25115_v58  ;;  %v25143_v13 = vld [vmem:[#allocation262_spill] sm:$0xff]  ;;  %v25148_v31 = vld [vmem:[#allocation264_spill] sm:$0xff]  ;;  %v25149_v52 = vld [vmem:[#allocation269_spill] sm:$0xff] }
 0x781   : > { %v25122_v55 = vcombine.high %v25118_v51, %v25118_v51  ;;  %v25124_v14 = vrot.slane %v25123_v4, %v24329_v32  ;;  %v15245_v16 = vcombine.low %v15237_v56, %v15244_v49  ;;  %v15016_v34 = vrot.slane %v15008_v57, %v18134_v37  ;;  %v25145_v49 = vld [vmem:[#allocation261_spill] sm:$0xff] }
 0x782   : > { %v10124_v18 = vsel %vm948_vm6, %v25120_v53, %v25119_v40  ;;  %v15023_v20 = vrot.slane %v15009_v39, %v18134_v37  ;;  %v15246_v27 = vcombine.low %v10122_v26, %v10123_v41  ;;  %v25127_v5 = vrot.slane %v25126_v10, %v24329_v32  ;;  %v25146_v39 = vld [vmem:[#allocation266_spill] sm:$0xff]  ;;  %v25153_v4 = vld [vmem:[#allocation265_spill] sm:$0xff] }
 0x783   : > { %v10125_v0 = vsel %vm948_vm6, %v25122_v55, %v25121_v9  ;;  %v13838_v61 = vsel %vm948_vm6, %v25125_v44, %v25124_v14  ;;  %v25130_v45 = vcombine.high %v25125_v44, %v25125_v44  ;;  %v25132_v1 = vcombine.high %v25128_v6, %v25128_v6  ;;  %15389 = vxpose.xlu1.b32.cont [12/16] (narrow) %v15245_v16, 8  ;;  %v25151_v40 = vld [vmem:[#allocation270_spill] sm:$0xff]  ;;  %v25155_v44 = vld [vmem:[#allocation263_spill] sm:$0xff]  ;;  %v25156_v16 = vld [vmem:[#allocation268_spill] sm:$0xff] }
 0x784   : > { %v15247_v8 = vcombine.low %v10124_v18, %v10125_v0  ;;  %v13839_v25 = vsel %vm948_vm6, %v25128_v6, %v25127_v5  ;;  %v15024_v62 = vcombine.low %v15016_v34, %v15023_v20  ;;  %v15254_v48 = vrot.slane %v15246_v27, %v18134_v37  ;;  %v25158_v20 = vld [vmem:[#allocation267_spill] sm:$0xff]  ;;  %v25161_v6 = vld [vmem:[#allocation273_spill] sm:$0xff] }
 0x785   : > { %v13840_v7 = vsel %vm948_vm6, %v25130_v45, %v25129_v29  ;;  %v13841_v2 = vsel %vm948_vm6, %v25132_v1, %v25131_v22  ;;  %v15025_v54 = vcombine.low %v13838_v61, %v13839_v25  ;;  %v25134_v46 = vrot.slane %v25133_v63, %v24329_v32 }
 0x786   : > { %v15026_v11 = vcombine.low %v13840_v7, %v13841_v2  ;;  %v15261_v43 = vrot.slane %v15247_v8, %v18134_v37  ;;  %v25137_v33 = vrot.slane %v25136_v35, %v24329_v32  ;;  %v25140_v17 = vcombine.high %v25135_v42, %v25135_v42  ;;  %15360 = vxpose.xlu0.b32.cont [15/16] (narrow) %v15024_v62, 8  ;;  %v25159_v8 = vld [vmem:[#allocation271_spill] sm:$0xff] }
 0x787   : > { %v10126_v28 = vsel %vm948_vm6, %v25135_v42, %v25134_v46  ;;  %v15033_v19 = vrot.slane %v15025_v54, %v18134_v37  ;;  %v25142_v56 = vcombine.high %v25138_v3, %v25138_v3  ;;  %v25144_v15 = vrot.slane %v25143_v13, %v24329_v32 }
 0x788   : > { %v10127_v59 = vsel %vm948_vm6, %v25138_v3, %v25137_v33  ;;  %v10128_v24 = vsel %vm948_vm6, %v25140_v17, %v25139_v23  ;;  %v15040_v38 = vrot.slane %v15026_v11, %v18134_v37  ;;  %v15262_v47 = vcombine.low %v15254_v48, %v15261_v43  ;;  %v14594_v11 = vpop.trf.xlu0  ;;  %v14626_v43 = vpop.trf.xlu1 }
 0x789   : > { %v10129_v30 = vsel %vm948_vm6, %v25142_v56, %v25141_v21  ;;  %v15263_v50 = vcombine.low %v10126_v28, %v10127_v59  ;;  %v13866_v57 = vsel %vm948_vm6, %v25145_v49, %v25144_v15  ;;  %v25147_v12 = vrot.slane %v25146_v39, %v24329_v32 }
 0x78a   : > { %v15264_v36 = vcombine.low %v10128_v24, %v10129_v30  ;;  %v15041_v26 = vcombine.low %v15033_v19, %v15040_v38  ;;  %v25150_v51 = vcombine.high %v25145_v49, %v25145_v49  ;;  %v25152_v53 = vcombine.high %v25148_v31, %v25148_v31  ;;  %15390 = vxpose.xlu1.b32.cont [13/16] (narrow) %v15262_v47, 8 }
 0x78b   : > { %v13867_v58 = vsel %vm948_vm6, %v25148_v31, %v25147_v12  ;;  %v15271_v60 = vrot.slane %v15263_v50, %v18134_v37  ;;  %v25154_v14 = vrot.slane %v25153_v4, %v24329_v32  ;;  %v25157_v34 = vrot.slane %v25156_v16, %v24329_v32 }
 0x78c   : > { %v13868_v41 = vsel %vm948_vm6, %v25150_v51, %v25149_v52  ;;  %v13869_v18 = vsel %vm948_vm6, %v25152_v53, %v25151_v40  ;;  %v15278_v9 = vrot.slane %v15264_v36, %v18134_v37  ;;  %v15280_v55 = vcombine.low %v13866_v57, %v13867_v58  ;;  %15361 = vxpose.xlu0.b32.end [16/16] (narrow) %v15041_v26, 8 }
 0x78d   : > { %v15281_v0 = vcombine.low %v13868_v41, %v13869_v18  ;;  %v13870_v61 = vsel %vm948_vm6, %v25155_v44, %v25154_v14  ;;  %v13871_v27 = vsel %vm948_vm6, %v25158_v20, %v25157_v34  ;;  %v25160_v10 = vcombine.high %v25155_v44, %v25155_v44 }
 0x78e   : > { %v25162_v25 = vcombine.high %v25158_v20, %v25158_v20  ;;  %v15279_v45 = vcombine.low %v15271_v60, %v15278_v9  ;;  %v15288_v7 = vrot.slane %v15280_v55, %v18134_v37  ;;  %v15297_v22 = vcombine.low %v13870_v61, %v13871_v27 }
 0x78f   : > { %v13872_v5 = vsel %vm948_vm6, %v25160_v10, %v25159_v8  ;;  %v15295_v32 = vrot.slane %v15281_v0, %v18134_v37  ;;  %v15414_v63 = vcombine.low %v14594_v11, %v14626_v43 }
 0x790   : > { %v13873_v29 = vsel %vm948_vm6, %v25162_v25, %v25161_v6  ;;  %15391 = vxpose.xlu1.b32.cont [14/16] (narrow) %v15279_v45, 8  ;;  %v15305_v62 = vrot.slane %v15297_v22, %v18134_v37 }
 0x791   : > { %v15298_v1 = vcombine.low %v13872_v5, %v13873_v29  ;;  %v15296_v2 = vcombine.low %v15288_v7, %v15295_v32  ;;  %15418 = vst [vmem:[%s412_s22] sm:$0xff] %v15414_v63 }
 0x793   : > { %v15312_v48 = vrot.slane %v15298_v1, %v18134_v37 }
 0x794   : > { %15392 = vxpose.xlu1.b32.cont [15/16] (narrow) %v15296_v2, 8 }
 0x795   : > { %v15313_v54 = vcombine.low %v15305_v62, %v15312_v48 }
 0x798   : > { %15393 = vxpose.xlu1.b32.end [16/16] (narrow) %v15313_v54, 8  ;;  %v15459_v35 = vld [vmem:[%s412_s22] sm:$0xff] (%p18019_p4) }
 0x799   : > { %15460 = vst [vmem:[%s15429_s25] sm:$0xff] (%p18019_p4), %v15459_v35 }
 0x7d0   : > { %v15362_v46 = vpop.trf.xlu0 }
 0x7d9   : > { %15426 = sbr.rel (!%p18019_p4) target bundleno = 2024 (0x7e8), region = 60 }
 0x7dc   : > { %v15394_v42 = vpop.trf.xlu1 }
 0x7dd   : > { %v15415_v28 = vcombine.low %v15362_v46, %v15394_v42 }
 0x7df   : > { %15419 = vst [vmem:[%s412_s22 + $0x8] sm:$0xff] %v15415_v28 }
 0x7e6   : > { %v15461_v37 = vld [vmem:[%s412_s22 + $0x8] sm:$0xff] }
 0x7e7   : > { %15462 = vst [vmem:[%s15429_s25 + $0x10] sm:$0xff] %v15461_v37 }
 0x7e8 PF: > { %p16_p8 = scmp.ge.s32.totalorder %s18009_s13, 4   ;;  %s25163_s30 = smov %s17933_s10 }
 0x7e9   : > { %s25164_s10 = smov %s18017_s16  ;;  %s25165_s11 = smov %s18009_s13 }
 0x7ea   :  { %18 = sbr.rel (!%p16_p8) target bundleno = 2 (0x2), region = 145 }

</bundles_post_ra>
